<compile_context>
chip_gen: v6e
topology: v6e:2x2x1
jax: 0.10.0
libtpu: 0.0.40
codegen_flags: <defaults>
</compile_context>

<pallas_src>
import math

import jax
import jax.numpy as jnp
from jax.experimental import pallas as pl
from jax.experimental.pallas import tpu as pltpu

_F32 = jnp.float32
_BF16 = jnp.bfloat16
_EPS_PCN = 1e-5   # PointCN InstanceNorm2d (torch default eps)
_EPS_OA = 1e-3    # OAFilter / diff_pool / diff_unpool InstanceNorm2d eps


# -----------------------------------------------------------------------------
# small in-kernel helpers
# -----------------------------------------------------------------------------
def _in_affine_relu(v, scale, shift, eps):
    """InstanceNorm over spatial axis 0 + folded eval-mode BN affine + ReLU (fp32).

    Perf review: single-pass variance (mean(v*v) - mu^2) and BN scale folded into
    the rsqrt, so the hot N x C path is one mul + one add + one max.
    """
    mu = jnp.mean(v, axis=0, keepdims=True)
    var = jnp.maximum(jnp.mean(v * v, axis=0, keepdims=True) - mu * mu, 0.0)
    inv = jax.lax.rsqrt(var + eps) * scale
    return jnp.maximum(v * inv + (shift - mu * inv), 0.0)


def _dot(a, w_bf16):
    """MXU matmul: bf16 operands (weights pre-cast), fp32 accumulation."""
    return jnp.dot(a.astype(_BF16), w_bf16, preferred_element_type=_F32)


def _batched_spec(shape):
    nd = len(shape)
    return pl.BlockSpec((1,) + tuple(shape[1:]),
                        lambda b, _nd=nd: (b,) + (0,) * (_nd - 1))


def _shared_spec(arr):
    nd = arr.ndim
    return pl.BlockSpec(arr.shape, lambda b, _nd=nd: (0,) * _nd)


def _nbytes(shape, dtype):
    return int(math.prod(shape)) * jnp.dtype(dtype).itemsize


def _compiler_params(act_blocks, shared_arrays):
    """Explicit VMEM budget (perf review): double-buffered per-grid-step blocks +
    shared params + slack, clamped into [32 MiB, 56 MiB] (above v5e's 16 MiB scoped
    default, below v7x's 64 MiB physical)."""
    est = 8 << 20                                   # slack for in-kernel intermediates
    for shape, dtype in act_blocks:
        est += 2 * _nbytes(shape, dtype)            # Pallas double-buffers each block
    for a in shared_arrays:
        est += 2 * _nbytes(a.shape, a.dtype)
    est = max(32 << 20, min(est, 56 << 20))
    return pltpu.CompilerParams(
        # TODO(synk): for B==1 deployments on v7x add a second parallel grid axis
        # (tile N with a two-pass InstanceNorm) so the second TensorCore is used.
        dimension_semantics=("parallel",),
        vmem_limit_bytes=int(est),
    )


# -----------------------------------------------------------------------------
# stage A: conv1 + l1_1 PointCN stack + diff_pool (one pallas_call)
# -----------------------------------------------------------------------------
def stage_a_l11_pool(x_raw, p):
    """x_raw: (B, N, Cin) fp32 -> x1_1 (B, N, C) bf16, x_down (B, K, C) fp32."""
    B, N, Cin = x_raw.shape
    w0, b0 = p["conv1_W"], p["conv1_b"]
    C = w0.shape[1]
    L = p["l11_W1"].shape[0]
    K = p["down_W"].shape[1]

    inputs = [x_raw, w0, b0,
              p["l11_s1"], p["l11_sh1"], p["l11_W1"],
              p["l11_s2"], p["l11_sh2"], p["l11_W2"], p["l11_b2"],
              p["down_s"], p["down_sh"], p["down_W"], p["down_b"]]

    def kernel(x_ref, w0_r, b0_r,
               s1_r, sh1_r, w1_r, s2_r, sh2_r, w2_r, b2_r,
               dps_r, dpsh_r, dpw_r, dpb_r,
               x11_ref, xd_ref):
        # module conv1 fused in (b0 kept: it reaches the residual path)
        h = _dot(x_ref[0], w0_r[...]) + b0_r[...]                     # (N, C)
        # l1_1 PointCN stack, VMEM-resident, statically unrolled layer loop
        for l in range(L):
            t = _dot(_in_affine_relu(h, s1_r[l], sh1_r[l], _EPS_PCN), w1_r[l])
            # stage-1 conv bias dropped: channel-constant bias is cancelled exactly
            # by the following InstanceNorm (perf review).
            h = h + _dot(_in_affine_relu(t, s2_r[l], sh2_r[l], _EPS_PCN), w2_r[l]) \
                  + b2_r[l]
        x11_ref[0] = h.astype(_BF16)              # bf16 inter-stage activation
        # diff_pool: embed conv -> softmax over points (axis 0) -> S^T @ x1_1
        e = _dot(_in_affine_relu(h, dps_r[...], dpsh_r[...], _EPS_OA),
                 dpw_r[...]) + dpb_r[...]                             # (N, K)
        m = jnp.max(e, axis=0, keepdims=True)
        pe = jnp.exp(e - m)
        smat = pe * (1.0 / jnp.sum(pe, axis=0, keepdims=True))        # (N, K)
        # TODO(synk): at production cluster counts, transpose S and use a canonical
        # bf16 (K,N)@(N,C) matmul; at K=8 this fp32 (0,0)-contraction is negligible.
        xd_ref[0] = jax.lax.dot_general(
            smat, h, dimension_numbers=(((0,), (0,)), ((), ())),
            preferred_element_type=_F32)

    in_specs = [_batched_spec(x_raw.shape)] + [_shared_spec(a) for a in inputs[1:]]
    out_shape = (jax.ShapeDtypeStruct((B, N, C), _BF16),
                 jax.ShapeDtypeStruct((B, K, C), _F32))
    out_specs = (_batched_spec((B, N, C)), _batched_spec((B, K, C)))
    cp = _compiler_params(
        [((1, N, Cin), _F32), ((1, N, C), _BF16), ((1, K, C), _F32)], inputs[1:])
    return pl.pallas_call(kernel, out_shape=out_shape, grid=(B,),
                          in_specs=in_specs, out_specs=out_specs,
                          compiler_params=cp)(*inputs)


# -----------------------------------------------------------------------------
# stage B: the full l2 OAFilter stack (one pallas_call)
# -----------------------------------------------------------------------------
def stage_b_oafilters(x_down, p):
    """x_down: (B, K, C) fp32 -> (B, K, C) fp32."""
    B, K, C = x_down.shape
    L = p["l2_W1"].shape[0]
    inputs = [x_down,
              p["l2_s1"], p["l2_sh1"], p["l2_W1"], p["l2_b1"],
              p["l2_s2"], p["l2_sh2"], p["l2_W2t"], p["l2_b2"],
              p["l2_s3"], p["l2_sh3"], p["l2_W3"], p["l2_b3"]]

    def kernel(x_ref, s1_r, sh1_r, w1_r, b1_r, s2_r, sh2_r, w2t_r, b2_r,
               s3_r, sh3_r, w3_r, b3_r, o_ref):
        h = x_ref[0]                                                   # (K, C) fp32
        for l in range(L):
            x_in = h
            # conv1: IN(1e-3) -> BN -> ReLU -> Conv(C->C); the trailing trans(1,2)
            # is a pure reinterpretation of the (K, C) VMEM tile (no data movement).
            t = _dot(_in_affine_relu(x_in, s1_r[l], sh1_r[l], _EPS_OA),
                     w1_r[l]) + b1_r[l]
            # conv2 ("channels" = K now): BN(K) -> ReLU -> Conv(K->K) as left-matmul.
            a2 = jnp.maximum(t * s2_r[l] + sh2_r[l], 0.0)              # s2: (K, 1)
            t = t + (jnp.dot(w2t_r[l], a2.astype(_BF16),
                             preferred_element_type=_F32) + b2_r[l])
            # conv3: (implicit trans back) IN(1e-3) -> BN -> ReLU -> Conv(C->C)
            t3 = _dot(_in_affine_relu(t, s3_r[l], sh3_r[l], _EPS_OA),
                      w3_r[l]) + b3_r[l]
            h = t3 + x_in                                              # outer residual
        o_ref[0] = h

    in_specs = [_batched_spec(x_down.shape)] + [_shared_spec(a) for a in inputs[1:]]
    cp = _compiler_params([((1, K, C), _F32), ((1, K, C), _F32)], inputs[1:])
    return pl.pallas_call(kernel,
                          out_shape=jax.ShapeDtypeStruct((B, K, C), _F32),
                          grid=(B,),
                          in_specs=in_specs,
                          out_specs=_batched_spec((B, K, C)),
                          compiler_params=cp)(*inputs)


# -----------------------------------------------------------------------------
# stage C: diff_unpool + l1_2 PointCN stack + logits head (one pallas_call)
# -----------------------------------------------------------------------------
def stage_c_unpool_l12_head(x1_1, x2f, p):
    """x1_1: (B, N, C) bf16, x2f: (B, K, C) fp32 ->
       out (B, N, C) fp32 and lane-dense logits (B, 1, N) fp32."""
    B, N, C = x1_1.shape
    K = x2f.shape[1]
    f = p["l12_first"]
    has_rest = "l12_W1" in p
    Lr = p["l12_W1"].shape[0] if has_rest else 0

    inputs = [x1_1, x2f,
              p["up_s"], p["up_sh"], p["up_W"], p["up_b"],
              f["s1a"], f["sh1a"], f["W1a"],
              f["s1b"], f["sh1b"], f["W1b"],
              f["s2"], f["sh2"], f["W2"], f["b2"],
              f["Wsca"], f["Wscb"], f["bsc"]]
    if has_rest:
        inputs += [p["l12_s1"], p["l12_sh1"], p["l12_W1"],
                   p["l12_s2"], p["l12_sh2"], p["l12_W2"], p["l12_b2"]]
    inputs += [p["out_Wrow"], p["out_b"]]

    def kernel(*refs):
        out_ref, lg_ref = refs[-2], refs[-1]
        it = iter(refs[:-2])
        x11_ref, xd_ref = next(it), next(it)
        us_r, ush_r, uw_r, ub_r = next(it), next(it), next(it), next(it)
        fs1a, fsh1a, fw1a = next(it), next(it), next(it)
        fs1b, fsh1b, fw1b = next(it), next(it), next(it)
        fs2, fsh2, fw2, fb2 = next(it), next(it), next(it), next(it)
        fwsca, fwscb, fbsc = next(it), next(it), next(it)
        if has_rest:
            rs1, rsh1, rw1, rs2, rsh2, rw2, rb2 = [next(it) for _ in range(7)]
        wout_r, bout_r = next(it), next(it)

        x11_bf = x11_ref[0]                 # (N, C) bf16; reused for shortcut matmul
        x11 = x11_bf.astype(_F32)           # fp32 for norm statistics
        xd = xd_ref[0]                      # (K, C) fp32

        # diff_unpool: embed conv on x1_1, softmax over clusters (axis 1), S @ x_down
        e = _dot(_in_affine_relu(x11, us_r[...], ush_r[...], _EPS_OA),
                 uw_r[...]) + ub_r[...]                                 # (N, K)
        m = jnp.max(e, axis=1, keepdims=True)
        pe = jnp.exp(e - m)
        smat = pe * (1.0 / jnp.sum(pe, axis=1, keepdims=True))          # (N, K)
        x_up = jnp.dot(smat.astype(_BF16), xd.astype(_BF16),
                       preferred_element_type=_F32)                     # (N, C)
        x_up_bf = x_up.astype(_BF16)

        # l1_2[0]: PointCN(2C -> C) on concat([x1_1, x_up], channel).  The concat is
        # never materialized: weights/affines are pre-split per half (InstanceNorm is
        # per-channel, so the concat's statistics equal each half's statistics).
        # TODO(synk): at production C=128 on v6e/v7x, materialize the (N, 2C) concat
        # in VMEM and use a single 256-wide-contraction matmul to fill the MXU.
        h = (_dot(_in_affine_relu(x11, fs1a[...], fsh1a[...], _EPS_PCN), fw1a[...]) +
             _dot(_in_affine_relu(x_up, fs1b[...], fsh1b[...], _EPS_PCN), fw1b[...]))
        h = _dot(_in_affine_relu(h, fs2[...], fsh2[...], _EPS_PCN), fw2[...]) + fb2[...]
        h = h + (_dot(x11_bf, fwsca[...]) + _dot(x_up_bf, fwscb[...]) + fbsc[...])

        # remaining l1_2 PointCN(C) layers, VMEM-resident
        if has_rest:
            for l in range(Lr):
                t = _dot(_in_affine_relu(h, rs1[l], rsh1[l], _EPS_PCN), rw1[l])
                h = h + _dot(_in_affine_relu(t, rs2[l], rsh2[l], _EPS_PCN), rw2[l]) \
                      + rb2[l]

        out_ref[0] = h
        # output head fused: lane-dense logits (1, N) = Wout_row (1, C) . h^T
        lg = jax.lax.dot_general(wout_r[...], h.astype(_BF16),
                                 dimension_numbers=(((1,), (1,)), ((), ())),
                                 preferred_element_type=_F32)
        lg_ref[0] = lg + bout_r[...]

    in_specs = ([_batched_spec(x1_1.shape), _batched_spec(x2f.shape)] +
                [_shared_spec(a) for a in inputs[2:]])
    out_shape = (jax.ShapeDtypeStruct((B, N, C), _F32),
                 jax.ShapeDtypeStruct((B, 1, N), _F32))
    out_specs = (_batched_spec((B, N, C)), _batched_spec((B, 1, N)))
    cp = _compiler_params(
        [((1, N, C), _BF16), ((1, K, C), _F32), ((1, N, C), _F32), ((1, 1, N), _F32)],
        inputs[2:])
    return pl.pallas_call(kernel, out_shape=out_shape, grid=(B,),
                          in_specs=in_specs, out_specs=out_specs,
                          compiler_params=cp)(*inputs)


# -----------------------------------------------------------------------------
# Kabsch (plain JAX: SVD has no Pallas equivalent)
# -----------------------------------------------------------------------------
def kabsch_transformation_estimation(x1, x2, weights):
    """Weighted Kabsch solver.  x1, x2: (B, N, 3); weights: (B, N)."""
    # TODO(synk): exact reference impl of kabsch_transformation_estimation was not
    # provided with the module; this is the standard weighted Kabsch solver.
    eps = 1e-8
    w = weights / (jnp.sum(weights, axis=1, keepdims=True) + eps)        # (B, N)
    mu1 = jnp.sum(w[..., None] * x1, axis=1)                             # (B, 3)
    mu2 = jnp.sum(w[..., None] * x2, axis=1)                             # (B, 3)
    x1c = x1 - mu1[:, None, :]
    x2c = x2 - mu2[:, None, :]
    cov = jnp.einsum("bnc,bnd->bcd", x1c * w[..., None], x2c)            # (B, 3, 3)
    U, _, Vt = jnp.linalg.svd(cov)
    V = jnp.transpose(Vt, (0, 2, 1))
    Ut = jnp.transpose(U, (0, 2, 1))
    d = jnp.sign(jnp.linalg.det(jnp.matmul(V, Ut)))
    B = x1.shape[0]
    E = jnp.tile(jnp.eye(3, dtype=_F32)[None], (B, 1, 1))
    E = E.at[:, 2, 2].set(d)
    R = jnp.matmul(jnp.matmul(V, E), Ut)                                  # maps x1 -> x2
    t = mu2[:, :, None] - jnp.matmul(R, mu1[:, :, None])                  # (B, 3, 1)
    x1t = jnp.einsum("bij,bnj->bni", R, x1) + t[:, :, 0][:, None, :]
    residuals = jnp.sqrt(jnp.sum(w * jnp.sum((x1t - x2) ** 2, axis=-1), axis=1))
    gradient_not_valid = jnp.any(jnp.isnan(R)) | jnp.any(jnp.isinf(R))
    return R, t, residuals, gradient_not_valid


# -----------------------------------------------------------------------------
# full OANBlock forward
# -----------------------------------------------------------------------------
def oanblock_forward(params, data, xs):
    """data: (B, input_channel, N, 1) NCHW; xs: (B, 1, N, 6)."""
    x_raw = jnp.transpose(data[..., 0], (0, 2, 1))                # (B, N, Cin)

    x1_1, x_down = stage_a_l11_pool(x_raw, params)                # bf16 / fp32
    x2f = stage_b_oafilters(x_down, params)                       # (B, K, C)
    out, logits3 = stage_c_unpool_l12_head(x1_1, x2f, params)     # (B,N,C), (B,1,N)

    logits = logits3[:, 0, :]                                      # (B, N)
    weights = jnp.maximum(jnp.tanh(logits), 0.0)
    # NOTE: the torch reference applies a GLOBAL guard (if ANY sample's weights sum
    # to zero, 1/N is added to every weight of every sample); kept verbatim.
    weights = jnp.where(jnp.any(jnp.sum(weights, axis=1) == 0.0),
                        weights + 1.0 / weights.shape[1], weights)

    x1 = xs[:, 0, :, :3]
    x2c = xs[:, 0, :, 3:]
    rotation_est, translation_est, residuals, gradient_not_valid = (
        kabsch_transformation_estimation(x1, x2c, weights))

    out_nchw = jnp.transpose(out, (0, 2, 1))[..., None]            # torch (B, C, N, 1)
    return (logits, weights, rotation_est, translation_est, residuals,
            out_nchw, gradient_not_valid)


# -----------------------------------------------------------------------------
# Deterministic, kernel-ready parameter initialization
# -----------------------------------------------------------------------------
class _KeyGen:
    def __init__(self, key):
        self.key = key

    def __call__(self):
        self.key, sub = jax.random.split(self.key)
        return sub


def init_params(key, net_channels, input_channel, depth, clusters):
    """Kernel-ready params: (cin, cout) conv weights pre-cast to bf16, fp32 biases as
    (1, cout) rows, eval-mode BatchNorm folded into per-channel scale/shift rows,
    per-layer params stacked along a leading layer axis, the 2C concat layer's
    weights pre-split, and dead PointCN stage-1 biases dropped."""
    kg = _KeyGen(key)
    C, K, L = net_channels, clusters, depth // 2

    def conv_w(cin, cout):
        bound = 1.0 / math.sqrt(cin)
        w = jax.random.uniform(kg(), (cin, cout), _F32, -bound, bound)
        b = jax.random.uniform(kg(), (cout,), _F32, -bound, bound)
        return w.astype(_BF16), b.reshape(1, cout)

    def bn_fold(c, eps=1e-5):
        # eval-mode BatchNorm2d with default stats: gamma=1, beta=0, mean=0, var=1
        gamma = jnp.ones((1, c), _F32)
        beta = jnp.zeros((1, c), _F32)
        rmean = jnp.zeros((1, c), _F32)
        rvar = jnp.ones((1, c), _F32)
        scale = gamma * jax.lax.rsqrt(rvar + eps)
        return scale, beta - rmean * scale

    def stack(layers):
        return [jnp.stack(t) for t in zip(*layers)]

    def pointcn_cc():
        s1, sh1 = bn_fold(C)
        w1, _b1_dead = conv_w(C, C)   # stage-1 bias cancelled by following InstanceNorm
        s2, sh2 = bn_fold(C)
        w2, b2 = conv_w(C, C)
        return s1, sh1, w1, s2, sh2, w2, b2

    p = {}
    p["conv1_W"], p["conv1_b"] = conv_w(input_channel, C)

    (p["l11_s1"], p["l11_sh1"], p["l11_W1"],
     p["l11_s2"], p["l11_sh2"], p["l11_W2"], p["l11_b2"]) = stack(
        [pointcn_cc() for _ in range(L)])

    p["down_s"], p["down_sh"] = bn_fold(C)
    p["down_W"], p["down_b"] = conv_w(C, K)

    def oafilter():
        s1, sh1 = bn_fold(C)
        w1, b1 = conv_w(C, C)
        s2, sh2 = bn_fold(K)
        w2, b2 = conv_w(K, K)
        s3, sh3 = bn_fold(C)
        w3, b3 = conv_w(C, C)
        return (s1, sh1, w1, b1,
                s2.reshape(K, 1), sh2.reshape(K, 1),
                jnp.transpose(w2), b2.reshape(K, 1),   # (out,in) layout: left-matmul
                s3, sh3, w3, b3)

    (p["l2_s1"], p["l2_sh1"], p["l2_W1"], p["l2_b1"],
     p["l2_s2"], p["l2_sh2"], p["l2_W2t"], p["l2_b2"],
     p["l2_s3"], p["l2_sh3"], p["l2_W3"], p["l2_b3"]) = stack(
        [oafilter() for _ in range(L)])

    p["up_s"], p["up_sh"] = bn_fold(C)
    p["up_W"], p["up_b"] = conv_w(C, K)

    # l1_2[0]: PointCN(2C -> C) over concat([x1_1, x_up]); weights/affines pre-split.
    s1, sh1 = bn_fold(2 * C)
    w1, _b1_dead = conv_w(2 * C, C)
    s2, sh2 = bn_fold(C)
    w2, b2 = conv_w(C, C)
    wsc, bsc = conv_w(2 * C, C)
    p["l12_first"] = {
        "s1a": s1[:, :C], "sh1a": sh1[:, :C], "W1a": w1[:C],
        "s1b": s1[:, C:], "sh1b": sh1[:, C:], "W1b": w1[C:],
        "s2": s2, "sh2": sh2, "W2": w2, "b2": b2,
        "Wsca": wsc[:C], "Wscb": wsc[C:], "bsc": bsc,
    }
    rest = [pointcn_cc() for _ in range(L - 1)]
    if rest:
        (p["l12_s1"], p["l12_sh1"], p["l12_W1"],
         p["l12_s2"], p["l12_sh2"], p["l12_W2"], p["l12_b2"]) = stack(rest)

    wout, bout = conv_w(C, 1)
    p["out_Wrow"] = jnp.transpose(wout)   # (1, C) bf16 row -> lane-dense logits (B,1,N)
    p["out_b"] = bout                     # (1, 1) fp32
    return p


# -----------------------------------------------------------------------------
if __name__ == "__main__":
    B, N = 2, 64
    input_channel = 6
    net_channels = 32
    depth = 4
    clusters = 8

    key = jax.random.PRNGKey(0)
    kd, kx, kp = jax.random.split(key, 3)

    data = jax.random.normal(kd, (B, input_channel, N, 1), jnp.float32)
    xs = jax.random.normal(kx, (B, 1, N, 6), jnp.float32)
    params = init_params(kp, net_channels, input_channel, depth, clusters)

    fwd = jax.jit(oanblock_forward)
    outs = jax.block_until_ready(fwd(params, data, xs))

    logits, weights, R, t, residuals, out_feat, grad_not_valid = outs
    assert logits.shape == (B, N)
    assert weights.shape == (B, N)
    assert R.shape == (B, 3, 3)
    assert t.shape == (B, 3, 1)
    assert residuals.shape == (B,)
    assert out_feat.shape == (B, net_channels, N, 1)
    assert bool(jnp.all(jnp.isfinite(logits)))
    assert bool(jnp.all(jnp.isfinite(out_feat)))
    print("KERNEL_OK")
</pallas_src>

<mosaic_0001>
module attributes {stable_mosaic.version = 11 : i64} {
  func.func @kernel(%arg0: i32, %arg1: memref<1x64x6xf32, #tpu.memory_space<vmem>>, %arg2: memref<6x32xbf16, #tpu.memory_space<vmem>>, %arg3: memref<1x32xf32, #tpu.memory_space<vmem>>, %arg4: memref<2x1x32xf32, #tpu.memory_space<vmem>>, %arg5: memref<2x1x32xf32, #tpu.memory_space<vmem>>, %arg6: memref<2x32x32xbf16, #tpu.memory_space<vmem>>, %arg7: memref<2x1x32xf32, #tpu.memory_space<vmem>>, %arg8: memref<2x1x32xf32, #tpu.memory_space<vmem>>, %arg9: memref<2x32x32xbf16, #tpu.memory_space<vmem>>, %arg10: memref<2x1x32xf32, #tpu.memory_space<vmem>>, %arg11: memref<1x32xf32, #tpu.memory_space<vmem>>, %arg12: memref<1x32xf32, #tpu.memory_space<vmem>>, %arg13: memref<32x8xbf16, #tpu.memory_space<vmem>>, %arg14: memref<1x8xf32, #tpu.memory_space<vmem>>, %arg15: memref<1x64x32xbf16, #tpu.memory_space<vmem>>, %arg16: memref<1x8x32xf32, #tpu.memory_space<vmem>>) attributes {dimension_semantics = [#tpu.dimension_semantics<parallel>], iteration_bounds = array<i64: 2>, scalar_prefetch = 0 : i64, scratch_operands = 0 : i64, tpu.core_type = #tpu.core_type<tc>, window_params = [{transform_indices = @transform_0, window_bounds = array<i64: 1, 64, 6>}, {pipeline_mode = #tpu.pipeline_mode<synchronous>, transform_indices = @transform_1, window_bounds = array<i64: 6, 32>}, {pipeline_mode = #tpu.pipeline_mode<synchronous>, transform_indices = @transform_2, window_bounds = array<i64: 1, 32>}, {pipeline_mode = #tpu.pipeline_mode<synchronous>, transform_indices = @transform_3, window_bounds = array<i64: 2, 1, 32>}, {pipeline_mode = #tpu.pipeline_mode<synchronous>, transform_indices = @transform_4, window_bounds = array<i64: 2, 1, 32>}, {pipeline_mode = #tpu.pipeline_mode<synchronous>, transform_indices = @transform_5, window_bounds = array<i64: 2, 32, 32>}, {pipeline_mode = #tpu.pipeline_mode<synchronous>, transform_indices = @transform_6, window_bounds = array<i64: 2, 1, 32>}, {pipeline_mode = #tpu.pipeline_mode<synchronous>, transform_indices = @transform_7, window_bounds = array<i64: 2, 1, 32>}, {pipeline_mode = #tpu.pipeline_mode<synchronous>, transform_indices = @transform_8, window_bounds = array<i64: 2, 32, 32>}, {pipeline_mode = #tpu.pipeline_mode<synchronous>, transform_indices = @transform_9, window_bounds = array<i64: 2, 1, 32>}, {pipeline_mode = #tpu.pipeline_mode<synchronous>, transform_indices = @transform_10, window_bounds = array<i64: 1, 32>}, {pipeline_mode = #tpu.pipeline_mode<synchronous>, transform_indices = @transform_11, window_bounds = array<i64: 1, 32>}, {pipeline_mode = #tpu.pipeline_mode<synchronous>, transform_indices = @transform_12, window_bounds = array<i64: 32, 8>}, {pipeline_mode = #tpu.pipeline_mode<synchronous>, transform_indices = @transform_13, window_bounds = array<i64: 1, 8>}, {transform_indices = @transform_14, window_bounds = array<i64: 1, 64, 32>}, {transform_indices = @transform_15, window_bounds = array<i64: 1, 8, 32>}]} {
    %c0 = arith.constant 0 : index
    %c0_0 = arith.constant 0 : index
    %c0_1 = arith.constant 0 : index
    %0 = vector.load %arg1[%c0, %c0_0, %c0_1] : memref<1x64x6xf32, #tpu.memory_space<vmem>>, vector<1x64x6xf32>
    %1 = vector.shape_cast %0 : vector<1x64x6xf32> to vector<64x6xf32>
    %c0_2 = arith.constant 0 : index
    %c0_3 = arith.constant 0 : index
    %2 = vector.load %arg2[%c0_2, %c0_3] : memref<6x32xbf16, #tpu.memory_space<vmem>>, vector<6x32xbf16>
    %3 = arith.truncf %1 : vector<64x6xf32> to vector<64x6xbf16>
    %cst = arith.constant dense<0.000000e+00> : vector<64x32xf32>
    %4 = tpu.matmul %3, %2, %cst {dimension_numbers = #tpu.dot_dimension_numbers<[1], [0], [0], [1], [0, 0, 1, 1], [], []>} : vector<64x6xbf16>, vector<6x32xbf16>, vector<64x32xf32> -> vector<64x32xf32>
    %c0_4 = arith.constant 0 : index
    %c0_5 = arith.constant 0 : index
    %5 = vector.load %arg3[%c0_4, %c0_5] : memref<1x32xf32, #tpu.memory_space<vmem>>, vector<1x32xf32>
    %6 = vector.broadcast %5 : vector<1x32xf32> to vector<64x32xf32>
    %7 = arith.addf %4, %6 : vector<64x32xf32>
    %c0_6 = arith.constant 0 : index
    %c0_7 = arith.constant 0 : index
    %c0_8 = arith.constant 0 : index
    %8 = vector.load %arg4[%c0_6, %c0_7, %c0_8] : memref<2x1x32xf32, #tpu.memory_space<vmem>>, vector<1x1x32xf32>
    %9 = vector.shape_cast %8 : vector<1x1x32xf32> to vector<1x32xf32>
    %c0_9 = arith.constant 0 : index
    %c0_10 = arith.constant 0 : index
    %c0_11 = arith.constant 0 : index
    %10 = vector.load %arg5[%c0_9, %c0_10, %c0_11] : memref<2x1x32xf32, #tpu.memory_space<vmem>>, vector<1x1x32xf32>
    %11 = vector.shape_cast %10 : vector<1x1x32xf32> to vector<1x32xf32>
    %cst_12 = arith.constant dense<0.000000e+00> : vector<32xf32>
    %12 = vector.multi_reduction <add>, %7, %cst_12 [0] : vector<64x32xf32> to vector<32xf32>
    %13 = vector.shape_cast %12 : vector<32xf32> to vector<1x32xf32>
    %cst_13 = arith.constant 6.400000e+01 : f32
    %14 = vector.broadcast %cst_13 : f32 to vector<1x32xf32>
    %15 = arith.divf %13, %14 : vector<1x32xf32>
    %16 = arith.mulf %7, %7 : vector<64x32xf32>
    %cst_14 = arith.constant dense<0.000000e+00> : vector<32xf32>
    %17 = vector.multi_reduction <add>, %16, %cst_14 [0] : vector<64x32xf32> to vector<32xf32>
    %18 = vector.shape_cast %17 : vector<32xf32> to vector<1x32xf32>
    %cst_15 = arith.constant 6.400000e+01 : f32
    %19 = vector.broadcast %cst_15 : f32 to vector<1x32xf32>
    %20 = arith.divf %18, %19 : vector<1x32xf32>
    %21 = arith.mulf %15, %15 : vector<1x32xf32>
    %22 = arith.subf %20, %21 : vector<1x32xf32>
    %cst_16 = arith.constant 0.000000e+00 : f32
    %23 = vector.broadcast %cst_16 : f32 to vector<1x32xf32>
    %24 = arith.maximumf %22, %23 : vector<1x32xf32>
    %cst_17 = arith.constant 9.99999974E-6 : f32
    %25 = vector.broadcast %cst_17 : f32 to vector<1x32xf32>
    %26 = arith.addf %24, %25 : vector<1x32xf32>
    %27 = math.rsqrt %26 : vector<1x32xf32>
    %28 = arith.mulf %27, %9 : vector<1x32xf32>
    %29 = vector.broadcast %28 : vector<1x32xf32> to vector<64x32xf32>
    %30 = arith.mulf %7, %29 : vector<64x32xf32>
    %31 = arith.mulf %15, %28 : vector<1x32xf32>
    %32 = arith.subf %11, %31 : vector<1x32xf32>
    %33 = vector.broadcast %32 : vector<1x32xf32> to vector<64x32xf32>
    %34 = arith.addf %30, %33 : vector<64x32xf32>
    %cst_18 = arith.constant 0.000000e+00 : f32
    %35 = vector.broadcast %cst_18 : f32 to vector<64x32xf32>
    %36 = arith.maximumf %34, %35 : vector<64x32xf32>
    %c0_19 = arith.constant 0 : index
    %c0_20 = arith.constant 0 : index
    %c0_21 = arith.constant 0 : index
    %37 = vector.load %arg6[%c0_19, %c0_20, %c0_21] : memref<2x32x32xbf16, #tpu.memory_space<vmem>>, vector<1x32x32xbf16>
    %38 = vector.shape_cast %37 : vector<1x32x32xbf16> to vector<32x32xbf16>
    %39 = arith.truncf %36 : vector<64x32xf32> to vector<64x32xbf16>
    %cst_22 = arith.constant dense<0.000000e+00> : vector<64x32xf32>
    %40 = tpu.matmul %39, %38, %cst_22 {dimension_numbers = #tpu.dot_dimension_numbers<[1], [0], [0], [1], [0, 0, 1, 1], [], []>} : vector<64x32xbf16>, vector<32x32xbf16>, vector<64x32xf32> -> vector<64x32xf32>
    %c0_23 = arith.constant 0 : index
    %c0_24 = arith.constant 0 : index
    %c0_25 = arith.constant 0 : index
    %41 = vector.load %arg7[%c0_23, %c0_24, %c0_25] : memref<2x1x32xf32, #tpu.memory_space<vmem>>, vector<1x1x32xf32>
    %42 = vector.shape_cast %41 : vector<1x1x32xf32> to vector<1x32xf32>
    %c0_26 = arith.constant 0 : index
    %c0_27 = arith.constant 0 : index
    %c0_28 = arith.constant 0 : index
    %43 = vector.load %arg8[%c0_26, %c0_27, %c0_28] : memref<2x1x32xf32, #tpu.memory_space<vmem>>, vector<1x1x32xf32>
    %44 = vector.shape_cast %43 : vector<1x1x32xf32> to vector<1x32xf32>
    %cst_29 = arith.constant dense<0.000000e+00> : vector<32xf32>
    %45 = vector.multi_reduction <add>, %40, %cst_29 [0] : vector<64x32xf32> to vector<32xf32>
    %46 = vector.shape_cast %45 : vector<32xf32> to vector<1x32xf32>
    %cst_30 = arith.constant 6.400000e+01 : f32
    %47 = vector.broadcast %cst_30 : f32 to vector<1x32xf32>
    %48 = arith.divf %46, %47 : vector<1x32xf32>
    %49 = arith.mulf %40, %40 : vector<64x32xf32>
    %cst_31 = arith.constant dense<0.000000e+00> : vector<32xf32>
    %50 = vector.multi_reduction <add>, %49, %cst_31 [0] : vector<64x32xf32> to vector<32xf32>
    %51 = vector.shape_cast %50 : vector<32xf32> to vector<1x32xf32>
    %cst_32 = arith.constant 6.400000e+01 : f32
    %52 = vector.broadcast %cst_32 : f32 to vector<1x32xf32>
    %53 = arith.divf %51, %52 : vector<1x32xf32>
    %54 = arith.mulf %48, %48 : vector<1x32xf32>
    %55 = arith.subf %53, %54 : vector<1x32xf32>
    %cst_33 = arith.constant 0.000000e+00 : f32
    %56 = vector.broadcast %cst_33 : f32 to vector<1x32xf32>
    %57 = arith.maximumf %55, %56 : vector<1x32xf32>
    %cst_34 = arith.constant 9.99999974E-6 : f32
    %58 = vector.broadcast %cst_34 : f32 to vector<1x32xf32>
    %59 = arith.addf %57, %58 : vector<1x32xf32>
    %60 = math.rsqrt %59 : vector<1x32xf32>
    %61 = arith.mulf %60, %42 : vector<1x32xf32>
    %62 = vector.broadcast %61 : vector<1x32xf32> to vector<64x32xf32>
    %63 = arith.mulf %40, %62 : vector<64x32xf32>
    %64 = arith.mulf %48, %61 : vector<1x32xf32>
    %65 = arith.subf %44, %64 : vector<1x32xf32>
    %66 = vector.broadcast %65 : vector<1x32xf32> to vector<64x32xf32>
    %67 = arith.addf %63, %66 : vector<64x32xf32>
    %cst_35 = arith.constant 0.000000e+00 : f32
    %68 = vector.broadcast %cst_35 : f32 to vector<64x32xf32>
    %69 = arith.maximumf %67, %68 : vector<64x32xf32>
    %c0_36 = arith.constant 0 : index
    %c0_37 = arith.constant 0 : index
    %c0_38 = arith.constant 0 : index
    %70 = vector.load %arg9[%c0_36, %c0_37, %c0_38] : memref<2x32x32xbf16, #tpu.memory_space<vmem>>, vector<1x32x32xbf16>
    %71 = vector.shape_cast %70 : vector<1x32x32xbf16> to vector<32x32xbf16>
    %72 = arith.truncf %69 : vector<64x32xf32> to vector<64x32xbf16>
    %cst_39 = arith.constant dense<0.000000e+00> : vector<64x32xf32>
    %73 = tpu.matmul %72, %71, %cst_39 {dimension_numbers = #tpu.dot_dimension_numbers<[1], [0], [0], [1], [0, 0, 1, 1], [], []>} : vector<64x32xbf16>, vector<32x32xbf16>, vector<64x32xf32> -> vector<64x32xf32>
    %74 = arith.addf %7, %73 : vector<64x32xf32>
    %c0_40 = arith.constant 0 : index
    %c0_41 = arith.constant 0 : index
    %c0_42 = arith.constant 0 : index
    %75 = vector.load %arg10[%c0_40, %c0_41, %c0_42] : memref<2x1x32xf32, #tpu.memory_space<vmem>>, vector<1x1x32xf32>
    %76 = vector.shape_cast %75 : vector<1x1x32xf32> to vector<1x32xf32>
    %77 = vector.broadcast %76 : vector<1x32xf32> to vector<64x32xf32>
    %78 = arith.addf %74, %77 : vector<64x32xf32>
    %c1 = arith.constant 1 : index
    %c0_43 = arith.constant 0 : index
    %c0_44 = arith.constant 0 : index
    %79 = vector.load %arg4[%c1, %c0_43, %c0_44] : memref<2x1x32xf32, #tpu.memory_space<vmem>>, vector<1x1x32xf32>
    %80 = vector.shape_cast %79 : vector<1x1x32xf32> to vector<1x32xf32>
    %c1_45 = arith.constant 1 : index
    %c0_46 = arith.constant 0 : index
    %c0_47 = arith.constant 0 : index
    %81 = vector.load %arg5[%c1_45, %c0_46, %c0_47] : memref<2x1x32xf32, #tpu.memory_space<vmem>>, vector<1x1x32xf32>
    %82 = vector.shape_cast %81 : vector<1x1x32xf32> to vector<1x32xf32>
    %cst_48 = arith.constant dense<0.000000e+00> : vector<32xf32>
    %83 = vector.multi_reduction <add>, %78, %cst_48 [0] : vector<64x32xf32> to vector<32xf32>
    %84 = vector.shape_cast %83 : vector<32xf32> to vector<1x32xf32>
    %cst_49 = arith.constant 6.400000e+01 : f32
    %85 = vector.broadcast %cst_49 : f32 to vector<1x32xf32>
    %86 = arith.divf %84, %85 : vector<1x32xf32>
    %87 = arith.mulf %78, %78 : vector<64x32xf32>
    %cst_50 = arith.constant dense<0.000000e+00> : vector<32xf32>
    %88 = vector.multi_reduction <add>, %87, %cst_50 [0] : vector<64x32xf32> to vector<32xf32>
    %89 = vector.shape_cast %88 : vector<32xf32> to vector<1x32xf32>
    %cst_51 = arith.constant 6.400000e+01 : f32
    %90 = vector.broadcast %cst_51 : f32 to vector<1x32xf32>
    %91 = arith.divf %89, %90 : vector<1x32xf32>
    %92 = arith.mulf %86, %86 : vector<1x32xf32>
    %93 = arith.subf %91, %92 : vector<1x32xf32>
    %cst_52 = arith.constant 0.000000e+00 : f32
    %94 = vector.broadcast %cst_52 : f32 to vector<1x32xf32>
    %95 = arith.maximumf %93, %94 : vector<1x32xf32>
    %cst_53 = arith.constant 9.99999974E-6 : f32
    %96 = vector.broadcast %cst_53 : f32 to vector<1x32xf32>
    %97 = arith.addf %95, %96 : vector<1x32xf32>
    %98 = math.rsqrt %97 : vector<1x32xf32>
    %99 = arith.mulf %98, %80 : vector<1x32xf32>
    %100 = vector.broadcast %99 : vector<1x32xf32> to vector<64x32xf32>
    %101 = arith.mulf %78, %100 : vector<64x32xf32>
    %102 = arith.mulf %86, %99 : vector<1x32xf32>
    %103 = arith.subf %82, %102 : vector<1x32xf32>
    %104 = vector.broadcast %103 : vector<1x32xf32> to vector<64x32xf32>
    %105 = arith.addf %101, %104 : vector<64x32xf32>
    %cst_54 = arith.constant 0.000000e+00 : f32
    %106 = vector.broadcast %cst_54 : f32 to vector<64x32xf32>
    %107 = arith.maximumf %105, %106 : vector<64x32xf32>
    %c1_55 = arith.constant 1 : index
    %c0_56 = arith.constant 0 : index
    %c0_57 = arith.constant 0 : index
    %108 = vector.load %arg6[%c1_55, %c0_56, %c0_57] : memref<2x32x32xbf16, #tpu.memory_space<vmem>>, vector<1x32x32xbf16>
    %109 = vector.shape_cast %108 : vector<1x32x32xbf16> to vector<32x32xbf16>
    %110 = arith.truncf %107 : vector<64x32xf32> to vector<64x32xbf16>
    %cst_58 = arith.constant dense<0.000000e+00> : vector<64x32xf32>
    %111 = tpu.matmul %110, %109, %cst_58 {dimension_numbers = #tpu.dot_dimension_numbers<[1], [0], [0], [1], [0, 0, 1, 1], [], []>} : vector<64x32xbf16>, vector<32x32xbf16>, vector<64x32xf32> -> vector<64x32xf32>
    %c1_59 = arith.constant 1 : index
    %c0_60 = arith.constant 0 : index
    %c0_61 = arith.constant 0 : index
    %112 = vector.load %arg7[%c1_59, %c0_60, %c0_61] : memref<2x1x32xf32, #tpu.memory_space<vmem>>, vector<1x1x32xf32>
    %113 = vector.shape_cast %112 : vector<1x1x32xf32> to vector<1x32xf32>
    %c1_62 = arith.constant 1 : index
    %c0_63 = arith.constant 0 : index
    %c0_64 = arith.constant 0 : index
    %114 = vector.load %arg8[%c1_62, %c0_63, %c0_64] : memref<2x1x32xf32, #tpu.memory_space<vmem>>, vector<1x1x32xf32>
    %115 = vector.shape_cast %114 : vector<1x1x32xf32> to vector<1x32xf32>
    %cst_65 = arith.constant dense<0.000000e+00> : vector<32xf32>
    %116 = vector.multi_reduction <add>, %111, %cst_65 [0] : vector<64x32xf32> to vector<32xf32>
    %117 = vector.shape_cast %116 : vector<32xf32> to vector<1x32xf32>
    %cst_66 = arith.constant 6.400000e+01 : f32
    %118 = vector.broadcast %cst_66 : f32 to vector<1x32xf32>
    %119 = arith.divf %117, %118 : vector<1x32xf32>
    %120 = arith.mulf %111, %111 : vector<64x32xf32>
    %cst_67 = arith.constant dense<0.000000e+00> : vector<32xf32>
    %121 = vector.multi_reduction <add>, %120, %cst_67 [0] : vector<64x32xf32> to vector<32xf32>
    %122 = vector.shape_cast %121 : vector<32xf32> to vector<1x32xf32>
    %cst_68 = arith.constant 6.400000e+01 : f32
    %123 = vector.broadcast %cst_68 : f32 to vector<1x32xf32>
    %124 = arith.divf %122, %123 : vector<1x32xf32>
    %125 = arith.mulf %119, %119 : vector<1x32xf32>
    %126 = arith.subf %124, %125 : vector<1x32xf32>
    %cst_69 = arith.constant 0.000000e+00 : f32
    %127 = vector.broadcast %cst_69 : f32 to vector<1x32xf32>
    %128 = arith.maximumf %126, %127 : vector<1x32xf32>
    %cst_70 = arith.constant 9.99999974E-6 : f32
    %129 = vector.broadcast %cst_70 : f32 to vector<1x32xf32>
    %130 = arith.addf %128, %129 : vector<1x32xf32>
    %131 = math.rsqrt %130 : vector<1x32xf32>
    %132 = arith.mulf %131, %113 : vector<1x32xf32>
    %133 = vector.broadcast %132 : vector<1x32xf32> to vector<64x32xf32>
    %134 = arith.mulf %111, %133 : vector<64x32xf32>
    %135 = arith.mulf %119, %132 : vector<1x32xf32>
    %136 = arith.subf %115, %135 : vector<1x32xf32>
    %137 = vector.broadcast %136 : vector<1x32xf32> to vector<64x32xf32>
    %138 = arith.addf %134, %137 : vector<64x32xf32>
    %cst_71 = arith.constant 0.000000e+00 : f32
    %139 = vector.broadcast %cst_71 : f32 to vector<64x32xf32>
    %140 = arith.maximumf %138, %139 : vector<64x32xf32>
    %c1_72 = arith.constant 1 : index
    %c0_73 = arith.constant 0 : index
    %c0_74 = arith.constant 0 : index
    %141 = vector.load %arg9[%c1_72, %c0_73, %c0_74] : memref<2x32x32xbf16, #tpu.memory_space<vmem>>, vector<1x32x32xbf16>
    %142 = vector.shape_cast %141 : vector<1x32x32xbf16> to vector<32x32xbf16>
    %143 = arith.truncf %140 : vector<64x32xf32> to vector<64x32xbf16>
    %cst_75 = arith.constant dense<0.000000e+00> : vector<64x32xf32>
    %144 = tpu.matmul %143, %142, %cst_75 {dimension_numbers = #tpu.dot_dimension_numbers<[1], [0], [0], [1], [0, 0, 1, 1], [], []>} : vector<64x32xbf16>, vector<32x32xbf16>, vector<64x32xf32> -> vector<64x32xf32>
    %145 = arith.addf %78, %144 : vector<64x32xf32>
    %c1_76 = arith.constant 1 : index
    %c0_77 = arith.constant 0 : index
    %c0_78 = arith.constant 0 : index
    %146 = vector.load %arg10[%c1_76, %c0_77, %c0_78] : memref<2x1x32xf32, #tpu.memory_space<vmem>>, vector<1x1x32xf32>
    %147 = vector.shape_cast %146 : vector<1x1x32xf32> to vector<1x32xf32>
    %148 = vector.broadcast %147 : vector<1x32xf32> to vector<64x32xf32>
    %149 = arith.addf %145, %148 : vector<64x32xf32>
    %150 = arith.truncf %149 : vector<64x32xf32> to vector<64x32xbf16>
    %c0_79 = arith.constant 0 : index
    %c0_80 = arith.constant 0 : index
    %c0_81 = arith.constant 0 : index
    %151 = vector.load %arg15[%c0_79, %c0_80, %c0_81] : memref<1x64x32xbf16, #tpu.memory_space<vmem>>, vector<1x64x32xbf16>
    %152 = vector.shape_cast %151 : vector<1x64x32xbf16> to vector<64x32xbf16>
    %153 = vector.shape_cast %150 : vector<64x32xbf16> to vector<1x64x32xbf16>
    tpu.vector_store %arg15[%c0_79, %c0_80, %c0_81], %153 {strides = array<i32>} : memref<1x64x32xbf16, #tpu.memory_space<vmem>>, vector<1x64x32xbf16>,
    %c0_82 = arith.constant 0 : index
    %c0_83 = arith.constant 0 : index
    %154 = vector.load %arg11[%c0_82, %c0_83] : memref<1x32xf32, #tpu.memory_space<vmem>>, vector<1x32xf32>
    %c0_84 = arith.constant 0 : index
    %c0_85 = arith.constant 0 : index
    %155 = vector.load %arg12[%c0_84, %c0_85] : memref<1x32xf32, #tpu.memory_space<vmem>>, vector<1x32xf32>
    %cst_86 = arith.constant dense<0.000000e+00> : vector<32xf32>
    %156 = vector.multi_reduction <add>, %149, %cst_86 [0] : vector<64x32xf32> to vector<32xf32>
    %157 = vector.shape_cast %156 : vector<32xf32> to vector<1x32xf32>
    %cst_87 = arith.constant 6.400000e+01 : f32
    %158 = vector.broadcast %cst_87 : f32 to vector<1x32xf32>
    %159 = arith.divf %157, %158 : vector<1x32xf32>
    %160 = arith.mulf %149, %149 : vector<64x32xf32>
    %cst_88 = arith.constant dense<0.000000e+00> : vector<32xf32>
    %161 = vector.multi_reduction <add>, %160, %cst_88 [0] : vector<64x32xf32> to vector<32xf32>
    %162 = vector.shape_cast %161 : vector<32xf32> to vector<1x32xf32>
    %cst_89 = arith.constant 6.400000e+01 : f32
    %163 = vector.broadcast %cst_89 : f32 to vector<1x32xf32>
    %164 = arith.divf %162, %163 : vector<1x32xf32>
    %165 = arith.mulf %159, %159 : vector<1x32xf32>
    %166 = arith.subf %164, %165 : vector<1x32xf32>
    %cst_90 = arith.constant 0.000000e+00 : f32
    %167 = vector.broadcast %cst_90 : f32 to vector<1x32xf32>
    %168 = arith.maximumf %166, %167 : vector<1x32xf32>
    %cst_91 = arith.constant 1.000000e-03 : f32
    %169 = vector.broadcast %cst_91 : f32 to vector<1x32xf32>
    %170 = arith.addf %168, %169 : vector<1x32xf32>
    %171 = math.rsqrt %170 : vector<1x32xf32>
    %172 = arith.mulf %171, %154 : vector<1x32xf32>
    %173 = vector.broadcast %172 : vector<1x32xf32> to vector<64x32xf32>
    %174 = arith.mulf %149, %173 : vector<64x32xf32>
    %175 = arith.mulf %159, %172 : vector<1x32xf32>
    %176 = arith.subf %155, %175 : vector<1x32xf32>
    %177 = vector.broadcast %176 : vector<1x32xf32> to vector<64x32xf32>
    %178 = arith.addf %174, %177 : vector<64x32xf32>
    %cst_92 = arith.constant 0.000000e+00 : f32
    %179 = vector.broadcast %cst_92 : f32 to vector<64x32xf32>
    %180 = arith.maximumf %178, %179 : vector<64x32xf32>
    %c0_93 = arith.constant 0 : index
    %c0_94 = arith.constant 0 : index
    %181 = vector.load %arg13[%c0_93, %c0_94] : memref<32x8xbf16, #tpu.memory_space<vmem>>, vector<32x8xbf16>
    %182 = arith.truncf %180 : vector<64x32xf32> to vector<64x32xbf16>
    %cst_95 = arith.constant dense<0.000000e+00> : vector<64x8xf32>
    %183 = tpu.matmul %182, %181, %cst_95 {dimension_numbers = #tpu.dot_dimension_numbers<[1], [0], [0], [1], [0, 0, 1, 1], [], []>} : vector<64x32xbf16>, vector<32x8xbf16>, vector<64x8xf32> -> vector<64x8xf32>
    %c0_96 = arith.constant 0 : index
    %c0_97 = arith.constant 0 : index
    %184 = vector.load %arg14[%c0_96, %c0_97] : memref<1x8xf32, #tpu.memory_space<vmem>>, vector<1x8xf32>
    %185 = vector.broadcast %184 : vector<1x8xf32> to vector<64x8xf32>
    %186 = arith.addf %183, %185 : vector<64x8xf32>
    %cst_98 = arith.constant dense<0xFF800000> : vector<8xf32>
    %187 = vector.multi_reduction <maximumf>, %186, %cst_98 [0] : vector<64x8xf32> to vector<8xf32>
    %188 = vector.shape_cast %187 : vector<8xf32> to vector<1x8xf32>
    %189 = vector.broadcast %188 : vector<1x8xf32> to vector<64x8xf32>
    %190 = arith.subf %186, %189 : vector<64x8xf32>
    %191 = math.exp %190 : vector<64x8xf32>
    %cst_99 = arith.constant dense<0.000000e+00> : vector<8xf32>
    %192 = vector.multi_reduction <add>, %191, %cst_99 [0] : vector<64x8xf32> to vector<8xf32>
    %193 = vector.shape_cast %192 : vector<8xf32> to vector<1x8xf32>
    %cst_100 = arith.constant 1.000000e+00 : f32
    %194 = vector.broadcast %cst_100 : f32 to vector<1x8xf32>
    %195 = arith.divf %194, %193 : vector<1x8xf32>
    %196 = vector.broadcast %195 : vector<1x8xf32> to vector<64x8xf32>
    %197 = arith.mulf %191, %196 : vector<64x8xf32>
    %cst_101 = arith.constant dense<0.000000e+00> : vector<8x32xf32>
    %198 = tpu.matmul %197, %149, %cst_101 {dimension_numbers = #tpu.dot_dimension_numbers<[0], [0], [1], [1], [0, 1, 1, 1], [], []>} : vector<64x8xf32>, vector<64x32xf32>, vector<8x32xf32> -> vector<8x32xf32>
    %c0_102 = arith.constant 0 : index
    %c0_103 = arith.constant 0 : index
    %c0_104 = arith.constant 0 : index
    %199 = vector.load %arg16[%c0_102, %c0_103, %c0_104] : memref<1x8x32xf32, #tpu.memory_space<vmem>>, vector<1x8x32xf32>
    %200 = vector.shape_cast %199 : vector<1x8x32xf32> to vector<8x32xf32>
    %201 = vector.shape_cast %198 : vector<8x32xf32> to vector<1x8x32xf32>
    tpu.vector_store %arg16[%c0_102, %c0_103, %c0_104], %201 {strides = array<i32>} : memref<1x8x32xf32, #tpu.memory_space<vmem>>, vector<1x8x32xf32>,
    return
  }
  func.func @transform_0(%arg0: i32) -> (i32, i32, i32) {
    %c0_i32 = arith.constant 0 : i32
    %c0_i32_0 = arith.constant 0 : i32
    %c0_i32_1 = arith.constant 0 : i32
    return %arg0, %c0_i32, %c0_i32_0 : i32, i32, i32
  }
  func.func @transform_1(%arg0: i32) -> (i32, i32) {
    %c0_i32 = arith.constant 0 : i32
    %c0_i32_0 = arith.constant 0 : i32
    %c0_i32_1 = arith.constant 0 : i32
    return %c0_i32, %c0_i32_0 : i32, i32
  }
  func.func @transform_2(%arg0: i32) -> (i32, i32) {
    %c0_i32 = arith.constant 0 : i32
    %c0_i32_0 = arith.constant 0 : i32
    %c0_i32_1 = arith.constant 0 : i32
    return %c0_i32, %c0_i32_0 : i32, i32
  }
  func.func @transform_3(%arg0: i32) -> (i32, i32, i32) {
    %c0_i32 = arith.constant 0 : i32
    %c0_i32_0 = arith.constant 0 : i32
    %c0_i32_1 = arith.constant 0 : i32
    %c0_i32_2 = arith.constant 0 : i32
    return %c0_i32, %c0_i32_0, %c0_i32_1 : i32, i32, i32
  }
  func.func @transform_4(%arg0: i32) -> (i32, i32, i32) {
    %c0_i32 = arith.constant 0 : i32
    %c0_i32_0 = arith.constant 0 : i32
    %c0_i32_1 = arith.constant 0 : i32
    %c0_i32_2 = arith.constant 0 : i32
    return %c0_i32, %c0_i32_0, %c0_i32_1 : i32, i32, i32
  }
  func.func @transform_5(%arg0: i32) -> (i32, i32, i32) {
    %c0_i32 = arith.constant 0 : i32
    %c0_i32_0 = arith.constant 0 : i32
    %c0_i32_1 = arith.constant 0 : i32
    %c0_i32_2 = arith.constant 0 : i32
    return %c0_i32, %c0_i32_0, %c0_i32_1 : i32, i32, i32
  }
  func.func @transform_6(%arg0: i32) -> (i32, i32, i32) {
    %c0_i32 = arith.constant 0 : i32
    %c0_i32_0 = arith.constant 0 : i32
    %c0_i32_1 = arith.constant 0 : i32
    %c0_i32_2 = arith.constant 0 : i32
    return %c0_i32, %c0_i32_0, %c0_i32_1 : i32, i32, i32
  }
  func.func @transform_7(%arg0: i32) -> (i32, i32, i32) {
    %c0_i32 = arith.constant 0 : i32
    %c0_i32_0 = arith.constant 0 : i32
    %c0_i32_1 = arith.constant 0 : i32
    %c0_i32_2 = arith.constant 0 : i32
    return %c0_i32, %c0_i32_0, %c0_i32_1 : i32, i32, i32
  }
  func.func @transform_8(%arg0: i32) -> (i32, i32, i32) {
    %c0_i32 = arith.constant 0 : i32
    %c0_i32_0 = arith.constant 0 : i32
    %c0_i32_1 = arith.constant 0 : i32
    %c0_i32_2 = arith.constant 0 : i32
    return %c0_i32, %c0_i32_0, %c0_i32_1 : i32, i32, i32
  }
  func.func @transform_9(%arg0: i32) -> (i32, i32, i32) {
    %c0_i32 = arith.constant 0 : i32
    %c0_i32_0 = arith.constant 0 : i32
    %c0_i32_1 = arith.constant 0 : i32
    %c0_i32_2 = arith.constant 0 : i32
    return %c0_i32, %c0_i32_0, %c0_i32_1 : i32, i32, i32
  }
  func.func @transform_10(%arg0: i32) -> (i32, i32) {
    %c0_i32 = arith.constant 0 : i32
    %c0_i32_0 = arith.constant 0 : i32
    %c0_i32_1 = arith.constant 0 : i32
    return %c0_i32, %c0_i32_0 : i32, i32
  }
  func.func @transform_11(%arg0: i32) -> (i32, i32) {
    %c0_i32 = arith.constant 0 : i32
    %c0_i32_0 = arith.constant 0 : i32
    %c0_i32_1 = arith.constant 0 : i32
    return %c0_i32, %c0_i32_0 : i32, i32
  }
  func.func @transform_12(%arg0: i32) -> (i32, i32) {
    %c0_i32 = arith.constant 0 : i32
    %c0_i32_0 = arith.constant 0 : i32
    %c0_i32_1 = arith.constant 0 : i32
    return %c0_i32, %c0_i32_0 : i32, i32
  }
  func.func @transform_13(%arg0: i32) -> (i32, i32) {
    %c0_i32 = arith.constant 0 : i32
    %c0_i32_0 = arith.constant 0 : i32
    %c0_i32_1 = arith.constant 0 : i32
    return %c0_i32, %c0_i32_0 : i32, i32
  }
  func.func @transform_14(%arg0: i32) -> (i32, i32, i32) {
    %c0_i32 = arith.constant 0 : i32
    %c0_i32_0 = arith.constant 0 : i32
    %c0_i32_1 = arith.constant 0 : i32
    return %arg0, %c0_i32, %c0_i32_0 : i32, i32, i32
  }
  func.func @transform_15(%arg0: i32) -> (i32, i32, i32) {
    %c0_i32 = arith.constant 0 : i32
    %c0_i32_0 = arith.constant 0 : i32
    %c0_i32_1 = arith.constant 0 : i32
    return %arg0, %c0_i32, %c0_i32_0 : i32, i32, i32
  }
}

module attributes {stable_mosaic.version = 11 : i64} {
  func.func @kernel(%arg0: i32, %arg1: memref<1x64x32xbf16, #tpu.memory_space<vmem>>, %arg2: memref<1x8x32xf32, #tpu.memory_space<vmem>>, %arg3: memref<1x32xf32, #tpu.memory_space<vmem>>, %arg4: memref<1x32xf32, #tpu.memory_space<vmem>>, %arg5: memref<32x8xbf16, #tpu.memory_space<vmem>>, %arg6: memref<1x8xf32, #tpu.memory_space<vmem>>, %arg7: memref<1x32xf32, #tpu.memory_space<vmem>>, %arg8: memref<1x32xf32, #tpu.memory_space<vmem>>, %arg9: memref<32x32xbf16, #tpu.memory_space<vmem>>, %arg10: memref<1x32xf32, #tpu.memory_space<vmem>>, %arg11: memref<1x32xf32, #tpu.memory_space<vmem>>, %arg12: memref<32x32xbf16, #tpu.memory_space<vmem>>, %arg13: memref<1x32xf32, #tpu.memory_space<vmem>>, %arg14: memref<1x32xf32, #tpu.memory_space<vmem>>, %arg15: memref<32x32xbf16, #tpu.memory_space<vmem>>, %arg16: memref<1x32xf32, #tpu.memory_space<vmem>>, %arg17: memref<32x32xbf16, #tpu.memory_space<vmem>>, %arg18: memref<32x32xbf16, #tpu.memory_space<vmem>>, %arg19: memref<1x32xf32, #tpu.memory_space<vmem>>, %arg20: memref<1x1x32xf32, #tpu.memory_space<vmem>>, %arg21: memref<1x1x32xf32, #tpu.memory_space<vmem>>, %arg22: memref<1x32x32xbf16, #tpu.memory_space<vmem>>, %arg23: memref<1x1x32xf32, #tpu.memory_space<vmem>>, %arg24: memref<1x1x32xf32, #tpu.memory_space<vmem>>, %arg25: memref<1x32x32xbf16, #tpu.memory_space<vmem>>, %arg26: memref<1x1x32xf32, #tpu.memory_space<vmem>>, %arg27: memref<1x32xbf16, #tpu.memory_space<vmem>>, %arg28: memref<1x1xf32, #tpu.memory_space<vmem>>, %arg29: memref<1x64x32xf32, #tpu.memory_space<vmem>>, %arg30: memref<1x1x64xf32, #tpu.memory_space<vmem>>) attributes {dimension_semantics = [#tpu.dimension_semantics<parallel>], iteration_bounds = array<i64: 2>, scalar_prefetch = 0 : i64, scratch_operands = 0 : i64, tpu.core_type = #tpu.core_type<tc>, window_params = [{transform_indices = @transform_0, window_bounds = array<i64: 1, 64, 32>}, {transform_indices = @transform_1, window_bounds = array<i64: 1, 8, 32>}, {pipeline_mode = #tpu.pipeline_mode<synchronous>, transform_indices = @transform_2, window_bounds = array<i64: 1, 32>}, {pipeline_mode = #tpu.pipeline_mode<synchronous>, transform_indices = @transform_3, window_bounds = array<i64: 1, 32>}, {pipeline_mode = #tpu.pipeline_mode<synchronous>, transform_indices = @transform_4, window_bounds = array<i64: 32, 8>}, {pipeline_mode = #tpu.pipeline_mode<synchronous>, transform_indices = @transform_5, window_bounds = array<i64: 1, 8>}, {pipeline_mode = #tpu.pipeline_mode<synchronous>, transform_indices = @transform_6, window_bounds = array<i64: 1, 32>}, {pipeline_mode = #tpu.pipeline_mode<synchronous>, transform_indices = @transform_7, window_bounds = array<i64: 1, 32>}, {pipeline_mode = #tpu.pipeline_mode<synchronous>, transform_indices = @transform_8, window_bounds = array<i64: 32, 32>}, {pipeline_mode = #tpu.pipeline_mode<synchronous>, transform_indices = @transform_9, window_bounds = array<i64: 1, 32>}, {pipeline_mode = #tpu.pipeline_mode<synchronous>, transform_indices = @transform_10, window_bounds = array<i64: 1, 32>}, {pipeline_mode = #tpu.pipeline_mode<synchronous>, transform_indices = @transform_11, window_bounds = array<i64: 32, 32>}, {pipeline_mode = #tpu.pipeline_mode<synchronous>, transform_indices = @transform_12, window_bounds = array<i64: 1, 32>}, {pipeline_mode = #tpu.pipeline_mode<synchronous>, transform_indices = @transform_13, window_bounds = array<i64: 1, 32>}, {pipeline_mode = #tpu.pipeline_mode<synchronous>, transform_indices = @transform_14, window_bounds = array<i64: 32, 32>}, {pipeline_mode = #tpu.pipeline_mode<synchronous>, transform_indices = @transform_15, window_bounds = array<i64: 1, 32>}, {pipeline_mode = #tpu.pipeline_mode<synchronous>, transform_indices = @transform_16, window_bounds = array<i64: 32, 32>}, {pipeline_mode = #tpu.pipeline_mode<synchronous>, transform_indices = @transform_17, window_bounds = array<i64: 32, 32>}, {pipeline_mode = #tpu.pipeline_mode<synchronous>, transform_indices = @transform_18, window_bounds = array<i64: 1, 32>}, {pipeline_mode = #tpu.pipeline_mode<synchronous>, transform_indices = @transform_19, window_bounds = array<i64: 1, 1, 32>}, {pipeline_mode = #tpu.pipeline_mode<synchronous>, transform_indices = @transform_20, window_bounds = array<i64: 1, 1, 32>}, {pipeline_mode = #tpu.pipeline_mode<synchronous>, transform_indices = @transform_21, window_bounds = array<i64: 1, 32, 32>}, {pipeline_mode = #tpu.pipeline_mode<synchronous>, transform_indices = @transform_22, window_bounds = array<i64: 1, 1, 32>}, {pipeline_mode = #tpu.pipeline_mode<synchronous>, transform_indices = @transform_23, window_bounds = array<i64: 1, 1, 32>}, {pipeline_mode = #tpu.pipeline_mode<synchronous>, transform_indices = @transform_24, window_bounds = array<i64: 1, 32, 32>}, {pipeline_mode = #tpu.pipeline_mode<synchronous>, transform_indices = @transform_25, window_bounds = array<i64: 1, 1, 32>}, {pipeline_mode = #tpu.pipeline_mode<synchronous>, transform_indices = @transform_26, window_bounds = array<i64: 1, 32>}, {pipeline_mode = #tpu.pipeline_mode<synchronous>, transform_indices = @transform_27, window_bounds = array<i64: 1, 1>}, {transform_indices = @transform_28, window_bounds = array<i64: 1, 64, 32>}, {transform_indices = @transform_29, window_bounds = array<i64: 1, 1, 64>}]} {
    %c0 = arith.constant 0 : index
    %c0_0 = arith.constant 0 : index
    %c0_1 = arith.constant 0 : index
    %0 = vector.load %arg1[%c0, %c0_0, %c0_1] : memref<1x64x32xbf16, #tpu.memory_space<vmem>>, vector<1x64x32xbf16>
    %1 = vector.shape_cast %0 : vector<1x64x32xbf16> to vector<64x32xbf16>
    %2 = arith.extf %1 : vector<64x32xbf16> to vector<64x32xf32>
    %c0_2 = arith.constant 0 : index
    %c0_3 = arith.constant 0 : index
    %c0_4 = arith.constant 0 : index
    %3 = vector.load %arg2[%c0_2, %c0_3, %c0_4] : memref<1x8x32xf32, #tpu.memory_space<vmem>>, vector<1x8x32xf32>
    %4 = vector.shape_cast %3 : vector<1x8x32xf32> to vector<8x32xf32>
    %c0_5 = arith.constant 0 : index
    %c0_6 = arith.constant 0 : index
    %5 = vector.load %arg3[%c0_5, %c0_6] : memref<1x32xf32, #tpu.memory_space<vmem>>, vector<1x32xf32>
    %c0_7 = arith.constant 0 : index
    %c0_8 = arith.constant 0 : index
    %6 = vector.load %arg4[%c0_7, %c0_8] : memref<1x32xf32, #tpu.memory_space<vmem>>, vector<1x32xf32>
    %cst = arith.constant dense<0.000000e+00> : vector<32xf32>
    %7 = vector.multi_reduction <add>, %2, %cst [0] : vector<64x32xf32> to vector<32xf32>
    %8 = vector.shape_cast %7 : vector<32xf32> to vector<1x32xf32>
    %cst_9 = arith.constant 6.400000e+01 : f32
    %9 = vector.broadcast %cst_9 : f32 to vector<1x32xf32>
    %10 = arith.divf %8, %9 : vector<1x32xf32>
    %11 = arith.mulf %2, %2 : vector<64x32xf32>
    %cst_10 = arith.constant dense<0.000000e+00> : vector<32xf32>
    %12 = vector.multi_reduction <add>, %11, %cst_10 [0] : vector<64x32xf32> to vector<32xf32>
    %13 = vector.shape_cast %12 : vector<32xf32> to vector<1x32xf32>
    %cst_11 = arith.constant 6.400000e+01 : f32
    %14 = vector.broadcast %cst_11 : f32 to vector<1x32xf32>
    %15 = arith.divf %13, %14 : vector<1x32xf32>
    %16 = arith.mulf %10, %10 : vector<1x32xf32>
    %17 = arith.subf %15, %16 : vector<1x32xf32>
    %cst_12 = arith.constant 0.000000e+00 : f32
    %18 = vector.broadcast %cst_12 : f32 to vector<1x32xf32>
    %19 = arith.maximumf %17, %18 : vector<1x32xf32>
    %cst_13 = arith.constant 1.000000e-03 : f32
    %20 = vector.broadcast %cst_13 : f32 to vector<1x32xf32>
    %21 = arith.addf %19, %20 : vector<1x32xf32>
    %22 = math.rsqrt %21 : vector<1x32xf32>
    %23 = arith.mulf %22, %5 : vector<1x32xf32>
    %24 = vector.broadcast %23 : vector<1x32xf32> to vector<64x32xf32>
    %25 = arith.mulf %2, %24 : vector<64x32xf32>
    %26 = arith.mulf %10, %23 : vector<1x32xf32>
    %27 = arith.subf %6, %26 : vector<1x32xf32>
    %28 = vector.broadcast %27 : vector<1x32xf32> to vector<64x32xf32>
    %29 = arith.addf %25, %28 : vector<64x32xf32>
    %cst_14 = arith.constant 0.000000e+00 : f32
    %30 = vector.broadcast %cst_14 : f32 to vector<64x32xf32>
    %31 = arith.maximumf %29, %30 : vector<64x32xf32>
    %c0_15 = arith.constant 0 : index
    %c0_16 = arith.constant 0 : index
    %32 = vector.load %arg5[%c0_15, %c0_16] : memref<32x8xbf16, #tpu.memory_space<vmem>>, vector<32x8xbf16>
    %33 = arith.truncf %31 : vector<64x32xf32> to vector<64x32xbf16>
    %cst_17 = arith.constant dense<0.000000e+00> : vector<64x8xf32>
    %34 = tpu.matmul %33, %32, %cst_17 {dimension_numbers = #tpu.dot_dimension_numbers<[1], [0], [0], [1], [0, 0, 1, 1], [], []>} : vector<64x32xbf16>, vector<32x8xbf16>, vector<64x8xf32> -> vector<64x8xf32>
    %c0_18 = arith.constant 0 : index
    %c0_19 = arith.constant 0 : index
    %35 = vector.load %arg6[%c0_18, %c0_19] : memref<1x8xf32, #tpu.memory_space<vmem>>, vector<1x8xf32>
    %36 = vector.broadcast %35 : vector<1x8xf32> to vector<64x8xf32>
    %37 = arith.addf %34, %36 : vector<64x8xf32>
    %cst_20 = arith.constant dense<0xFF800000> : vector<64xf32>
    %38 = vector.multi_reduction <maximumf>, %37, %cst_20 [1] : vector<64x8xf32> to vector<64xf32>
    %39 = vector.shape_cast %38 : vector<64xf32> to vector<64x1xf32>
    %40 = vector.broadcast %39 : vector<64x1xf32> to vector<64x8xf32>
    %41 = arith.subf %37, %40 : vector<64x8xf32>
    %42 = math.exp %41 : vector<64x8xf32>
    %cst_21 = arith.constant dense<0.000000e+00> : vector<64xf32>
    %43 = vector.multi_reduction <add>, %42, %cst_21 [1] : vector<64x8xf32> to vector<64xf32>
    %44 = vector.shape_cast %43 : vector<64xf32> to vector<64x1xf32>
    %cst_22 = arith.constant 1.000000e+00 : f32
    %45 = vector.broadcast %cst_22 : f32 to vector<64x1xf32>
    %46 = arith.divf %45, %44 : vector<64x1xf32>
    %47 = vector.broadcast %46 : vector<64x1xf32> to vector<64x8xf32>
    %48 = arith.mulf %42, %47 : vector<64x8xf32>
    %49 = arith.truncf %48 : vector<64x8xf32> to vector<64x8xbf16>
    %50 = arith.truncf %4 : vector<8x32xf32> to vector<8x32xbf16>
    %cst_23 = arith.constant dense<0.000000e+00> : vector<64x32xf32>
    %51 = tpu.matmul %49, %50, %cst_23 {dimension_numbers = #tpu.dot_dimension_numbers<[1], [0], [0], [1], [0, 0, 1, 1], [], []>} : vector<64x8xbf16>, vector<8x32xbf16>, vector<64x32xf32> -> vector<64x32xf32>
    %52 = arith.truncf %51 : vector<64x32xf32> to vector<64x32xbf16>
    %c0_24 = arith.constant 0 : index
    %c0_25 = arith.constant 0 : index
    %53 = vector.load %arg7[%c0_24, %c0_25] : memref<1x32xf32, #tpu.memory_space<vmem>>, vector<1x32xf32>
    %c0_26 = arith.constant 0 : index
    %c0_27 = arith.constant 0 : index
    %54 = vector.load %arg8[%c0_26, %c0_27] : memref<1x32xf32, #tpu.memory_space<vmem>>, vector<1x32xf32>
    %cst_28 = arith.constant dense<0.000000e+00> : vector<32xf32>
    %55 = vector.multi_reduction <add>, %2, %cst_28 [0] : vector<64x32xf32> to vector<32xf32>
    %56 = vector.shape_cast %55 : vector<32xf32> to vector<1x32xf32>
    %cst_29 = arith.constant 6.400000e+01 : f32
    %57 = vector.broadcast %cst_29 : f32 to vector<1x32xf32>
    %58 = arith.divf %56, %57 : vector<1x32xf32>
    %59 = arith.mulf %2, %2 : vector<64x32xf32>
    %cst_30 = arith.constant dense<0.000000e+00> : vector<32xf32>
    %60 = vector.multi_reduction <add>, %59, %cst_30 [0] : vector<64x32xf32> to vector<32xf32>
    %61 = vector.shape_cast %60 : vector<32xf32> to vector<1x32xf32>
    %cst_31 = arith.constant 6.400000e+01 : f32
    %62 = vector.broadcast %cst_31 : f32 to vector<1x32xf32>
    %63 = arith.divf %61, %62 : vector<1x32xf32>
    %64 = arith.mulf %58, %58 : vector<1x32xf32>
    %65 = arith.subf %63, %64 : vector<1x32xf32>
    %cst_32 = arith.constant 0.000000e+00 : f32
    %66 = vector.broadcast %cst_32 : f32 to vector<1x32xf32>
    %67 = arith.maximumf %65, %66 : vector<1x32xf32>
    %cst_33 = arith.constant 9.99999974E-6 : f32
    %68 = vector.broadcast %cst_33 : f32 to vector<1x32xf32>
    %69 = arith.addf %67, %68 : vector<1x32xf32>
    %70 = math.rsqrt %69 : vector<1x32xf32>
    %71 = arith.mulf %70, %53 : vector<1x32xf32>
    %72 = vector.broadcast %71 : vector<1x32xf32> to vector<64x32xf32>
    %73 = arith.mulf %2, %72 : vector<64x32xf32>
    %74 = arith.mulf %58, %71 : vector<1x32xf32>
    %75 = arith.subf %54, %74 : vector<1x32xf32>
    %76 = vector.broadcast %75 : vector<1x32xf32> to vector<64x32xf32>
    %77 = arith.addf %73, %76 : vector<64x32xf32>
    %cst_34 = arith.constant 0.000000e+00 : f32
    %78 = vector.broadcast %cst_34 : f32 to vector<64x32xf32>
    %79 = arith.maximumf %77, %78 : vector<64x32xf32>
    %c0_35 = arith.constant 0 : index
    %c0_36 = arith.constant 0 : index
    %80 = vector.load %arg9[%c0_35, %c0_36] : memref<32x32xbf16, #tpu.memory_space<vmem>>, vector<32x32xbf16>
    %81 = arith.truncf %79 : vector<64x32xf32> to vector<64x32xbf16>
    %cst_37 = arith.constant dense<0.000000e+00> : vector<64x32xf32>
    %82 = tpu.matmul %81, %80, %cst_37 {dimension_numbers = #tpu.dot_dimension_numbers<[1], [0], [0], [1], [0, 0, 1, 1], [], []>} : vector<64x32xbf16>, vector<32x32xbf16>, vector<64x32xf32> -> vector<64x32xf32>
    %c0_38 = arith.constant 0 : index
    %c0_39 = arith.constant 0 : index
    %83 = vector.load %arg10[%c0_38, %c0_39] : memref<1x32xf32, #tpu.memory_space<vmem>>, vector<1x32xf32>
    %c0_40 = arith.constant 0 : index
    %c0_41 = arith.constant 0 : index
    %84 = vector.load %arg11[%c0_40, %c0_41] : memref<1x32xf32, #tpu.memory_space<vmem>>, vector<1x32xf32>
    %cst_42 = arith.constant dense<0.000000e+00> : vector<32xf32>
    %85 = vector.multi_reduction <add>, %51, %cst_42 [0] : vector<64x32xf32> to vector<32xf32>
    %86 = vector.shape_cast %85 : vector<32xf32> to vector<1x32xf32>
    %cst_43 = arith.constant 6.400000e+01 : f32
    %87 = vector.broadcast %cst_43 : f32 to vector<1x32xf32>
    %88 = arith.divf %86, %87 : vector<1x32xf32>
    %89 = arith.mulf %51, %51 : vector<64x32xf32>
    %cst_44 = arith.constant dense<0.000000e+00> : vector<32xf32>
    %90 = vector.multi_reduction <add>, %89, %cst_44 [0] : vector<64x32xf32> to vector<32xf32>
    %91 = vector.shape_cast %90 : vector<32xf32> to vector<1x32xf32>
    %cst_45 = arith.constant 6.400000e+01 : f32
    %92 = vector.broadcast %cst_45 : f32 to vector<1x32xf32>
    %93 = arith.divf %91, %92 : vector<1x32xf32>
    %94 = arith.mulf %88, %88 : vector<1x32xf32>
    %95 = arith.subf %93, %94 : vector<1x32xf32>
    %cst_46 = arith.constant 0.000000e+00 : f32
    %96 = vector.broadcast %cst_46 : f32 to vector<1x32xf32>
    %97 = arith.maximumf %95, %96 : vector<1x32xf32>
    %cst_47 = arith.constant 9.99999974E-6 : f32
    %98 = vector.broadcast %cst_47 : f32 to vector<1x32xf32>
    %99 = arith.addf %97, %98 : vector<1x32xf32>
    %100 = math.rsqrt %99 : vector<1x32xf32>
    %101 = arith.mulf %100, %83 : vector<1x32xf32>
    %102 = vector.broadcast %101 : vector<1x32xf32> to vector<64x32xf32>
    %103 = arith.mulf %51, %102 : vector<64x32xf32>
    %104 = arith.mulf %88, %101 : vector<1x32xf32>
    %105 = arith.subf %84, %104 : vector<1x32xf32>
    %106 = vector.broadcast %105 : vector<1x32xf32> to vector<64x32xf32>
    %107 = arith.addf %103, %106 : vector<64x32xf32>
    %cst_48 = arith.constant 0.000000e+00 : f32
    %108 = vector.broadcast %cst_48 : f32 to vector<64x32xf32>
    %109 = arith.maximumf %107, %108 : vector<64x32xf32>
    %c0_49 = arith.constant 0 : index
    %c0_50 = arith.constant 0 : index
    %110 = vector.load %arg12[%c0_49, %c0_50] : memref<32x32xbf16, #tpu.memory_space<vmem>>, vector<32x32xbf16>
    %111 = arith.truncf %109 : vector<64x32xf32> to vector<64x32xbf16>
    %cst_51 = arith.constant dense<0.000000e+00> : vector<64x32xf32>
    %112 = tpu.matmul %111, %110, %cst_51 {dimension_numbers = #tpu.dot_dimension_numbers<[1], [0], [0], [1], [0, 0, 1, 1], [], []>} : vector<64x32xbf16>, vector<32x32xbf16>, vector<64x32xf32> -> vector<64x32xf32>
    %113 = arith.addf %82, %112 : vector<64x32xf32>
    %c0_52 = arith.constant 0 : index
    %c0_53 = arith.constant 0 : index
    %114 = vector.load %arg13[%c0_52, %c0_53] : memref<1x32xf32, #tpu.memory_space<vmem>>, vector<1x32xf32>
    %c0_54 = arith.constant 0 : index
    %c0_55 = arith.constant 0 : index
    %115 = vector.load %arg14[%c0_54, %c0_55] : memref<1x32xf32, #tpu.memory_space<vmem>>, vector<1x32xf32>
    %cst_56 = arith.constant dense<0.000000e+00> : vector<32xf32>
    %116 = vector.multi_reduction <add>, %113, %cst_56 [0] : vector<64x32xf32> to vector<32xf32>
    %117 = vector.shape_cast %116 : vector<32xf32> to vector<1x32xf32>
    %cst_57 = arith.constant 6.400000e+01 : f32
    %118 = vector.broadcast %cst_57 : f32 to vector<1x32xf32>
    %119 = arith.divf %117, %118 : vector<1x32xf32>
    %120 = arith.mulf %113, %113 : vector<64x32xf32>
    %cst_58 = arith.constant dense<0.000000e+00> : vector<32xf32>
    %121 = vector.multi_reduction <add>, %120, %cst_58 [0] : vector<64x32xf32> to vector<32xf32>
    %122 = vector.shape_cast %121 : vector<32xf32> to vector<1x32xf32>
    %cst_59 = arith.constant 6.400000e+01 : f32
    %123 = vector.broadcast %cst_59 : f32 to vector<1x32xf32>
    %124 = arith.divf %122, %123 : vector<1x32xf32>
    %125 = arith.mulf %119, %119 : vector<1x32xf32>
    %126 = arith.subf %124, %125 : vector<1x32xf32>
    %cst_60 = arith.constant 0.000000e+00 : f32
    %127 = vector.broadcast %cst_60 : f32 to vector<1x32xf32>
    %128 = arith.maximumf %126, %127 : vector<1x32xf32>
    %cst_61 = arith.constant 9.99999974E-6 : f32
    %129 = vector.broadcast %cst_61 : f32 to vector<1x32xf32>
    %130 = arith.addf %128, %129 : vector<1x32xf32>
    %131 = math.rsqrt %130 : vector<1x32xf32>
    %132 = arith.mulf %131, %114 : vector<1x32xf32>
    %133 = vector.broadcast %132 : vector<1x32xf32> to vector<64x32xf32>
    %134 = arith.mulf %113, %133 : vector<64x32xf32>
    %135 = arith.mulf %119, %132 : vector<1x32xf32>
    %136 = arith.subf %115, %135 : vector<1x32xf32>
    %137 = vector.broadcast %136 : vector<1x32xf32> to vector<64x32xf32>
    %138 = arith.addf %134, %137 : vector<64x32xf32>
    %cst_62 = arith.constant 0.000000e+00 : f32
    %139 = vector.broadcast %cst_62 : f32 to vector<64x32xf32>
    %140 = arith.maximumf %138, %139 : vector<64x32xf32>
    %c0_63 = arith.constant 0 : index
    %c0_64 = arith.constant 0 : index
    %141 = vector.load %arg15[%c0_63, %c0_64] : memref<32x32xbf16, #tpu.memory_space<vmem>>, vector<32x32xbf16>
    %142 = arith.truncf %140 : vector<64x32xf32> to vector<64x32xbf16>
    %cst_65 = arith.constant dense<0.000000e+00> : vector<64x32xf32>
    %143 = tpu.matmul %142, %141, %cst_65 {dimension_numbers = #tpu.dot_dimension_numbers<[1], [0], [0], [1], [0, 0, 1, 1], [], []>} : vector<64x32xbf16>, vector<32x32xbf16>, vector<64x32xf32> -> vector<64x32xf32>
    %c0_66 = arith.constant 0 : index
    %c0_67 = arith.constant 0 : index
    %144 = vector.load %arg16[%c0_66, %c0_67] : memref<1x32xf32, #tpu.memory_space<vmem>>, vector<1x32xf32>
    %145 = vector.broadcast %144 : vector<1x32xf32> to vector<64x32xf32>
    %146 = arith.addf %143, %145 : vector<64x32xf32>
    %c0_68 = arith.constant 0 : index
    %c0_69 = arith.constant 0 : index
    %147 = vector.load %arg17[%c0_68, %c0_69] : memref<32x32xbf16, #tpu.memory_space<vmem>>, vector<32x32xbf16>
    %cst_70 = arith.constant dense<0.000000e+00> : vector<64x32xf32>
    %148 = tpu.matmul %1, %147, %cst_70 {dimension_numbers = #tpu.dot_dimension_numbers<[1], [0], [0], [1], [0, 0, 1, 1], [], []>} : vector<64x32xbf16>, vector<32x32xbf16>, vector<64x32xf32> -> vector<64x32xf32>
    %c0_71 = arith.constant 0 : index
    %c0_72 = arith.constant 0 : index
    %149 = vector.load %arg18[%c0_71, %c0_72] : memref<32x32xbf16, #tpu.memory_space<vmem>>, vector<32x32xbf16>
    %cst_73 = arith.constant dense<0.000000e+00> : vector<64x32xf32>
    %150 = tpu.matmul %52, %149, %cst_73 {dimension_numbers = #tpu.dot_dimension_numbers<[1], [0], [0], [1], [0, 0, 1, 1], [], []>} : vector<64x32xbf16>, vector<32x32xbf16>, vector<64x32xf32> -> vector<64x32xf32>
    %151 = arith.addf %148, %150 : vector<64x32xf32>
    %c0_74 = arith.constant 0 : index
    %c0_75 = arith.constant 0 : index
    %152 = vector.load %arg19[%c0_74, %c0_75] : memref<1x32xf32, #tpu.memory_space<vmem>>, vector<1x32xf32>
    %153 = vector.broadcast %152 : vector<1x32xf32> to vector<64x32xf32>
    %154 = arith.addf %151, %153 : vector<64x32xf32>
    %155 = arith.addf %146, %154 : vector<64x32xf32>
    %c0_76 = arith.constant 0 : index
    %c0_77 = arith.constant 0 : index
    %c0_78 = arith.constant 0 : index
    %156 = vector.load %arg20[%c0_76, %c0_77, %c0_78] : memref<1x1x32xf32, #tpu.memory_space<vmem>>, vector<1x1x32xf32>
    %157 = vector.shape_cast %156 : vector<1x1x32xf32> to vector<1x32xf32>
    %c0_79 = arith.constant 0 : index
    %c0_80 = arith.constant 0 : index
    %c0_81 = arith.constant 0 : index
    %158 = vector.load %arg21[%c0_79, %c0_80, %c0_81] : memref<1x1x32xf32, #tpu.memory_space<vmem>>, vector<1x1x32xf32>
    %159 = vector.shape_cast %158 : vector<1x1x32xf32> to vector<1x32xf32>
    %cst_82 = arith.constant dense<0.000000e+00> : vector<32xf32>
    %160 = vector.multi_reduction <add>, %155, %cst_82 [0] : vector<64x32xf32> to vector<32xf32>
    %161 = vector.shape_cast %160 : vector<32xf32> to vector<1x32xf32>
    %cst_83 = arith.constant 6.400000e+01 : f32
    %162 = vector.broadcast %cst_83 : f32 to vector<1x32xf32>
    %163 = arith.divf %161, %162 : vector<1x32xf32>
    %164 = arith.mulf %155, %155 : vector<64x32xf32>
    %cst_84 = arith.constant dense<0.000000e+00> : vector<32xf32>
    %165 = vector.multi_reduction <add>, %164, %cst_84 [0] : vector<64x32xf32> to vector<32xf32>
    %166 = vector.shape_cast %165 : vector<32xf32> to vector<1x32xf32>
    %cst_85 = arith.constant 6.400000e+01 : f32
    %167 = vector.broadcast %cst_85 : f32 to vector<1x32xf32>
    %168 = arith.divf %166, %167 : vector<1x32xf32>
    %169 = arith.mulf %163, %163 : vector<1x32xf32>
    %170 = arith.subf %168, %169 : vector<1x32xf32>
    %cst_86 = arith.constant 0.000000e+00 : f32
    %171 = vector.broadcast %cst_86 : f32 to vector<1x32xf32>
    %172 = arith.maximumf %170, %171 : vector<1x32xf32>
    %cst_87 = arith.constant 9.99999974E-6 : f32
    %173 = vector.broadcast %cst_87 : f32 to vector<1x32xf32>
    %174 = arith.addf %172, %173 : vector<1x32xf32>
    %175 = math.rsqrt %174 : vector<1x32xf32>
    %176 = arith.mulf %175, %157 : vector<1x32xf32>
    %177 = vector.broadcast %176 : vector<1x32xf32> to vector<64x32xf32>
    %178 = arith.mulf %155, %177 : vector<64x32xf32>
    %179 = arith.mulf %163, %176 : vector<1x32xf32>
    %180 = arith.subf %159, %179 : vector<1x32xf32>
    %181 = vector.broadcast %180 : vector<1x32xf32> to vector<64x32xf32>
    %182 = arith.addf %178, %181 : vector<64x32xf32>
    %cst_88 = arith.constant 0.000000e+00 : f32
    %183 = vector.broadcast %cst_88 : f32 to vector<64x32xf32>
    %184 = arith.maximumf %182, %183 : vector<64x32xf32>
    %c0_89 = arith.constant 0 : index
    %c0_90 = arith.constant 0 : index
    %c0_91 = arith.constant 0 : index
    %185 = vector.load %arg22[%c0_89, %c0_90, %c0_91] : memref<1x32x32xbf16, #tpu.memory_space<vmem>>, vector<1x32x32xbf16>
    %186 = vector.shape_cast %185 : vector<1x32x32xbf16> to vector<32x32xbf16>
    %187 = arith.truncf %184 : vector<64x32xf32> to vector<64x32xbf16>
    %cst_92 = arith.constant dense<0.000000e+00> : vector<64x32xf32>
    %188 = tpu.matmul %187, %186, %cst_92 {dimension_numbers = #tpu.dot_dimension_numbers<[1], [0], [0], [1], [0, 0, 1, 1], [], []>} : vector<64x32xbf16>, vector<32x32xbf16>, vector<64x32xf32> -> vector<64x32xf32>
    %c0_93 = arith.constant 0 : index
    %c0_94 = arith.constant 0 : index
    %c0_95 = arith.constant 0 : index
    %189 = vector.load %arg23[%c0_93, %c0_94, %c0_95] : memref<1x1x32xf32, #tpu.memory_space<vmem>>, vector<1x1x32xf32>
    %190 = vector.shape_cast %189 : vector<1x1x32xf32> to vector<1x32xf32>
    %c0_96 = arith.constant 0 : index
    %c0_97 = arith.constant 0 : index
    %c0_98 = arith.constant 0 : index
    %191 = vector.load %arg24[%c0_96, %c0_97, %c0_98] : memref<1x1x32xf32, #tpu.memory_space<vmem>>, vector<1x1x32xf32>
    %192 = vector.shape_cast %191 : vector<1x1x32xf32> to vector<1x32xf32>
    %cst_99 = arith.constant dense<0.000000e+00> : vector<32xf32>
    %193 = vector.multi_reduction <add>, %188, %cst_99 [0] : vector<64x32xf32> to vector<32xf32>
    %194 = vector.shape_cast %193 : vector<32xf32> to vector<1x32xf32>
    %cst_100 = arith.constant 6.400000e+01 : f32
    %195 = vector.broadcast %cst_100 : f32 to vector<1x32xf32>
    %196 = arith.divf %194, %195 : vector<1x32xf32>
    %197 = arith.mulf %188, %188 : vector<64x32xf32>
    %cst_101 = arith.constant dense<0.000000e+00> : vector<32xf32>
    %198 = vector.multi_reduction <add>, %197, %cst_101 [0] : vector<64x32xf32> to vector<32xf32>
    %199 = vector.shape_cast %198 : vector<32xf32> to vector<1x32xf32>
    %cst_102 = arith.constant 6.400000e+01 : f32
    %200 = vector.broadcast %cst_102 : f32 to vector<1x32xf32>
    %201 = arith.divf %199, %200 : vector<1x32xf32>
    %202 = arith.mulf %196, %196 : vector<1x32xf32>
    %203 = arith.subf %201, %202 : vector<1x32xf32>
    %cst_103 = arith.constant 0.000000e+00 : f32
    %204 = vector.broadcast %cst_103 : f32 to vector<1x32xf32>
    %205 = arith.maximumf %203, %204 : vector<1x32xf32>
    %cst_104 = arith.constant 9.99999974E-6 : f32
    %206 = vector.broadcast %cst_104 : f32 to vector<1x32xf32>
    %207 = arith.addf %205, %206 : vector<1x32xf32>
    %208 = math.rsqrt %207 : vector<1x32xf32>
    %209 = arith.mulf %208, %190 : vector<1x32xf32>
    %210 = vector.broadcast %209 : vector<1x32xf32> to vector<64x32xf32>
    %211 = arith.mulf %188, %210 : vector<64x32xf32>
    %212 = arith.mulf %196, %209 : vector<1x32xf32>
    %213 = arith.subf %192, %212 : vector<1x32xf32>
    %214 = vector.broadcast %213 : vector<1x32xf32> to vector<64x32xf32>
    %215 = arith.addf %211, %214 : vector<64x32xf32>
    %cst_105 = arith.constant 0.000000e+00 : f32
    %216 = vector.broadcast %cst_105 : f32 to vector<64x32xf32>
    %217 = arith.maximumf %215, %216 : vector<64x32xf32>
    %c0_106 = arith.constant 0 : index
    %c0_107 = arith.constant 0 : index
    %c0_108 = arith.constant 0 : index
    %218 = vector.load %arg25[%c0_106, %c0_107, %c0_108] : memref<1x32x32xbf16, #tpu.memory_space<vmem>>, vector<1x32x32xbf16>
    %219 = vector.shape_cast %218 : vector<1x32x32xbf16> to vector<32x32xbf16>
    %220 = arith.truncf %217 : vector<64x32xf32> to vector<64x32xbf16>
    %cst_109 = arith.constant dense<0.000000e+00> : vector<64x32xf32>
    %221 = tpu.matmul %220, %219, %cst_109 {dimension_numbers = #tpu.dot_dimension_numbers<[1], [0], [0], [1], [0, 0, 1, 1], [], []>} : vector<64x32xbf16>, vector<32x32xbf16>, vector<64x32xf32> -> vector<64x32xf32>
    %222 = arith.addf %155, %221 : vector<64x32xf32>
    %c0_110 = arith.constant 0 : index
    %c0_111 = arith.constant 0 : index
    %c0_112 = arith.constant 0 : index
    %223 = vector.load %arg26[%c0_110, %c0_111, %c0_112] : memref<1x1x32xf32, #tpu.memory_space<vmem>>, vector<1x1x32xf32>
    %224 = vector.shape_cast %223 : vector<1x1x32xf32> to vector<1x32xf32>
    %225 = vector.broadcast %224 : vector<1x32xf32> to vector<64x32xf32>
    %226 = arith.addf %222, %225 : vector<64x32xf32>
    %c0_113 = arith.constant 0 : index
    %c0_114 = arith.constant 0 : index
    %c0_115 = arith.constant 0 : index
    %227 = vector.load %arg29[%c0_113, %c0_114, %c0_115] : memref<1x64x32xf32, #tpu.memory_space<vmem>>, vector<1x64x32xf32>
    %228 = vector.shape_cast %227 : vector<1x64x32xf32> to vector<64x32xf32>
    %229 = vector.shape_cast %226 : vector<64x32xf32> to vector<1x64x32xf32>
    tpu.vector_store %arg29[%c0_113, %c0_114, %c0_115], %229 {strides = array<i32>} : memref<1x64x32xf32, #tpu.memory_space<vmem>>, vector<1x64x32xf32>,
    %c0_116 = arith.constant 0 : index
    %c0_117 = arith.constant 0 : index
    %230 = vector.load %arg27[%c0_116, %c0_117] : memref<1x32xbf16, #tpu.memory_space<vmem>>, vector<1x32xbf16>
    %231 = arith.truncf %226 : vector<64x32xf32> to vector<64x32xbf16>
    %cst_118 = arith.constant dense<0.000000e+00> : vector<1x64xf32>
    %232 = tpu.matmul %230, %231, %cst_118 {dimension_numbers = #tpu.dot_dimension_numbers<[1], [1], [0], [0], [0, 0, 1, 0], [], []>} : vector<1x32xbf16>, vector<64x32xbf16>, vector<1x64xf32> -> vector<1x64xf32>
    %c0_119 = arith.constant 0 : index
    %c0_120 = arith.constant 0 : index
    %233 = vector.load %arg28[%c0_119, %c0_120] : memref<1x1xf32, #tpu.memory_space<vmem>>, vector<1x1xf32>
    %234 = vector.broadcast %233 : vector<1x1xf32> to vector<1x64xf32>
    %235 = arith.addf %232, %234 : vector<1x64xf32>
    %c0_121 = arith.constant 0 : index
    %c0_122 = arith.constant 0 : index
    %c0_123 = arith.constant 0 : index
    %236 = vector.load %arg30[%c0_121, %c0_122, %c0_123] : memref<1x1x64xf32, #tpu.memory_space<vmem>>, vector<1x1x64xf32>
    %237 = vector.shape_cast %236 : vector<1x1x64xf32> to vector<1x64xf32>
    %238 = vector.shape_cast %235 : vector<1x64xf32> to vector<1x1x64xf32>
    tpu.vector_store %arg30[%c0_121, %c0_122, %c0_123], %238 {strides = array<i32>} : memref<1x1x64xf32, #tpu.memory_space<vmem>>, vector<1x1x64xf32>,
    return
  }
  func.func @transform_0(%arg0: i32) -> (i32, i32, i32) {
    %c0_i32 = arith.constant 0 : i32
    %c0_i32_0 = arith.constant 0 : i32
    %c0_i32_1 = arith.constant 0 : i32
    return %arg0, %c0_i32, %c0_i32_0 : i32, i32, i32
  }
  func.func @transform_1(%arg0: i32) -> (i32, i32, i32) {
    %c0_i32 = arith.constant 0 : i32
    %c0_i32_0 = arith.constant 0 : i32
    %c0_i32_1 = arith.constant 0 : i32
    return %arg0, %c0_i32, %c0_i32_0 : i32, i32, i32
  }
  func.func @transform_2(%arg0: i32) -> (i32, i32) {
    %c0_i32 = arith.constant 0 : i32
    %c0_i32_0 = arith.constant 0 : i32
    %c0_i32_1 = arith.constant 0 : i32
    return %c0_i32, %c0_i32_0 : i32, i32
  }
  func.func @transform_3(%arg0: i32) -> (i32, i32) {
    %c0_i32 = arith.constant 0 : i32
    %c0_i32_0 = arith.constant 0 : i32
    %c0_i32_1 = arith.constant 0 : i32
    return %c0_i32, %c0_i32_0 : i32, i32
  }
  func.func @transform_4(%arg0: i32) -> (i32, i32) {
    %c0_i32 = arith.constant 0 : i32
    %c0_i32_0 = arith.constant 0 : i32
    %c0_i32_1 = arith.constant 0 : i32
    return %c0_i32, %c0_i32_0 : i32, i32
  }
  func.func @transform_5(%arg0: i32) -> (i32, i32) {
    %c0_i32 = arith.constant 0 : i32
    %c0_i32_0 = arith.constant 0 : i32
    %c0_i32_1 = arith.constant 0 : i32
    return %c0_i32, %c0_i32_0 : i32, i32
  }
  func.func @transform_6(%arg0: i32) -> (i32, i32) {
    %c0_i32 = arith.constant 0 : i32
    %c0_i32_0 = arith.constant 0 : i32
    %c0_i32_1 = arith.constant 0 : i32
    return %c0_i32, %c0_i32_0 : i32, i32
  }
  func.func @transform_7(%arg0: i32) -> (i32, i32) {
    %c0_i32 = arith.constant 0 : i32
    %c0_i32_0 = arith.constant 0 : i32
    %c0_i32_1 = arith.constant 0 : i32
    return %c0_i32, %c0_i32_0 : i32, i32
  }
  func.func @transform_8(%arg0: i32) -> (i32, i32) {
    %c0_i32 = arith.constant 0 : i32
    %c0_i32_0 = arith.constant 0 : i32
    %c0_i32_1 = arith.constant 0 : i32
    return %c0_i32, %c0_i32_0 : i32, i32
  }
  func.func @transform_9(%arg0: i32) -> (i32, i32) {
    %c0_i32 = arith.constant 0 : i32
    %c0_i32_0 = arith.constant 0 : i32
    %c0_i32_1 = arith.constant 0 : i32
    return %c0_i32, %c0_i32_0 : i32, i32
  }
  func.func @transform_10(%arg0: i32) -> (i32, i32) {
    %c0_i32 = arith.constant 0 : i32
    %c0_i32_0 = arith.constant 0 : i32
    %c0_i32_1 = arith.constant 0 : i32
    return %c0_i32, %c0_i32_0 : i32, i32
  }
  func.func @transform_11(%arg0: i32) -> (i32, i32) {
    %c0_i32 = arith.constant 0 : i32
    %c0_i32_0 = arith.constant 0 : i32
    %c0_i32_1 = arith.constant 0 : i32
    return %c0_i32, %c0_i32_0 : i32, i32
  }
  func.func @transform_12(%arg0: i32) -> (i32, i32) {
    %c0_i32 = arith.constant 0 : i32
    %c0_i32_0 = arith.constant 0 : i32
    %c0_i32_1 = arith.constant 0 : i32
    return %c0_i32, %c0_i32_0 : i32, i32
  }
  func.func @transform_13(%arg0: i32) -> (i32, i32) {
    %c0_i32 = arith.constant 0 : i32
    %c0_i32_0 = arith.constant 0 : i32
    %c0_i32_1 = arith.constant 0 : i32
    return %c0_i32, %c0_i32_0 : i32, i32
  }
  func.func @transform_14(%arg0: i32) -> (i32, i32) {
    %c0_i32 = arith.constant 0 : i32
    %c0_i32_0 = arith.constant 0 : i32
    %c0_i32_1 = arith.constant 0 : i32
    return %c0_i32, %c0_i32_0 : i32, i32
  }
  func.func @transform_15(%arg0: i32) -> (i32, i32) {
    %c0_i32 = arith.constant 0 : i32
    %c0_i32_0 = arith.constant 0 : i32
    %c0_i32_1 = arith.constant 0 : i32
    return %c0_i32, %c0_i32_0 : i32, i32
  }
  func.func @transform_16(%arg0: i32) -> (i32, i32) {
    %c0_i32 = arith.constant 0 : i32
    %c0_i32_0 = arith.constant 0 : i32
    %c0_i32_1 = arith.constant 0 : i32
    return %c0_i32, %c0_i32_0 : i32, i32
  }
  func.func @transform_17(%arg0: i32) -> (i32, i32) {
    %c0_i32 = arith.constant 0 : i32
    %c0_i32_0 = arith.constant 0 : i32
    %c0_i32_1 = arith.constant 0 : i32
    return %c0_i32, %c0_i32_0 : i32, i32
  }
  func.func @transform_18(%arg0: i32) -> (i32, i32) {
    %c0_i32 = arith.constant 0 : i32
    %c0_i32_0 = arith.constant 0 : i32
    %c0_i32_1 = arith.constant 0 : i32
    return %c0_i32, %c0_i32_0 : i32, i32
  }
  func.func @transform_19(%arg0: i32) -> (i32, i32, i32) {
    %c0_i32 = arith.constant 0 : i32
    %c0_i32_0 = arith.constant 0 : i32
    %c0_i32_1 = arith.constant 0 : i32
    %c0_i32_2 = arith.constant 0 : i32
    return %c0_i32, %c0_i32_0, %c0_i32_1 : i32, i32, i32
  }
  func.func @transform_20(%arg0: i32) -> (i32, i32, i32) {
    %c0_i32 = arith.constant 0 : i32
    %c0_i32_0 = arith.constant 0 : i32
    %c0_i32_1 = arith.constant 0 : i32
    %c0_i32_2 = arith.constant 0 : i32
    return %c0_i32, %c0_i32_0, %c0_i32_1 : i32, i32, i32
  }
  func.func @transform_21(%arg0: i32) -> (i32, i32, i32) {
    %c0_i32 = arith.constant 0 : i32
    %c0_i32_0 = arith.constant 0 : i32
    %c0_i32_1 = arith.constant 0 : i32
    %c0_i32_2 = arith.constant 0 : i32
    return %c0_i32, %c0_i32_0, %c0_i32_1 : i32, i32, i32
  }
  func.func @transform_22(%arg0: i32) -> (i32, i32, i32) {
    %c0_i32 = arith.constant 0 : i32
    %c0_i32_0 = arith.constant 0 : i32
    %c0_i32_1 = arith.constant 0 : i32
    %c0_i32_2 = arith.constant 0 : i32
    return %c0_i32, %c0_i32_0, %c0_i32_1 : i32, i32, i32
  }
  func.func @transform_23(%arg0: i32) -> (i32, i32, i32) {
    %c0_i32 = arith.constant 0 : i32
    %c0_i32_0 = arith.constant 0 : i32
    %c0_i32_1 = arith.constant 0 : i32
    %c0_i32_2 = arith.constant 0 : i32
    return %c0_i32, %c0_i32_0, %c0_i32_1 : i32, i32, i32
  }
  func.func @transform_24(%arg0: i32) -> (i32, i32, i32) {
    %c0_i32 = arith.constant 0 : i32
    %c0_i32_0 = arith.constant 0 : i32
    %c0_i32_1 = arith.constant 0 : i32
    %c0_i32_2 = arith.constant 0 : i32
    return %c0_i32, %c0_i32_0, %c0_i32_1 : i32, i32, i32
  }
  func.func @transform_25(%arg0: i32) -> (i32, i32, i32) {
    %c0_i32 = arith.constant 0 : i32
    %c0_i32_0 = arith.constant 0 : i32
    %c0_i32_1 = arith.constant 0 : i32
    %c0_i32_2 = arith.constant 0 : i32
    return %c0_i32, %c0_i32_0, %c0_i32_1 : i32, i32, i32
  }
  func.func @transform_26(%arg0: i32) -> (i32, i32) {
    %c0_i32 = arith.constant 0 : i32
    %c0_i32_0 = arith.constant 0 : i32
    %c0_i32_1 = arith.constant 0 : i32
    return %c0_i32, %c0_i32_0 : i32, i32
  }
  func.func @transform_27(%arg0: i32) -> (i32, i32) {
    %c0_i32 = arith.constant 0 : i32
    %c0_i32_0 = arith.constant 0 : i32
    %c0_i32_1 = arith.constant 0 : i32
    return %c0_i32, %c0_i32_0 : i32, i32
  }
  func.func @transform_28(%arg0: i32) -> (i32, i32, i32) {
    %c0_i32 = arith.constant 0 : i32
    %c0_i32_0 = arith.constant 0 : i32
    %c0_i32_1 = arith.constant 0 : i32
    return %arg0, %c0_i32, %c0_i32_0 : i32, i32, i32
  }
  func.func @transform_29(%arg0: i32) -> (i32, i32, i32) {
    %c0_i32 = arith.constant 0 : i32
    %c0_i32_0 = arith.constant 0 : i32
    %c0_i32_1 = arith.constant 0 : i32
    return %arg0, %c0_i32, %c0_i32_0 : i32, i32, i32
  }
}

module attributes {stable_mosaic.version = 11 : i64} {
  func.func @kernel(%arg0: i32, %arg1: memref<1x8x32xf32, #tpu.memory_space<vmem>>, %arg2: memref<2x1x32xf32, #tpu.memory_space<vmem>>, %arg3: memref<2x1x32xf32, #tpu.memory_space<vmem>>, %arg4: memref<2x32x32xbf16, #tpu.memory_space<vmem>>, %arg5: memref<2x1x32xf32, #tpu.memory_space<vmem>>, %arg6: memref<2x8x1xf32, #tpu.memory_space<vmem>>, %arg7: memref<2x8x1xf32, #tpu.memory_space<vmem>>, %arg8: memref<2x8x8xbf16, #tpu.memory_space<vmem>>, %arg9: memref<2x8x1xf32, #tpu.memory_space<vmem>>, %arg10: memref<2x1x32xf32, #tpu.memory_space<vmem>>, %arg11: memref<2x1x32xf32, #tpu.memory_space<vmem>>, %arg12: memref<2x32x32xbf16, #tpu.memory_space<vmem>>, %arg13: memref<2x1x32xf32, #tpu.memory_space<vmem>>, %arg14: memref<1x8x32xf32, #tpu.memory_space<vmem>>) attributes {dimension_semantics = [#tpu.dimension_semantics<parallel>], iteration_bounds = array<i64: 2>, scalar_prefetch = 0 : i64, scratch_operands = 0 : i64, tpu.core_type = #tpu.core_type<tc>, window_params = [{transform_indices = @transform_0, window_bounds = array<i64: 1, 8, 32>}, {pipeline_mode = #tpu.pipeline_mode<synchronous>, transform_indices = @transform_1, window_bounds = array<i64: 2, 1, 32>}, {pipeline_mode = #tpu.pipeline_mode<synchronous>, transform_indices = @transform_2, window_bounds = array<i64: 2, 1, 32>}, {pipeline_mode = #tpu.pipeline_mode<synchronous>, transform_indices = @transform_3, window_bounds = array<i64: 2, 32, 32>}, {pipeline_mode = #tpu.pipeline_mode<synchronous>, transform_indices = @transform_4, window_bounds = array<i64: 2, 1, 32>}, {pipeline_mode = #tpu.pipeline_mode<synchronous>, transform_indices = @transform_5, window_bounds = array<i64: 2, 8, 1>}, {pipeline_mode = #tpu.pipeline_mode<synchronous>, transform_indices = @transform_6, window_bounds = array<i64: 2, 8, 1>}, {pipeline_mode = #tpu.pipeline_mode<synchronous>, transform_indices = @transform_7, window_bounds = array<i64: 2, 8, 8>}, {pipeline_mode = #tpu.pipeline_mode<synchronous>, transform_indices = @transform_8, window_bounds = array<i64: 2, 8, 1>}, {pipeline_mode = #tpu.pipeline_mode<synchronous>, transform_indices = @transform_9, window_bounds = array<i64: 2, 1, 32>}, {pipeline_mode = #tpu.pipeline_mode<synchronous>, transform_indices = @transform_10, window_bounds = array<i64: 2, 1, 32>}, {pipeline_mode = #tpu.pipeline_mode<synchronous>, transform_indices = @transform_11, window_bounds = array<i64: 2, 32, 32>}, {pipeline_mode = #tpu.pipeline_mode<synchronous>, transform_indices = @transform_12, window_bounds = array<i64: 2, 1, 32>}, {transform_indices = @transform_13, window_bounds = array<i64: 1, 8, 32>}]} {
    %c0 = arith.constant 0 : index
    %c0_0 = arith.constant 0 : index
    %c0_1 = arith.constant 0 : index
    %0 = vector.load %arg1[%c0, %c0_0, %c0_1] : memref<1x8x32xf32, #tpu.memory_space<vmem>>, vector<1x8x32xf32>
    %1 = vector.shape_cast %0 : vector<1x8x32xf32> to vector<8x32xf32>
    %c0_2 = arith.constant 0 : index
    %c0_3 = arith.constant 0 : index
    %c0_4 = arith.constant 0 : index
    %2 = vector.load %arg2[%c0_2, %c0_3, %c0_4] : memref<2x1x32xf32, #tpu.memory_space<vmem>>, vector<1x1x32xf32>
    %3 = vector.shape_cast %2 : vector<1x1x32xf32> to vector<1x32xf32>
    %c0_5 = arith.constant 0 : index
    %c0_6 = arith.constant 0 : index
    %c0_7 = arith.constant 0 : index
    %4 = vector.load %arg3[%c0_5, %c0_6, %c0_7] : memref<2x1x32xf32, #tpu.memory_space<vmem>>, vector<1x1x32xf32>
    %5 = vector.shape_cast %4 : vector<1x1x32xf32> to vector<1x32xf32>
    %cst = arith.constant dense<0.000000e+00> : vector<32xf32>
    %6 = vector.multi_reduction <add>, %1, %cst [0] : vector<8x32xf32> to vector<32xf32>
    %7 = vector.shape_cast %6 : vector<32xf32> to vector<1x32xf32>
    %cst_8 = arith.constant 8.000000e+00 : f32
    %8 = vector.broadcast %cst_8 : f32 to vector<1x32xf32>
    %9 = arith.divf %7, %8 : vector<1x32xf32>
    %10 = arith.mulf %1, %1 : vector<8x32xf32>
    %cst_9 = arith.constant dense<0.000000e+00> : vector<32xf32>
    %11 = vector.multi_reduction <add>, %10, %cst_9 [0] : vector<8x32xf32> to vector<32xf32>
    %12 = vector.shape_cast %11 : vector<32xf32> to vector<1x32xf32>
    %cst_10 = arith.constant 8.000000e+00 : f32
    %13 = vector.broadcast %cst_10 : f32 to vector<1x32xf32>
    %14 = arith.divf %12, %13 : vector<1x32xf32>
    %15 = arith.mulf %9, %9 : vector<1x32xf32>
    %16 = arith.subf %14, %15 : vector<1x32xf32>
    %cst_11 = arith.constant 0.000000e+00 : f32
    %17 = vector.broadcast %cst_11 : f32 to vector<1x32xf32>
    %18 = arith.maximumf %16, %17 : vector<1x32xf32>
    %cst_12 = arith.constant 1.000000e-03 : f32
    %19 = vector.broadcast %cst_12 : f32 to vector<1x32xf32>
    %20 = arith.addf %18, %19 : vector<1x32xf32>
    %21 = math.rsqrt %20 : vector<1x32xf32>
    %22 = arith.mulf %21, %3 : vector<1x32xf32>
    %23 = vector.broadcast %22 : vector<1x32xf32> to vector<8x32xf32>
    %24 = arith.mulf %1, %23 : vector<8x32xf32>
    %25 = arith.mulf %9, %22 : vector<1x32xf32>
    %26 = arith.subf %5, %25 : vector<1x32xf32>
    %27 = vector.broadcast %26 : vector<1x32xf32> to vector<8x32xf32>
    %28 = arith.addf %24, %27 : vector<8x32xf32>
    %cst_13 = arith.constant 0.000000e+00 : f32
    %29 = vector.broadcast %cst_13 : f32 to vector<8x32xf32>
    %30 = arith.maximumf %28, %29 : vector<8x32xf32>
    %c0_14 = arith.constant 0 : index
    %c0_15 = arith.constant 0 : index
    %c0_16 = arith.constant 0 : index
    %31 = vector.load %arg4[%c0_14, %c0_15, %c0_16] : memref<2x32x32xbf16, #tpu.memory_space<vmem>>, vector<1x32x32xbf16>
    %32 = vector.shape_cast %31 : vector<1x32x32xbf16> to vector<32x32xbf16>
    %33 = arith.truncf %30 : vector<8x32xf32> to vector<8x32xbf16>
    %cst_17 = arith.constant dense<0.000000e+00> : vector<8x32xf32>
    %34 = tpu.matmul %33, %32, %cst_17 {dimension_numbers = #tpu.dot_dimension_numbers<[1], [0], [0], [1], [0, 0, 1, 1], [], []>} : vector<8x32xbf16>, vector<32x32xbf16>, vector<8x32xf32> -> vector<8x32xf32>
    %c0_18 = arith.constant 0 : index
    %c0_19 = arith.constant 0 : index
    %c0_20 = arith.constant 0 : index
    %35 = vector.load %arg5[%c0_18, %c0_19, %c0_20] : memref<2x1x32xf32, #tpu.memory_space<vmem>>, vector<1x1x32xf32>
    %36 = vector.shape_cast %35 : vector<1x1x32xf32> to vector<1x32xf32>
    %37 = vector.broadcast %36 : vector<1x32xf32> to vector<8x32xf32>
    %38 = arith.addf %34, %37 : vector<8x32xf32>
    %c0_21 = arith.constant 0 : index
    %c0_22 = arith.constant 0 : index
    %c0_23 = arith.constant 0 : index
    %39 = vector.load %arg6[%c0_21, %c0_22, %c0_23] : memref<2x8x1xf32, #tpu.memory_space<vmem>>, vector<1x8x1xf32>
    %40 = vector.shape_cast %39 : vector<1x8x1xf32> to vector<8x1xf32>
    %41 = vector.broadcast %40 : vector<8x1xf32> to vector<8x32xf32>
    %42 = arith.mulf %38, %41 : vector<8x32xf32>
    %c0_24 = arith.constant 0 : index
    %c0_25 = arith.constant 0 : index
    %c0_26 = arith.constant 0 : index
    %43 = vector.load %arg7[%c0_24, %c0_25, %c0_26] : memref<2x8x1xf32, #tpu.memory_space<vmem>>, vector<1x8x1xf32>
    %44 = vector.shape_cast %43 : vector<1x8x1xf32> to vector<8x1xf32>
    %45 = vector.broadcast %44 : vector<8x1xf32> to vector<8x32xf32>
    %46 = arith.addf %42, %45 : vector<8x32xf32>
    %cst_27 = arith.constant 0.000000e+00 : f32
    %47 = vector.broadcast %cst_27 : f32 to vector<8x32xf32>
    %48 = arith.maximumf %46, %47 : vector<8x32xf32>
    %c0_28 = arith.constant 0 : index
    %c0_29 = arith.constant 0 : index
    %c0_30 = arith.constant 0 : index
    %49 = vector.load %arg8[%c0_28, %c0_29, %c0_30] : memref<2x8x8xbf16, #tpu.memory_space<vmem>>, vector<1x8x8xbf16>
    %50 = vector.shape_cast %49 : vector<1x8x8xbf16> to vector<8x8xbf16>
    %51 = arith.truncf %48 : vector<8x32xf32> to vector<8x32xbf16>
    %cst_31 = arith.constant dense<0.000000e+00> : vector<8x32xf32>
    %52 = tpu.matmul %50, %51, %cst_31 {dimension_numbers = #tpu.dot_dimension_numbers<[1], [0], [0], [1], [0, 0, 1, 1], [], []>} : vector<8x8xbf16>, vector<8x32xbf16>, vector<8x32xf32> -> vector<8x32xf32>
    %c0_32 = arith.constant 0 : index
    %c0_33 = arith.constant 0 : index
    %c0_34 = arith.constant 0 : index
    %53 = vector.load %arg9[%c0_32, %c0_33, %c0_34] : memref<2x8x1xf32, #tpu.memory_space<vmem>>, vector<1x8x1xf32>
    %54 = vector.shape_cast %53 : vector<1x8x1xf32> to vector<8x1xf32>
    %55 = vector.broadcast %54 : vector<8x1xf32> to vector<8x32xf32>
    %56 = arith.addf %52, %55 : vector<8x32xf32>
    %57 = arith.addf %38, %56 : vector<8x32xf32>
    %c0_35 = arith.constant 0 : index
    %c0_36 = arith.constant 0 : index
    %c0_37 = arith.constant 0 : index
    %58 = vector.load %arg10[%c0_35, %c0_36, %c0_37] : memref<2x1x32xf32, #tpu.memory_space<vmem>>, vector<1x1x32xf32>
    %59 = vector.shape_cast %58 : vector<1x1x32xf32> to vector<1x32xf32>
    %c0_38 = arith.constant 0 : index
    %c0_39 = arith.constant 0 : index
    %c0_40 = arith.constant 0 : index
    %60 = vector.load %arg11[%c0_38, %c0_39, %c0_40] : memref<2x1x32xf32, #tpu.memory_space<vmem>>, vector<1x1x32xf32>
    %61 = vector.shape_cast %60 : vector<1x1x32xf32> to vector<1x32xf32>
    %cst_41 = arith.constant dense<0.000000e+00> : vector<32xf32>
    %62 = vector.multi_reduction <add>, %57, %cst_41 [0] : vector<8x32xf32> to vector<32xf32>
    %63 = vector.shape_cast %62 : vector<32xf32> to vector<1x32xf32>
    %cst_42 = arith.constant 8.000000e+00 : f32
    %64 = vector.broadcast %cst_42 : f32 to vector<1x32xf32>
    %65 = arith.divf %63, %64 : vector<1x32xf32>
    %66 = arith.mulf %57, %57 : vector<8x32xf32>
    %cst_43 = arith.constant dense<0.000000e+00> : vector<32xf32>
    %67 = vector.multi_reduction <add>, %66, %cst_43 [0] : vector<8x32xf32> to vector<32xf32>
    %68 = vector.shape_cast %67 : vector<32xf32> to vector<1x32xf32>
    %cst_44 = arith.constant 8.000000e+00 : f32
    %69 = vector.broadcast %cst_44 : f32 to vector<1x32xf32>
    %70 = arith.divf %68, %69 : vector<1x32xf32>
    %71 = arith.mulf %65, %65 : vector<1x32xf32>
    %72 = arith.subf %70, %71 : vector<1x32xf32>
    %cst_45 = arith.constant 0.000000e+00 : f32
    %73 = vector.broadcast %cst_45 : f32 to vector<1x32xf32>
    %74 = arith.maximumf %72, %73 : vector<1x32xf32>
    %cst_46 = arith.constant 1.000000e-03 : f32
    %75 = vector.broadcast %cst_46 : f32 to vector<1x32xf32>
    %76 = arith.addf %74, %75 : vector<1x32xf32>
    %77 = math.rsqrt %76 : vector<1x32xf32>
    %78 = arith.mulf %77, %59 : vector<1x32xf32>
    %79 = vector.broadcast %78 : vector<1x32xf32> to vector<8x32xf32>
    %80 = arith.mulf %57, %79 : vector<8x32xf32>
    %81 = arith.mulf %65, %78 : vector<1x32xf32>
    %82 = arith.subf %61, %81 : vector<1x32xf32>
    %83 = vector.broadcast %82 : vector<1x32xf32> to vector<8x32xf32>
    %84 = arith.addf %80, %83 : vector<8x32xf32>
    %cst_47 = arith.constant 0.000000e+00 : f32
    %85 = vector.broadcast %cst_47 : f32 to vector<8x32xf32>
    %86 = arith.maximumf %84, %85 : vector<8x32xf32>
    %c0_48 = arith.constant 0 : index
    %c0_49 = arith.constant 0 : index
    %c0_50 = arith.constant 0 : index
    %87 = vector.load %arg12[%c0_48, %c0_49, %c0_50] : memref<2x32x32xbf16, #tpu.memory_space<vmem>>, vector<1x32x32xbf16>
    %88 = vector.shape_cast %87 : vector<1x32x32xbf16> to vector<32x32xbf16>
    %89 = arith.truncf %86 : vector<8x32xf32> to vector<8x32xbf16>
    %cst_51 = arith.constant dense<0.000000e+00> : vector<8x32xf32>
    %90 = tpu.matmul %89, %88, %cst_51 {dimension_numbers = #tpu.dot_dimension_numbers<[1], [0], [0], [1], [0, 0, 1, 1], [], []>} : vector<8x32xbf16>, vector<32x32xbf16>, vector<8x32xf32> -> vector<8x32xf32>
    %c0_52 = arith.constant 0 : index
    %c0_53 = arith.constant 0 : index
    %c0_54 = arith.constant 0 : index
    %91 = vector.load %arg13[%c0_52, %c0_53, %c0_54] : memref<2x1x32xf32, #tpu.memory_space<vmem>>, vector<1x1x32xf32>
    %92 = vector.shape_cast %91 : vector<1x1x32xf32> to vector<1x32xf32>
    %93 = vector.broadcast %92 : vector<1x32xf32> to vector<8x32xf32>
    %94 = arith.addf %90, %93 : vector<8x32xf32>
    %95 = arith.addf %94, %1 : vector<8x32xf32>
    %c1 = arith.constant 1 : index
    %c0_55 = arith.constant 0 : index
    %c0_56 = arith.constant 0 : index
    %96 = vector.load %arg2[%c1, %c0_55, %c0_56] : memref<2x1x32xf32, #tpu.memory_space<vmem>>, vector<1x1x32xf32>
    %97 = vector.shape_cast %96 : vector<1x1x32xf32> to vector<1x32xf32>
    %c1_57 = arith.constant 1 : index
    %c0_58 = arith.constant 0 : index
    %c0_59 = arith.constant 0 : index
    %98 = vector.load %arg3[%c1_57, %c0_58, %c0_59] : memref<2x1x32xf32, #tpu.memory_space<vmem>>, vector<1x1x32xf32>
    %99 = vector.shape_cast %98 : vector<1x1x32xf32> to vector<1x32xf32>
    %cst_60 = arith.constant dense<0.000000e+00> : vector<32xf32>
    %100 = vector.multi_reduction <add>, %95, %cst_60 [0] : vector<8x32xf32> to vector<32xf32>
    %101 = vector.shape_cast %100 : vector<32xf32> to vector<1x32xf32>
    %cst_61 = arith.constant 8.000000e+00 : f32
    %102 = vector.broadcast %cst_61 : f32 to vector<1x32xf32>
    %103 = arith.divf %101, %102 : vector<1x32xf32>
    %104 = arith.mulf %95, %95 : vector<8x32xf32>
    %cst_62 = arith.constant dense<0.000000e+00> : vector<32xf32>
    %105 = vector.multi_reduction <add>, %104, %cst_62 [0] : vector<8x32xf32> to vector<32xf32>
    %106 = vector.shape_cast %105 : vector<32xf32> to vector<1x32xf32>
    %cst_63 = arith.constant 8.000000e+00 : f32
    %107 = vector.broadcast %cst_63 : f32 to vector<1x32xf32>
    %108 = arith.divf %106, %107 : vector<1x32xf32>
    %109 = arith.mulf %103, %103 : vector<1x32xf32>
    %110 = arith.subf %108, %109 : vector<1x32xf32>
    %cst_64 = arith.constant 0.000000e+00 : f32
    %111 = vector.broadcast %cst_64 : f32 to vector<1x32xf32>
    %112 = arith.maximumf %110, %111 : vector<1x32xf32>
    %cst_65 = arith.constant 1.000000e-03 : f32
    %113 = vector.broadcast %cst_65 : f32 to vector<1x32xf32>
    %114 = arith.addf %112, %113 : vector<1x32xf32>
    %115 = math.rsqrt %114 : vector<1x32xf32>
    %116 = arith.mulf %115, %97 : vector<1x32xf32>
    %117 = vector.broadcast %116 : vector<1x32xf32> to vector<8x32xf32>
    %118 = arith.mulf %95, %117 : vector<8x32xf32>
    %119 = arith.mulf %103, %116 : vector<1x32xf32>
    %120 = arith.subf %99, %119 : vector<1x32xf32>
    %121 = vector.broadcast %120 : vector<1x32xf32> to vector<8x32xf32>
    %122 = arith.addf %118, %121 : vector<8x32xf32>
    %cst_66 = arith.constant 0.000000e+00 : f32
    %123 = vector.broadcast %cst_66 : f32 to vector<8x32xf32>
    %124 = arith.maximumf %122, %123 : vector<8x32xf32>
    %c1_67 = arith.constant 1 : index
    %c0_68 = arith.constant 0 : index
    %c0_69 = arith.constant 0 : index
    %125 = vector.load %arg4[%c1_67, %c0_68, %c0_69] : memref<2x32x32xbf16, #tpu.memory_space<vmem>>, vector<1x32x32xbf16>
    %126 = vector.shape_cast %125 : vector<1x32x32xbf16> to vector<32x32xbf16>
    %127 = arith.truncf %124 : vector<8x32xf32> to vector<8x32xbf16>
    %cst_70 = arith.constant dense<0.000000e+00> : vector<8x32xf32>
    %128 = tpu.matmul %127, %126, %cst_70 {dimension_numbers = #tpu.dot_dimension_numbers<[1], [0], [0], [1], [0, 0, 1, 1], [], []>} : vector<8x32xbf16>, vector<32x32xbf16>, vector<8x32xf32> -> vector<8x32xf32>
    %c1_71 = arith.constant 1 : index
    %c0_72 = arith.constant 0 : index
    %c0_73 = arith.constant 0 : index
    %129 = vector.load %arg5[%c1_71, %c0_72, %c0_73] : memref<2x1x32xf32, #tpu.memory_space<vmem>>, vector<1x1x32xf32>
    %130 = vector.shape_cast %129 : vector<1x1x32xf32> to vector<1x32xf32>
    %131 = vector.broadcast %130 : vector<1x32xf32> to vector<8x32xf32>
    %132 = arith.addf %128, %131 : vector<8x32xf32>
    %c1_74 = arith.constant 1 : index
    %c0_75 = arith.constant 0 : index
    %c0_76 = arith.constant 0 : index
    %133 = vector.load %arg6[%c1_74, %c0_75, %c0_76] : memref<2x8x1xf32, #tpu.memory_space<vmem>>, vector<1x8x1xf32>
    %134 = vector.shape_cast %133 : vector<1x8x1xf32> to vector<8x1xf32>
    %135 = vector.broadcast %134 : vector<8x1xf32> to vector<8x32xf32>
    %136 = arith.mulf %132, %135 : vector<8x32xf32>
    %c1_77 = arith.constant 1 : index
    %c0_78 = arith.constant 0 : index
    %c0_79 = arith.constant 0 : index
    %137 = vector.load %arg7[%c1_77, %c0_78, %c0_79] : memref<2x8x1xf32, #tpu.memory_space<vmem>>, vector<1x8x1xf32>
    %138 = vector.shape_cast %137 : vector<1x8x1xf32> to vector<8x1xf32>
    %139 = vector.broadcast %138 : vector<8x1xf32> to vector<8x32xf32>
    %140 = arith.addf %136, %139 : vector<8x32xf32>
    %cst_80 = arith.constant 0.000000e+00 : f32
    %141 = vector.broadcast %cst_80 : f32 to vector<8x32xf32>
    %142 = arith.maximumf %140, %141 : vector<8x32xf32>
    %c1_81 = arith.constant 1 : index
    %c0_82 = arith.constant 0 : index
    %c0_83 = arith.constant 0 : index
    %143 = vector.load %arg8[%c1_81, %c0_82, %c0_83] : memref<2x8x8xbf16, #tpu.memory_space<vmem>>, vector<1x8x8xbf16>
    %144 = vector.shape_cast %143 : vector<1x8x8xbf16> to vector<8x8xbf16>
    %145 = arith.truncf %142 : vector<8x32xf32> to vector<8x32xbf16>
    %cst_84 = arith.constant dense<0.000000e+00> : vector<8x32xf32>
    %146 = tpu.matmul %144, %145, %cst_84 {dimension_numbers = #tpu.dot_dimension_numbers<[1], [0], [0], [1], [0, 0, 1, 1], [], []>} : vector<8x8xbf16>, vector<8x32xbf16>, vector<8x32xf32> -> vector<8x32xf32>
    %c1_85 = arith.constant 1 : index
    %c0_86 = arith.constant 0 : index
    %c0_87 = arith.constant 0 : index
    %147 = vector.load %arg9[%c1_85, %c0_86, %c0_87] : memref<2x8x1xf32, #tpu.memory_space<vmem>>, vector<1x8x1xf32>
    %148 = vector.shape_cast %147 : vector<1x8x1xf32> to vector<8x1xf32>
    %149 = vector.broadcast %148 : vector<8x1xf32> to vector<8x32xf32>
    %150 = arith.addf %146, %149 : vector<8x32xf32>
    %151 = arith.addf %132, %150 : vector<8x32xf32>
    %c1_88 = arith.constant 1 : index
    %c0_89 = arith.constant 0 : index
    %c0_90 = arith.constant 0 : index
    %152 = vector.load %arg10[%c1_88, %c0_89, %c0_90] : memref<2x1x32xf32, #tpu.memory_space<vmem>>, vector<1x1x32xf32>
    %153 = vector.shape_cast %152 : vector<1x1x32xf32> to vector<1x32xf32>
    %c1_91 = arith.constant 1 : index
    %c0_92 = arith.constant 0 : index
    %c0_93 = arith.constant 0 : index
    %154 = vector.load %arg11[%c1_91, %c0_92, %c0_93] : memref<2x1x32xf32, #tpu.memory_space<vmem>>, vector<1x1x32xf32>
    %155 = vector.shape_cast %154 : vector<1x1x32xf32> to vector<1x32xf32>
    %cst_94 = arith.constant dense<0.000000e+00> : vector<32xf32>
    %156 = vector.multi_reduction <add>, %151, %cst_94 [0] : vector<8x32xf32> to vector<32xf32>
    %157 = vector.shape_cast %156 : vector<32xf32> to vector<1x32xf32>
    %cst_95 = arith.constant 8.000000e+00 : f32
    %158 = vector.broadcast %cst_95 : f32 to vector<1x32xf32>
    %159 = arith.divf %157, %158 : vector<1x32xf32>
    %160 = arith.mulf %151, %151 : vector<8x32xf32>
    %cst_96 = arith.constant dense<0.000000e+00> : vector<32xf32>
    %161 = vector.multi_reduction <add>, %160, %cst_96 [0] : vector<8x32xf32> to vector<32xf32>
    %162 = vector.shape_cast %161 : vector<32xf32> to vector<1x32xf32>
    %cst_97 = arith.constant 8.000000e+00 : f32
    %163 = vector.broadcast %cst_97 : f32 to vector<1x32xf32>
    %164 = arith.divf %162, %163 : vector<1x32xf32>
    %165 = arith.mulf %159, %159 : vector<1x32xf32>
    %166 = arith.subf %164, %165 : vector<1x32xf32>
    %cst_98 = arith.constant 0.000000e+00 : f32
    %167 = vector.broadcast %cst_98 : f32 to vector<1x32xf32>
    %168 = arith.maximumf %166, %167 : vector<1x32xf32>
    %cst_99 = arith.constant 1.000000e-03 : f32
    %169 = vector.broadcast %cst_99 : f32 to vector<1x32xf32>
    %170 = arith.addf %168, %169 : vector<1x32xf32>
    %171 = math.rsqrt %170 : vector<1x32xf32>
    %172 = arith.mulf %171, %153 : vector<1x32xf32>
    %173 = vector.broadcast %172 : vector<1x32xf32> to vector<8x32xf32>
    %174 = arith.mulf %151, %173 : vector<8x32xf32>
    %175 = arith.mulf %159, %172 : vector<1x32xf32>
    %176 = arith.subf %155, %175 : vector<1x32xf32>
    %177 = vector.broadcast %176 : vector<1x32xf32> to vector<8x32xf32>
    %178 = arith.addf %174, %177 : vector<8x32xf32>
    %cst_100 = arith.constant 0.000000e+00 : f32
    %179 = vector.broadcast %cst_100 : f32 to vector<8x32xf32>
    %180 = arith.maximumf %178, %179 : vector<8x32xf32>
    %c1_101 = arith.constant 1 : index
    %c0_102 = arith.constant 0 : index
    %c0_103 = arith.constant 0 : index
    %181 = vector.load %arg12[%c1_101, %c0_102, %c0_103] : memref<2x32x32xbf16, #tpu.memory_space<vmem>>, vector<1x32x32xbf16>
    %182 = vector.shape_cast %181 : vector<1x32x32xbf16> to vector<32x32xbf16>
    %183 = arith.truncf %180 : vector<8x32xf32> to vector<8x32xbf16>
    %cst_104 = arith.constant dense<0.000000e+00> : vector<8x32xf32>
    %184 = tpu.matmul %183, %182, %cst_104 {dimension_numbers = #tpu.dot_dimension_numbers<[1], [0], [0], [1], [0, 0, 1, 1], [], []>} : vector<8x32xbf16>, vector<32x32xbf16>, vector<8x32xf32> -> vector<8x32xf32>
    %c1_105 = arith.constant 1 : index
    %c0_106 = arith.constant 0 : index
    %c0_107 = arith.constant 0 : index
    %185 = vector.load %arg13[%c1_105, %c0_106, %c0_107] : memref<2x1x32xf32, #tpu.memory_space<vmem>>, vector<1x1x32xf32>
    %186 = vector.shape_cast %185 : vector<1x1x32xf32> to vector<1x32xf32>
    %187 = vector.broadcast %186 : vector<1x32xf32> to vector<8x32xf32>
    %188 = arith.addf %184, %187 : vector<8x32xf32>
    %189 = arith.addf %188, %95 : vector<8x32xf32>
    %c0_108 = arith.constant 0 : index
    %c0_109 = arith.constant 0 : index
    %c0_110 = arith.constant 0 : index
    %190 = vector.load %arg14[%c0_108, %c0_109, %c0_110] : memref<1x8x32xf32, #tpu.memory_space<vmem>>, vector<1x8x32xf32>
    %191 = vector.shape_cast %190 : vector<1x8x32xf32> to vector<8x32xf32>
    %192 = vector.shape_cast %189 : vector<8x32xf32> to vector<1x8x32xf32>
    tpu.vector_store %arg14[%c0_108, %c0_109, %c0_110], %192 {strides = array<i32>} : memref<1x8x32xf32, #tpu.memory_space<vmem>>, vector<1x8x32xf32>,
    return
  }
  func.func @transform_0(%arg0: i32) -> (i32, i32, i32) {
    %c0_i32 = arith.constant 0 : i32
    %c0_i32_0 = arith.constant 0 : i32
    %c0_i32_1 = arith.constant 0 : i32
    return %arg0, %c0_i32, %c0_i32_0 : i32, i32, i32
  }
  func.func @transform_1(%arg0: i32) -> (i32, i32, i32) {
    %c0_i32 = arith.constant 0 : i32
    %c0_i32_0 = arith.constant 0 : i32
    %c0_i32_1 = arith.constant 0 : i32
    %c0_i32_2 = arith.constant 0 : i32
    return %c0_i32, %c0_i32_0, %c0_i32_1 : i32, i32, i32
  }
  func.func @transform_2(%arg0: i32) -> (i32, i32, i32) {
    %c0_i32 = arith.constant 0 : i32
    %c0_i32_0 = arith.constant 0 : i32
    %c0_i32_1 = arith.constant 0 : i32
    %c0_i32_2 = arith.constant 0 : i32
    return %c0_i32, %c0_i32_0, %c0_i32_1 : i32, i32, i32
  }
  func.func @transform_3(%arg0: i32) -> (i32, i32, i32) {
    %c0_i32 = arith.constant 0 : i32
    %c0_i32_0 = arith.constant 0 : i32
    %c0_i32_1 = arith.constant 0 : i32
    %c0_i32_2 = arith.constant 0 : i32
    return %c0_i32, %c0_i32_0, %c0_i32_1 : i32, i32, i32
  }
  func.func @transform_4(%arg0: i32) -> (i32, i32, i32) {
    %c0_i32 = arith.constant 0 : i32
    %c0_i32_0 = arith.constant 0 : i32
    %c0_i32_1 = arith.constant 0 : i32
    %c0_i32_2 = arith.constant 0 : i32
    return %c0_i32, %c0_i32_0, %c0_i32_1 : i32, i32, i32
  }
  func.func @transform_5(%arg0: i32) -> (i32, i32, i32) {
    %c0_i32 = arith.constant 0 : i32
    %c0_i32_0 = arith.constant 0 : i32
    %c0_i32_1 = arith.constant 0 : i32
    %c0_i32_2 = arith.constant 0 : i32
    return %c0_i32, %c0_i32_0, %c0_i32_1 : i32, i32, i32
  }
  func.func @transform_6(%arg0: i32) -> (i32, i32, i32) {
    %c0_i32 = arith.constant 0 : i32
    %c0_i32_0 = arith.constant 0 : i32
    %c0_i32_1 = arith.constant 0 : i32
    %c0_i32_2 = arith.constant 0 : i32
    return %c0_i32, %c0_i32_0, %c0_i32_1 : i32, i32, i32
  }
  func.func @transform_7(%arg0: i32) -> (i32, i32, i32) {
    %c0_i32 = arith.constant 0 : i32
    %c0_i32_0 = arith.constant 0 : i32
    %c0_i32_1 = arith.constant 0 : i32
    %c0_i32_2 = arith.constant 0 : i32
    return %c0_i32, %c0_i32_0, %c0_i32_1 : i32, i32, i32
  }
  func.func @transform_8(%arg0: i32) -> (i32, i32, i32) {
    %c0_i32 = arith.constant 0 : i32
    %c0_i32_0 = arith.constant 0 : i32
    %c0_i32_1 = arith.constant 0 : i32
    %c0_i32_2 = arith.constant 0 : i32
    return %c0_i32, %c0_i32_0, %c0_i32_1 : i32, i32, i32
  }
  func.func @transform_9(%arg0: i32) -> (i32, i32, i32) {
    %c0_i32 = arith.constant 0 : i32
    %c0_i32_0 = arith.constant 0 : i32
    %c0_i32_1 = arith.constant 0 : i32
    %c0_i32_2 = arith.constant 0 : i32
    return %c0_i32, %c0_i32_0, %c0_i32_1 : i32, i32, i32
  }
  func.func @transform_10(%arg0: i32) -> (i32, i32, i32) {
    %c0_i32 = arith.constant 0 : i32
    %c0_i32_0 = arith.constant 0 : i32
    %c0_i32_1 = arith.constant 0 : i32
    %c0_i32_2 = arith.constant 0 : i32
    return %c0_i32, %c0_i32_0, %c0_i32_1 : i32, i32, i32
  }
  func.func @transform_11(%arg0: i32) -> (i32, i32, i32) {
    %c0_i32 = arith.constant 0 : i32
    %c0_i32_0 = arith.constant 0 : i32
    %c0_i32_1 = arith.constant 0 : i32
    %c0_i32_2 = arith.constant 0 : i32
    return %c0_i32, %c0_i32_0, %c0_i32_1 : i32, i32, i32
  }
  func.func @transform_12(%arg0: i32) -> (i32, i32, i32) {
    %c0_i32 = arith.constant 0 : i32
    %c0_i32_0 = arith.constant 0 : i32
    %c0_i32_1 = arith.constant 0 : i32
    %c0_i32_2 = arith.constant 0 : i32
    return %c0_i32, %c0_i32_0, %c0_i32_1 : i32, i32, i32
  }
  func.func @transform_13(%arg0: i32) -> (i32, i32, i32) {
    %c0_i32 = arith.constant 0 : i32
    %c0_i32_0 = arith.constant 0 : i32
    %c0_i32_1 = arith.constant 0 : i32
    return %arg0, %c0_i32, %c0_i32_0 : i32, i32, i32
  }
}

</mosaic_0001>

<bundles_post_ra>
// kernel: custom-call.57
= control target key start
LH: loop header
LB: loop body
LE: loop exit
PB: predicated region body
PF: predicated region fallthrough
CT: control target
= control target key end

     0   :  { %s651_s9 = smov 0   ;;  %s653_s10 = smov 0   ;;  %s801_s0 = inlined_call_operand.vmem [shape: f32[2,6,3], index: 0, kind: input, shape index: {}]   ;;  %s802_s1 = inlined_call_operand.vmem [shape: f32[2,6,3], index: 1, kind: output, shape index: {0}]   ;;  %s803_s2 = inlined_call_operand.vmem [shape: f32[2,3], index: 2, kind: output, shape index: {1}]  }
   0x1   :  { %s655_s11 = smov 0   ;;  %s657_s12 = smov 0  }
   0x2   :  { %s659_s13 = smov 0  }
   0x3 LB: > { %s28_s14 = sadd.s32 1, %s624_s12  ;;  %s506_s15 = sadd.s32 4294967295, %s628_s13   ;;  %s628_s13 = sphi %s659_s13, %s9_s13   ;;  %s624_s12 = sphi %s657_s12, %s810_s12   ;;  %s620_s11 = sphi %s655_s11, %s809_s11   ;;  %s616_s10 = sphi %s653_s10, %s808_s10   ;;  %s612_s9 = sphi %s651_s9, %s807_s9  }
   0x4   : > { %p30_p0 = scmp.ge.s32.totalorder %s28_s14, 2  ;;  %s33_s16 = ssub.s32 0, %s624_s12 }
   0x5   : > { %s508_s17 = smin.u32 %s624_s12, %s33_s16  ;;  %p57_p1 = scmp.ne.s32.totalorder %s616_s10, %s612_s9 }
   0x6   : > { %s812_s14 = smov (%p30_p0, %s28_s14), 0  ;;  %s35_s18 = sshrl.u32 %s508_s17, 3 }
   0x7   : > { %s39_s19 = ssub.s32 0, %s812_s14  ;;  %p58_p2 = scmp.eq.s32.totalorder %s506_s15, 1 }
   0x8   : > { %s509_s20 = smin.u32 %s39_s19, %s812_s14  ;;  %s47_s24 = sadd.s32 1, %s616_s10 }
   0x9   : > { %s41_s21 = sshrl.u32 %s509_s20, 3  ;;  %p686_p3 = por %p58_p2, %p57_p1 }
   0xa   : > { %s44_s23 = ssub.s32 %s35_s18, %s41_s21  ;;  %p511_p5 = scmp.ge.s32.totalorder %s628_s13, 2 }
   0xb   : > { %p45_p4 = scmp.eq.s32.totalorder %s44_s23, 0  ;;  %s82_s26 = sand.u32 (!%p511_p5), 1, %s628_s13  }
   0xc   : > { %80 = sbr.rel (%p511_p5) target bundleno = 19 (0x13), region = 16  ;;  %s513_s27 = sshll.u32 (!%p511_p5), %s624_s12, 3 }
   0xd   : > { %s692_s25 = scalar_select %p45_p4, %s616_s10, %s47_s24  }
   0xe   : > { %s512_s28 = sshll.u32 (!%p511_p5), %s82_s26, 3  ;;  %s88_s3 = scalar_lea.vmem (!%p511_p5), %s801_s0, %s513_s27 }
   0xf   : > { %s84_s4 = scalar_lea.vmem (!%p511_p5), [#allocation0], %s512_s28 }
  0x11   : > { %v117_v0 = vld [vmem:[%s88_s3] sm:$0xff] }
  0x12   : > { %118 = vst [vmem:[%s84_s4] sm:$0xff] %v117_v0 }
  0x13 PF: > { %p514_p6 = scmp.ge.s32.totalorder %s628_s13, 1  ;;  %p123_p7 = scmp.lt.s32.totalorder %s628_s13, 3 }
  0x15   : > { %p124_p8 = pnand %p514_p6, %p123_p7 }
  0x17   : > { %127 = sbr.rel (%p124_p8) target bundleno = 336 (0x150), region = 54 }
  0x1c   : > { %s130_s5 = sand.u32 1, %s506_s15   ;;  %s144_s6 = sand.u32 1, %s612_s9   ;;  %v634_v2 = vmov 0.0  }
  0x1d   : > { %s515_s7 = sshll.u32 %s130_s5, 3  ;;  %s703_s8 = sshll.u32 %s144_s6, 1 }
  0x1e   : > { %s153_s16 = sand.u32 7, %s620_s11   ;;  %s132_s17 = scalar_lea.vmem [#allocation0], %s515_s7 }
  0x1f   : > { %v155_v1 = vld [vmem:[%s132_s17] sm:$0xff]  ;;  %s706_s18 = scalar_lea.vmem [#allocation1], %s515_s7  ;;  %s709_s19 = scalar_lea.vmem [#allocation2], %s153_s16 }
  0x20   : > { %156 = vst [vmem:[%s706_s18] sm:$0xff] %v155_v1  ;;  %157 = vst [vmem:[%s709_s19] sm:$0x1] %v634_v2  ;;  %s146_s15 = scalar_lea.vmem [#allocation3], %s703_s8  ;;  %s713_s20 = smov 0  }
  0x21 LB: >> { %v165_v3 = vlaneseq  ;;  %v722_v5 = vstv %s632_s20  ;;  %s192_s9 = scalar_lea.vmem %s706_s18, %s632_s20 [#allocation1]  ;;  %s250_s21 = scalar_lea.vmem [#allocation4], %s632_s20  ;;  %v635_v59 = vmov 1.0   ;;  %s632_s20 = sphi %s713_s20, %s163_s20  }
  0x22   : >> { %s267_s23 = smov [#allocation4] }
  0x23   : >> { %v719_v4 = vshrl.u32 %v165_v3, 7  ;;  %v244_v48 = vand.u32 127, %v165_v3 }
  0x25   : >> { %vm169_vm0 = vcmp.gt.s32.totalorder %v719_v4, %v722_v5  ;;  %vm170_vm1 = vcmp.lt.s32.totalorder %v719_v4, 6  ;;  %v231_v4 = vmov %v719_v4  ;;  %vm740_vm12 = vcmp.eq.s32.totalorder %v244_v48, %v722_v5 }
  0x26   : >> { %vm171_vm2 = vmand %vm169_vm0, %vm170_vm1  ;;  %vm235_vm9 = vcmp.gt.s32.totalorder %v231_v4, %v722_v5  ;;  %vm236_vm10 = vcmp.lt.s32.totalorder %v231_v4, 6  ;;  %v270_v4 = vmov %v719_v4  ;;  %vm296_vm15 = vcmp.gt.s32.totalorder %v244_v48, %v722_v5 }
  0x27   : >> { %v164_v6 = vld [vmem:[%s706_s18] sm:$0xff]  ;;  %v193_v15 = vld [vmem:[%s192_s9] ss:$0 sm:$0xff]  ;;  %s228_s18 = smov %s706_s18  ;;  %vm237_vm11 = vmand %vm235_vm9, %vm236_vm10  ;;  %vm275_vm13 = vcmp.lt.s32.totalorder %v270_v4, 6  ;;  %v287_v4 = vmov %v719_v4 }
  0x28   : >> { %v172_v7 = vsel %vm171_vm2, %v164_v6, 0.0  ;;  %v194_v16 = vand.u32 2147483647, %v193_v15  ;;  %vm219_vm8 = vcmp.lt.f32.partialorder %v193_v15, 0.0  ;;  %v232_v45 = vld [vmem:[%s228_s18] sm:$0xff]  ;;  %s266_s18 = smov %s706_s18  ;;  %vm304_vm14 = vcmp.ge.s32.totalorder %v287_v4, %v722_v5 }
  0x29   : >> { %v173_v8 = vmul.f32 %v172_v7, %v172_v7  ;;  %v238_v49 = vsel %vm237_vm11, %v232_v45, 0.0  ;;  %v263_v60 = vld [vmem:[%s709_s19] ss:$0 sm:$0xff]  ;;  %vm305_vm0 = vmand %vm740_vm12, %vm304_vm14 }
  0x2a   : >> { %v195_v21 = vmax.f32 %v194_v16, 0.0  ;;  %v273_v63 = vld [vmem:[%s266_s18] sm:$0xff]  ;;  %s283_s18 = smov %s266_s18 }
  0x2b   : >> { %v174_v9 = vrot.slane %v173_v8, 4  ;;  %s308_s24 = scalar_lea.vmem %s283_s18, %s632_s20  ;;  %s163_s20 = sadd.s32 1, %s632_s20  }
  0x2c   : >> { %p160_p9 = scmp.ge.s32.totalorder %s163_s20, 3  }
  0x2d   : >> { %v175_v10 = vadd.f32 %v174_v9, %v173_v8  ;;  %s521_s26 = sshll.u32 (%p160_p9), %s620_s11, 3 }
  0x2e   : > { %s335_s29 = scalar_lea.vmem (%p160_p9), %s802_s1, %s521_s26 }
  0x2f   : >> { %v176_v11 = vrot.slane %v175_v10, 2 }
  0x31   : >> { %v177_v12 = vadd.f32 %v176_v11, %v175_v10 }
  0x33   : >> { %v178_v13 = vrot.slane %v177_v12, 1 }
  0x35   : >> { %v179_v14 = vadd.f32 %v178_v13, %v177_v12  ;;  %v294_v13 = vld [vmem:[%s283_s18] sm:$0xff] }
  0x37   : >> { %576 = vrsqrt.f32 %v179_v14  ;;  %vm182_vm3 = vcmp.eq.f32.partialorder %v179_v14, inf  ;;  %v185_v18 = vand.u32 2147483648, %v179_v14  ;;  %vm184_vm4 = vcmp.eq.f32.partialorder %v179_v14, 0.0 }
  0x44   : >> { %v577_v17 = vpop.eup %576 }
  0x45   : >> { %v181_v19 = vmul.f32 %v577_v17, %v179_v14 }
  0x47   : >> { %v183_v20 = vsel %vm182_vm3, %v179_v14, %v181_v19 }
  0x48   : >> { %v186_v22 = vsel %vm184_vm4, %v185_v18, %v183_v20 }
  0x49   : >> { %v196_v23 = vand.u32 2147483647, %v186_v22 }
  0x4b   : >> { %v197_v24 = vmax.f32 %v195_v21, %v196_v23 }
  0x4d   : >> { %578 = vrcp.f32 %v197_v24  ;;  %vm209_vm7 = vcmp.eq.f32.partialorder %v197_v24, 0.0 }
  0x5a   : >> { %v579_v25 = vpop.eup %578 }
  0x5b   : >> { %v199_v26 = vmul.f32 %v579_v25, %v194_v16  ;;  %v202_v27 = vmul.f32 0.0, %v579_v25  ;;  %v206_v28 = vmul.f32 %v579_v25, %v196_v23 }
  0x5d   : >> { %v200_v29 = vmul.f32 %v199_v26, %v199_v26  ;;  %v203_v30 = vmul.f32 %v202_v27, %v202_v27  ;;  %v207_v31 = vmul.f32 %v206_v28, %v206_v28 }
  0x5f   : >> { %v204_v32 = vadd.f32 %v203_v30, %v200_v29 }
  0x61   : >> { %v208_v33 = vadd.f32 %v207_v31, %v204_v32 }
  0x63   : >> { %580 = vrsqrt.f32 %v208_v33  ;;  %vm212_vm5 = vcmp.eq.f32.partialorder %v208_v33, inf  ;;  %v215_v35 = vand.u32 2147483648, %v208_v33  ;;  %vm214_vm6 = vcmp.eq.f32.partialorder %v208_v33, 0.0 }
  0x70   : >> { %v581_v34 = vpop.eup %580 }
  0x71   : >> { %v211_v36 = vmul.f32 %v581_v34, %v208_v33 }
  0x73   : >> { %v213_v37 = vsel %vm212_vm5, %v208_v33, %v211_v36 }
  0x74   : >> { %v216_v38 = vsel %vm214_vm6, %v215_v35, %v213_v37 }
  0x75   : >> { %v217_v39 = vmul.f32 %v216_v38, %v197_v24 }
  0x77   : >> { %v218_v40 = vsel %vm209_vm7, 0.0, %v217_v39 }
  0x78   : >> { %v220_v41 = vxor.u32 2147483648, %v218_v40 }
  0x7a   : >> { %v221_v42 = vsel %vm219_vm8, %v218_v40, %v220_v41 }
  0x7b   : >> { %v732_v43 = vsel %vm184_vm4, %v193_v15, %v221_v42  ;;  %582 = vrcp.f32 %v221_v42  ;;  %v222_v46 = vsub.f32 %v221_v42, %v193_v15 }
  0x7c   : >> { %v227_v44 = vsub.f32 %v193_v15, %v732_v43 }
  0x7e   : >> { %584 = vrcp.f32 %v227_v44 }
  0x88   : >> { %v583_v47 = vpop.eup %582 }
  0x89   : >> { %v224_v50 = vmul.f32 %v583_v47, %v222_v46 }
  0x8b   : >> { %v585_v51 = vpop.eup %584  ;;  %v226_v55 = vsel %vm184_vm4, 0.0, %v224_v50 }
  0x8c   : >> { %v240_v52 = vmul.f32 %v585_v51, %v238_v49  ;;  %v256_v57 = vsel %vm740_vm12, %v226_v55, 0.0 }
  0x8e   : >> { %v241_v54 = vsel %vm184_vm4, 0.0, %v240_v52 }
  0x8f   : >> { %v246_v56 = vsel %vm740_vm12, %v241_v54, 0.0 }
  0x90   : >> { %247 = vadd.xlane.f32.xlu0 %v246_v56 }
  0x94   : >> { %257 = vadd.xlane.f32.xlu0 %v256_v57 }
 0x119   : >> { %v248_v58 = vpop.xlane.xlu0 %247 }
 0x11a   : >> { %249 = vst [vmem:[#allocation4] sm:$0xff] %v248_v58 }
 0x11b   : >> { %251 = vst [vmem:[%s250_s21] sm:$0x1] %v635_v59 }
 0x11d   : >> { %v258_v61 = vpop.xlane.xlu0 %257 }
 0x11e   : >> { %v264_v62 = vsel %vm740_vm12, %v258_v61, %v263_v60 }
 0x11f   : >> { %265 = vst [vmem:[%s709_s19] sm:$0x1] %v264_v62 }
 0x122   : >> { %v272_v0 = vld [vmem:[%s267_s23] sm:$0xff]  ;;  %s284_s23 = smov %s267_s23 }
 0x123   : >> { %v274_v1 = vmul.f32 %v273_v63, %v272_v0  ;;  %v292_v12 = vld [vmem:[%s284_s23] sm:$0xff] }
 0x125   : >> { %v276_v2 = vsel %vm275_vm13, %v274_v1, 0.0 }
 0x126   : >> { %v277_v3 = vrot.slane %v276_v2, 4  ;;  %v320_v4 = vld [vmem:[#allocation2] sm:$0x3] (%p160_p9) }
 0x127   : > { %323 = vst [vmem:[%s146_s15] sm:$0x3] (%p160_p9), %v320_v4 }
 0x128   : >> { %v278_v6 = vadd.f32 %v277_v3, %v276_v2 }
 0x12a   : >> { %v279_v7 = vrot.slane %v278_v6, 2 }
 0x12c   : >> { %v280_v8 = vadd.f32 %v279_v7, %v278_v6 }
 0x12e   : >> { %v281_v9 = vrot.slane %v280_v8, 1 }
 0x130   : >> { %v282_v10 = vadd.f32 %v281_v9, %v280_v8 }
 0x132   : >> { %v288_v11 = vmul.f32 %v282_v10, %v258_v61 }
 0x134   : >> { %v293_v14 = vmul.f32 %v292_v12, %v288_v11 }
 0x136   : >> { %v297_v15 = vsub.f32 %v294_v13, %v293_v14 }
 0x138   : >> { %v298_v16 = vsel %vm296_vm15, %v297_v15, %v294_v13 }
 0x139   : >> { %v306_v17 = vsel %vm305_vm0, %v292_v12, %v298_v16 }
 0x13a   : >> { %307 = vst [vmem:[%s283_s18] sm:$0xff] %v306_v17 }
 0x13f   : > { %162 = sbr.rel (!%p160_p9) target bundleno = 33 (0x21), region = 175 }
 0x141   : >> { %v309_v18 = vld [vmem:[%s308_s24] ss:$0 sm:$0xff] }
 0x142   : >> { %v314_v19 = vsel %vm740_vm12, %v732_v43, %v309_v18 }
 0x143   : >> { %315 = vst [vmem:[%s308_s24] sm:$0x1] %v314_v19 }
 0x144   : > { %p372_p10 = scmp.lt.s32.totalorder (%p686_p3), %s620_s11, 0  ;;  %s373_s30 = ssub.s32 (%p686_p3), 0, %s620_s11  ;;  %v396_v20 = vld [vmem:[%s146_s15] sm:$0x3] (%p686_p3) }
 0x145   : > { %s522_s3 = smin.u32 (%p686_p3), %s620_s11, %s373_s30 }
 0x146   : > { %s375_s4 = sshrl.u32 (%p686_p3), %s522_s3, 3 }
 0x147   : > { %371 = sbr.rel (!%p686_p3) target bundleno = 336 (0x150), region = 99  ;;  %s376_s5 = ssub.s32 (%p686_p3), 0, %s375_s4 }
 0x14a   : > { %v364_v5 = vld [vmem:[%s706_s18] sm:$0xff] }
 0x14b   : > { %365 = vst [vmem:[%s335_s29] sm:$0xff] %v364_v5 }
 0x14c   : > { %s814_s5 = smov (!%p372_p10, %s376_s5), %s375_s4 }
 0x14d   : > { %s523_s6 = sshll.u32 %s814_s5, 1 }
 0x14e   : > { %s379_s17 = scalar_lea.vmem %s803_s2, %s523_s6 }
 0x14f   : > { %397 = vst [vmem:[%s379_s17] sm:$0x3] %v396_v20 }
 0x150 PF: > { %s9_s13 = sadd.s32 1, %s628_s13   ;;  %s807_s9 = smov %s616_s10 }
 0x151   : > { %p6_p11 = scmp.ge.s32.totalorder %s9_s13, 4   ;;  %s808_s10 = smov %s692_s25 }
 0x152   : > { %s809_s11 = smov %s624_s12  ;;  %s810_s12 = smov %s812_s14 }
 0x153   :  { %8 = sbr.rel (!%p6_p11) target bundleno = 3 (0x3), region = 186 }

// kernel: oanblock_forward.4
= control target key start
LH: loop header
LB: loop body
LE: loop exit
PB: predicated region body
PF: predicated region fallthrough
CT: control target
= control target key end

     0   :  { %s1293_s25 = smov 0   ;;  %s1464_s0 = inlined_call_operand.vmem [shape: f32[2,8,32], index: 0, kind: input, shape index: {}]   ;;  %s1465_s1 = inlined_call_operand.vmem [shape: f32[2,1,32], index: 1, kind: input, shape index: {}]   ;;  %s1466_s2 = inlined_call_operand.vmem [shape: f32[2,1,32], index: 2, kind: input, shape index: {}]   ;;  %s1467_s3 = inlined_call_operand.vmem [shape: bf16[2,32,32], index: 3, kind: input, shape index: {}]   ;;  %s1468_s4 = inlined_call_operand.vmem [shape: f32[2,1,32], index: 4, kind: input, shape index: {}]   ;;  %s1469_s5 = inlined_call_operand.vmem [shape: f32[2,8,1], index: 5, kind: input, shape index: {}]   ;;  %s1470_s6 = inlined_call_operand.vmem [shape: f32[2,8,1], index: 6, kind: input, shape index: {}]   ;;  %s1471_s7 = inlined_call_operand.vmem [shape: bf16[2,8,8], index: 7, kind: input, shape index: {}]   ;;  %s1472_s8 = inlined_call_operand.vmem [shape: f32[2,8,1], index: 8, kind: input, shape index: {}]   ;;  %s1473_s9 = inlined_call_operand.vmem [shape: f32[2,1,32], index: 9, kind: input, shape index: {}]   ;;  %s1474_s10 = inlined_call_operand.vmem [shape: f32[2,1,32], index: 10, kind: input, shape index: {}]   ;;  %s1475_s11 = inlined_call_operand.vmem [shape: bf16[2,32,32], index: 11, kind: input, shape index: {}]   ;;  %s1476_s12 = inlined_call_operand.vmem [shape: f32[2,1,32], index: 12, kind: input, shape index: {}]   ;;  %s1477_s13 = inlined_call_operand.vmem [shape: f32[2,8,32], index: 13, kind: output, shape index: {}]  }
   0x1 LB: > { %s1078_s26 = sadd.s32 4294967295, %s1218_s25   ;;  %p1082_p0 = scmp.ge.s32.totalorder %s1218_s25, 1  ;;  %s1218_s25 = sphi %s1293_s25, %s23_s25  }
   0x2   : > { %p386_p1 = scmp.lt.s32.totalorder %s1218_s25, 3 }
   0x4   : > { %p387_p2 = pnand %p1082_p0, %p386_p1 }
   0x5   : > { %p428_p3 = scmp.lt.s32.totalorder (!%p387_p2), %s1078_s26, 1 }
   0x6   : > { %390 = sbr.rel (%p387_p2) target bundleno = 1423 (0x58f), region = 72 }
   0xb   : > { %v1196_v0 = vld [vmem:[%s1467_s3 + $0x8] sm:$0xff]   ;;  %v1220_v1 = vmov 0.0   ;;  %v1197_v2 = vld [vmem:[%s1467_s3] sm:$0xff]   ;;  %vm1221_vm0 = vmmov 0   ;;  %s1479_s26 = smov (!%p428_p3, %s1078_s26), 1  ;;  %v1222_v4 = vmov 0   ;;  %v465_v29 = vlaneseq }
   0xc   : > { %1139 = vmatprep.subr.bf16.mxu0 %v1220_v1  ;;  %1147 = vmatprep.subr.bf16.mxu1 %v1220_v1  ;;  %v547_v3 = vld [vmem:[%s1469_s5] sm:$0xff]  ;;  %vm440_vm1 = vcmask 261120   ;;  %s1083_s16 = sshll.u32 %s1479_s26, 3  ;;  %v1106_v10 = vld [vmem:[%s1470_s6 + $0x8] sm:$0xff]  ;;  %vm574_vm2 = vcmask 1043456   ;;  %vm570_vm3 = vcmask 64512  }
   0xd   : > { %1140 = vmatpush3.bf16.msra.mxu0 %v1196_v0  ;;  %1143 = vmatprep.mubr.msk.bf16.mxu0 %vm1221_vm0, %v1220_v1  ;;  %v554_v5 = vld [vmem:[%s1470_s6] sm:$0xff]  ;;  %s431_s21 = scalar_lea.vmem %s1464_s0, %s1083_s16  ;;  %v466_v30 = vshrl.u32 %v465_v29, 7  ;;  %v1105_v45 = vld [vmem:[%s1469_s5 + $0x8] sm:$0xff]  ;;  %s435_s15 = scalar_lea.vmem %s1477_s13, %s1083_s16 }
   0xe   : > { %1141 = vmatprep.subr.bf16.mxu0 %v1220_v1  ;;  %1149 = vmatprep.mubr.msk.bf16.mxu1 %vm1221_vm0, %v1220_v1  ;;  %v1329_v6 = vld [vmem:[%s431_s21] sm:$0xff]  ;;  %v1108_v46 = vld [vmem:[%s1472_s8 + $0x8] sm:$0xff] }
   0xf   : > { %1194 = vset.pattern.permute.xlu0 %v1222_v4  ;;  %1195 = vset.pattern.permute.xlu1 %v1222_v4  ;;  %v441_v7 = vsel %vm440_vm1, %v1329_v6, 0.0  ;;  %v450_v8 = vmul.f32 %v1329_v6, %v1329_v6  ;;  %v438_v31 = vld [vmem:[%s1465_s1] sm:$0x1]  ;;  %v1342_v32 = vsub.s32 0, %v466_v30  ;;  %v1198_v61 = vld [vmem:[%s1475_s11 + $0x8] sm:$0xff]  }
  0x10   : > { %550 = vperm.xlu0 %1194, %v547_v3   ;;  %v442_v9 = vrot.slane %v441_v7, 4  ;;  %v439_v35 = vld [vmem:[%s1466_s2] sm:$0x1] }
  0x11   : > { %1142 = vmatpush3.bf16.msra.mxu0 %v1197_v2  ;;  %v451_v11 = vsel %vm440_vm1, %v450_v8, 0.0  ;;  %v564_v44 = vld [vmem:[%s1472_s8] sm:$0xff] }
  0x12   : > { %1161 = vmatprep.subr.bf16.mxu0 %v1220_v1  ;;  %v443_v12 = vadd.f32 %v442_v9, %v441_v7  ;;  %v452_v13 = vrot.slane %v451_v11, 4  ;;  %567 = vperm.xlu1 %1195, %v564_v44   ;;  %v1085_v48 = vld [vmem:[%s1468_s4] ss:$0 sm:$0xff] }
  0x13   : > { %v562_v60 = vld [vmem:[%s1471_s7] sm:$0xf] }
  0x14   : > { %557 = vperm.xlu0 %1194, %v554_v5   ;;  %v444_v14 = vrot.slane %v443_v12, 2  ;;  %v453_v15 = vadd.f32 %v452_v13, %v451_v11  ;;  %v1199_v62 = vld [vmem:[%s1475_s11] sm:$0xff]  }
  0x15   : > { %v619_v29 = vld [vmem:[%s1473_s9] sm:$0x1] }
  0x16   : > { %v445_v16 = vadd.f32 %v444_v14, %v443_v12  ;;  %v454_v17 = vrot.slane %v453_v15, 2  ;;  %842 = vperm.xlu1 %1195, %v1105_v45   ;;  %v1090_v44 = vld [vmem:[%s1476_s12] ss:$0 sm:$0xff] }
  0x18   : > { %850 = vperm.xlu0 %1194, %v1106_v10   ;;  %v446_v18 = vrot.slane %v445_v16, 1  ;;  %v455_v19 = vadd.f32 %v454_v17, %v453_v15 }
  0x1a   : > { %v447_v20 = vadd.f32 %v446_v18, %v445_v16  ;;  %v456_v21 = vrot.slane %v455_v19, 1  ;;  %862 = vperm.xlu1 %1195, %v1108_v46  }
  0x1c   : > { %v449_v22 = vmul.f32 0.125, %v447_v20  ;;  %v457_v23 = vadd.f32 %v456_v21, %v455_v19 }
  0x1e   : > { %v458_v24 = vmul.f32 0.125, %v457_v23  ;;  %v459_v25 = vmul.f32 %v449_v22, %v449_v22 }
  0x20   : > { %v460_v26 = vsub.f32 %v458_v24, %v459_v25 }
  0x22   : > { %v461_v27 = vmax.f32 %v460_v26, 0.0 }
  0x24   : > { %v462_v28 = vadd.f32 0.001, %v461_v27 }
  0x26   : > { %1204 = vrsqrt.f32 %v462_v28 }
  0x33   : > { %v1205_v33 = vpop.eup %1204 }
  0x34   : > { %v464_v34 = vmul.f32 %v1205_v33, %v438_v31  ;;  %v620_v33 = vld [vmem:[%s1474_s10] sm:$0x1] }
  0x36   : > { %v468_v36 = vrot.slane %v464_v34, %v1342_v32  ;;  %v470_v37 = vmul.f32 %v464_v34, %v449_v22 }
  0x38   : > { %v469_v38 = vmul.f32 %v468_v36, %v1329_v6  ;;  %v471_v39 = vsub.f32 %v439_v35, %v470_v37 }
  0x3a   : > { %v476_v40 = vrot.slane %v471_v39, %v1342_v32 }
  0x3c   : > { %v478_v41 = vadd.f32 %v476_v40, %v469_v38 }
  0x3e   : > { %v479_v42 = vmax.f32 %v478_v41, 0.0 }
  0x40   : > { %v484_v43 = vpack.c.bf16 %v479_v42, %v479_v42  ;;  %v1200_v42 = vld [vmem:[%s1467_s3 + $0x18] sm:$0xff]  }
  0x42   : > { %1144 = vmatmul.mubr.msk.bf16.vlgmr.msra.gmra.mxu0 %vm440_vm1, %v484_v43  ;;  %v1201_v43 = vld [vmem:[%s1467_s3 + $0x10] sm:$0xff]  }
  0x43   : > { %1165 = vmatprep.mubr.msk.bf16.mxu0 %vm1221_vm0, %v1220_v1  ;;  %1162 = vmatpush3.bf16.msra.mxu0 %v1200_v42 }
  0x44   : > { %1163 = vmatprep.subr.bf16.mxu0 %v1220_v1 }
  0x47   : > { %1164 = vmatpush3.bf16.msra.mxu0 %v1201_v43 }
  0x48   : > { %1175 = vmatprep.subr.bf16.mxu0 %v1220_v1 }
  0x8b   : > { %v551_v47 = vpop.permute.xlu0 %550 }
  0x8d   : > { %v568_v63 = vpop.permute.xlu1 %567 }
  0x8f   : > { %v558_v53 = vpop.permute.xlu0 %557 }
 0x102   : > { %v541_v49 = vpop.f32.mrf.mxu0 }
 0x103   : > { %v542_v50 = vadd.f32 %v1085_v48, %v541_v49 }
 0x104   : > { %v1145_v51 = vpop.f32.mrf.mxu0 }
 0x105   : > { %v553_v52 = vmul.f32 %v551_v47, %v542_v50 }
 0x106   : > { %v544_v54 = vpop.f32.mrf.mxu0 }
 0x107   : > { %v560_v55 = vadd.f32 %v558_v53, %v553_v52 }
 0x108   : > { %v1146_v56 = vpop.f32.mrf.mxu0 }
 0x109   : > { %v561_v57 = vmax.f32 %v560_v55, 0.0 }
 0x10b   : > { %v563_v58 = vpack.c.bf16 %v561_v57, %v561_v57 }
 0x10d   : > { %v576_v59 = vsel %vm574_vm2, %v563_v58, 0 }
 0x10e   : > { %1148 = vmatpush3.bf16.msra.mxu1 %v576_v59 }
 0x10f   : > { %1153 = vmatprep.subr.bf16.mxu1 %v1220_v1 }
 0x111   : > { %1150 = vmatmul.mubr.msk.bf16.vlgmr.msra.gmra.mxu1 %vm570_vm3, %v562_v60 }
 0x112   : > { %1157 = vmatprep.mubr.msk.bf16.mxu1 %vm1221_vm0, %v1220_v1  ;;  %1154 = vmatpush3.bf16.msra.mxu1 %v1198_v61 }
 0x113   : > { %1155 = vmatprep.subr.bf16.mxu1 %v1220_v1 }
 0x116   : > { %1156 = vmatpush3.bf16.msra.mxu1 %v1199_v62 }
 0x117   : > { %1169 = vmatprep.subr.bf16.mxu1 %v1220_v1 }
 0x1d1   : > { %v612_v0 = vpop.f32.mrf.mxu1 }
 0x1d2   : > { %v613_v2 = vadd.f32 %v612_v0, %v568_v63 }
 0x1d3   : > { %v1151_v3 = vpop.f32.mrf.mxu1 }
 0x1d4   : > { %v618_v4 = vadd.f32 %v613_v2, %v542_v50 }
 0x1d5   : > { %v615_v5 = vpop.f32.mrf.mxu1 }
 0x1d6   : > { %v621_v7 = vsel %vm440_vm1, %v618_v4, 0.0  ;;  %v629_v8 = vmul.f32 %v618_v4, %v618_v4 }
 0x1d7   : > { %v622_v9 = vrot.slane %v621_v7, 4  ;;  %v1152_v10 = vpop.f32.mrf.mxu1 }
 0x1d8   : > { %v630_v11 = vsel %vm440_vm1, %v629_v8, 0.0 }
 0x1d9   : > { %v623_v12 = vadd.f32 %v622_v9, %v621_v7  ;;  %v631_v13 = vrot.slane %v630_v11, 4  ;;  %v1094_v9 = vld [vmem:[%s1465_s1 + $0x1] sm:$0x1] }
 0x1db   : > { %v624_v14 = vrot.slane %v623_v12, 2  ;;  %v632_v15 = vadd.f32 %v631_v13, %v630_v11 }
 0x1dd   : > { %v625_v16 = vadd.f32 %v624_v14, %v623_v12  ;;  %v633_v17 = vrot.slane %v632_v15, 2  ;;  %v1095_v12 = vld [vmem:[%s1466_s2 + $0x1] sm:$0x1] }
 0x1df   : > { %v626_v18 = vrot.slane %v625_v16, 1  ;;  %v634_v19 = vadd.f32 %v633_v17, %v632_v15 }
 0x1e1   : > { %v627_v20 = vadd.f32 %v626_v18, %v625_v16  ;;  %v635_v21 = vrot.slane %v634_v19, 1 }
 0x1e3   : > { %v628_v22 = vmul.f32 0.125, %v627_v20  ;;  %v636_v23 = vadd.f32 %v635_v21, %v634_v19  ;;  %v1101_v21 = vld [vmem:[%s1468_s4 + $0x1] ss:$0 sm:$0xff] }
 0x1e5   : > { %v637_v24 = vmul.f32 0.125, %v636_v23  ;;  %v638_v25 = vmul.f32 %v628_v22, %v628_v22 }
 0x1e7   : > { %v639_v26 = vsub.f32 %v637_v24, %v638_v25  ;;  %v843_v24 = vpop.permute.xlu1 %842 }
 0x1e9   : > { %v640_v27 = vmax.f32 %v639_v26, 0.0 }
 0x1eb   : > { %v641_v28 = vadd.f32 0.001, %v640_v27  ;;  %v851_v27 = vpop.permute.xlu0 %850 }
 0x1ed   : > { %1206 = vrsqrt.f32 %v641_v28 }
 0x1fa   : > { %v1207_v30 = vpop.eup %1206 }
 0x1fb   : > { %v643_v31 = vmul.f32 %v1207_v30, %v619_v29 }
 0x1fd   : > { %v647_v34 = vrot.slane %v643_v31, %v1342_v32  ;;  %v649_v35 = vmul.f32 %v643_v31, %v628_v22 }
 0x1ff   : > { %v650_v36 = vsub.f32 %v620_v33, %v649_v35  ;;  %v648_v37 = vmul.f32 %v647_v34, %v618_v4  ;;  %v1107_v35 = vld [vmem:[%s1471_s7 + $0x4] sm:$0xf] }
 0x201   : > { %v655_v38 = vrot.slane %v650_v36, %v1342_v32  ;;  %v1202_v36 = vld [vmem:[%s1475_s11 + $0x18] sm:$0xff]  }
 0x203   : > { %v657_v39 = vadd.f32 %v655_v38, %v648_v37  ;;  %v1203_v37 = vld [vmem:[%s1475_s11 + $0x10] sm:$0xff]   ;;  %v863_v38 = vpop.permute.xlu1 %862 }
 0x205   : > { %v658_v40 = vmax.f32 %v657_v39, 0.0 }
 0x207   : > { %v663_v41 = vpack.c.bf16 %v658_v40, %v658_v40 }
 0x209   : > { %1158 = vmatmul.mubr.msk.bf16.vlgmr.msra.gmra.mxu1 %vm440_vm1, %v663_v41 }
 0x20a   : > { %1171 = vmatprep.mubr.msk.bf16.mxu1 %vm1221_vm0, %v1220_v1 }
 0x2c9   : > { %v720_v45 = vpop.f32.mrf.mxu1 }
 0x2ca   : > { %v721_v46 = vadd.f32 %v1090_v44, %v720_v45 }
 0x2cb   : > { %v1159_v47 = vpop.f32.mrf.mxu1 }
 0x2cc   : > { %v1406_v48 = vadd.f32 %v721_v46, %v1329_v6 }
 0x2cd   : > { %v723_v49 = vpop.f32.mrf.mxu1 }
 0x2ce   : > { %v731_v50 = vsel %vm440_vm1, %v1406_v48, 0.0  ;;  %v739_v51 = vmul.f32 %v1406_v48, %v1406_v48 }
 0x2cf   : > { %v732_v52 = vrot.slane %v731_v50, 4  ;;  %v1160_v53 = vpop.f32.mrf.mxu1 }
 0x2d0   : > { %v740_v54 = vsel %vm440_vm1, %v739_v51, 0.0 }
 0x2d1   : > { %v733_v55 = vadd.f32 %v732_v52, %v731_v50  ;;  %v741_v56 = vrot.slane %v740_v54, 4 }
 0x2d3   : > { %v734_v57 = vrot.slane %v733_v55, 2  ;;  %v742_v58 = vadd.f32 %v741_v56, %v740_v54 }
 0x2d5   : > { %v735_v59 = vadd.f32 %v734_v57, %v733_v55  ;;  %v743_v60 = vrot.slane %v742_v58, 2 }
 0x2d7   : > { %v736_v61 = vrot.slane %v735_v59, 1  ;;  %v744_v6 = vadd.f32 %v743_v60, %v742_v58 }
 0x2d9   : > { %v737_v62 = vadd.f32 %v736_v61, %v735_v59  ;;  %v745_v63 = vrot.slane %v744_v6, 1 }
 0x2db   : > { %v738_v0 = vmul.f32 0.125, %v737_v62  ;;  %v746_v2 = vadd.f32 %v745_v63, %v744_v6 }
 0x2dd   : > { %v747_v3 = vmul.f32 0.125, %v746_v2  ;;  %v748_v4 = vmul.f32 %v738_v0, %v738_v0  ;;  %v1110_v2 = vld [vmem:[%s1473_s9 + $0x1] sm:$0x1] }
 0x2df   : > { %v749_v5 = vsub.f32 %v747_v3, %v748_v4 }
 0x2e1   : > { %v750_v7 = vmax.f32 %v749_v5, 0.0  ;;  %v1111_v5 = vld [vmem:[%s1474_s10 + $0x1] sm:$0x1] }
 0x2e3   : > { %v751_v8 = vadd.f32 0.001, %v750_v7 }
 0x2e5   : > { %1208 = vrsqrt.f32 %v751_v8 }
 0x2f2   : > { %v1209_v10 = vpop.eup %1208 }
 0x2f3   : > { %v753_v11 = vmul.f32 %v1209_v10, %v1094_v9 }
 0x2f5   : > { %v757_v13 = vrot.slane %v753_v11, %v1342_v32  ;;  %v759_v14 = vmul.f32 %v753_v11, %v738_v0 }
 0x2f7   : > { %v760_v15 = vsub.f32 %v1095_v12, %v759_v14  ;;  %v758_v16 = vmul.f32 %v757_v13, %v1406_v48 }
 0x2f9   : > { %v765_v17 = vrot.slane %v760_v15, %v1342_v32  ;;  %v1117_v15 = vld [vmem:[%s1476_s12 + $0x1] ss:$0 sm:$0xff] }
 0x2fb   : > { %v767_v18 = vadd.f32 %v765_v17, %v758_v16 }
 0x2fd   : > { %v768_v19 = vmax.f32 %v767_v18, 0.0 }
 0x2ff   : > { %v774_v20 = vpack.c.bf16 %v768_v19, %v768_v19 }
 0x301   : > { %1166 = vmatmul.mubr.msk.bf16.vlgmr.msra.gmra.mxu0 %vm440_vm1, %v774_v20 }
 0x302   : > { %1179 = vmatprep.mubr.msk.bf16.mxu0 %vm1221_vm0, %v1220_v1  ;;  %1176 = vmatpush3.bf16.msra.mxu0 %v1202_v36 }
 0x303   : > { %1177 = vmatprep.subr.bf16.mxu0 %v1220_v1 }
 0x306   : > { %1178 = vmatpush3.bf16.msra.mxu0 %v1203_v37 }
 0x3c1   : > { %v832_v22 = vpop.f32.mrf.mxu0 }
 0x3c2   : > { %v833_v23 = vadd.f32 %v1101_v21, %v832_v22 }
 0x3c3   : > { %v1167_v25 = vpop.f32.mrf.mxu0 }
 0x3c4   : > { %v845_v26 = vmul.f32 %v843_v24, %v833_v23 }
 0x3c5   : > { %v835_v28 = vpop.f32.mrf.mxu0 }
 0x3c6   : > { %v853_v29 = vadd.f32 %v851_v27, %v845_v26 }
 0x3c7   : > { %v1168_v30 = vpop.f32.mrf.mxu0 }
 0x3c8   : > { %v854_v31 = vmax.f32 %v853_v29, 0.0 }
 0x3ca   : > { %v857_v33 = vpack.c.bf16 %v854_v31, %v854_v31 }
 0x3cc   : > { %v869_v34 = vsel %vm574_vm2, %v857_v33, 0 }
 0x3cd   : > { %1170 = vmatpush3.bf16.msra.mxu1 %v869_v34 }
 0x3d0   : > { %1172 = vmatmul.mubr.msk.bf16.vlgmr.msra.gmra.mxu1 %vm570_vm3, %v1107_v35 }
 0x490   : > { %v905_v39 = vpop.f32.mrf.mxu1 }
 0x491   : > { %v906_v40 = vadd.f32 %v905_v39, %v863_v38 }
 0x492   : > { %v1173_v41 = vpop.f32.mrf.mxu1 }
 0x493   : > { %v911_v42 = vadd.f32 %v906_v40, %v833_v23 }
 0x494   : > { %v908_v43 = vpop.f32.mrf.mxu1 }
 0x495   : > { %v916_v44 = vsel %vm440_vm1, %v911_v42, 0.0  ;;  %v924_v45 = vmul.f32 %v911_v42, %v911_v42 }
 0x496   : > { %v917_v46 = vrot.slane %v916_v44, 4  ;;  %v1174_v47 = vpop.f32.mrf.mxu1 }
 0x497   : > { %v925_v49 = vsel %vm440_vm1, %v924_v45, 0.0 }
 0x498   : > { %v918_v50 = vadd.f32 %v917_v46, %v916_v44  ;;  %v926_v1 = vrot.slane %v925_v49, 4 }
 0x49a   : > { %v919_v51 = vrot.slane %v918_v50, 2  ;;  %v927_v52 = vadd.f32 %v926_v1, %v925_v49 }
 0x49c   : > { %v920_v53 = vadd.f32 %v919_v51, %v918_v50  ;;  %v928_v54 = vrot.slane %v927_v52, 2 }
 0x49e   : > { %v921_v55 = vrot.slane %v920_v53, 1  ;;  %v929_v56 = vadd.f32 %v928_v54, %v927_v52 }
 0x4a0   : > { %v922_v57 = vadd.f32 %v921_v55, %v920_v53  ;;  %v930_v58 = vrot.slane %v929_v56, 1 }
 0x4a2   : > { %v923_v59 = vmul.f32 0.125, %v922_v57  ;;  %v931_v60 = vadd.f32 %v930_v58, %v929_v56 }
 0x4a4   : > { %v932_v61 = vmul.f32 0.125, %v931_v60  ;;  %v933_v6 = vmul.f32 %v923_v59, %v923_v59 }
 0x4a6   : > { %v934_v62 = vsub.f32 %v932_v61, %v933_v6 }
 0x4a8   : > { %v935_v63 = vmax.f32 %v934_v62, 0.0 }
 0x4aa   : > { %v936_v0 = vadd.f32 0.001, %v935_v63 }
 0x4ac   : > { %1210 = vrsqrt.f32 %v936_v0 }
 0x4b9   : > { %v1211_v3 = vpop.eup %1210 }
 0x4ba   : > { %v938_v4 = vmul.f32 %v1211_v3, %v1110_v2 }
 0x4bc   : > { %v942_v7 = vrot.slane %v938_v4, %v1342_v32  ;;  %v944_v8 = vmul.f32 %v938_v4, %v923_v59 }
 0x4be   : > { %v945_v9 = vsub.f32 %v1111_v5, %v944_v8  ;;  %v943_v10 = vmul.f32 %v942_v7, %v911_v42 }
 0x4c0   : > { %v950_v11 = vrot.slane %v945_v9, %v1342_v32 }
 0x4c2   : > { %v952_v12 = vadd.f32 %v950_v11, %v943_v10 }
 0x4c4   : > { %v953_v13 = vmax.f32 %v952_v12, 0.0 }
 0x4c6   : > { %v959_v14 = vpack.c.bf16 %v953_v13, %v953_v13 }
 0x4c8   : > { %1180 = vmatmul.mubr.msk.bf16.vlgmr.msra.gmra.mxu0 %vm440_vm1, %v959_v14 }
 0x588   : > { %v1017_v16 = vpop.f32.mrf.mxu0 }
 0x589   : > { %v1018_v17 = vadd.f32 %v1117_v15, %v1017_v16 }
 0x58a   : > { %v1181_v18 = vpop.f32.mrf.mxu0 }
 0x58b   : > { %v1023_v19 = vadd.f32 %v1018_v17, %v1406_v48 }
 0x58c   : > { %v1020_v32 = vpop.f32.mrf.mxu0 }
 0x58d   : > { %1024 = vst.msk [vmem:[%s435_s15] sm:$0xff] %vm440_vm1, %v1023_v19 }
 0x58e   : > { %v1182_v20 = vpop.f32.mrf.mxu0 }
 0x58f PF: > { %s23_s25 = sadd.s32 1, %s1218_s25  }
 0x590   : > { %p20_p4 = scmp.ge.s32.totalorder %s23_s25, 4  }
 0x592   :  { %22 = sbr.rel (!%p20_p4) target bundleno = 1 (0x1), region = 114 }

// kernel: oanblock_forward.3
= control target key start
LH: loop header
LB: loop body
LE: loop exit
PB: predicated region body
PF: predicated region fallthrough
CT: control target
= control target key end

     0   :  { %s2301_s18 = smov 0   ;;  %s2813_s0 = inlined_call_operand.vmem [shape: f32[2,64,6], index: 0, kind: input, shape index: {}]   ;;  %s2814_s1 = inlined_call_operand.vmem [shape: bf16[6,32], index: 1, kind: input, shape index: {}]   ;;  %s2815_s2 = inlined_call_operand.vmem [shape: f32[1,32], index: 2, kind: input, shape index: {}]   ;;  %s2816_s3 = inlined_call_operand.vmem [shape: f32[2,1,32], index: 3, kind: input, shape index: {}]   ;;  %s2817_s4 = inlined_call_operand.vmem [shape: f32[2,1,32], index: 4, kind: input, shape index: {}]   ;;  %s2818_s5 = inlined_call_operand.vmem [shape: bf16[2,32,32], index: 5, kind: input, shape index: {}]   ;;  %s2819_s6 = inlined_call_operand.vmem [shape: f32[2,1,32], index: 6, kind: input, shape index: {}]   ;;  %s2820_s7 = inlined_call_operand.vmem [shape: f32[2,1,32], index: 7, kind: input, shape index: {}]   ;;  %s2821_s8 = inlined_call_operand.vmem [shape: bf16[2,32,32], index: 8, kind: input, shape index: {}]   ;;  %s2822_s9 = inlined_call_operand.vmem [shape: f32[2,1,32], index: 9, kind: input, shape index: {}]   ;;  %s2823_s10 = inlined_call_operand.vmem [shape: f32[1,32], index: 10, kind: input, shape index: {}]   ;;  %s2824_s11 = inlined_call_operand.vmem [shape: f32[1,32], index: 11, kind: input, shape index: {}]   ;;  %s2825_s12 = inlined_call_operand.vmem [shape: bf16[32,8], index: 12, kind: input, shape index: {}]   ;;  %s2826_s13 = inlined_call_operand.vmem [shape: f32[1,8], index: 13, kind: input, shape index: {}]   ;;  %s2827_s14 = inlined_call_operand.vmem [shape: bf16[2,64,32], index: 14, kind: output, shape index: {0}]   ;;  %s2828_s15 = inlined_call_operand.vmem [shape: f32[2,8,32], index: 15, kind: output, shape index: {1}]  }
   0x1 LB: > { %s1947_s19 = sadd.s32 4294967295, %s2217_s18   ;;  %p1951_p0 = scmp.ge.s32.totalorder %s2217_s18, 1  ;;  %s2217_s18 = sphi %s2301_s18, %s26_s18  }
   0x2   : > { %p440_p1 = scmp.lt.s32.totalorder %s2217_s18, 3 }
   0x4   : > { %p441_p2 = pnand %p1951_p0, %p440_p1 }
   0x5   : > { %p492_p3 = scmp.lt.s32.totalorder (!%p441_p2), %s1947_s19, 1 }
   0x6   : > { %444 = sbr.rel (%p441_p2) target bundleno = 1964 (0x7ac), region = 76 }
   0xb   : > { %v515_v0 = vld [vmem:[%s2814_s1] sm:$0x7]  ;;  %vm540_vm0 = vcmask 1042432   ;;  %s2830_s19 = smov (!%p492_p3, %s1947_s19), 1  ;;  %vm527_vm1 = vcmask 48128   ;;  %v2173_v14 = vld [vmem:[%s2818_s5 + $0x8] sm:$0xff]  }
   0xc   : > { %2162 = vmatprep.subr.msk.bf16.mxu0 %vm540_vm0, %v515_v0  ;;  %v542_v1 = vsel %vm540_vm0, %v515_v0, 0  ;;  %s2019_s22 = sshll.u32 %s2830_s19, 6  ;;  %v2174_v15 = vld [vmem:[%s2818_s5] sm:$0xff]   ;;  %2083 = vmatprep.subr.bf16.mxu1 %v2173_v14  ;;  %vm611_vm2 = vcmask 261120   ;;  %s2020_s29 = sshll.u32 %s2830_s19, 5  ;;  %vm1468_vm3 = vcmask 257024  }
   0xd   : > { %2074 = vmatpush3.bf16.msra.mxu0 %v542_v1  ;;  %s496_s25 = scalar_lea.vmem %s2813_s0, %s2019_s22  ;;  %2084 = vmatpush3.bf16.msra.mxu1 %v2173_v14  ;;  %v1957_v17 = vld [vmem:[%s2815_s2] ss:$0 sm:$0xff]  ;;  %s2656_s17 = scalar_lea.vmem %s2827_s14, %s2020_s29  ;;  %vm2220_vm4 = vmmov 0   ;;  %vm1677_vm5 = vcmask 64512   ;;  %vm1786_vm6 = vcmask 523264  }
   0xe   : > { %v507_v2 = vld [vmem:[%s496_s25] sm:$0xff]  ;;  %v508_v3 = vld [vmem:[%s496_s25 + $0x8] sm:$0xff]  ;;  %v509_v4 = vld [vmem:[%s496_s25 + $0x10] sm:$0xff]  ;;  %2085 = vmatprep.subr.bf16.mxu1 %v2174_v15  ;;  %s1956_s26 = sshll.u32 %s2830_s19, 3 }
   0xf   : > { %v516_v5 = vpack.c.bf16 %v508_v3, %v507_v2  ;;  %v510_v6 = vld [vmem:[%s496_s25 + $0x18] sm:$0xff]  ;;  %v511_v7 = vld [vmem:[%s496_s25 + $0x20] sm:$0xff]  ;;  %v512_v8 = vld [vmem:[%s496_s25 + $0x28] sm:$0xff]  ;;  %s505_s29 = scalar_lea.vmem %s2828_s15, %s1956_s26 }
  0x10   : > { %v517_v9 = vpack.c.bf16 %v510_v6, %v509_v4  ;;  %v518_v10 = vpack.c.bf16 %v512_v8, %v511_v7  ;;  %v513_v11 = vld [vmem:[%s496_s25 + $0x30] sm:$0xff]  ;;  %v514_v12 = vld [vmem:[%s496_s25 + $0x38] sm:$0xff] }
  0x11   : > { %2075 = vmatprep.mubr.msk.bf16.mxu0 %vm527_vm1, %v516_v5  ;;  %v519_v13 = vpack.c.bf16 %v514_v12, %v513_v11  ;;  %2086 = vmatpush3.bf16.msra.mxu1 %v2174_v15 }
  0x12   : > { %2076 = vmatmul.mubr.msk.bf16.vlgmr.msra.gmra.mxu0 %vm527_vm1, %v517_v9 }
  0x13   : > { %2079 = vmatprep.mubr.msk.bf16.mxu0 %vm527_vm1, %v518_v10 }
  0x1a   : > { %2080 = vmatmul.mubr.msk.bf16.gmra.mxu0 %vm527_vm1, %v519_v13 }
  0xd2   : > { %v2077_v16 = vpop.f32.mrf.mxu0 }
  0xd3   : > { %v2329_v21 = vadd.f32 %v2077_v16, %v1957_v17 }
  0xd4   : > { %v578_v18 = vpop.f32.mrf.mxu0 }
  0xd5   : > { %v2327_v19 = vadd.f32 %v1957_v17, %v578_v18  ;;  %v637_v27 = vmul.f32 %v2329_v21, %v2329_v21  ;;  %v615_v31 = vsel %vm611_vm2, %v2329_v21, 0.0 }
  0xd6   : > { %v2078_v20 = vpop.f32.mrf.mxu0 }
  0xd7   : > { %v635_v23 = vmul.f32 %v2327_v19, %v2327_v19  ;;  %v2333_v24 = vadd.f32 %v2078_v20, %v1957_v17  ;;  %v612_v28 = vsel %vm611_vm2, %v2327_v19, 0.0  ;;  %v646_v41 = vsel %vm611_vm2, %v637_v27, 0.0 }
  0xd8   : > { %v581_v22 = vpop.f32.mrf.mxu0 }
  0xd9   : > { %v2335_v25 = vadd.f32 %v1957_v17, %v581_v22  ;;  %v643_v34 = vsel %vm611_vm2, %v635_v23, 0.0  ;;  %v638_v35 = vmul.f32 %v2333_v24, %v2333_v24  ;;  %v617_v42 = vsel %vm611_vm2, %v2333_v24, 0.0 }
  0xda   : > { %v2081_v26 = vpop.f32.mrf.mxu0 }
  0xdb   : > { %v613_v29 = vsel %vm611_vm2, %v2335_v25, 0.0  ;;  %v636_v30 = vmul.f32 %v2335_v25, %v2335_v25  ;;  %v2356_v43 = vadd.f32 %v2081_v26, %v1957_v17  ;;  %v648_v48 = vsel %vm611_vm2, %v638_v35, 0.0  ;;  %v610_v35 = vld [vmem:[%s2817_s4] sm:$0x1] }
  0xdc   : > { %v614_v32 = vadd.f32 %v613_v29, %v612_v28  ;;  %v594_v33 = vpop.f32.mrf.mxu0  ;;  %v671_v29 = vlaneseq }
  0xdd   : > { %v644_v36 = vsel %vm611_vm2, %v636_v30, 0.0  ;;  %v2351_v37 = vadd.f32 %v1957_v17, %v594_v33  ;;  %v641_v54 = vmul.f32 %v2356_v43, %v2356_v43  ;;  %v623_v60 = vsel %vm611_vm2, %v2356_v43, 0.0 }
  0xde   : > { %v616_v38 = vadd.f32 %v615_v31, %v614_v32  ;;  %v645_v39 = vadd.f32 %v644_v36, %v643_v34  ;;  %v2082_v40 = vpop.f32.mrf.mxu0  ;;  %v672_v30 = vshrl.u32 %v671_v29, 7  ;;  %v609_v31 = vld [vmem:[%s2816_s3] sm:$0x1] }
  0xdf   : > { %v639_v44 = vmul.f32 %v2351_v37, %v2351_v37  ;;  %v619_v49 = vsel %vm611_vm2, %v2351_v37, 0.0  ;;  %v2363_v50 = vadd.f32 %v2082_v40, %v1957_v17  ;;  %v654_v1 = vsel %vm611_vm2, %v641_v54, 0.0 }
  0xe0   : > { %v647_v45 = vadd.f32 %v646_v41, %v645_v39  ;;  %v618_v46 = vadd.f32 %v617_v42, %v616_v38  ;;  %v597_v47 = vpop.f32.mrf.mxu0  ;;  %v2386_v32 = vsub.s32 0, %v672_v30 }
  0xe1   : > { %v2365_v51 = vadd.f32 %v1957_v17, %v597_v47  ;;  %v650_v55 = vsel %vm611_vm2, %v639_v44, 0.0  ;;  %v642_v61 = vmul.f32 %v2363_v50, %v2363_v50  ;;  %v625_v2 = vsel %vm611_vm2, %v2363_v50, 0.0 }
  0xe2   : > { %v620_v52 = vadd.f32 %v619_v49, %v618_v46  ;;  %v649_v53 = vadd.f32 %v648_v48, %v647_v45 }
  0xe3   : > { %v621_v56 = vsel %vm611_vm2, %v2365_v51, 0.0  ;;  %v640_v57 = vmul.f32 %v2365_v51, %v2365_v51  ;;  %v656_v5 = vsel %vm611_vm2, %v642_v61, 0.0 }
  0xe4   : > { %v651_v58 = vadd.f32 %v650_v55, %v649_v53  ;;  %v622_v59 = vadd.f32 %v621_v56, %v620_v52 }
  0xe5   : > { %v652_v62 = vsel %vm611_vm2, %v640_v57, 0.0 }
  0xe6   : > { %v624_v63 = vadd.f32 %v623_v60, %v622_v59  ;;  %v653_v0 = vadd.f32 %v652_v62, %v651_v58 }
  0xe8   : > { %v626_v3 = vadd.f32 %v625_v2, %v624_v63  ;;  %v655_v4 = vadd.f32 %v654_v1, %v653_v0 }
  0xea   : > { %v627_v6 = vrot.slane %v626_v3, 4  ;;  %v657_v7 = vadd.f32 %v656_v5, %v655_v4 }
  0xec   : > { %v628_v8 = vadd.f32 %v627_v6, %v626_v3  ;;  %v658_v9 = vrot.slane %v657_v7, 4 }
  0xee   : > { %v629_v10 = vrot.slane %v628_v8, 2  ;;  %v659_v11 = vadd.f32 %v658_v9, %v657_v7  ;;  %v2176_v9 = vld [vmem:[%s2821_s8] sm:$0xff]  }
  0xf0   : > { %v630_v12 = vadd.f32 %v629_v10, %v628_v8  ;;  %v660_v13 = vrot.slane %v659_v11, 2  ;;  %v2175_v8 = vld [vmem:[%s2821_s8 + $0x8] sm:$0xff]  }
  0xf1   : > { %2095 = vmatprep.subr.bf16.mxu0 %v2175_v8 }
  0xf2   : > { %v631_v14 = vrot.slane %v630_v12, 1  ;;  %v661_v15 = vadd.f32 %v660_v13, %v659_v11  ;;  %2096 = vmatpush3.bf16.msra.mxu0 %v2175_v8 }
  0xf3   : > { %2097 = vmatprep.subr.bf16.mxu0 %v2176_v9 }
  0xf4   : > { %v632_v16 = vadd.f32 %v631_v14, %v630_v12  ;;  %v662_v17 = vrot.slane %v661_v15, 1 }
  0xf6   : > { %v634_v18 = vmul.f32 0.015625, %v632_v16  ;;  %v663_v20 = vadd.f32 %v662_v17, %v661_v15  ;;  %2098 = vmatpush3.bf16.msra.mxu0 %v2176_v9 }
  0xf8   : > { %v664_v22 = vmul.f32 0.015625, %v663_v20  ;;  %v665_v23 = vmul.f32 %v634_v18, %v634_v18 }
  0xfa   : > { %v666_v26 = vsub.f32 %v664_v22, %v665_v23 }
  0xfc   : > { %v667_v27 = vmax.f32 %v666_v26, 0.0 }
  0xfe   : > { %v668_v28 = vadd.f32 1e-05, %v667_v27 }
 0x100   : > { %2183 = vrsqrt.f32 %v668_v28 }
 0x10d   : > { %v2184_v33 = vpop.eup %2183 }
 0x10e   : > { %v670_v34 = vmul.f32 %v2184_v33, %v609_v31 }
 0x110   : > { %v674_v36 = vrot.slane %v670_v34, %v2386_v32  ;;  %v683_v38 = vmul.f32 %v670_v34, %v634_v18 }
 0x112   : > { %v684_v39 = vsub.f32 %v610_v35, %v683_v38  ;;  %v675_v40 = vmul.f32 %v674_v36, %v2327_v19  ;;  %v676_v42 = vmul.f32 %v674_v36, %v2335_v25  ;;  %v677_v44 = vmul.f32 %v674_v36, %v2329_v21 }
 0x113   : > { %v678_v45 = vmul.f32 %v674_v36, %v2333_v24  ;;  %v680_v46 = vmul.f32 %v674_v36, %v2365_v51  ;;  %v679_v47 = vmul.f32 %v674_v36, %v2351_v37  ;;  %v681_v62 = vmul.f32 %v674_v36, %v2356_v43 }
 0x114   : > { %v689_v41 = vrot.slane %v684_v39, %v2386_v32  ;;  %v682_v63 = vmul.f32 %v674_v36, %v2363_v50 }
 0x116   : > { %v691_v48 = vadd.f32 %v689_v41, %v675_v40  ;;  %v692_v49 = vadd.f32 %v689_v41, %v676_v42  ;;  %v693_v52 = vadd.f32 %v689_v41, %v677_v44  ;;  %v694_v53 = vadd.f32 %v689_v41, %v678_v45 }
 0x117   : > { %v695_v54 = vadd.f32 %v689_v41, %v679_v47  ;;  %v696_v55 = vadd.f32 %v689_v41, %v680_v46  ;;  %v697_v2 = vadd.f32 %v689_v41, %v681_v62  ;;  %v698_v3 = vadd.f32 %v689_v41, %v682_v63 }
 0x118   : > { %v699_v56 = vmax.f32 %v691_v48, 0.0  ;;  %v700_v57 = vmax.f32 %v692_v49, 0.0  ;;  %v701_v58 = vmax.f32 %v693_v52, 0.0  ;;  %v702_v59 = vmax.f32 %v694_v53, 0.0 }
 0x119   : > { %v703_v60 = vmax.f32 %v695_v54, 0.0  ;;  %v704_v61 = vmax.f32 %v696_v55, 0.0  ;;  %v705_v5 = vmax.f32 %v697_v2, 0.0  ;;  %v706_v6 = vmax.f32 %v698_v3, 0.0 }
 0x11a   : > { %v711_v0 = vpack.c.bf16 %v700_v57, %v699_v56  ;;  %v712_v1 = vpack.c.bf16 %v702_v59, %v701_v58 }
 0x11b   : > { %v713_v4 = vpack.c.bf16 %v704_v61, %v703_v60  ;;  %v714_v7 = vpack.c.bf16 %v706_v6, %v705_v5 }
 0x11c   : > { %2087 = vmatprep.mubr.msk.bf16.mxu1 %vm611_vm2, %v711_v0 }
 0x11d   : > { %2088 = vmatmul.mubr.msk.bf16.vlgmr.msra.gmra.mxu1 %vm611_vm2, %v712_v1 }
 0x11e   : > { %2091 = vmatprep.mubr.msk.bf16.mxu1 %vm611_vm2, %v713_v4 }
 0x125   : > { %2092 = vmatmul.mubr.msk.bf16.gmra.mxu1 %vm611_vm2, %v714_v7 }
 0x1dd   : > { %v2411_v10 = vpop.f32.mrf.mxu1 }
 0x1de   : > { %v830_v15 = vmul.f32 %v2411_v10, %v2411_v10  ;;  %v809_v23 = vsel %vm611_vm2, %v2411_v10, 0.0 }
 0x1df   : > { %v2413_v11 = vpop.f32.mrf.mxu1 }
 0x1e0   : > { %v828_v13 = vmul.f32 %v2413_v11, %v2413_v11  ;;  %v806_v16 = vsel %vm611_vm2, %v2413_v11, 0.0  ;;  %v839_v33 = vsel %vm611_vm2, %v830_v15, 0.0 }
 0x1e1   : > { %v2415_v12 = vpop.f32.mrf.mxu1 }
 0x1e2   : > { %v836_v26 = vsel %vm611_vm2, %v828_v13, 0.0  ;;  %v831_v27 = vmul.f32 %v2415_v12, %v2415_v12  ;;  %v811_v34 = vsel %vm611_vm2, %v2415_v12, 0.0 }
 0x1e3   : > { %v2419_v14 = vpop.f32.mrf.mxu1 }
 0x1e4   : > { %v807_v17 = vsel %vm611_vm2, %v2419_v14, 0.0  ;;  %v829_v18 = vmul.f32 %v2419_v14, %v2419_v14  ;;  %v841_v40 = vsel %vm611_vm2, %v831_v27, 0.0 }
 0x1e5   : > { %v808_v20 = vadd.f32 %v807_v17, %v806_v16  ;;  %v2429_v22 = vpop.f32.mrf.mxu1 }
 0x1e6   : > { %v837_v28 = vsel %vm611_vm2, %v829_v18, 0.0  ;;  %v834_v46 = vmul.f32 %v2429_v22, %v2429_v22  ;;  %v817_v54 = vsel %vm611_vm2, %v2429_v22, 0.0 }
 0x1e7   : > { %v810_v29 = vadd.f32 %v809_v23, %v808_v20  ;;  %v838_v30 = vadd.f32 %v837_v28, %v836_v26  ;;  %v789_v31 = vpop.f32.mrf.mxu1  ;;  %v804_v28 = vld [vmem:[%s2819_s6] sm:$0x1] }
 0x1e8   : > { %v832_v35 = vmul.f32 %v789_v31, %v789_v31  ;;  %v813_v41 = vsel %vm611_vm2, %v789_v31, 0.0  ;;  %v847_v59 = vsel %vm611_vm2, %v834_v46, 0.0 }
 0x1e9   : > { %v840_v36 = vadd.f32 %v839_v33, %v838_v30  ;;  %v812_v38 = vadd.f32 %v811_v34, %v810_v29  ;;  %v2440_v39 = vpop.f32.mrf.mxu1  ;;  %v805_v33 = vld [vmem:[%s2820_s7] sm:$0x1] }
 0x1ea   : > { %v843_v47 = vsel %vm611_vm2, %v832_v35, 0.0  ;;  %v835_v55 = vmul.f32 %v2440_v39, %v2440_v39  ;;  %v819_v60 = vsel %vm611_vm2, %v2440_v39, 0.0 }
 0x1eb   : > { %v814_v42 = vadd.f32 %v813_v41, %v812_v38  ;;  %v842_v44 = vadd.f32 %v841_v40, %v840_v36  ;;  %v792_v45 = vpop.f32.mrf.mxu1 }
 0x1ec   : > { %v815_v48 = vsel %vm611_vm2, %v792_v45, 0.0  ;;  %v833_v49 = vmul.f32 %v792_v45, %v792_v45  ;;  %v849_v63 = vsel %vm611_vm2, %v835_v55, 0.0 }
 0x1ed   : > { %v844_v52 = vadd.f32 %v843_v47, %v842_v44  ;;  %v816_v53 = vadd.f32 %v815_v48, %v814_v42 }
 0x1ee   : > { %v845_v56 = vsel %vm611_vm2, %v833_v49, 0.0 }
 0x1ef   : > { %v818_v57 = vadd.f32 %v817_v54, %v816_v53  ;;  %v846_v58 = vadd.f32 %v845_v56, %v844_v52 }
 0x1f1   : > { %v820_v61 = vadd.f32 %v819_v60, %v818_v57  ;;  %v848_v62 = vadd.f32 %v847_v59, %v846_v58 }
 0x1f3   : > { %v821_v0 = vrot.slane %v820_v61, 4  ;;  %v850_v1 = vadd.f32 %v849_v63, %v848_v62 }
 0x1f5   : > { %v822_v2 = vadd.f32 %v821_v0, %v820_v61  ;;  %v851_v3 = vrot.slane %v850_v1, 4 }
 0x1f7   : > { %v823_v4 = vrot.slane %v822_v2, 2  ;;  %v852_v5 = vadd.f32 %v851_v3, %v850_v1 }
 0x1f9   : > { %v824_v6 = vadd.f32 %v823_v4, %v822_v2  ;;  %v853_v7 = vrot.slane %v852_v5, 2 }
 0x1fb   : > { %v825_v8 = vrot.slane %v824_v6, 1  ;;  %v854_v9 = vadd.f32 %v853_v7, %v852_v5 }
 0x1fd   : > { %v826_v13 = vadd.f32 %v825_v8, %v824_v6  ;;  %v855_v15 = vrot.slane %v854_v9, 1  ;;  %v1974_v6 = vld [vmem:[%s2822_s9] ss:$0 sm:$0xff] }
 0x1ff   : > { %v827_v16 = vmul.f32 0.015625, %v826_v13  ;;  %v856_v17 = vadd.f32 %v855_v15, %v854_v9 }
 0x201   : > { %v857_v18 = vmul.f32 0.015625, %v856_v17  ;;  %v858_v20 = vmul.f32 %v827_v16, %v827_v16 }
 0x203   : > { %v859_v23 = vsub.f32 %v857_v18, %v858_v20 }
 0x205   : > { %v860_v26 = vmax.f32 %v859_v23, 0.0 }
 0x207   : > { %v861_v27 = vadd.f32 1e-05, %v860_v26 }
 0x209   : > { %2185 = vrsqrt.f32 %v861_v27 }
 0x216   : > { %v2186_v29 = vpop.eup %2185 }
 0x217   : > { %v863_v30 = vmul.f32 %v2186_v29, %v804_v28 }
 0x219   : > { %v867_v34 = vrot.slane %v863_v30, %v2386_v32  ;;  %v876_v35 = vmul.f32 %v863_v30, %v827_v16 }
 0x21b   : > { %v877_v36 = vsub.f32 %v805_v33, %v876_v35  ;;  %v873_v38 = vmul.f32 %v867_v34, %v792_v45  ;;  %v868_v41 = vmul.f32 %v867_v34, %v2413_v11  ;;  %v869_v42 = vmul.f32 %v867_v34, %v2419_v14 }
 0x21c   : > { %v870_v44 = vmul.f32 %v2411_v10, %v867_v34  ;;  %v871_v46 = vmul.f32 %v2415_v12, %v867_v34  ;;  %v872_v47 = vmul.f32 %v867_v34, %v789_v31  ;;  %v874_v11 = vmul.f32 %v2429_v22, %v867_v34  ;;  %v2177_v22 = vld [vmem:[%s2818_s5 + $0x18] sm:$0xff]  }
 0x21d   : > { %v882_v40 = vrot.slane %v877_v36, %v2386_v32  ;;  %v875_v14 = vmul.f32 %v2440_v39, %v867_v34  ;;  %v2178_v39 = vld [vmem:[%s2818_s5 + $0x10] sm:$0xff]   ;;  %2107 = vmatprep.subr.bf16.mxu1 %v2177_v22 }
 0x21e   : > { %2108 = vmatpush3.bf16.msra.mxu1 %v2177_v22 }
 0x21f   : > { %v889_v48 = vadd.f32 %v882_v40, %v873_v38  ;;  %v884_v49 = vadd.f32 %v882_v40, %v868_v41  ;;  %v885_v52 = vadd.f32 %v882_v40, %v869_v42  ;;  %v886_v53 = vadd.f32 %v882_v40, %v870_v44  ;;  %2109 = vmatprep.subr.bf16.mxu1 %v2178_v39 }
 0x220   : > { %v887_v54 = vadd.f32 %v882_v40, %v871_v46  ;;  %v888_v55 = vadd.f32 %v882_v40, %v872_v47  ;;  %v890_v12 = vadd.f32 %v882_v40, %v874_v11  ;;  %v891_v31 = vadd.f32 %v882_v40, %v875_v14 }
 0x221   : > { %v897_v56 = vmax.f32 %v889_v48, 0.0  ;;  %v892_v57 = vmax.f32 %v884_v49, 0.0  ;;  %v893_v45 = vmax.f32 %v885_v52, 0.0  ;;  %v894_v58 = vmax.f32 %v886_v53, 0.0 }
 0x222   : > { %v895_v59 = vmax.f32 %v887_v54, 0.0  ;;  %v896_v60 = vmax.f32 %v888_v55, 0.0  ;;  %v898_v63 = vmax.f32 %v890_v12, 0.0  ;;  %v899_v0 = vmax.f32 %v891_v31, 0.0  ;;  %2110 = vmatpush3.bf16.msra.mxu1 %v2178_v39 }
 0x223   : > { %v904_v10 = vpack.c.bf16 %v893_v45, %v892_v57 }
 0x224   : > { %v905_v61 = vpack.c.bf16 %v895_v59, %v894_v58  ;;  %v906_v62 = vpack.c.bf16 %v897_v56, %v896_v60  ;;  %v907_v1 = vpack.c.bf16 %v899_v0, %v898_v63 }
 0x225   : > { %2099 = vmatprep.mubr.msk.bf16.mxu0 %vm611_vm2, %v904_v10 }
 0x226   : > { %2100 = vmatmul.mubr.msk.bf16.vlgmr.msra.gmra.mxu0 %vm611_vm2, %v905_v61 }
 0x227   : > { %2103 = vmatprep.mubr.msk.bf16.mxu0 %vm611_vm2, %v906_v62 }
 0x22e   : > { %2104 = vmatmul.mubr.msk.bf16.gmra.mxu0 %vm611_vm2, %v907_v1 }
 0x2e6   : > { %v2101_v2 = vpop.f32.mrf.mxu0 }
 0x2e7   : > { %v999_v4 = vadd.f32 %v2101_v2, %v2329_v21 }
 0x2e8   : > { %v966_v3 = vpop.f32.mrf.mxu0 }
 0x2e9   : > { %v997_v5 = vadd.f32 %v966_v3, %v2327_v19  ;;  %v2489_v15 = vadd.f32 %v1974_v6, %v999_v4 }
 0x2ea   : > { %v2102_v7 = vpop.f32.mrf.mxu0 }
 0x2eb   : > { %v2486_v8 = vadd.f32 %v1974_v6, %v997_v5  ;;  %v1000_v9 = vadd.f32 %v2102_v7, %v2333_v24  ;;  %v1048_v23 = vmul.f32 %v2489_v15, %v2489_v15  ;;  %v1027_v30 = vsel %vm611_vm2, %v2489_v15, 0.0 }
 0x2ec   : > { %v969_v13 = vpop.f32.mrf.mxu0 }
 0x2ed   : > { %v998_v16 = vadd.f32 %v969_v13, %v2335_v25  ;;  %v1046_v21 = vmul.f32 %v2486_v8, %v2486_v8  ;;  %v2494_v18 = vadd.f32 %v1974_v6, %v1000_v9  ;;  %v1024_v24 = vsel %vm611_vm2, %v2486_v8, 0.0 }
 0x2ee   : > { %v2105_v17 = vpop.f32.mrf.mxu0  ;;  %v1057_v41 = vsel %vm611_vm2, %v1048_v23, 0.0 }
 0x2ef   : > { %v2496_v19 = vadd.f32 %v1974_v6, %v998_v16  ;;  %v1003_v28 = vadd.f32 %v2105_v17, %v2356_v43  ;;  %v1049_v35 = vmul.f32 %v2494_v18, %v2494_v18  ;;  %v1029_v44 = vsel %vm611_vm2, %v2494_v18, 0.0 }
 0x2f0   : > { %v982_v20 = vpop.f32.mrf.mxu0 }
 0x2f1   : > { %v1001_v26 = vadd.f32 %v982_v20, %v2351_v37  ;;  %v1025_v25 = vsel %vm611_vm2, %v2496_v19, 0.0  ;;  %v1047_v27 = vmul.f32 %v2496_v19, %v2496_v19  ;;  %v1054_v37 = vsel %vm611_vm2, %v1046_v21, 0.0 }
 0x2f2   : > { %v2106_v29 = vpop.f32.mrf.mxu0  ;;  %v1026_v33 = vadd.f32 %v1025_v25, %v1024_v24  ;;  %v2520_v46 = vadd.f32 %v1974_v6, %v1003_v28  ;;  %v1059_v53 = vsel %vm611_vm2, %v1049_v35, 0.0 }
 0x2f3   : > { %v2510_v34 = vadd.f32 %v1974_v6, %v1001_v26  ;;  %v1055_v36 = vsel %vm611_vm2, %v1047_v27, 0.0  ;;  %v1004_v38 = vadd.f32 %v2106_v29, %v2363_v50  ;;  %v1975_v29 = vld [vmem:[%s2816_s3 + $0x1] sm:$0x1] }
 0x2f4   : > { %v985_v40 = vpop.f32.mrf.mxu0  ;;  %v1028_v43 = vadd.f32 %v1027_v30, %v1026_v33  ;;  %v1056_v42 = vadd.f32 %v1055_v36, %v1054_v37  ;;  %v1052_v45 = vmul.f32 %v2520_v46, %v2520_v46  ;;  %v1035_v14 = vsel %vm611_vm2, %v2520_v46, 0.0  ;;  %v1976_v37 = vld [vmem:[%s2817_s4 + $0x1] sm:$0x1] }
 0x2f5   : > { %v1050_v47 = vmul.f32 %v2510_v34, %v2510_v34  ;;  %v1002_v48 = vadd.f32 %v985_v40, %v2365_v51  ;;  %v1031_v50 = vsel %vm611_vm2, %v2510_v34, 0.0  ;;  %v2528_v54 = vadd.f32 %v1974_v6, %v1004_v38 }
 0x2f6   : > { %v1058_v49 = vadd.f32 %v1057_v41, %v1056_v42  ;;  %v1030_v52 = vadd.f32 %v1029_v44, %v1028_v43  ;;  %v1065_v62 = vsel %vm611_vm2, %v1052_v45, 0.0 }
 0x2f7   : > { %v2530_v55 = vadd.f32 %v1974_v6, %v1002_v48  ;;  %v1061_v58 = vsel %vm611_vm2, %v1050_v47, 0.0  ;;  %v1053_v10 = vmul.f32 %v2528_v54, %v2528_v54  ;;  %v1037_v63 = vsel %vm611_vm2, %v2528_v54, 0.0 }
 0x2f8   : > { %v1032_v56 = vadd.f32 %v1031_v50, %v1030_v52  ;;  %v1060_v57 = vadd.f32 %v1059_v53, %v1058_v49 }
 0x2f9   : > { %v1033_v51 = vsel %vm611_vm2, %v2530_v55, 0.0  ;;  %v1051_v59 = vmul.f32 %v2530_v55, %v2530_v55  ;;  %v1067_v22 = vsel %vm611_vm2, %v1053_v10, 0.0 }
 0x2fa   : > { %v1062_v60 = vadd.f32 %v1061_v58, %v1060_v57  ;;  %v1034_v11 = vadd.f32 %v1033_v51, %v1032_v56 }
 0x2fb   : > { %v1063_v61 = vsel %vm611_vm2, %v1051_v59, 0.0 }
 0x2fc   : > { %v1036_v12 = vadd.f32 %v1035_v14, %v1034_v11  ;;  %v1064_v31 = vadd.f32 %v1063_v61, %v1062_v60 }
 0x2fe   : > { %v1038_v0 = vadd.f32 %v1037_v63, %v1036_v12  ;;  %v1066_v1 = vadd.f32 %v1065_v62, %v1064_v31 }
 0x300   : > { %v1039_v39 = vrot.slane %v1038_v0, 4  ;;  %v1068_v2 = vadd.f32 %v1067_v22, %v1066_v1 }
 0x302   : > { %v1040_v3 = vadd.f32 %v1039_v39, %v1038_v0  ;;  %v1069_v4 = vrot.slane %v1068_v2, 4  ;;  %v2179_v39 = vld [vmem:[%s2821_s8 + $0x18] sm:$0xff]  }
 0x303   : > { %2119 = vmatprep.subr.bf16.mxu0 %v2179_v39 }
 0x304   : > { %v1041_v5 = vrot.slane %v1040_v3, 2  ;;  %v1070_v6 = vadd.f32 %v1069_v4, %v1068_v2  ;;  %2120 = vmatpush3.bf16.msra.mxu0 %v2179_v39  ;;  %v2180_v2 = vld [vmem:[%s2821_s8 + $0x10] sm:$0xff]  }
 0x305   : > { %2121 = vmatprep.subr.bf16.mxu0 %v2180_v2 }
 0x306   : > { %v1042_v7 = vadd.f32 %v1041_v5, %v1040_v3  ;;  %v1071_v9 = vrot.slane %v1070_v6, 2 }
 0x308   : > { %v1043_v13 = vrot.slane %v1042_v7, 1  ;;  %v1072_v16 = vadd.f32 %v1071_v9, %v1070_v6  ;;  %2122 = vmatpush3.bf16.msra.mxu0 %v2180_v2 }
 0x30a   : > { %v1044_v17 = vadd.f32 %v1043_v13, %v1042_v7  ;;  %v1073_v21 = vrot.slane %v1072_v16, 1 }
 0x30c   : > { %v1045_v20 = vmul.f32 0.015625, %v1044_v17  ;;  %v1074_v23 = vadd.f32 %v1073_v21, %v1072_v16 }
 0x30e   : > { %v1075_v26 = vmul.f32 0.015625, %v1074_v23  ;;  %v1076_v24 = vmul.f32 %v1045_v20, %v1045_v20 }
 0x310   : > { %v1077_v25 = vsub.f32 %v1075_v26, %v1076_v24 }
 0x312   : > { %v1078_v27 = vmax.f32 %v1077_v25, 0.0 }
 0x314   : > { %v1079_v28 = vadd.f32 1e-05, %v1078_v27 }
 0x316   : > { %2187 = vrsqrt.f32 %v1079_v28 }
 0x323   : > { %v2188_v30 = vpop.eup %2187 }
 0x324   : > { %v1081_v33 = vmul.f32 %v2188_v30, %v1975_v29 }
 0x326   : > { %v1085_v35 = vrot.slane %v1081_v33, %v2386_v32  ;;  %v1094_v36 = vmul.f32 %v1081_v33, %v1045_v20 }
 0x328   : > { %v1095_v38 = vsub.f32 %v1976_v37, %v1094_v36  ;;  %v1086_v40 = vmul.f32 %v1085_v35, %v2486_v8  ;;  %v1087_v43 = vmul.f32 %v1085_v35, %v2496_v19  ;;  %v1088_v42 = vmul.f32 %v1085_v35, %v2489_v15 }
 0x329   : > { %v1089_v44 = vmul.f32 %v1085_v35, %v2494_v18  ;;  %v1091_v47 = vmul.f32 %v1085_v35, %v2530_v55  ;;  %v1090_v48 = vmul.f32 %v1085_v35, %v2510_v34  ;;  %v1092_v14 = vmul.f32 %v1085_v35, %v2520_v46 }
 0x32a   : > { %v1100_v41 = vrot.slane %v1095_v38, %v2386_v32  ;;  %v1093_v10 = vmul.f32 %v1085_v35, %v2528_v54 }
 0x32c   : > { %v1102_v49 = vadd.f32 %v1100_v41, %v1086_v40  ;;  %v1103_v52 = vadd.f32 %v1100_v41, %v1087_v43  ;;  %v1104_v53 = vadd.f32 %v1100_v41, %v1088_v42  ;;  %v1105_v50 = vadd.f32 %v1100_v41, %v1089_v44 }
 0x32d   : > { %v1106_v56 = vadd.f32 %v1100_v41, %v1090_v48  ;;  %v1107_v57 = vadd.f32 %v1100_v41, %v1091_v47  ;;  %v1108_v31 = vadd.f32 %v1100_v41, %v1092_v14  ;;  %v1109_v62 = vadd.f32 %v1100_v41, %v1093_v10 }
 0x32e   : > { %v1110_v45 = vmax.f32 %v1102_v49, 0.0  ;;  %v1111_v58 = vmax.f32 %v1103_v52, 0.0  ;;  %v1112_v51 = vmax.f32 %v1104_v53, 0.0  ;;  %v1113_v59 = vmax.f32 %v1105_v50, 0.0 }
 0x32f   : > { %v1114_v60 = vmax.f32 %v1106_v56, 0.0  ;;  %v1115_v11 = vmax.f32 %v1107_v57, 0.0  ;;  %v1116_v0 = vmax.f32 %v1108_v31, 0.0  ;;  %v1117_v1 = vmax.f32 %v1109_v62, 0.0 }
 0x330   : > { %v1123_v61 = vpack.c.bf16 %v1111_v58, %v1110_v45  ;;  %v1124_v12 = vpack.c.bf16 %v1113_v59, %v1112_v51 }
 0x331   : > { %v1125_v63 = vpack.c.bf16 %v1115_v11, %v1114_v60  ;;  %v1126_v22 = vpack.c.bf16 %v1117_v1, %v1116_v0 }
 0x332   : > { %2111 = vmatprep.mubr.msk.bf16.mxu1 %vm611_vm2, %v1123_v61 }
 0x333   : > { %2112 = vmatmul.mubr.msk.bf16.vlgmr.msra.gmra.mxu1 %vm611_vm2, %v1124_v12 }
 0x334   : > { %2115 = vmatprep.mubr.msk.bf16.mxu1 %vm611_vm2, %v1125_v63 }
 0x33b   : > { %2116 = vmatmul.mubr.msk.bf16.gmra.mxu1 %vm611_vm2, %v1126_v22 }
 0x3f3   : > { %v2574_v3 = vpop.f32.mrf.mxu1 }
 0x3f4   : > { %v1244_v9 = vmul.f32 %v2574_v3, %v2574_v3  ;;  %v1223_v23 = vsel %vm611_vm2, %v2574_v3, 0.0 }
 0x3f5   : > { %v2576_v4 = vpop.f32.mrf.mxu1 }
 0x3f6   : > { %v1242_v6 = vmul.f32 %v2576_v4, %v2576_v4  ;;  %v1220_v13 = vsel %vm611_vm2, %v2576_v4, 0.0  ;;  %v1253_v30 = vsel %vm611_vm2, %v1244_v9, 0.0 }
 0x3f7   : > { %v2578_v5 = vpop.f32.mrf.mxu1 }
 0x3f8   : > { %v1250_v26 = vsel %vm611_vm2, %v1242_v6, 0.0  ;;  %v1245_v24 = vmul.f32 %v2578_v5, %v2578_v5  ;;  %v1225_v33 = vsel %vm611_vm2, %v2578_v5, 0.0 }
 0x3f9   : > { %v2582_v7 = vpop.f32.mrf.mxu1 }
 0x3fa   : > { %v1221_v16 = vsel %vm611_vm2, %v2582_v7, 0.0  ;;  %v1243_v17 = vmul.f32 %v2582_v7, %v2582_v7  ;;  %v1255_v40 = vsel %vm611_vm2, %v1245_v24, 0.0 }
 0x3fb   : > { %v1222_v21 = vadd.f32 %v1221_v16, %v1220_v13  ;;  %v2592_v20 = vpop.f32.mrf.mxu1 }
 0x3fc   : > { %v1251_v25 = vsel %vm611_vm2, %v1243_v17, 0.0  ;;  %v1248_v47 = vmul.f32 %v2592_v20, %v2592_v20  ;;  %v1231_v56 = vsel %vm611_vm2, %v2592_v20, 0.0 }
 0x3fd   : > { %v1224_v27 = vadd.f32 %v1223_v23, %v1222_v21  ;;  %v1252_v28 = vadd.f32 %v1251_v25, %v1250_v26  ;;  %v1201_v29 = vpop.f32.mrf.mxu1  ;;  %v1987_v25 = vld [vmem:[%s2819_s6 + $0x1] sm:$0x1] }
 0x3fe   : > { %v1246_v37 = vmul.f32 %v1201_v29, %v1201_v29  ;;  %v1227_v41 = vsel %vm611_vm2, %v1201_v29, 0.0  ;;  %v1261_v59 = vsel %vm611_vm2, %v1248_v47, 0.0 }
 0x3ff   : > { %v1254_v35 = vadd.f32 %v1253_v30, %v1252_v28  ;;  %v1226_v36 = vadd.f32 %v1225_v33, %v1224_v27  ;;  %v2603_v38 = vpop.f32.mrf.mxu1  ;;  %v1988_v30 = vld [vmem:[%s2820_s7 + $0x1] sm:$0x1] }
 0x400   : > { %v1257_v48 = vsel %vm611_vm2, %v1246_v37, 0.0  ;;  %v1249_v57 = vmul.f32 %v2603_v38, %v2603_v38  ;;  %v1233_v60 = vsel %vm611_vm2, %v2603_v38, 0.0 }
 0x401   : > { %v1228_v43 = vadd.f32 %v1227_v41, %v1226_v36  ;;  %v1256_v42 = vadd.f32 %v1255_v40, %v1254_v35  ;;  %v1204_v44 = vpop.f32.mrf.mxu1 }
 0x402   : > { %v1229_v49 = vsel %vm611_vm2, %v1204_v44, 0.0  ;;  %v1247_v52 = vmul.f32 %v1204_v44, %v1204_v44  ;;  %v1263_v10 = vsel %vm611_vm2, %v1249_v57, 0.0 }
 0x403   : > { %v1258_v53 = vadd.f32 %v1257_v48, %v1256_v42  ;;  %v1230_v50 = vadd.f32 %v1229_v49, %v1228_v43 }
 0x404   : > { %v1259_v45 = vsel %vm611_vm2, %v1247_v52, 0.0 }
 0x405   : > { %v1232_v58 = vadd.f32 %v1231_v56, %v1230_v50  ;;  %v1260_v51 = vadd.f32 %v1259_v45, %v1258_v53 }
 0x407   : > { %v1234_v11 = vadd.f32 %v1233_v60, %v1232_v58  ;;  %v1262_v14 = vadd.f32 %v1261_v59, %v1260_v51 }
 0x409   : > { %v1235_v61 = vrot.slane %v1234_v11, 4  ;;  %v1264_v12 = vadd.f32 %v1263_v10, %v1262_v14 }
 0x40b   : > { %v1236_v31 = vadd.f32 %v1235_v61, %v1234_v11  ;;  %v1265_v62 = vrot.slane %v1264_v12, 4 }
 0x40d   : > { %v1237_v63 = vrot.slane %v1236_v31, 2  ;;  %v1266_v0 = vadd.f32 %v1265_v62, %v1264_v12 }
 0x40f   : > { %v1238_v1 = vadd.f32 %v1237_v63, %v1236_v31  ;;  %v1267_v22 = vrot.slane %v1266_v0, 2  ;;  %v2182_v31 = vld [vmem:[%s2825_s12] sm:$0xff]  }
 0x410   : > { %v2000_v63 = vld [vmem:[%s2822_s9 + $0x1] ss:$0 sm:$0xff] }
 0x411   : > { %v1239_v39 = vrot.slane %v1238_v1, 1  ;;  %v1268_v2 = vadd.f32 %v1267_v22, %v1266_v0 }
 0x413   : > { %v1240_v6 = vadd.f32 %v1239_v39, %v1238_v1  ;;  %v1269_v9 = vrot.slane %v1268_v2, 1 }
 0x415   : > { %v1241_v13 = vmul.f32 0.015625, %v1240_v6  ;;  %v1270_v16 = vadd.f32 %v1269_v9, %v1268_v2 }
 0x417   : > { %v1271_v17 = vmul.f32 0.015625, %v1270_v16  ;;  %v1272_v21 = vmul.f32 %v1241_v13, %v1241_v13 }
 0x419   : > { %v1273_v23 = vsub.f32 %v1271_v17, %v1272_v21 }
 0x41b   : > { %v1274_v26 = vmax.f32 %v1273_v23, 0.0 }
 0x41d   : > { %v1275_v24 = vadd.f32 1e-05, %v1274_v26 }
 0x41f   : > { %2189 = vrsqrt.f32 %v1275_v24 }
 0x42c   : > { %v2190_v27 = vpop.eup %2189 }
 0x42d   : > { %v1277_v28 = vmul.f32 %v2190_v27, %v1987_v25 }
 0x42f   : > { %v1281_v33 = vrot.slane %v1277_v28, %v2386_v32  ;;  %v1290_v37 = vmul.f32 %v1277_v28, %v1241_v13 }
 0x431   : > { %v1291_v35 = vsub.f32 %v1988_v30, %v1290_v37  ;;  %v1287_v36 = vmul.f32 %v1281_v33, %v1204_v44  ;;  %v1282_v41 = vmul.f32 %v1281_v33, %v2576_v4  ;;  %v1283_v43 = vmul.f32 %v1281_v33, %v2582_v7 }
 0x432   : > { %v1284_v42 = vmul.f32 %v2574_v3, %v1281_v33  ;;  %v1285_v47 = vmul.f32 %v2578_v5, %v1281_v33  ;;  %v1286_v48 = vmul.f32 %v1281_v33, %v1201_v29  ;;  %v1288_v4 = vmul.f32 %v2592_v20, %v1281_v33 }
 0x433   : > { %v1296_v40 = vrot.slane %v1291_v35, %v2386_v32  ;;  %v1289_v7 = vmul.f32 %v2603_v38, %v1281_v33  ;;  %v2219_v20 = vmov 0.0   ;;  %v2181_v38 = vld [vmem:[%s2825_s12 + $0x8] sm:$0xff]  }
 0x434   : > { %2143 = vmatprep.subr.mxu0 %v2219_v20  ;;  %2131 = vmatprep.subr.bf16.mxu1 %v2181_v38 }
 0x435   : > { %v1303_v49 = vadd.f32 %v1296_v40, %v1287_v36  ;;  %v1298_v52 = vadd.f32 %v1296_v40, %v1282_v41  ;;  %v1299_v53 = vadd.f32 %v1296_v40, %v1283_v43  ;;  %v1300_v50 = vadd.f32 %v1296_v40, %v1284_v42  ;;  %2132 = vmatpush3.bf16.msra.mxu1 %v2181_v38 }
 0x436   : > { %v1301_v56 = vadd.f32 %v1296_v40, %v1285_v47  ;;  %v1302_v57 = vadd.f32 %v1296_v40, %v1286_v48  ;;  %v1304_v5 = vadd.f32 %v1296_v40, %v1288_v4  ;;  %v1305_v29 = vadd.f32 %v1296_v40, %v1289_v7  ;;  %2133 = vmatprep.subr.bf16.mxu1 %v2182_v31 }
 0x437   : > { %v1311_v45 = vmax.f32 %v1303_v49, 0.0  ;;  %v1306_v58 = vmax.f32 %v1298_v52, 0.0  ;;  %v1307_v44 = vmax.f32 %v1299_v53, 0.0  ;;  %v1308_v51 = vmax.f32 %v1300_v50, 0.0 }
 0x438   : > { %v1309_v59 = vmax.f32 %v1301_v56, 0.0  ;;  %v1310_v60 = vmax.f32 %v1302_v57, 0.0  ;;  %v1312_v10 = vmax.f32 %v1304_v5, 0.0  ;;  %v1313_v61 = vmax.f32 %v1305_v29, 0.0 }
 0x439   : > { %v1319_v3 = vpack.c.bf16 %v1307_v44, %v1306_v58  ;;  %2134 = vmatpush3.bf16.msra.mxu1 %v2182_v31 }
 0x43a   : > { %v1320_v11 = vpack.c.bf16 %v1309_v59, %v1308_v51  ;;  %v1321_v14 = vpack.c.bf16 %v1311_v45, %v1310_v60  ;;  %v1322_v12 = vpack.c.bf16 %v1313_v61, %v1312_v10 }
 0x43b   : > { %2123 = vmatprep.mubr.msk.bf16.mxu0 %vm611_vm2, %v1319_v3 }
 0x43c   : > { %2124 = vmatmul.mubr.msk.bf16.vlgmr.msra.gmra.mxu0 %vm611_vm2, %v1320_v11 }
 0x43d   : > { %2127 = vmatprep.mubr.msk.bf16.mxu0 %vm611_vm2, %v1321_v14 }
 0x444   : > { %2128 = vmatmul.mubr.msk.bf16.gmra.mxu0 %vm611_vm2, %v1322_v12 }
 0x445   : > { %2159 = vmatprep.mubr.msk.f32.mxu0 %vm2220_vm4, %v2219_v20 }
 0x4fc   : > { %v2125_v62 = vpop.f32.mrf.mxu0 }
 0x4fd   : > { %v1414_v0 = vadd.f32 %v2125_v62, %v2489_v15 }
 0x4fe   : > { %v1381_v1 = vpop.f32.mrf.mxu0 }
 0x4ff   : > { %v2650_v22 = vadd.f32 %v2000_v63, %v1414_v0  ;;  %v1412_v39 = vadd.f32 %v1381_v1, %v2486_v8 }
 0x500   : > { %v2126_v2 = vpop.f32.mrf.mxu0 }
 0x501   : > { %v2023_v6 = vpack.c.bf16 %v2650_v22, %v2650_v22  ;;  %v2660_v9 = vadd.f32 %v2000_v63, %v1412_v39  ;;  %v1415_v15 = vadd.f32 %v2126_v2, %v2494_v18  ;;  %v1503_v27 = vmul.f32 %v2650_v22, %v2650_v22 }
 0x502   : > { %v1384_v13 = vpop.f32.mrf.mxu0  ;;  %v1482_v36 = vsel %vm611_vm2, %v2650_v22, 0.0 }
 0x503   : > { %1471 = vst.msk [vmem:[%s2656_s17 + $0x8] sm:$0xf] %vm1468_vm3, %v2023_v6  ;;  %v2021_v8 = vpack.c.bf16 %v2660_v9, %v2660_v9  ;;  %v2667_v16 = vadd.f32 %v2000_v63, %v1415_v15  ;;  %v1413_v17 = vadd.f32 %v1384_v13, %v2496_v19  ;;  %v1501_v23 = vmul.f32 %v2660_v9, %v2660_v9 }
 0x504   : > { %v2129_v21 = vpop.f32.mrf.mxu0  ;;  %v1479_v30 = vsel %vm611_vm2, %v2660_v9, 0.0  ;;  %v1512_v52 = vsel %vm611_vm2, %v1503_v27, 0.0 }
 0x505   : > { %1469 = vst.msk [vmem:[%s2656_s17] sm:$0xf] %vm1468_vm3, %v2021_v8  ;;  %v1418_v26 = vadd.f32 %v2129_v21, %v2520_v46  ;;  %v2024_v18 = vpack.c.bf16 %v2667_v16, %v2667_v16  ;;  %v2677_v24 = vadd.f32 %v2000_v63, %v1413_v17  ;;  %v1504_v43 = vmul.f32 %v2667_v16, %v2667_v16 }
 0x506   : > { %v1397_v25 = vpop.f32.mrf.mxu0  ;;  %v1484_v57 = vsel %vm611_vm2, %v2667_v16, 0.0 }
 0x507   : > { %v2681_v28 = vadd.f32 %v2000_v63, %v1418_v26  ;;  %v1416_v19 = vadd.f32 %v1397_v25, %v2510_v34  ;;  %1472 = vst.msk [vmem:[%s2656_s17 + $0xc] sm:$0xf] %vm1468_vm3, %v2024_v18  ;;  %v2022_v46 = vpack.c.bf16 %v2677_v24, %v2677_v24  ;;  %v1480_v33 = vsel %vm611_vm2, %v2677_v24, 0.0 }
 0x508   : > { %v1502_v37 = vmul.f32 %v2677_v24, %v2677_v24  ;;  %v2130_v35 = vpop.f32.mrf.mxu0  ;;  %v1509_v34 = vsel %vm611_vm2, %v1501_v23, 0.0  ;;  %v1481_v40 = vadd.f32 %v1480_v33, %v1479_v30  ;;  %v1514_v60 = vsel %vm611_vm2, %v1504_v43, 0.0  ;;  %v1477_v43 = vld [vmem:[%s2823_s10] sm:$0x1] }
 0x509   : > { %v2027_v41 = vpack.c.bf16 %v2681_v28, %v2681_v28  ;;  %1470 = vst.msk [vmem:[%s2656_s17 + $0x4] sm:$0xf] %vm1468_vm3, %v2022_v46  ;;  %v2704_v47 = vadd.f32 %v2000_v63, %v1416_v19  ;;  %v1419_v48 = vadd.f32 %v2130_v35, %v2528_v54  ;;  %v1507_v29 = vmul.f32 %v2681_v28, %v2681_v28 }
 0x50a   : > { %v1510_v42 = vsel %vm611_vm2, %v1502_v37, 0.0  ;;  %v1400_v49 = vpop.f32.mrf.mxu0  ;;  %v1483_v53 = vadd.f32 %v1482_v36, %v1481_v40  ;;  %v1490_v38 = vsel %vm611_vm2, %v2681_v28, 0.0 }
 0x50b   : > { %v1511_v50 = vadd.f32 %v1510_v42, %v1509_v34  ;;  %1475 = vst.msk [vmem:[%s2656_s17 + $0x18] sm:$0xf] %vm1468_vm3, %v2027_v41  ;;  %v1417_v56 = vadd.f32 %v1400_v49, %v2530_v55  ;;  %v2025_v45 = vpack.c.bf16 %v2704_v47, %v2704_v47  ;;  %v1505_v58 = vmul.f32 %v2704_v47, %v2704_v47  ;;  %v1478_v49 = vld [vmem:[%s2824_s11] sm:$0x1] }
 0x50c   : > { %v2717_v44 = vadd.f32 %v2000_v63, %v1419_v48  ;;  %v1485_v51 = vadd.f32 %v1484_v57, %v1483_v53  ;;  %v1486_v55 = vsel %vm611_vm2, %v2704_v47, 0.0  ;;  %v1520_v1 = vsel %vm611_vm2, %v1507_v29, 0.0 }
 0x50d   : > { %v1513_v54 = vadd.f32 %v1512_v52, %v1511_v50  ;;  %v2719_v59 = vadd.f32 %v2000_v63, %v1417_v56  ;;  %1473 = vst.msk [vmem:[%s2656_s17 + $0x10] sm:$0xf] %vm1468_vm3, %v2025_v45  ;;  %v1516_v14 = vsel %vm611_vm2, %v1505_v58, 0.0 }
 0x50e   : > { %v2028_v4 = vpack.c.bf16 %v2717_v44, %v2717_v44  ;;  %2144 = vmatpush3.msra.mxu0 %v2717_v44  ;;  %v1487_v7 = vadd.f32 %v1486_v55, %v1485_v51  ;;  %v1508_v31 = vmul.f32 %v2717_v44, %v2717_v44  ;;  %v1492_v39 = vsel %vm611_vm2, %v2717_v44, 0.0 }
 0x50f   : > { %v1515_v3 = vadd.f32 %v1514_v60, %v1513_v54  ;;  %v2026_v11 = vpack.c.bf16 %v2719_v59, %v2719_v59  ;;  %v1488_v5 = vsel %vm611_vm2, %v2719_v59, 0.0  ;;  %2145 = vmatprep.subr.mxu0 %v2219_v20  ;;  %v1506_v10 = vmul.f32 %v2719_v59, %v2719_v59 }
 0x510   : > { %1476 = vst.msk [vmem:[%s2656_s17 + $0x1c] sm:$0xf] %vm1468_vm3, %v2028_v4  ;;  %2146 = vmatpush3.msra.mxu0 %v2681_v28  ;;  %v1489_v12 = vadd.f32 %v1488_v5, %v1487_v7  ;;  %v1522_v15 = vsel %vm611_vm2, %v1508_v31, 0.0 }
 0x511   : > { %v1517_v61 = vadd.f32 %v1516_v14, %v1515_v3  ;;  %1474 = vst.msk [vmem:[%s2656_s17 + $0x14] sm:$0xf] %vm1468_vm3, %v2026_v11  ;;  %2147 = vmatprep.subr.mxu0 %v2219_v20  ;;  %v1518_v62 = vsel %vm611_vm2, %v1506_v10, 0.0 }
 0x512   : > { %2148 = vmatpush3.msra.mxu0 %v2719_v59  ;;  %v1491_v63 = vadd.f32 %v1490_v38, %v1489_v12 }
 0x513   : > { %v1519_v0 = vadd.f32 %v1518_v62, %v1517_v61  ;;  %2149 = vmatprep.subr.mxu0 %v2219_v20 }
 0x514   : > { %2150 = vmatpush3.msra.mxu0 %v2704_v47  ;;  %v1493_v2 = vadd.f32 %v1492_v39, %v1491_v63 }
 0x515   : > { %v1521_v6 = vadd.f32 %v1520_v1, %v1519_v0  ;;  %2151 = vmatprep.subr.mxu0 %v2219_v20 }
 0x516   : > { %2152 = vmatpush3.msra.mxu0 %v2667_v16  ;;  %v1494_v13 = vrot.slane %v1493_v2, 4 }
 0x517   : > { %v1523_v8 = vadd.f32 %v1522_v15, %v1521_v6  ;;  %2153 = vmatprep.subr.mxu0 %v2219_v20 }
 0x518   : > { %2154 = vmatpush3.msra.mxu0 %v2650_v22  ;;  %v1495_v17 = vadd.f32 %v1494_v13, %v1493_v2  ;;  %v2009_v2 = vld [vmem:[%s2826_s13] ss:$0 sm:$0xff] }
 0x519   : > { %v1524_v21 = vrot.slane %v1523_v8, 4  ;;  %2155 = vmatprep.subr.mxu0 %v2219_v20 }
 0x51a   : > { %2156 = vmatpush3.msra.mxu0 %v2677_v24  ;;  %v1496_v23 = vrot.slane %v1495_v17, 2 }
 0x51b   : > { %v1525_v26 = vadd.f32 %v1524_v21, %v1523_v8  ;;  %2157 = vmatprep.subr.mxu0 %v2219_v20 }
 0x51c   : > { %2158 = vmatpush3.msra.mxu0 %v2660_v9  ;;  %v1497_v18 = vadd.f32 %v1496_v23, %v1495_v17 }
 0x51d   : > { %v1526_v25 = vrot.slane %v1525_v26, 2 }
 0x51e   : > { %v1498_v27 = vrot.slane %v1497_v18, 1 }
 0x51f   : > { %v1527_v19 = vadd.f32 %v1526_v25, %v1525_v26 }
 0x520   : > { %v1499_v30 = vadd.f32 %v1498_v27, %v1497_v18 }
 0x521   : > { %v1528_v46 = vrot.slane %v1527_v19, 1 }
 0x522   : > { %v1500_v33 = vmul.f32 0.015625, %v1499_v30 }
 0x523   : > { %v1529_v37 = vadd.f32 %v1528_v46, %v1527_v19 }
 0x524   : > { %v1531_v36 = vmul.f32 %v1500_v33, %v1500_v33 }
 0x525   : > { %v1530_v35 = vmul.f32 0.015625, %v1529_v37 }
 0x527   : > { %v1532_v34 = vsub.f32 %v1530_v35, %v1531_v36 }
 0x529   : > { %v1533_v40 = vmax.f32 %v1532_v34, 0.0 }
 0x52b   : > { %v1534_v41 = vadd.f32 0.001, %v1533_v40 }
 0x52d   : > { %2191 = vrsqrt.f32 %v1534_v41 }
 0x53a   : > { %v2192_v42 = vpop.eup %2191 }
 0x53b   : > { %v1536_v48 = vmul.f32 %v2192_v42, %v1477_v43 }
 0x53d   : > { %v1540_v52 = vrot.slane %v1536_v48, %v2386_v32  ;;  %v1549_v53 = vmul.f32 %v1536_v48, %v1500_v33 }
 0x53f   : > { %v1550_v50 = vsub.f32 %v1478_v49, %v1549_v53  ;;  %v1541_v56 = vmul.f32 %v1540_v52, %v2660_v9  ;;  %v1542_v45 = vmul.f32 %v1540_v52, %v2677_v24  ;;  %v1543_v58 = vmul.f32 %v1540_v52, %v2650_v22 }
 0x540   : > { %v1544_v54 = vmul.f32 %v1540_v52, %v2667_v16  ;;  %v1545_v51 = vmul.f32 %v1540_v52, %v2704_v47  ;;  %v1546_v60 = vmul.f32 %v1540_v52, %v2719_v59  ;;  %v1547_v22 = vmul.f32 %v1540_v52, %v2681_v28 }
 0x541   : > { %v1555_v57 = vrot.slane %v1550_v50, %v2386_v32  ;;  %v1548_v16 = vmul.f32 %v1540_v52, %v2717_v44 }
 0x543   : > { %v1557_v55 = vadd.f32 %v1555_v57, %v1541_v56  ;;  %v1558_v4 = vadd.f32 %v1555_v57, %v1542_v45  ;;  %v1559_v7 = vadd.f32 %v1555_v57, %v1543_v58  ;;  %v1560_v3 = vadd.f32 %v1555_v57, %v1544_v54 }
 0x544   : > { %v1561_v11 = vadd.f32 %v1555_v57, %v1545_v51  ;;  %v1562_v5 = vadd.f32 %v1555_v57, %v1546_v60  ;;  %v1563_v12 = vadd.f32 %v1555_v57, %v1547_v22  ;;  %v1564_v59 = vadd.f32 %v1555_v57, %v1548_v16 }
 0x545   : > { %v1565_v29 = vmax.f32 %v1557_v55, 0.0  ;;  %v1566_v9 = vmax.f32 %v1558_v4, 0.0  ;;  %v1567_v14 = vmax.f32 %v1559_v7, 0.0  ;;  %v1568_v32 = vmax.f32 %v1560_v3, 0.0 }
 0x546   : > { %v1569_v10 = vmax.f32 %v1561_v11, 0.0  ;;  %v1570_v24 = vmax.f32 %v1562_v5, 0.0  ;;  %v1571_v31 = vmax.f32 %v1563_v12, 0.0  ;;  %v1572_v62 = vmax.f32 %v1564_v59, 0.0 }
 0x547   : > { %v1577_v61 = vpack.c.bf16 %v1566_v9, %v1565_v29  ;;  %v1578_v47 = vpack.c.bf16 %v1568_v32, %v1567_v14 }
 0x548   : > { %v1579_v38 = vpack.c.bf16 %v1570_v24, %v1569_v10  ;;  %v1580_v63 = vpack.c.bf16 %v1572_v62, %v1571_v31 }
 0x549   : > { %2135 = vmatprep.mubr.msk.bf16.mxu1 %vm611_vm2, %v1577_v61 }
 0x54a   : > { %2136 = vmatmul.mubr.msk.bf16.vlgmr.msra.gmra.mxu1 %vm611_vm2, %v1578_v47 }
 0x54b   : > { %2139 = vmatprep.mubr.msk.bf16.mxu1 %vm611_vm2, %v1579_v38 }
 0x552   : > { %2140 = vmatmul.mubr.msk.bf16.gmra.mxu1 %vm611_vm2, %v1580_v63 }
 0x60a   : > { %v2137_v0 = vpop.f32.mrf.mxu1 }
 0x60b   : > { %v1655_v21 = vadd.f32 %v2137_v0, %v2009_v2 }
 0x60c   : > { %v1646_v28 = vpop.f32.mrf.mxu1 }
 0x60d   : > { %v1647_v23 = vadd.f32 %v2009_v2, %v1646_v28  ;;  %v1680_v37 = vsel %vm1677_vm5, %v1655_v21, -inf }
 0x60e   : > { %v2138_v1 = vpop.f32.mrf.mxu1 }
 0x60f   : > { %v1658_v6 = vadd.f32 %v2138_v1, %v2009_v2  ;;  %v1678_v35 = vsel %vm1677_vm5, %v1647_v23, -inf }
 0x610   : > { %v1649_v44 = vpop.f32.mrf.mxu1 }
 0x611   : > { %v1650_v26 = vadd.f32 %v2009_v2, %v1649_v44  ;;  %v1681_v25 = vsel %vm1677_vm5, %v1658_v6, -inf }
 0x612   : > { %v2141_v39 = vpop.f32.mrf.mxu1 }
 0x613   : > { %v1671_v13 = vadd.f32 %v2141_v39, %v2009_v2  ;;  %v1679_v36 = vsel %vm1677_vm5, %v1650_v26, -inf }
 0x614   : > { %v1662_v15 = vpop.f32.mrf.mxu1 }
 0x615   : > { %v1663_v8 = vadd.f32 %v2009_v2, %v1662_v15  ;;  %v1686_v20 = vsel %vm1677_vm5, %v1671_v13, -inf }
 0x616   : > { %v2142_v17 = vpop.f32.mrf.mxu1  ;;  %v1687_v40 = vmax.f32 %v1680_v37, %v1686_v20 }
 0x617   : > { %v1674_v18 = vadd.f32 %v2142_v17, %v2009_v2  ;;  %v1682_v19 = vsel %vm1677_vm5, %v1663_v8, -inf }
 0x618   : > { %v1665_v27 = vpop.f32.mrf.mxu1  ;;  %v1683_v41 = vmax.f32 %v1678_v35, %v1682_v19 }
 0x619   : > { %v1688_v30 = vsel %vm1677_vm5, %v1674_v18, -inf  ;;  %v1666_v46 = vadd.f32 %v2009_v2, %v1665_v27 }
 0x61a   : > { %v1689_v33 = vmax.f32 %v1681_v25, %v1688_v30 }
 0x61b   : > { %v1684_v34 = vsel %vm1677_vm5, %v1666_v46, -inf }
 0x61c   : > { %v1685_v43 = vmax.f32 %v1679_v36, %v1684_v34  ;;  %v1691_v42 = vmax.f32 %v1687_v40, %v1689_v33 }
 0x61e   : > { %v1690_v48 = vmax.f32 %v1683_v41, %v1685_v43 }
 0x620   : > { %v1692_v49 = vmax.f32 %v1690_v48, %v1691_v42 }
 0x622   : > { %v1693_v52 = vrot.slane %v1692_v49, 4 }
 0x624   : > { %v1694_v53 = vmax.f32 %v1692_v49, %v1693_v52 }
 0x626   : > { %v1695_v50 = vrot.slane %v1694_v53, 2 }
 0x628   : > { %v1696_v56 = vmax.f32 %v1694_v53, %v1695_v50 }
 0x62a   : > { %v1697_v57 = vrot.slane %v1696_v56, 1 }
 0x62c   : > { %v1698_v45 = vmax.f32 %v1696_v56, %v1697_v57 }
 0x62e   : > { %v1699_v58 = vsub.f32 %v1647_v23, %v1698_v45  ;;  %v1700_v54 = vsub.f32 %v1650_v26, %v1698_v45  ;;  %v1701_v51 = vsub.f32 %v1655_v21, %v1698_v45  ;;  %v1702_v60 = vsub.f32 %v1658_v6, %v1698_v45 }
 0x62f   : > { %v1703_v4 = vsub.f32 %v1663_v8, %v1698_v45  ;;  %v1704_v11 = vsub.f32 %v1666_v46, %v1698_v45  ;;  %v1705_v29 = vsub.f32 %v1671_v13, %v1698_v45  ;;  %v1706_v14 = vsub.f32 %v1674_v18, %v1698_v45 }
 0x630   : > { %v1707_v55 = vmul.f32 1.442695, %v1699_v58  ;;  %v1709_v7 = vmul.f32 1.442695, %v1700_v54  ;;  %v1711_v3 = vmul.f32 1.442695, %v1701_v51 }
 0x631   : > { %v1713_v5 = vmul.f32 1.442695, %v1702_v60  ;;  %v1715_v9 = vmul.f32 1.442695, %v1703_v4  ;;  %v1717_v32 = vmul.f32 1.442695, %v1704_v11 }
 0x632   : > { %2193 = vpow2.f32 %v1707_v55  ;;  %v1719_v10 = vmul.f32 1.442695, %v1705_v29  ;;  %v1721_v24 = vmul.f32 1.442695, %v1706_v14 }
 0x633   : > { %2195 = vpow2.f32 %v1709_v7 }
 0x634   : > { %2197 = vpow2.f32 %v1711_v3 }
 0x635   : > { %2199 = vpow2.f32 %v1713_v5 }
 0x636   : > { %2201 = vpow2.f32 %v1715_v9 }
 0x637   : > { %2203 = vpow2.f32 %v1717_v32 }
 0x638   : > { %2205 = vpow2.f32 %v1719_v10 }
 0x639   : > { %2207 = vpow2.f32 %v1721_v24 }
 0x63f   : > { %v2194_v22 = vpop.eup %2193 }
 0x640   : > { %v2196_v16 = vpop.eup %2195  ;;  %v1723_v61 = vsel %vm1677_vm5, %v2194_v22, 0.0 }
 0x641   : > { %v2198_v47 = vpop.eup %2197  ;;  %v1724_v12 = vsel %vm1677_vm5, %v2196_v16, 0.0 }
 0x642   : > { %v2200_v59 = vpop.eup %2199  ;;  %v1725_v38 = vadd.f32 %v1724_v12, %v1723_v61  ;;  %v1726_v31 = vsel %vm1677_vm5, %v2198_v47, 0.0 }
 0x643   : > { %v2202_v62 = vpop.eup %2201  ;;  %v1728_v0 = vsel %vm1677_vm5, %v2200_v59, 0.0 }
 0x644   : > { %v1727_v63 = vadd.f32 %v1726_v31, %v1725_v38  ;;  %v2204_v28 = vpop.eup %2203  ;;  %v1730_v44 = vsel %vm1677_vm5, %v2202_v62, 0.0 }
 0x645   : > { %v2206_v39 = vpop.eup %2205  ;;  %v1732_v6 = vsel %vm1677_vm5, %v2204_v28, 0.0 }
 0x646   : > { %v1729_v1 = vadd.f32 %v1728_v0, %v1727_v63  ;;  %v2208_v15 = vpop.eup %2207  ;;  %v1734_v8 = vsel %vm1677_vm5, %v2206_v39, 0.0 }
 0x647   : > { %v1736_v21 = vsel %vm1677_vm5, %v2208_v15, 0.0 }
 0x648   : > { %v1731_v2 = vadd.f32 %v1730_v44, %v1729_v1 }
 0x64a   : > { %v1733_v13 = vadd.f32 %v1732_v6, %v1731_v2 }
 0x64c   : > { %v1735_v17 = vadd.f32 %v1734_v8, %v1733_v13 }
 0x64e   : > { %v1737_v23 = vadd.f32 %v1736_v21, %v1735_v17 }
 0x650   : > { %v1738_v26 = vrot.slane %v1737_v23, 4 }
 0x652   : > { %v1739_v18 = vadd.f32 %v1738_v26, %v1737_v23 }
 0x654   : > { %v1740_v25 = vrot.slane %v1739_v18, 2 }
 0x656   : > { %v1741_v27 = vadd.f32 %v1740_v25, %v1739_v18 }
 0x658   : > { %v1742_v20 = vrot.slane %v1741_v27, 1 }
 0x65a   : > { %v1743_v19 = vadd.f32 %v1742_v20, %v1741_v27 }
 0x65c   : > { %2209 = vrcp.f32 %v1743_v19 }
 0x669   : > { %v2210_v30 = vpop.eup %2209 }
 0x66a   : > { %v1746_v46 = vmul.f32 %v2210_v30, %v2194_v22  ;;  %v1747_v33 = vmul.f32 %v2210_v30, %v2196_v16  ;;  %v1748_v37 = vmul.f32 %v2210_v30, %v2198_v47  ;;  %v1749_v35 = vmul.f32 %v2210_v30, %v2200_v59 }
 0x66b   : > { %v1750_v36 = vmul.f32 %v2210_v30, %v2202_v62  ;;  %v1751_v34 = vmul.f32 %v2210_v30, %v2204_v28  ;;  %v1752_v40 = vmul.f32 %v2210_v30, %v2206_v39  ;;  %v1753_v41 = vmul.f32 %v2210_v30, %v2208_v15 }
 0x66c   : > { %1754 = vxpose.xlu0.b32.start [1/8] (short) (narrow) %v1746_v46, 8 }
 0x670   : > { %1755 = vxpose.xlu0.b32.cont [2/8] (short) (narrow) %v1747_v33, 8 }
 0x674   : > { %1756 = vxpose.xlu0.b32.cont [3/8] (short) (narrow) %v1748_v37, 8 }
 0x678   : > { %1757 = vxpose.xlu0.b32.cont [4/8] (short) (narrow) %v1749_v35, 8 }
 0x67c   : > { %1758 = vxpose.xlu0.b32.cont [5/8] (short) (narrow) %v1750_v36, 8 }
 0x680   : > { %1759 = vxpose.xlu0.b32.cont [6/8] (short) (narrow) %v1751_v34, 8 }
 0x684   : > { %1760 = vxpose.xlu0.b32.cont [7/8] (short) (narrow) %v1752_v40, 8 }
 0x688   : > { %1761 = vxpose.xlu0.b32.end [8/8] (short) (narrow) %v1753_v41, 8 }
 0x6e8   : > { %v1770_v43 = vpop.trf.xlu0 }
 0x6e9   : > { %2160 = vmatmul.mubr.msk.f32.vlgmr.msra.gmra.mxu0 %vm1786_vm6, %v1770_v43 }
 0x7a9   : > { %v1856_v42 = vpop.f32.mrf.mxu0 }
 0x7aa   : > { %1860 = vst.msk [vmem:[%s505_s29] sm:$0xff] %vm611_vm2, %v1856_v42 }
 0x7ab   : > { %v2161_v48 = vpop.f32.mrf.mxu0 }
 0x7ac PF: > { %s26_s18 = sadd.s32 1, %s2217_s18  }
 0x7ad   : > { %p23_p4 = scmp.ge.s32.totalorder %s26_s18, 4  }
 0x7af   :  { %25 = sbr.rel (!%p23_p4) target bundleno = 1 (0x1), region = 125 }

// kernel: oanblock_forward.5
= control target key start
LH: loop header
LB: loop body
LE: loop exit
PB: predicated region body
PF: predicated region fallthrough
CT: control target
= control target key end

     0   :  { %s3085_s6 = smov 1   ;;  %s3086_s10 = smov 2   ;;  %s3789_s0 = inlined_call_operand.smem [shape: u32[30], index: -1, kind: input, shape index: {}] }
   0x1   :  { %s3125_s5 = sld [smem:[%s3789_s0]]   ;;  %s3087_s14 = smov 3  }
   0x2   :  { %s3130_s9 = sld [smem:[%s3789_s0 + %s3085_s6]]   ;;  %s3088_s18 = smov 4  }
   0x3   :  { %s3135_s13 = sld [smem:[%s3789_s0 + %s3086_s10]]   ;;  %s3089_s22 = smov 5  }
   0x4   :  { %s3140_s17 = sld [smem:[%s3789_s0 + %s3087_s14]]   ;;  %s3090_s26 = smov 6  }
   0x5   :  { %s3145_s21 = sld [smem:[%s3789_s0 + %s3088_s18]]   ;;  %s3091_s30 = smov 7  }
   0x6   :  { %s3150_s25 = sld [smem:[%s3789_s0 + %s3089_s22]]   ;;  %s3092_s4 = smov 8  }
   0x7   :  { %s3155_s29 = sld [smem:[%s3789_s0 + %s3090_s26]]   ;;  %s3093_s10 = smov 9  }
   0x8   :  { %s3160_s3 = sld [smem:[%s3789_s0 + %s3091_s30]]   ;;  %s3094_s15 = smov 10  }
   0x9   :  { %s3165_s8 = sld [smem:[%s3789_s0 + %s3092_s4]]   ;;  %s3095_s20 = smov 11  }
   0xa   :  { %s3170_s14 = sld [smem:[%s3789_s0 + %s3093_s10]]   ;;  %s3096_s26 = smov 12  }
   0xb   :  { %s3175_s19 = sld [smem:[%s3789_s0 + %s3094_s15]]   ;;  %s3097_s1 = smov 13  }
   0xc   :  { %s3180_s24 = sld [smem:[%s3789_s0 + %s3095_s20]]   ;;  %s3098_s7 = smov 14  }
   0xd   :  { %s3185_s30 = sld [smem:[%s3789_s0 + %s3096_s26]]   ;;  %s3099_s15 = smov 15  }
   0xe   :  { %s3190_s6 = sld [smem:[%s3789_s0 + %s3097_s1]]   ;;  %s3100_s22 = smov 16  }
   0xf   :  { %s3195_s12 = sld [smem:[%s3789_s0 + %s3098_s7]]   ;;  %s3101_s28 = smov 17  }
  0x10   :  { %s3200_s20 = sld [smem:[%s3789_s0 + %s3099_s15]]   ;;  %s3102_s7 = smov 18  }
  0x11   :  { %s3205_s27 = sld [smem:[%s3789_s0 + %s3100_s22]]   ;;  %s3103_s15 = smov 19  }
  0x12   :  { %s3210_s4 = sld [smem:[%s3789_s0 + %s3101_s28]]   ;;  %s3104_s22 = smov 20  }
  0x13   :  { %3793 = sst [smem:[#allocation3_spill]] %s3185_s30  ;;  %s3105_s28 = smov 21  }
  0x14   :  { %3794 = sst [smem:[#allocation4_spill]] %s3190_s6  ;;  %s3112_s23 = smov 28  }
  0x15   :  { %s3215_s6 = sld [smem:[%s3789_s0 + %s3102_s7]]   ;;  %s3106_s7 = smov 22  }
  0x16   :  { %3795 = sst [smem:[#allocation5_spill]] %s3200_s20  ;;  %s3113_s1 = smov 29  }
  0x17   :  { %3796 = sst [smem:[#allocation6_spill]] %s3205_s27 }
  0x18   :  { %s3220_s20 = sld [smem:[%s3789_s0 + %s3103_s15]]   ;;  %s3107_s15 = smov 23  }
  0x19   :  { %s3225_s30 = sld [smem:[%s3789_s0 + %s3104_s22]]   ;;  %s3108_s22 = smov 24  }
  0x1a   :  { %s3230_s27 = sld [smem:[%s3789_s0 + %s3105_s28]]   ;;  %s3109_s28 = smov 25  }
  0x1b   :  { %3797 = sst [smem:[#allocation7_spill]] %s3215_s6 }
  0x1c   :  { %s3235_s6 = sld [smem:[%s3789_s0 + %s3106_s7]]   ;;  %s3110_s7 = smov 26  }
  0x1e   :  { %3798 = sst [smem:[#allocation8_spill]] %s3220_s20 }
  0x1f   :  { %3799 = sst [smem:[#allocation9_spill]] %s3225_s30 }
  0x20   :  { %3800 = sst [smem:[#allocation10_spill]] %s3230_s27 }
  0x21   :  { %s3240_s20 = sld [smem:[%s3789_s0 + %s3107_s15]]   ;;  %s3111_s15 = smov 27  }
  0x22   :  { %3801 = sst [smem:[#allocation11_spill]] %s3235_s6 }
  0x23   :  { %s3245_s30 = sld [smem:[%s3789_s0 + %s3108_s22]]  }
  0x24   :  { %s3250_s27 = sld [smem:[%s3789_s0 + %s3109_s28]]  }
  0x25   :  { %s3255_s6 = sld [smem:[%s3789_s0 + %s3110_s7]]   ;;  %s3270_s7 = smov 0  }
  0x27   :  { %3802 = sst [smem:[#allocation12_spill]] %s3240_s20 }
  0x28   :  { %s2705_s20 = sld [smem:[%s3789_s0 + %s3111_s15]]  }
  0x29   :  { %3803 = sst [smem:[#allocation13_spill]] %s3245_s30 }
  0x2a   :  { %3804 = sst [smem:[#allocation14_spill]] %s3250_s27 }
  0x2b   :  { %s3263_s30 = sld [smem:[%s3789_s0 + %s3112_s23]]  }
  0x2c   :  { %s3268_s27 = sld [smem:[%s3789_s0 + %s3113_s1]]  }
  0x2e   :  { %v65_v0 = vstv %s2705_s20 }
  0x2f   :  { %66 = vst [vmem:[#allocation2] sm:$0x1] %v65_v0 }
  0x30 LB: > { %s2708_s10 = sadd.s32 4294967295, %s3083_s7   ;;  %p2712_p0 = scmp.ge.s32.totalorder %s3083_s7, 1  ;;  %s3083_s7 = sphi %s3270_s7, %s72_s7  }
  0x31   : > { %p831_p1 = scmp.lt.s32.totalorder %s3083_s7, 3 }
  0x33   : > { %p832_p2 = pnand %p2712_p0, %p831_p1 }
  0x34   : > { %p914_p3 = scmp.lt.s32.totalorder (!%p832_p2), %s2708_s10, 1  ;;  %s3805_s16 = sld [smem:[#allocation6_spill]] (!%p832_p2) }
  0x35   : > { %835 = sbr.rel (%p832_p2) target bundleno = 2184 (0x888), region = 132  ;;  %s3806_s18 = sld [smem:[#allocation3_spill]] (!%p832_p2) }
  0x36   : > { %s3807_s23 = sld [smem:[#allocation4_spill]] (!%p832_p2) }
  0x37   : > { %s3808_s22 = sld [smem:[#allocation10_spill]] (!%p832_p2) }
  0x38   : > { %s3809_s26 = sld [smem:[#allocation7_spill]] (!%p832_p2) }
  0x39   : > { %s3810_s1 = sld [smem:[#allocation5_spill]] (!%p832_p2) }
  0x3a   : > { %v3005_v1 = vld [vmem:[%s3145_s21 + $0x8] sm:$0xff]   ;;  %v3006_v2 = vld [vmem:[%s3145_s21] sm:$0xff]   ;;  %s3818_s10 = smov (!%p914_p3, %s2708_s10), 1  ;;  %vm951_vm0 = vcmask 261120   ;;  %vm1151_vm1 = vcmask 64512   ;;  %vm1265_vm2 = vcmask 1043456  }
  0x3b   : > { %2841 = vmatprep.subr.bf16.mxu0 %v3005_v1  ;;  %s2781_s0 = sshll.u32 %s3818_s10, 5  ;;  %s2715_s11 = sshll.u32 %s3818_s10, 3  ;;  %vm3115_vm3 = vmmov 0   ;;  %vm2585_vm4 = vcmask 516096  }
  0x3c   : > { %2842 = vmatpush3.bf16.msra.mxu0 %v3005_v1  ;;  %s3284_s20 = scalar_lea.vmem %s3125_s5, %s2781_s0  ;;  %s922_s15 = scalar_lea.vmem %s3130_s9, %s2715_s11 }
  0x3d   : > { %2843 = vmatprep.subr.bf16.mxu0 %v3006_v2  ;;  %v932_v3 = vld [vmem:[%s3284_s20] sm:$0xff]   ;;  %v934_v4 = vld [vmem:[%s3284_s20 + $0x8] sm:$0xff]   ;;  %v936_v5 = vld [vmem:[%s3284_s20 + $0x10] sm:$0xff]   ;;  %s3811_s28 = sld [smem:[#allocation8_spill]] }
  0x3e   : > { %v3289_v6 = vunpack.c.l.bf16 %v932_v3  ;;  %v3291_v7 = vunpack.c.h.bf16 %v932_v3  ;;  %v3293_v8 = vunpack.c.l.bf16 %v934_v4  ;;  %v3295_v9 = vunpack.c.h.bf16 %v934_v4  ;;  %v938_v14 = vld [vmem:[%s3284_s20 + $0x18] sm:$0xff]   ;;  %s3812_s2 = sld [smem:[#allocation9_spill]] }
  0x3f   : > { %v3297_v10 = vunpack.c.l.bf16 %v936_v5  ;;  %v3306_v15 = vunpack.c.h.bf16 %v936_v5  ;;  %v3320_v24 = vunpack.c.l.bf16 %v938_v14  ;;  %v3327_v31 = vunpack.c.h.bf16 %v938_v14  ;;  %v949_v14 = vld [vmem:[%s3135_s13] sm:$0x1]  ;;  %s3813_s0 = sld [smem:[#allocation13_spill]] }
  0x40   : > { %2844 = vmatpush3.bf16.msra.mxu0 %v3006_v2  ;;  %v952_v11 = vsel %vm951_vm0, %v3289_v6, 0.0  ;;  %v953_v12 = vsel %vm951_vm0, %v3291_v7, 0.0  ;;  %v955_v13 = vsel %vm951_vm0, %v3293_v8, 0.0  ;;  %v957_v17 = vsel %vm951_vm0, %v3295_v9, 0.0  ;;  %s3815_s11 = sld [smem:[#allocation12_spill]] }
  0x41   : > { %v954_v16 = vadd.f32 %v953_v12, %v952_v11  ;;  %v959_v18 = vsel %vm951_vm0, %v3297_v10, 0.0  ;;  %v975_v19 = vmul.f32 %v3289_v6, %v3289_v6  ;;  %v976_v20 = vmul.f32 %v3291_v7, %v3291_v7 }
  0x42   : > { %v977_v21 = vmul.f32 %v3293_v8, %v3293_v8  ;;  %v978_v23 = vmul.f32 %v3295_v9, %v3295_v9  ;;  %v979_v25 = vmul.f32 %v3297_v10, %v3297_v10  ;;  %v961_v32 = vsel %vm951_vm0, %v3306_v15, 0.0 }
  0x43   : > { %v956_v22 = vadd.f32 %v955_v13, %v954_v16  ;;  %v983_v26 = vsel %vm951_vm0, %v975_v19, 0.0  ;;  %v984_v27 = vsel %vm951_vm0, %v976_v20, 0.0  ;;  %v980_v33 = vmul.f32 %v3306_v15, %v3306_v15  ;;  %v950_v19 = vld [vmem:[%s3140_s17] sm:$0x1] }
  0x44   : > { %v985_v29 = vadd.f32 %v984_v27, %v983_v26  ;;  %v986_v30 = vsel %vm951_vm0, %v977_v21, 0.0  ;;  %v988_v34 = vsel %vm951_vm0, %v978_v23, 0.0  ;;  %v963_v37 = vsel %vm951_vm0, %v3320_v24, 0.0 }
  0x45   : > { %v958_v28 = vadd.f32 %v957_v17, %v956_v22  ;;  %v981_v38 = vmul.f32 %v3320_v24, %v3320_v24  ;;  %v990_v39 = vsel %vm951_vm0, %v979_v25, 0.0  ;;  %v965_v42 = vsel %vm951_vm0, %v3327_v31, 0.0 }
  0x46   : > { %v987_v36 = vadd.f32 %v986_v30, %v985_v29  ;;  %v982_v43 = vmul.f32 %v3327_v31, %v3327_v31  ;;  %v992_v44 = vsel %vm951_vm0, %v980_v33, 0.0  ;;  %v1011_v12 = vlaneseq }
  0x47   : > { %v960_v35 = vadd.f32 %v959_v18, %v958_v28  ;;  %v994_v47 = vsel %vm951_vm0, %v981_v38, 0.0 }
  0x48   : > { %v989_v41 = vadd.f32 %v988_v34, %v987_v36  ;;  %v996_v50 = vsel %vm951_vm0, %v982_v43, 0.0  ;;  %v1012_v13 = vshrl.u32 %v1011_v12, 7 }
  0x49   : > { %v962_v40 = vadd.f32 %v961_v32, %v960_v35 }
  0x4a   : > { %v991_v46 = vadd.f32 %v990_v39, %v989_v41  ;;  %v3354_v16 = vsub.s32 0, %v1012_v13 }
  0x4b   : > { %v964_v45 = vadd.f32 %v963_v37, %v962_v40 }
  0x4c   : > { %v993_v49 = vadd.f32 %v992_v44, %v991_v46 }
  0x4d   : > { %v966_v48 = vadd.f32 %v965_v42, %v964_v45 }
  0x4e   : > { %v995_v52 = vadd.f32 %v994_v47, %v993_v49 }
  0x4f   : > { %v967_v51 = vrot.slane %v966_v48, 4 }
  0x50   : > { %v997_v54 = vadd.f32 %v996_v50, %v995_v52 }
  0x51   : > { %v968_v53 = vadd.f32 %v967_v51, %v966_v48 }
  0x52   : > { %v998_v56 = vrot.slane %v997_v54, 4 }
  0x53   : > { %v969_v55 = vrot.slane %v968_v53, 2 }
  0x54   : > { %v999_v58 = vadd.f32 %v998_v56, %v997_v54  ;;  %v2718_v54 = vld [vmem:[%s3150_s25] ss:$0 sm:$0xff] }
  0x55   : > { %v970_v57 = vadd.f32 %v969_v55, %v968_v53 }
  0x56   : > { %v1000_v60 = vrot.slane %v999_v58, 2 }
  0x57   : > { %v971_v59 = vrot.slane %v970_v57, 1 }
  0x58   : > { %v1001_v62 = vadd.f32 %v1000_v60, %v999_v58 }
  0x59   : > { %v972_v61 = vadd.f32 %v971_v59, %v970_v57 }
  0x5a   : > { %v1002_v0 = vrot.slane %v1001_v62, 1 }
  0x5b   : > { %v3346_v63 = vmul.f32 0.015625, %v972_v61 }
  0x5c   : > { %v1003_v1 = vadd.f32 %v1002_v0, %v1001_v62 }
  0x5d   : > { %v1005_v2 = vmul.f32 %v3346_v63, %v3346_v63 }
  0x5e   : > { %v1004_v3 = vmul.f32 0.015625, %v1003_v1 }
  0x60   : > { %v1006_v4 = vsub.f32 %v1004_v3, %v1005_v2 }
  0x62   : > { %v3350_v5 = vmax.f32 %v1006_v4, 0.0 }
  0x64   : > { %v1008_v11 = vadd.f32 0.001, %v3350_v5 }
  0x66   : > { %3029 = vrsqrt.f32 %v1008_v11 }
  0x73   : > { %v3030_v17 = vpop.eup %3029 }
  0x74   : > { %v1010_v18 = vmul.f32 %v3030_v17, %v949_v14 }
  0x76   : > { %v1014_v20 = vrot.slane %v1010_v18, %v3354_v16  ;;  %v1023_v21 = vmul.f32 %v1010_v18, %v3346_v63 }
  0x78   : > { %v1015_v22 = vmul.f32 %v1014_v20, %v3289_v6  ;;  %v1016_v23 = vmul.f32 %v1014_v20, %v3291_v7  ;;  %v1024_v25 = vsub.f32 %v950_v19, %v1023_v21  ;;  %v1017_v26 = vmul.f32 %v1014_v20, %v3293_v8 }
  0x79   : > { %v1018_v27 = vmul.f32 %v1014_v20, %v3295_v9  ;;  %v1019_v28 = vmul.f32 %v1014_v20, %v3297_v10  ;;  %v1020_v29 = vmul.f32 %v1014_v20, %v3306_v15  ;;  %v1021_v32 = vmul.f32 %v1014_v20, %v3320_v24 }
  0x7a   : > { %v1029_v30 = vrot.slane %v1024_v25, %v3354_v16  ;;  %v1022_v33 = vmul.f32 %v1014_v20, %v3327_v31 }
  0x7c   : > { %v1031_v34 = vadd.f32 %v1029_v30, %v1015_v22  ;;  %v1032_v35 = vadd.f32 %v1029_v30, %v1016_v23  ;;  %v1033_v36 = vadd.f32 %v1029_v30, %v1017_v26  ;;  %v1034_v37 = vadd.f32 %v1029_v30, %v1018_v27 }
  0x7d   : > { %v1035_v38 = vadd.f32 %v1029_v30, %v1019_v28  ;;  %v1036_v39 = vadd.f32 %v1029_v30, %v1020_v29  ;;  %v1037_v46 = vadd.f32 %v1029_v30, %v1021_v32  ;;  %v1038_v47 = vadd.f32 %v1029_v30, %v1022_v33 }
  0x7e   : > { %v1039_v40 = vmax.f32 %v1031_v34, 0.0  ;;  %v1040_v41 = vmax.f32 %v1032_v35, 0.0  ;;  %v1041_v42 = vmax.f32 %v1033_v36, 0.0  ;;  %v1042_v43 = vmax.f32 %v1034_v37, 0.0 }
  0x7f   : > { %v1043_v44 = vmax.f32 %v1035_v38, 0.0  ;;  %v1044_v45 = vmax.f32 %v1036_v39, 0.0  ;;  %v1045_v51 = vmax.f32 %v1037_v46, 0.0  ;;  %v1046_v52 = vmax.f32 %v1038_v47, 0.0 }
  0x80   : > { %v1051_v48 = vpack.c.bf16 %v1040_v41, %v1039_v40  ;;  %v1052_v49 = vpack.c.bf16 %v1042_v43, %v1041_v42 }
  0x81   : > { %v1053_v50 = vpack.c.bf16 %v1044_v45, %v1043_v44  ;;  %v1054_v53 = vpack.c.bf16 %v1046_v52, %v1045_v51 }
  0x82   : > { %2845 = vmatprep.mubr.msk.bf16.mxu0 %vm951_vm0, %v1051_v48 }
  0x83   : > { %2846 = vmatmul.mubr.msk.bf16.vlgmr.msra.gmra.mxu0 %vm951_vm0, %v1052_v49 }
  0x84   : > { %2849 = vmatprep.mubr.msk.bf16.mxu0 %vm951_vm0, %v1053_v50 }
  0x8b   : > { %2850 = vmatmul.mubr.msk.bf16.gmra.mxu0 %vm951_vm0, %v1054_v53 }
 0x143   : > { %v2847_v55 = vpop.f32.mrf.mxu0 }
 0x144   : > { %v1129_v56 = vadd.f32 %v2847_v55, %v2718_v54 }
 0x145   : > { %v1120_v57 = vpop.f32.mrf.mxu0 }
 0x146   : > { %v1121_v58 = vadd.f32 %v2718_v54, %v1120_v57  ;;  %v1158_v59 = vsel %vm1151_vm1, %v1129_v56, -inf }
 0x147   : > { %1159 = vmax.xlane.f32.xlu1 %v1158_v59  ;;  %v2848_v60 = vpop.f32.mrf.mxu0 }
 0x148   : > { %v1132_v61 = vadd.f32 %v2848_v60, %v2718_v54  ;;  %v1152_v62 = vsel %vm1151_vm1, %v1121_v58, -inf }
 0x149   : > { %v1123_v0 = vpop.f32.mrf.mxu0  ;;  %1153 = vmax.xlane.f32.xlu0 %v1152_v62 }
 0x14a   : > { %v1124_v1 = vadd.f32 %v2718_v54, %v1123_v0  ;;  %v1161_v2 = vsel %vm1151_vm1, %v1132_v61, -inf }
 0x14b   : > { %1162 = vmax.xlane.f32.xlu1 %v1161_v2  ;;  %v2851_v3 = vpop.f32.mrf.mxu0 }
 0x14c   : > { %v1155_v4 = vsel %vm1151_vm1, %v1124_v1, -inf  ;;  %v1145_v14 = vadd.f32 %v2851_v3, %v2718_v54  ;;  %v948_v3 = vld [vmem:[%s922_s15] sm:$0xff]  ;;  %s3816_s15 = sld [smem:[#allocation14_spill]] }
 0x14d   : > { %v1136_v11 = vpop.f32.mrf.mxu0  ;;  %1156 = vmax.xlane.f32.xlu0 %v1155_v4  ;;  %v1252_v4 = vpack.c.bf16 %v948_v3, %v948_v3  ;;  %v3012_v3 = vld [vmem:[%s3180_s24] sm:$0xff]  }
 0x14e   : > { %v1137_v12 = vadd.f32 %v2718_v54, %v1136_v11  ;;  %v1170_v22 = vsel %vm1151_vm1, %v1145_v14, -inf }
 0x14f   : > { %v2852_v13 = vpop.f32.mrf.mxu0  ;;  %2963 = vmatprep.subr.msk.bf16.mxu1 %vm1265_vm2, %v1252_v4  ;;  %v1267_v11 = vsel %vm1265_vm2, %v1252_v4, 0 }
 0x150   : > { %v1164_v17 = vsel %vm1151_vm1, %v1137_v12, -inf  ;;  %v1148_v20 = vadd.f32 %v2852_v13, %v2718_v54  ;;  %2854 = vmatpush3.bf16.msra.mxu1 %v1267_v11  ;;  %v3395_v13 = vld [vmem:[%s3165_s8] sm:$0xff]  }
 0x151   : > { %v1139_v18 = vpop.f32.mrf.mxu0  ;;  %1165 = vmax.xlane.f32.xlu0 %v1164_v17 }
 0x152   : > { %v1140_v19 = vadd.f32 %v2718_v54, %v1139_v18  ;;  %v1173_v23 = vsel %vm1151_vm1, %v1148_v20, -inf }
 0x154   : > { %v1167_v21 = vsel %vm1151_vm1, %v1140_v19, -inf }
 0x155   : > { %1168 = vmax.xlane.f32.xlu1 %v1167_v21  ;;  %1171 = vmax.xlane.f32.xlu0 %v1170_v22 }
 0x159   : > { %1174 = vmax.xlane.f32.xlu1 %v1173_v23 }
 0x1d0   : > { %v1160_v25 = vpop.xlane.xlu1 %1159 }
 0x1d1   : > { %v1178_v26 = vsub.f32 %v1129_v56, %v1160_v25 }
 0x1d2   : > { %v1154_v27 = vpop.xlane.xlu0 %1153 }
 0x1d3   : > { %v1176_v28 = vsub.f32 %v1121_v58, %v1154_v27  ;;  %v1188_v30 = vmul.f32 1.442695, %v1178_v26 }
 0x1d4   : > { %v1163_v29 = vpop.xlane.xlu1 %1162 }
 0x1d5   : > { %v1184_v32 = vmul.f32 1.442695, %v1176_v28  ;;  %v1179_v33 = vsub.f32 %v1132_v61, %v1163_v29 }
 0x1d6   : > { %v1157_v34 = vpop.xlane.xlu0 %1156 }
 0x1d7   : > { %3031 = vpow2.f32 %v1184_v32  ;;  %v1177_v35 = vsub.f32 %v1124_v1, %v1157_v34  ;;  %v1190_v36 = vmul.f32 1.442695, %v1179_v33 }
 0x1d8   : > { %3033 = vpow2.f32 %v1188_v30 }
 0x1d9   : > { %v1186_v37 = vmul.f32 1.442695, %v1177_v35 }
 0x1da   : > { %v1166_v38 = vpop.xlane.xlu0 %1165 }
 0x1db   : > { %3035 = vpow2.f32 %v1186_v37  ;;  %v1180_v39 = vsub.f32 %v1137_v12, %v1166_v38  ;;  %v3392_v12 = vld [vmem:[%s3165_s8 + $0x8] sm:$0xff]  }
 0x1dc   : > { %3037 = vpow2.f32 %v1190_v36  ;;  %2875 = vmatprep.subr.bf16.mxu0 %v3392_v12 }
 0x1dd   : > { %v1192_v40 = vmul.f32 1.442695, %v1180_v39  ;;  %2876 = vmatpush3.bf16.msra.mxu0 %v3392_v12 }
 0x1de   : > { %v1169_v41 = vpop.xlane.xlu1 %1168  ;;  %v1172_v42 = vpop.xlane.xlu0 %1171  ;;  %2877 = vmatprep.subr.bf16.mxu0 %v3395_v13 }
 0x1df   : > { %3039 = vpow2.f32 %v1192_v40  ;;  %v1181_v43 = vsub.f32 %v1140_v19, %v1169_v41  ;;  %v1182_v44 = vsub.f32 %v1145_v14, %v1172_v42 }
 0x1e1   : > { %v1194_v45 = vmul.f32 1.442695, %v1181_v43  ;;  %v1196_v46 = vmul.f32 1.442695, %v1182_v44  ;;  %2878 = vmatpush3.bf16.msra.mxu0 %v3395_v13 }
 0x1e2   : > { %v1175_v47 = vpop.xlane.xlu1 %1174 }
 0x1e3   : > { %3041 = vpow2.f32 %v1194_v45  ;;  %v1183_v48 = vsub.f32 %v1148_v20, %v1175_v47 }
 0x1e4   : > { %v3032_v49 = vpop.eup %3031  ;;  %3043 = vpow2.f32 %v1196_v46  ;;  %v1340_v46 = vadd.f32 1e-05, %v3350_v5 }
 0x1e5   : > { %v1198_v50 = vmul.f32 1.442695, %v1183_v48  ;;  %v1200_v51 = vsel %vm1151_vm1, %v3032_v49, 0.0  ;;  %v3034_v52 = vpop.eup %3033  ;;  %v1338_v48 = vld [vmem:[%s3155_s29] sm:$0x1] }
 0x1e6   : > { %1201 = vadd.xlane.f32.xlu0 %v1200_v51  ;;  %v1206_v54 = vsel %vm1151_vm1, %v3034_v52, 0.0  ;;  %v1339_v51 = vld [vmem:[%s3160_s3] sm:$0x1] }
 0x1e7   : > { %3045 = vpow2.f32 %v1198_v50 }
 0x1e8   : > { %v3036_v53 = vpop.eup %3035 }
 0x1e9   : > { %v1203_v55 = vsel %vm1151_vm1, %v3036_v53, 0.0  ;;  %v3038_v56 = vpop.eup %3037 }
 0x1ea   : > { %1207 = vadd.xlane.f32.xlu0 %v1206_v54  ;;  %1204 = vadd.xlane.f32.xlu1 %v1203_v55  ;;  %v1209_v58 = vsel %vm1151_vm1, %v3038_v56, 0.0 }
 0x1ec   : > { %v3040_v57 = vpop.eup %3039 }
 0x1ed   : > { %v1212_v59 = vsel %vm1151_vm1, %v3040_v57, 0.0 }
 0x1ee   : > { %1210 = vadd.xlane.f32.xlu1 %v1209_v58  ;;  %1213 = vadd.xlane.f32.xlu0 %v1212_v59 }
 0x1f0   : > { %v3042_v60 = vpop.eup %3041 }
 0x1f1   : > { %v3044_v61 = vpop.eup %3043  ;;  %v1215_v62 = vsel %vm1151_vm1, %v3042_v60, 0.0 }
 0x1f2   : > { %1216 = vadd.xlane.f32.xlu1 %v1215_v62  ;;  %v1218_v0 = vsel %vm1151_vm1, %v3044_v61, 0.0 }
 0x1f3   : > { %1219 = vadd.xlane.f32.xlu0 %v1218_v0 }
 0x1f4   : > { %v3046_v1 = vpop.eup %3045 }
 0x1f5   : > { %v1221_v2 = vsel %vm1151_vm1, %v3046_v1, 0.0 }
 0x1f6   : > { %1222 = vadd.xlane.f32.xlu1 %v1221_v2  ;;  %v3011_v2 = vld [vmem:[%s3180_s24 + $0x8] sm:$0xff]  }
 0x1f7   : > { %2863 = vmatprep.subr.bf16.mxu1 %v3011_v2 }
 0x26f   : > { %v1202_v14 = vpop.xlane.xlu0 %1201 }
 0x270   : > { %3047 = vrcp.f32 %v1202_v14 }
 0x273   : > { %v1205_v17 = vpop.xlane.xlu1 %1204  ;;  %v1208_v18 = vpop.xlane.xlu0 %1207 }
 0x274   : > { %3049 = vrcp.f32 %v1205_v17 }
 0x275   : > { %3051 = vrcp.f32 %v1208_v18 }
 0x277   : > { %v1211_v19 = vpop.xlane.xlu1 %1210  ;;  %v1214_v20 = vpop.xlane.xlu0 %1213 }
 0x278   : > { %3053 = vrcp.f32 %v1211_v19 }
 0x279   : > { %3055 = vrcp.f32 %v1214_v20 }
 0x27b   : > { %v1217_v21 = vpop.xlane.xlu1 %1216 }
 0x27c   : > { %3057 = vrcp.f32 %v1217_v21  ;;  %v1220_v22 = vpop.xlane.xlu0 %1219 }
 0x27d   : > { %3059 = vrcp.f32 %v1220_v22  ;;  %v3048_v23 = vpop.eup %3047 }
 0x27e   : > { %v1240_v27 = vmul.f32 %v3048_v23, %v3032_v49 }
 0x27f   : > { %v1223_v25 = vpop.xlane.xlu1 %1222 }
 0x280   : > { %3061 = vrcp.f32 %v1223_v25 }
 0x281   : > { %v3050_v26 = vpop.eup %3049  ;;  %3063 = vrsqrt.f32 %v1340_v46 }
 0x282   : > { %v1241_v28 = vmul.f32 %v3050_v26, %v3036_v53  ;;  %v3052_v29 = vpop.eup %3051 }
 0x283   : > { %v1242_v33 = vmul.f32 %v3052_v29, %v3034_v52 }
 0x284   : > { %v1248_v30 = vpack.c.bf16 %v1241_v28, %v1240_v27 }
 0x285   : > { %v3054_v32 = vpop.eup %3053 }
 0x286   : > { %2855 = vmatprep.mubr.msk.bf16.mxu1 %vm1151_vm1, %v1248_v30  ;;  %v1243_v34 = vmul.f32 %v3054_v32, %v3038_v56  ;;  %v3056_v35 = vpop.eup %3055 }
 0x287   : > { %v1244_v38 = vmul.f32 %v3056_v35, %v3040_v57 }
 0x288   : > { %v1249_v36 = vpack.c.bf16 %v1243_v34, %v1242_v33 }
 0x289   : > { %v3058_v37 = vpop.eup %3057 }
 0x28a   : > { %2856 = vmatmul.mubr.msk.bf16.vlgmr.msra.gmra.mxu1 %vm1151_vm1, %v1249_v36  ;;  %v1245_v39 = vmul.f32 %v3058_v37, %v3042_v60  ;;  %v3060_v40 = vpop.eup %3059 }
 0x28b   : > { %v1246_v43 = vmul.f32 %v3060_v40, %v3044_v61  ;;  %2864 = vmatpush3.bf16.msra.mxu1 %v3011_v2 }
 0x28c   : > { %v1250_v41 = vpack.c.bf16 %v1245_v39, %v1244_v38  ;;  %2865 = vmatprep.subr.bf16.mxu1 %v3012_v3 }
 0x28d   : > { %v3062_v42 = vpop.eup %3061 }
 0x28e   : > { %2859 = vmatprep.mubr.msk.bf16.mxu1 %vm1151_vm1, %v1250_v41  ;;  %v1247_v44 = vmul.f32 %v3062_v42, %v3046_v1  ;;  %v3064_v47 = vpop.eup %3063  ;;  %v3009_v1 = vld [vmem:[%s3210_s4 + $0x8] sm:$0xff]  }
 0x28f   : > { %v1342_v49 = vmul.f32 %v3064_v47, %v1338_v48  ;;  %2899 = vmatprep.subr.bf16.mxu0 %v3009_v1  ;;  %2866 = vmatpush3.bf16.msra.mxu1 %v3012_v3 }
 0x290   : > { %v1251_v45 = vpack.c.bf16 %v1247_v44, %v1246_v43  ;;  %2959 = vmatprep.subr.bf16.mxu1 %v3392_v12 }
 0x291   : > { %v1355_v50 = vmul.f32 %v1342_v49, %v3346_v63  ;;  %v3410_v52 = vrot.slane %v1342_v49, %v3354_v16 }
 0x292   : > { %2860 = vmatmul.mubr.msk.bf16.gmra.mxu1 %vm1151_vm1, %v1251_v45 }
 0x293   : > { %v1356_v53 = vsub.f32 %v1339_v51, %v1355_v50  ;;  %v1347_v54 = vmul.f32 %v3410_v52, %v3289_v6  ;;  %v1348_v55 = vmul.f32 %v3410_v52, %v3291_v7  ;;  %v1349_v56 = vmul.f32 %v3410_v52, %v3293_v8 }
 0x294   : > { %v1350_v63 = vmul.f32 %v3410_v52, %v3295_v9  ;;  %v3010_v9 = vld [vmem:[%s3210_s4] sm:$0xff]  }
 0x295   : > { %v3417_v5 = vrot.slane %v1356_v53, %v3354_v16 }
 0x297   : > { %v1363_v57 = vadd.f32 %v3417_v5, %v1347_v54  ;;  %v1364_v58 = vadd.f32 %v3417_v5, %v1348_v55  ;;  %v1365_v59 = vadd.f32 %v3417_v5, %v1349_v56  ;;  %v1366_v6 = vadd.f32 %v3417_v5, %v1350_v63 }
 0x299   : > { %v1371_v7 = vmax.f32 %v1363_v57, 0.0  ;;  %v1372_v60 = vmax.f32 %v1364_v58, 0.0  ;;  %v1373_v61 = vmax.f32 %v1365_v59, 0.0  ;;  %v1374_v62 = vmax.f32 %v1366_v6, 0.0 }
 0x29b   : > { %v1383_v0 = vpack.c.bf16 %v1372_v60, %v1371_v7  ;;  %v1384_v8 = vpack.c.bf16 %v1374_v62, %v1373_v61 }
 0x29d   : > { %2879 = vmatprep.mubr.msk.bf16.mxu0 %vm951_vm0, %v1383_v0 }
 0x29e   : > { %2880 = vmatmul.mubr.msk.bf16.vlgmr.msra.gmra.mxu0 %vm951_vm0, %v1384_v8 }
 0x29f   : > { %2900 = vmatpush3.bf16.msra.mxu0 %v3009_v1 }
 0x2a0   : > { %2901 = vmatprep.subr.bf16.mxu0 %v3010_v9 }
 0x2a3   : > { %2902 = vmatpush3.bf16.msra.mxu0 %v3010_v9 }
 0x34a   : > { %v3434_v4 = vpop.f32.mrf.mxu1 }
 0x34b   : > { %v1413_v18 = vmul.f32 %v3434_v4, %v3434_v4  ;;  %v1392_v28 = vsel %vm951_vm0, %v3434_v4, 0.0 }
 0x34c   : > { %v3436_v11 = vpop.f32.mrf.mxu1 }
 0x34d   : > { %v1411_v17 = vmul.f32 %v3436_v11, %v3436_v11  ;;  %v1389_v20 = vsel %vm951_vm0, %v3436_v11, 0.0  ;;  %v1422_v36 = vsel %vm951_vm0, %v1413_v18, 0.0 }
 0x34e   : > { %v3438_v14 = vpop.f32.mrf.mxu1 }
 0x34f   : > { %v1335_v25 = vpack.c.bf16 %v3438_v14, %v3434_v4  ;;  %v1419_v29 = vsel %vm951_vm0, %v1411_v17, 0.0  ;;  %v1414_v30 = vmul.f32 %v3438_v14, %v3438_v14  ;;  %v1394_v37 = vsel %vm951_vm0, %v3438_v14, 0.0 }
 0x350   : > { %v3444_v19 = vpop.f32.mrf.mxu1 }
 0x351   : > { %v1334_v21 = vpack.c.bf16 %v3444_v19, %v3436_v11  ;;  %v1390_v22 = vsel %vm951_vm0, %v3444_v19, 0.0  ;;  %v1412_v23 = vmul.f32 %v3444_v19, %v3444_v19  ;;  %v1424_v42 = vsel %vm951_vm0, %v1414_v30, 0.0 }
 0x352   : > { %v1391_v26 = vadd.f32 %v1390_v22, %v1389_v20  ;;  %v3456_v27 = vpop.f32.mrf.mxu1 }
 0x353   : > { %v1420_v32 = vsel %vm951_vm0, %v1412_v23, 0.0  ;;  %2903 = vmatprep.mubr.msk.bf16.mxu0 %vm951_vm0, %v1334_v21  ;;  %v1417_v44 = vmul.f32 %v3456_v27, %v3456_v27  ;;  %v1400_v56 = vsel %vm951_vm0, %v3456_v27, 0.0 }
 0x354   : > { %v1393_v33 = vadd.f32 %v1392_v28, %v1391_v26  ;;  %v1421_v34 = vadd.f32 %v1420_v32, %v1419_v29  ;;  %v3465_v35 = vpop.f32.mrf.mxu1  ;;  %2904 = vmatmul.mubr.msk.bf16.vlgmr.msra.gmra.mxu0 %vm951_vm0, %v1335_v25 }
 0x355   : > { %v1415_v38 = vmul.f32 %v3465_v35, %v3465_v35  ;;  %v1396_v43 = vsel %vm951_vm0, %v3465_v35, 0.0  ;;  %v1430_v6 = vsel %vm951_vm0, %v1417_v44, 0.0 }
 0x356   : > { %v1423_v39 = vadd.f32 %v1422_v36, %v1421_v34  ;;  %v1395_v40 = vadd.f32 %v1394_v37, %v1393_v33  ;;  %v3473_v41 = vpop.f32.mrf.mxu1  ;;  %v1387_v34 = vld [vmem:[%s3170_s14] sm:$0x1] }
 0x357   : > { %v1426_v48 = vsel %vm951_vm0, %v1415_v38, 0.0  ;;  %v1337_v54 = vpack.c.bf16 %v3473_v41, %v3456_v27  ;;  %v1418_v63 = vmul.f32 %v3473_v41, %v3473_v41  ;;  %v1402_v7 = vsel %vm951_vm0, %v3473_v41, 0.0  ;;  %v1388_v38 = vld [vmem:[%s3175_s19] sm:$0x1] }
 0x358   : > { %v1397_v45 = vadd.f32 %v1396_v43, %v1395_v40  ;;  %v1425_v46 = vadd.f32 %v1424_v42, %v1423_v39  ;;  %v1322_v47 = vpop.f32.mrf.mxu1 }
 0x359   : > { %v1336_v49 = vpack.c.bf16 %v1322_v47, %v3465_v35  ;;  %v1398_v50 = vsel %vm951_vm0, %v1322_v47, 0.0  ;;  %v1416_v51 = vmul.f32 %v1322_v47, %v1322_v47  ;;  %v1432_v62 = vsel %vm951_vm0, %v1418_v63, 0.0 }
 0x35a   : > { %v1427_v53 = vadd.f32 %v1426_v48, %v1425_v46  ;;  %v1399_v55 = vadd.f32 %v1398_v50, %v1397_v45 }
 0x35b   : > { %v1428_v57 = vsel %vm951_vm0, %v1416_v51, 0.0  ;;  %2907 = vmatprep.mubr.msk.bf16.mxu0 %vm951_vm0, %v1336_v49  ;;  %v1351_v51 = vmul.f32 %v3410_v52, %v3297_v10 }
 0x35c   : > { %v1401_v58 = vadd.f32 %v1400_v56, %v1399_v55  ;;  %v1429_v59 = vadd.f32 %v1428_v57, %v1427_v53  ;;  %2908 = vmatmul.mubr.msk.bf16.gmra.mxu0 %vm951_vm0, %v1337_v54  ;;  %v1352_v53 = vmul.f32 %v3410_v52, %v3306_v15 }
 0x35e   : > { %v1403_v60 = vadd.f32 %v1402_v7, %v1401_v58  ;;  %v1431_v61 = vadd.f32 %v1430_v6, %v1429_v59  ;;  %v1367_v7 = vadd.f32 %v3417_v5, %v1351_v51  ;;  %v1368_v15 = vadd.f32 %v3417_v5, %v1352_v53 }
 0x360   : > { %v1404_v0 = vrot.slane %v1403_v60, 4  ;;  %v1433_v8 = vadd.f32 %v1432_v62, %v1431_v61 }
 0x362   : > { %v1405_v1 = vadd.f32 %v1404_v0, %v1403_v60  ;;  %v1434_v9 = vrot.slane %v1433_v8, 4 }
 0x364   : > { %v1406_v2 = vrot.slane %v1405_v1, 2  ;;  %v1435_v3 = vadd.f32 %v1434_v9, %v1433_v8  ;;  %v1353_v8 = vmul.f32 %v3410_v52, %v3320_v24 }
 0x366   : > { %v1407_v17 = vadd.f32 %v1406_v2, %v1405_v1  ;;  %v1436_v18 = vrot.slane %v1435_v3, 2  ;;  %v1376_v1 = vmax.f32 %v1368_v15, 0.0 }
 0x368   : > { %v1408_v20 = vrot.slane %v1407_v17, 1  ;;  %v1437_v21 = vadd.f32 %v1436_v18, %v1435_v3  ;;  %v1369_v3 = vadd.f32 %v3417_v5, %v1353_v8 }
 0x36a   : > { %v1409_v22 = vadd.f32 %v1408_v20, %v1407_v17  ;;  %v1438_v23 = vrot.slane %v1437_v21, 1  ;;  %v3013_v20 = vld [vmem:[%s3195_s12 + $0x8] sm:$0xff]  }
 0x36c   : > { %v1410_v25 = vmul.f32 0.015625, %v1409_v22  ;;  %v1439_v26 = vadd.f32 %v1438_v23, %v1437_v21  ;;  %v3014_v21 = vld [vmem:[%s3195_s12] sm:$0xff]  }
 0x36e   : > { %v1440_v28 = vmul.f32 0.015625, %v1439_v26  ;;  %v1441_v29 = vmul.f32 %v1410_v25, %v1410_v25 }
 0x370   : > { %v1442_v30 = vsub.f32 %v1440_v28, %v1441_v29 }
 0x372   : > { %v1443_v32 = vmax.f32 %v1442_v30, 0.0 }
 0x374   : > { %v1444_v33 = vadd.f32 1e-05, %v1443_v32 }
 0x376   : > { %3065 = vrsqrt.f32 %v1444_v33 }
 0x383   : > { %v3066_v36 = vpop.eup %3065 }
 0x384   : > { %v1446_v37 = vmul.f32 %v3066_v36, %v1387_v34 }
 0x386   : > { %v1450_v39 = vrot.slane %v1446_v37, %v3354_v16  ;;  %v1459_v40 = vmul.f32 %v1446_v37, %v1410_v25 }
 0x388   : > { %v1460_v42 = vsub.f32 %v1388_v38, %v1459_v40  ;;  %v1456_v43 = vmul.f32 %v1450_v39, %v1322_v47  ;;  %v1451_v45 = vmul.f32 %v1450_v39, %v3436_v11  ;;  %v1452_v46 = vmul.f32 %v1450_v39, %v3444_v19 }
 0x389   : > { %v1453_v48 = vmul.f32 %v3434_v4, %v1450_v39  ;;  %v1454_v49 = vmul.f32 %v3438_v14, %v1450_v39  ;;  %v1455_v50 = vmul.f32 %v1450_v39, %v3465_v35  ;;  %v1457_v35 = vmul.f32 %v3456_v27, %v1450_v39 }
 0x38a   : > { %v1465_v44 = vrot.slane %v1460_v42, %v3354_v16  ;;  %v1458_v6 = vmul.f32 %v3473_v41, %v1450_v39  ;;  %v1354_v27 = vmul.f32 %v3410_v52, %v3327_v31  ;;  %v1375_v41 = vmax.f32 %v1367_v7, 0.0 }
 0x38c   : > { %v1472_v54 = vadd.f32 %v1465_v44, %v1456_v43  ;;  %v1467_v47 = vadd.f32 %v1465_v44, %v1451_v45  ;;  %v1468_v55 = vadd.f32 %v1465_v44, %v1452_v46  ;;  %v1469_v56 = vadd.f32 %v1465_v44, %v1453_v48 }
 0x38d   : > { %v1470_v63 = vadd.f32 %v1465_v44, %v1454_v49  ;;  %v1471_v11 = vadd.f32 %v1465_v44, %v1455_v50  ;;  %v1473_v61 = vadd.f32 %v1465_v44, %v1457_v35  ;;  %v1474_v62 = vadd.f32 %v1465_v44, %v1458_v6 }
 0x38e   : > { %v1480_v57 = vmax.f32 %v1472_v54, 0.0  ;;  %v1475_v19 = vmax.f32 %v1467_v47, 0.0  ;;  %v1476_v58 = vmax.f32 %v1468_v55, 0.0  ;;  %v1477_v4 = vmax.f32 %v1469_v56, 0.0 }
 0x38f   : > { %v1478_v59 = vmax.f32 %v1470_v63, 0.0  ;;  %v1479_v14 = vmax.f32 %v1471_v11, 0.0  ;;  %v1481_v9 = vmax.f32 %v1473_v61, 0.0  ;;  %v1482_v2 = vmax.f32 %v1474_v62, 0.0 }
 0x390   : > { %v1487_v10 = vpack.c.bf16 %v1476_v58, %v1475_v19  ;;  %v1370_v17 = vadd.f32 %v3417_v5, %v1354_v27  ;;  %v1385_v24 = vpack.c.bf16 %v1376_v1, %v1375_v41  ;;  %v3531_v5 = vld [vmem:[%s3805_s16 + $0x8] sm:$0xff]  }
 0x391   : > { %v1488_v60 = vpack.c.bf16 %v1478_v59, %v1477_v4  ;;  %v1489_v0 = vpack.c.bf16 %v1480_v57, %v1479_v14  ;;  %v1490_v31 = vpack.c.bf16 %v1482_v2, %v1481_v9 }
 0x392   : > { %2867 = vmatprep.mubr.msk.bf16.mxu1 %vm951_vm0, %v1487_v10  ;;  %v1378_v52 = vmax.f32 %v1370_v17, 0.0 }
 0x393   : > { %2868 = vmatmul.mubr.msk.bf16.vlgmr.msra.gmra.mxu1 %vm951_vm0, %v1488_v60 }
 0x394   : > { %2961 = vmatpush3.bf16.msra.mxu1 %v3392_v12  ;;  %2871 = vmatprep.mubr.msk.bf16.mxu1 %vm951_vm0, %v1489_v0  ;;  %v1377_v12 = vmax.f32 %v1369_v3, 0.0 }
 0x395   : > { %2960 = vmatprep.subr.bf16.mxu1 %v3395_v13 }
 0x396   : > { %v1386_v18 = vpack.c.bf16 %v1378_v52, %v1377_v12 }
 0x398   : > { %2962 = vmatpush3.bf16.msra.mxu1 %v3395_v13  ;;  %v2881_v13 = vpop.f32.mrf.mxu0 }
 0x399   : > { %2887 = vmatprep.subr.bf16.mxu1 %v3013_v20 }
 0x39a   : > { %v1638_v22 = vpop.f32.mrf.mxu0 }
 0x39b   : > { %2872 = vmatmul.mubr.msk.bf16.gmra.mxu1 %vm951_vm0, %v1490_v31 }
 0x39c   : > { %2883 = vmatprep.mubr.msk.bf16.mxu1 %vm951_vm0, %v1385_v24  ;;  %v2882_v25 = vpop.f32.mrf.mxu0 }
 0x39e   : > { %v1641_v29 = vpop.f32.mrf.mxu0 }
 0x3a3   : > { %2884 = vmatmul.mubr.msk.bf16.vlgmr.msra.gmra.mxu1 %vm951_vm0, %v1386_v18 }
 0x3a4   : > { %2888 = vmatpush3.bf16.msra.mxu1 %v3013_v20 }
 0x3a5   : > { %2889 = vmatprep.subr.bf16.mxu1 %v3014_v21 }
 0x3a8   : > { %2890 = vmatpush3.bf16.msra.mxu1 %v3014_v21 }
 0x3a9   : > { %2911 = vmatprep.subr.bf16.mxu1 %v3531_v5 }
 0x453   : > { %v2869_v23 = vpop.f32.mrf.mxu1 }
 0x454   : > { %v3540_v38 = vadd.f32 %v2881_v13, %v2869_v23 }
 0x455   : > { %v1549_v26 = vpop.f32.mrf.mxu1 }
 0x456   : > { %v3534_v32 = vadd.f32 %v1638_v22, %v1549_v26  ;;  %v1695_v48 = vmul.f32 %v3540_v38, %v3540_v38  ;;  %v1674_v54 = vsel %vm951_vm0, %v3540_v38, 0.0 }
 0x457   : > { %v2870_v28 = vpop.f32.mrf.mxu1 }
 0x458   : > { %v1693_v39 = vmul.f32 %v3534_v32, %v3534_v32  ;;  %v1671_v43 = vsel %vm951_vm0, %v3534_v32, 0.0  ;;  %v3552_v50 = vadd.f32 %v2882_v25, %v2870_v28  ;;  %v1704_v56 = vsel %vm951_vm0, %v1695_v48, 0.0  ;;  %v1669_v48 = vld [vmem:[%s3806_s18] sm:$0x1]  ;;  %s2782_s18 = sshll.u32 %s3818_s10, 6 }
 0x459   : > { %v1552_v30 = vpop.f32.mrf.mxu1 }
 0x45a   : > { %v3536_v33 = vadd.f32 %v1641_v29, %v1552_v30  ;;  %v1701_v49 = vsel %vm951_vm0, %v1693_v39, 0.0  ;;  %v1696_v63 = vmul.f32 %v3552_v50, %v3552_v50  ;;  %v1676_v58 = vsel %vm951_vm0, %v3552_v50, 0.0 }
 0x45b   : > { %v2873_v34 = vpop.f32.mrf.mxu1 }
 0x45c   : > { %v1694_v36 = vmul.f32 %v3536_v33, %v3536_v33  ;;  %v1672_v40 = vsel %vm951_vm0, %v3536_v33, 0.0  ;;  %v1706_v10 = vsel %vm951_vm0, %v1696_v63, 0.0 }
 0x45d   : > { %v1565_v37 = vpop.f32.mrf.mxu1  ;;  %v1673_v45 = vadd.f32 %v1672_v40, %v1671_v43 }
 0x45e   : > { %v1702_v44 = vsel %vm951_vm0, %v1694_v36, 0.0 }
 0x45f   : > { %v2874_v42 = vpop.f32.mrf.mxu1  ;;  %v1703_v51 = vadd.f32 %v1702_v44, %v1701_v49  ;;  %v1675_v47 = vadd.f32 %v1674_v54, %v1673_v45 }
 0x461   : > { %v1568_v46 = vpop.f32.mrf.mxu1  ;;  %v1705_v57 = vadd.f32 %v1704_v56, %v1703_v51  ;;  %v1677_v35 = vadd.f32 %v1676_v58, %v1675_v47 }
 0x463   : > { %v2885_v53 = vpop.f32.mrf.mxu1  ;;  %v1707_v62 = vadd.f32 %v1706_v10, %v1705_v57 }
 0x464   : > { %v3563_v4 = vadd.f32 %v2885_v53, %v2873_v34  ;;  %v1670_v53 = vld [vmem:[%s3807_s23] sm:$0x1]  ;;  %s3752_s23 = scalar_lea.vmem %s3263_s30, %s2782_s18 }
 0x465   : > { %v1654_v55 = vpop.f32.mrf.mxu1 }
 0x466   : > { %v3559_v11 = vadd.f32 %v1654_v55, %v1565_v37  ;;  %v1699_v0 = vmul.f32 %v3563_v4, %v3563_v4  ;;  %v1682_v9 = vsel %vm951_vm0, %v3563_v4, 0.0 }
 0x467   : > { %v2886_v19 = vpop.f32.mrf.mxu1 }
 0x468   : > { %v1678_v59 = vsel %vm951_vm0, %v3559_v11, 0.0  ;;  %v1697_v14 = vmul.f32 %v3559_v11, %v3559_v11  ;;  %v3571_v15 = vadd.f32 %v2886_v19, %v2874_v42  ;;  %v1712_v31 = vsel %vm951_vm0, %v1699_v0, 0.0 }
 0x469   : > { %v1657_v6 = vpop.f32.mrf.mxu1  ;;  %v1679_v61 = vadd.f32 %v1678_v59, %v1677_v35 }
 0x46a   : > { %v1708_v7 = vsel %vm951_vm0, %v1697_v14, 0.0  ;;  %v1658_v60 = vadd.f32 %v1657_v6, %v1568_v46  ;;  %v1700_v2 = vmul.f32 %v3571_v15, %v3571_v15  ;;  %v1684_v12 = vsel %vm951_vm0, %v3571_v15, 0.0 }
 0x46b   : > { %v1709_v41 = vadd.f32 %v1708_v7, %v1707_v62 }
 0x46c   : > { %v1680_v8 = vsel %vm951_vm0, %v1658_v60, 0.0  ;;  %v1698_v27 = vmul.f32 %v1658_v60, %v1658_v60  ;;  %v1714_v20 = vsel %vm951_vm0, %v1700_v2, 0.0 }
 0x46d   : > { %v1681_v1 = vadd.f32 %v1680_v8, %v1679_v61 }
 0x46e   : > { %v1710_v3 = vsel %vm951_vm0, %v1698_v27, 0.0 }
 0x46f   : > { %v1683_v17 = vadd.f32 %v1682_v9, %v1681_v1  ;;  %v1711_v24 = vadd.f32 %v1710_v3, %v1709_v41  ;;  %v3016_v1 = vld [vmem:[%s3805_s16] sm:$0xff]  }
 0x471   : > { %v1685_v52 = vadd.f32 %v1684_v12, %v1683_v17  ;;  %v1713_v18 = vadd.f32 %v1712_v31, %v1711_v24  ;;  %v3073_v17 = vld [vmem:[%s3284_s20] sm:$0xff]   ;;  %v3074_v31 = vld [vmem:[%s3284_s20 + $0x8] sm:$0xff]   ;;  %v3075_v12 = vld [vmem:[%s3284_s20 + $0x10] sm:$0xff]  }
 0x473   : > { %v1686_v21 = vrot.slane %v1685_v52, 4  ;;  %v1715_v13 = vadd.f32 %v1714_v20, %v1713_v18  ;;  %v3022_v18 = vld [vmem:[%s3808_s22] sm:$0xff]  }
 0x475   : > { %v1687_v22 = vadd.f32 %v1686_v21, %v1685_v52  ;;  %v1716_v23 = vrot.slane %v1715_v13, 4  ;;  %v3021_v52 = vld [vmem:[%s3808_s22 + $0x8] sm:$0xff]   ;;  %v2905_v21 = vpop.f32.mrf.mxu0 }
 0x476   : > { %2923 = vmatprep.subr.bf16.mxu0 %v3021_v52 }
 0x477   : > { %v1688_v25 = vrot.slane %v1687_v22, 2  ;;  %v1717_v26 = vadd.f32 %v1716_v23, %v1715_v13  ;;  %2924 = vmatpush3.bf16.msra.mxu0 %v3021_v52  ;;  %v1935_v23 = vpop.f32.mrf.mxu0 }
 0x478   : > { %2925 = vmatprep.subr.bf16.mxu0 %v3022_v18 }
 0x479   : > { %v1689_v28 = vadd.f32 %v1688_v25, %v1687_v22  ;;  %v1718_v29 = vrot.slane %v1717_v26, 2 }
 0x47b   : > { %v1690_v30 = vrot.slane %v1689_v28, 1  ;;  %v1719_v34 = vadd.f32 %v1718_v29, %v1717_v26  ;;  %2926 = vmatpush3.bf16.msra.mxu0 %v3022_v18 }
 0x47d   : > { %v1691_v36 = vadd.f32 %v1690_v30, %v1689_v28  ;;  %v1720_v37 = vrot.slane %v1719_v34, 1  ;;  %v2906_v28 = vpop.f32.mrf.mxu0 }
 0x47f   : > { %v1692_v39 = vmul.f32 0.015625, %v1691_v36  ;;  %v1721_v40 = vadd.f32 %v1720_v37, %v1719_v34  ;;  %v1938_v34 = vpop.f32.mrf.mxu0 }
 0x481   : > { %v1722_v42 = vmul.f32 0.015625, %v1721_v40  ;;  %v1723_v43 = vmul.f32 %v1692_v39, %v1692_v39  ;;  %v2909_v40 = vpop.f32.mrf.mxu0 }
 0x483   : > { %v1724_v44 = vsub.f32 %v1722_v42, %v1723_v43  ;;  %v2764_v42 = vld [vmem:[%s3809_s26] ss:$0 sm:$0xff]  ;;  %s930_s26 = scalar_lea.vmem %s3268_s27, %s3818_s10 }
 0x485   : > { %v1725_v45 = vmax.f32 %v1724_v44, 0.0 }
 0x487   : > { %v1726_v46 = vadd.f32 1e-05, %v1725_v45  ;;  %v2741_v45 = vld [vmem:[%s3810_s1] ss:$0 sm:$0xff] }
 0x489   : > { %3067 = vrsqrt.f32 %v1726_v46 }
 0x496   : > { %v3068_v49 = vpop.eup %3067 }
 0x497   : > { %v1728_v51 = vmul.f32 %v3068_v49, %v1669_v48 }
 0x499   : > { %v1732_v54 = vrot.slane %v1728_v51, %v3354_v16  ;;  %v1741_v47 = vmul.f32 %v1728_v51, %v1692_v39 }
 0x49b   : > { %v1742_v55 = vsub.f32 %v1670_v53, %v1741_v47  ;;  %v1738_v56 = vmul.f32 %v1732_v54, %v1658_v60  ;;  %v1733_v57 = vmul.f32 %v1732_v54, %v3534_v32  ;;  %v1734_v19 = vmul.f32 %v1732_v54, %v3536_v33  ;;  %v1951_v53 = vpop.f32.mrf.mxu0 }
 0x49c   : > { %v1735_v58 = vmul.f32 %v1732_v54, %v3540_v38  ;;  %v1736_v59 = vmul.f32 %v1732_v54, %v3552_v50  ;;  %v1737_v14 = vmul.f32 %v1732_v54, %v3559_v11  ;;  %v1739_v33 = vmul.f32 %v1732_v54, %v3563_v4 }
 0x49d   : > { %v1747_v63 = vrot.slane %v1742_v55, %v3354_v16  ;;  %v1740_v38 = vmul.f32 %v1732_v54, %v3571_v15 }
 0x49f   : > { %v1754_v35 = vadd.f32 %v1747_v63, %v1738_v56  ;;  %v1749_v6 = vadd.f32 %v1747_v63, %v1733_v57  ;;  %v1750_v10 = vadd.f32 %v1747_v63, %v1734_v19  ;;  %v1751_v7 = vadd.f32 %v1747_v63, %v1735_v58 }
 0x4a0   : > { %v1752_v61 = vadd.f32 %v1747_v63, %v1736_v59  ;;  %v1753_v62 = vadd.f32 %v1747_v63, %v1737_v14  ;;  %v1755_v9 = vadd.f32 %v1747_v63, %v1739_v33  ;;  %v1756_v2 = vadd.f32 %v1747_v63, %v1740_v38  ;;  %v2910_v59 = vpop.f32.mrf.mxu0 }
 0x4a1   : > { %v1762_v60 = vmax.f32 %v1754_v35, 0.0  ;;  %v1757_v0 = vmax.f32 %v1749_v6, 0.0  ;;  %v1758_v8 = vmax.f32 %v1750_v10, 0.0  ;;  %v1759_v27 = vmax.f32 %v1751_v7, 0.0 }
 0x4a2   : > { %v1760_v32 = vmax.f32 %v1752_v61, 0.0  ;;  %v1761_v41 = vmax.f32 %v1753_v62, 0.0  ;;  %v1763_v4 = vmax.f32 %v1755_v9, 0.0  ;;  %v1764_v15 = vmax.f32 %v1756_v2, 0.0 }
 0x4a3   : > { %v1769_v50 = vpack.c.bf16 %v1758_v8, %v1757_v0 }
 0x4a4   : > { %v1770_v11 = vpack.c.bf16 %v1760_v32, %v1759_v27  ;;  %v1771_v3 = vpack.c.bf16 %v1762_v60, %v1761_v41  ;;  %v1772_v24 = vpack.c.bf16 %v1764_v15, %v1763_v4 }
 0x4a5   : > { %2891 = vmatprep.mubr.msk.bf16.mxu1 %vm951_vm0, %v1769_v50 }
 0x4a6   : > { %2892 = vmatmul.mubr.msk.bf16.vlgmr.msra.gmra.mxu1 %vm951_vm0, %v1770_v11  ;;  %v1954_v11 = vpop.f32.mrf.mxu0 }
 0x4a7   : > { %2912 = vmatpush3.bf16.msra.mxu1 %v3531_v5  ;;  %2895 = vmatprep.mubr.msk.bf16.mxu1 %vm951_vm0, %v1771_v3  ;;  %v3076_v5 = vld [vmem:[%s3284_s20 + $0x18] sm:$0xff]   ;;  %s3814_s20 = sld [smem:[#allocation11_spill]] }
 0x4a8   : > { %2913 = vmatprep.subr.bf16.mxu1 %v3016_v1 }
 0x4ab   : > { %2914 = vmatpush3.bf16.msra.mxu1 %v3016_v1 }
 0x4ae   : > { %2896 = vmatmul.mubr.msk.bf16.gmra.mxu1 %vm951_vm0, %v1772_v24 }
 0x4af   : > { %2915 = vmatprep.mubr.msk.bf16.mxu1 %vm951_vm0, %v3073_v17 }
 0x4b6   : > { %2916 = vmatmul.mubr.msk.bf16.vlgmr.msra.gmra.mxu1 %vm951_vm0, %v3074_v31 }
 0x4b7   : > { %2919 = vmatprep.mubr.msk.bf16.mxu1 %vm951_vm0, %v3075_v12 }
 0x4be   : > { %2920 = vmatmul.mubr.msk.bf16.gmra.mxu1 %vm951_vm0, %v3076_v5 }
 0x566   : > { %v2893_v20 = vpop.f32.mrf.mxu1 }
 0x567   : > { %v1847_v55 = vadd.f32 %v2893_v20, %v2741_v45 }
 0x568   : > { %v1838_v13 = vpop.f32.mrf.mxu1 }
 0x569   : > { %v1839_v54 = vadd.f32 %v2741_v45, %v1838_v13 }
 0x56a   : > { %v2894_v22 = vpop.f32.mrf.mxu1 }
 0x56b   : > { %v1850_v14 = vadd.f32 %v2894_v22, %v2741_v45 }
 0x56c   : > { %v1841_v25 = vpop.f32.mrf.mxu1 }
 0x56d   : > { %v1842_v35 = vadd.f32 %v2741_v45, %v1841_v25 }
 0x56e   : > { %v2897_v26 = vpop.f32.mrf.mxu1 }
 0x56f   : > { %v1863_v61 = vadd.f32 %v2897_v26, %v2741_v45 }
 0x570   : > { %v1854_v29 = vpop.f32.mrf.mxu1 }
 0x571   : > { %v1855_v60 = vadd.f32 %v2741_v45, %v1854_v29 }
 0x572   : > { %v2898_v30 = vpop.f32.mrf.mxu1 }
 0x573   : > { %v1866_v41 = vadd.f32 %v2898_v30, %v2741_v45 }
 0x574   : > { %v1857_v36 = vpop.f32.mrf.mxu1 }
 0x575   : > { %v1858_v20 = vadd.f32 %v2741_v45, %v1857_v36 }
 0x576   : > { %v2917_v37 = vpop.f32.mrf.mxu1 }
 0x577   : > { %v2053_v39 = vadd.f32 %v2917_v37, %v2905_v21 }
 0x578   : > { %v2044_v43 = vpop.f32.mrf.mxu1 }
 0x579   : > { %v2045_v44 = vadd.f32 %v2044_v43, %v1935_v23  ;;  %v2084_v48 = vadd.f32 %v2764_v42, %v2053_v39 }
 0x57a   : > { %v2918_v46 = vpop.f32.mrf.mxu1 }
 0x57b   : > { %v2082_v49 = vadd.f32 %v2764_v42, %v2045_v44  ;;  %v2056_v51 = vadd.f32 %v2918_v46, %v2906_v28  ;;  %v3616_v58 = vadd.f32 %v2084_v48, %v1847_v55 }
 0x57c   : > { %v2047_v47 = vpop.f32.mrf.mxu1 }
 0x57d   : > { %v3614_v56 = vadd.f32 %v2082_v49, %v1839_v54  ;;  %v2085_v63 = vadd.f32 %v2764_v42, %v2056_v51  ;;  %v2048_v57 = vadd.f32 %v2047_v47, %v1938_v34  ;;  %v2124_v33 = vmul.f32 %v3616_v58, %v3616_v58 }
 0x57e   : > { %v2921_v19 = vpop.f32.mrf.mxu1  ;;  %v2103_v15 = vsel %vm951_vm0, %v3616_v58, 0.0 }
 0x57f   : > { %v2083_v6 = vadd.f32 %v2764_v42, %v2048_v57  ;;  %v2069_v10 = vadd.f32 %v2921_v19, %v2909_v40  ;;  %v2122_v0 = vmul.f32 %v3614_v56, %v3614_v56  ;;  %v3620_v8 = vadd.f32 %v2085_v63, %v1850_v14 }
 0x580   : > { %v2060_v7 = vpop.f32.mrf.mxu1  ;;  %v2100_v1 = vsel %vm951_vm0, %v3614_v56, 0.0  ;;  %v2133_v21 = vsel %vm951_vm0, %v2124_v33, 0.0 }
 0x581   : > { %v2061_v62 = vadd.f32 %v2060_v7, %v1951_v53  ;;  %v3622_v27 = vadd.f32 %v2083_v6, %v1842_v35  ;;  %v2088_v3 = vadd.f32 %v2764_v42, %v2069_v10  ;;  %v2130_v12 = vsel %vm951_vm0, %v2122_v0, 0.0 }
 0x582   : > { %v2922_v32 = vpop.f32.mrf.mxu1  ;;  %v2125_v5 = vmul.f32 %v3620_v8, %v3620_v8  ;;  %v2105_v23 = vsel %vm951_vm0, %v3620_v8, 0.0 }
 0x583   : > { %v2086_v38 = vadd.f32 %v2764_v42, %v2061_v62  ;;  %v2072_v50 = vadd.f32 %v2922_v32, %v2910_v59  ;;  %v2101_v9 = vsel %vm951_vm0, %v3622_v27, 0.0  ;;  %v2123_v2 = vmul.f32 %v3622_v27, %v3622_v27 }
 0x584   : > { %v2063_v4 = vpop.f32.mrf.mxu1  ;;  %v2102_v17 = vadd.f32 %v2101_v9, %v2100_v1  ;;  %v3643_v25 = vadd.f32 %v2088_v3, %v1863_v61  ;;  %v2135_v34 = vsel %vm951_vm0, %v2125_v5, 0.0 }
 0x585   : > { %v3634_v24 = vadd.f32 %v2086_v38, %v1855_v60  ;;  %v2064_v31 = vadd.f32 %v2063_v4, %v1954_v11  ;;  %v2131_v52 = vsel %vm951_vm0, %v2123_v2, 0.0  ;;  %v2089_v18 = vadd.f32 %v2764_v42, %v2072_v50 }
 0x586   : > { %v2104_v13 = vadd.f32 %v2103_v15, %v2102_v17  ;;  %v2132_v22 = vadd.f32 %v2131_v52, %v2130_v12  ;;  %v2128_v44 = vmul.f32 %v3643_v25, %v3643_v25  ;;  %v2111_v51 = vsel %vm951_vm0, %v3643_v25, 0.0  ;;  %v2098_v15 = vld [vmem:[%s3811_s28] sm:$0x1] }
 0x587   : > { %v2126_v26 = vmul.f32 %v3634_v24, %v3634_v24  ;;  %v2087_v28 = vadd.f32 %v2764_v42, %v2064_v31  ;;  %v2107_v36 = vsel %vm951_vm0, %v3634_v24, 0.0  ;;  %v3650_v37 = vadd.f32 %v2089_v18, %v1866_v41  ;;  %v2099_v12 = vld [vmem:[%s3812_s2] sm:$0x1] }
 0x588   : > { %v2134_v29 = vadd.f32 %v2133_v21, %v2132_v22  ;;  %v2106_v30 = vadd.f32 %v2105_v23, %v2104_v13  ;;  %v2141_v63 = vsel %vm951_vm0, %v2128_v44, 0.0 }
 0x589   : > { %v3652_v39 = vadd.f32 %v2087_v28, %v1858_v20  ;;  %v2137_v45 = vsel %vm951_vm0, %v2126_v26, 0.0  ;;  %v2129_v53 = vmul.f32 %v3650_v37, %v3650_v37  ;;  %v2113_v57 = vsel %vm951_vm0, %v3650_v37, 0.0 }
 0x58a   : > { %v2108_v40 = vadd.f32 %v2107_v36, %v2106_v30  ;;  %v2136_v43 = vadd.f32 %v2135_v34, %v2134_v29 }
 0x58b   : > { %v2109_v42 = vsel %vm951_vm0, %v3652_v39, 0.0  ;;  %v2127_v46 = vmul.f32 %v3652_v39, %v3652_v39  ;;  %v2143_v14 = vsel %vm951_vm0, %v2129_v53, 0.0 }
 0x58c   : > { %v2138_v48 = vadd.f32 %v2137_v45, %v2136_v43  ;;  %v2110_v49 = vadd.f32 %v2109_v42, %v2108_v40 }
 0x58d   : > { %v2139_v54 = vsel %vm951_vm0, %v2127_v46, 0.0 }
 0x58e   : > { %v2112_v47 = vadd.f32 %v2111_v51, %v2110_v49  ;;  %v2140_v55 = vadd.f32 %v2139_v54, %v2138_v48 }
 0x590   : > { %v2114_v19 = vadd.f32 %v2113_v57, %v2112_v47  ;;  %v2142_v59 = vadd.f32 %v2141_v63, %v2140_v55 }
 0x592   : > { %v2115_v35 = vrot.slane %v2114_v19, 4  ;;  %v2144_v6 = vadd.f32 %v2143_v14, %v2142_v59 }
 0x594   : > { %v2116_v10 = vadd.f32 %v2115_v35, %v2114_v19  ;;  %v2145_v7 = vrot.slane %v2144_v6, 4  ;;  %v3023_v35 = vld [vmem:[%s3813_s0 + $0x8] sm:$0xff]  }
 0x595   : > { %2935 = vmatprep.subr.bf16.mxu1 %v3023_v35 }
 0x596   : > { %v2117_v61 = vrot.slane %v2116_v10, 2  ;;  %v2146_v62 = vadd.f32 %v2145_v7, %v2144_v6  ;;  %2936 = vmatpush3.bf16.msra.mxu1 %v3023_v35  ;;  %v3024_v6 = vld [vmem:[%s3813_s0] sm:$0xff]  }
 0x597   : > { %2937 = vmatprep.subr.bf16.mxu1 %v3024_v6 }
 0x598   : > { %v2118_v60 = vadd.f32 %v2117_v61, %v2116_v10  ;;  %v2147_v0 = vrot.slane %v2146_v62, 2 }
 0x59a   : > { %v2119_v32 = vrot.slane %v2118_v60, 1  ;;  %v2148_v41 = vadd.f32 %v2147_v0, %v2146_v62  ;;  %2938 = vmatpush3.bf16.msra.mxu1 %v3024_v6 }
 0x59c   : > { %v2120_v33 = vadd.f32 %v2119_v32, %v2118_v60  ;;  %v2149_v38 = vrot.slane %v2148_v41, 1 }
 0x59e   : > { %v2121_v50 = vmul.f32 0.015625, %v2120_v33  ;;  %v2150_v11 = vadd.f32 %v2149_v38, %v2148_v41 }
 0x5a0   : > { %v2151_v1 = vmul.f32 0.015625, %v2150_v11  ;;  %v2152_v9 = vmul.f32 %v2121_v50, %v2121_v50 }
 0x5a2   : > { %v2153_v2 = vsub.f32 %v2151_v1, %v2152_v9 }
 0x5a4   : > { %v2154_v3 = vmax.f32 %v2153_v2, 0.0 }
 0x5a6   : > { %v2155_v4 = vadd.f32 1e-05, %v2154_v3 }
 0x5a8   : > { %3069 = vrsqrt.f32 %v2155_v4 }
 0x5b5   : > { %v3070_v17 = vpop.eup %3069 }
 0x5b6   : > { %v2157_v31 = vmul.f32 %v3070_v17, %v2098_v15 }
 0x5b8   : > { %v2161_v5 = vrot.slane %v2157_v31, %v3354_v16  ;;  %v2170_v52 = vmul.f32 %v2157_v31, %v2121_v50 }
 0x5ba   : > { %v2171_v18 = vsub.f32 %v2099_v12, %v2170_v52  ;;  %v2162_v20 = vmul.f32 %v2161_v5, %v3614_v56  ;;  %v2163_v13 = vmul.f32 %v2161_v5, %v3622_v27  ;;  %v2164_v22 = vmul.f32 %v2161_v5, %v3616_v58 }
 0x5bb   : > { %v2165_v23 = vmul.f32 %v2161_v5, %v3620_v8  ;;  %v2166_v26 = vmul.f32 %v2161_v5, %v3634_v24  ;;  %v2167_v28 = vmul.f32 %v2161_v5, %v3652_v39  ;;  %v2168_v51 = vmul.f32 %v2161_v5, %v3643_v25 }
 0x5bc   : > { %v2176_v21 = vrot.slane %v2171_v18, %v3354_v16  ;;  %v2169_v53 = vmul.f32 %v2161_v5, %v3650_v37 }
 0x5be   : > { %v2178_v29 = vadd.f32 %v2176_v21, %v2162_v20  ;;  %v2179_v30 = vadd.f32 %v2176_v21, %v2163_v13  ;;  %v2180_v34 = vadd.f32 %v2176_v21, %v2164_v22  ;;  %v2181_v36 = vadd.f32 %v2176_v21, %v2165_v23 }
 0x5bf   : > { %v2182_v40 = vadd.f32 %v2176_v21, %v2166_v26  ;;  %v2183_v43 = vadd.f32 %v2176_v21, %v2167_v28  ;;  %v2184_v55 = vadd.f32 %v2176_v21, %v2168_v51  ;;  %v2185_v63 = vadd.f32 %v2176_v21, %v2169_v53 }
 0x5c0   : > { %v2186_v44 = vmax.f32 %v2178_v29, 0.0  ;;  %v2187_v45 = vmax.f32 %v2179_v30, 0.0  ;;  %v2188_v42 = vmax.f32 %v2180_v34, 0.0  ;;  %v2189_v46 = vmax.f32 %v2181_v36, 0.0 }
 0x5c1   : > { %v2190_v48 = vmax.f32 %v2182_v40, 0.0  ;;  %v2191_v49 = vmax.f32 %v2183_v43, 0.0  ;;  %v2192_v19 = vmax.f32 %v2184_v55, 0.0  ;;  %v2193_v59 = vmax.f32 %v2185_v63, 0.0 }
 0x5c2   : > { %v2198_v54 = vpack.c.bf16 %v2187_v45, %v2186_v44  ;;  %v2199_v47 = vpack.c.bf16 %v2189_v46, %v2188_v42 }
 0x5c3   : > { %v2200_v57 = vpack.c.bf16 %v2191_v49, %v2190_v48  ;;  %v2201_v14 = vpack.c.bf16 %v2193_v59, %v2192_v19 }
 0x5c4   : > { %2927 = vmatprep.mubr.msk.bf16.mxu0 %vm951_vm0, %v2198_v54 }
 0x5c5   : > { %2928 = vmatmul.mubr.msk.bf16.vlgmr.msra.gmra.mxu0 %vm951_vm0, %v2199_v47 }
 0x5c6   : > { %2931 = vmatprep.mubr.msk.bf16.mxu0 %vm951_vm0, %v2200_v57 }
 0x5cd   : > { %2932 = vmatmul.mubr.msk.bf16.gmra.mxu0 %vm951_vm0, %v2201_v14 }
 0x685   : > { %v3688_v10 = vpop.f32.mrf.mxu0 }
 0x686   : > { %v2317_v0 = vmul.f32 %v3688_v10, %v3688_v10  ;;  %v2296_v11 = vsel %vm951_vm0, %v3688_v10, 0.0 }
 0x687   : > { %v3690_v7 = vpop.f32.mrf.mxu0 }
 0x688   : > { %v2315_v62 = vmul.f32 %v3690_v7, %v3690_v7  ;;  %v2293_v32 = vsel %vm951_vm0, %v3690_v7, 0.0  ;;  %v2326_v17 = vsel %vm951_vm0, %v2317_v0, 0.0 }
 0x689   : > { %v3692_v61 = vpop.f32.mrf.mxu0 }
 0x68a   : > { %v2323_v1 = vsel %vm951_vm0, %v2315_v62, 0.0  ;;  %v2318_v9 = vmul.f32 %v3692_v61, %v3692_v61  ;;  %v2298_v31 = vsel %vm951_vm0, %v3692_v61, 0.0 }
 0x68b   : > { %v3696_v60 = vpop.f32.mrf.mxu0 }
 0x68c   : > { %v2294_v41 = vsel %vm951_vm0, %v3696_v60, 0.0  ;;  %v2316_v33 = vmul.f32 %v3696_v60, %v3696_v60  ;;  %v2328_v20 = vsel %vm951_vm0, %v2318_v9, 0.0 }
 0x68d   : > { %v2295_v38 = vadd.f32 %v2294_v41, %v2293_v32  ;;  %v3706_v50 = vpop.f32.mrf.mxu0 }
 0x68e   : > { %v2324_v2 = vsel %vm951_vm0, %v2316_v33, 0.0  ;;  %v2321_v26 = vmul.f32 %v3706_v50, %v3706_v50  ;;  %v2304_v40 = vsel %vm951_vm0, %v3706_v50, 0.0 }
 0x68f   : > { %v2297_v3 = vadd.f32 %v2296_v11, %v2295_v38  ;;  %v2325_v4 = vadd.f32 %v2324_v2, %v2323_v1  ;;  %v2276_v15 = vpop.f32.mrf.mxu0  ;;  %v2291_v2 = vld [vmem:[%s3814_s20] sm:$0x1] }
 0x690   : > { %v2319_v12 = vmul.f32 %v2276_v15, %v2276_v15  ;;  %v2300_v21 = vsel %vm951_vm0, %v2276_v15, 0.0  ;;  %v2334_v46 = vsel %vm951_vm0, %v2321_v26, 0.0 }
 0x691   : > { %v2327_v5 = vadd.f32 %v2326_v17, %v2325_v4  ;;  %v2299_v52 = vadd.f32 %v2298_v31, %v2297_v3  ;;  %v3717_v18 = vpop.f32.mrf.mxu0  ;;  %v2292_v17 = vld [vmem:[%s3815_s11] sm:$0x1] }
 0x692   : > { %v2330_v28 = vsel %vm951_vm0, %v2319_v12, 0.0  ;;  %v2322_v43 = vmul.f32 %v3717_v18, %v3717_v18  ;;  %v2306_v48 = vsel %vm951_vm0, %v3717_v18, 0.0 }
 0x693   : > { %v2301_v13 = vadd.f32 %v2300_v21, %v2299_v52  ;;  %v2329_v22 = vadd.f32 %v2328_v20, %v2327_v5  ;;  %v2279_v23 = vpop.f32.mrf.mxu0 }
 0x694   : > { %v2302_v29 = vsel %vm951_vm0, %v2279_v23, 0.0  ;;  %v2320_v30 = vmul.f32 %v2279_v23, %v2279_v23  ;;  %v2336_v53 = vsel %vm951_vm0, %v2322_v43, 0.0 }
 0x695   : > { %v2331_v34 = vadd.f32 %v2330_v28, %v2329_v22  ;;  %v2303_v36 = vadd.f32 %v2302_v29, %v2301_v13 }
 0x696   : > { %v2332_v44 = vsel %vm951_vm0, %v2320_v30, 0.0 }
 0x697   : > { %v2305_v45 = vadd.f32 %v2304_v40, %v2303_v36  ;;  %v2333_v42 = vadd.f32 %v2332_v44, %v2331_v34 }
 0x699   : > { %v2307_v49 = vadd.f32 %v2306_v48, %v2305_v45  ;;  %v2335_v51 = vadd.f32 %v2334_v46, %v2333_v42 }
 0x69b   : > { %v2308_v54 = vrot.slane %v2307_v49, 4  ;;  %v2337_v47 = vadd.f32 %v2336_v53, %v2335_v51 }
 0x69d   : > { %v2309_v55 = vadd.f32 %v2308_v54, %v2307_v49  ;;  %v2338_v63 = vrot.slane %v2337_v47, 4 }
 0x69f   : > { %v2310_v57 = vrot.slane %v2309_v55, 2  ;;  %v2339_v19 = vadd.f32 %v2338_v63, %v2337_v47 }
 0x6a1   : > { %v2311_v59 = vadd.f32 %v2310_v57, %v2309_v55  ;;  %v2340_v14 = vrot.slane %v2339_v19, 2  ;;  %v3116_v55 = vmov 0   ;;  %v2777_v57 = vld [vmem:[%s3816_s15] ss:$0 sm:$0xff] }
 0x6a2   : > { %3004 = vset.pattern.permute.xlu0 %v3116_v55 }
 0x6a3   : > { %v2312_v35 = vrot.slane %v2311_v59, 1  ;;  %v2341_v6 = vadd.f32 %v2340_v14, %v2339_v19 }
 0x6a5   : > { %v2313_v62 = vadd.f32 %v2312_v35, %v2311_v59  ;;  %v2342_v0 = vrot.slane %v2341_v6, 1 }
 0x6a7   : > { %v2314_v32 = vmul.f32 0.015625, %v2313_v62  ;;  %v2343_v41 = vadd.f32 %v2342_v0, %v2341_v6 }
 0x6a9   : > { %v2344_v33 = vmul.f32 0.015625, %v2343_v41  ;;  %v2345_v38 = vmul.f32 %v2314_v32, %v2314_v32 }
 0x6ab   : > { %v2346_v11 = vsub.f32 %v2344_v33, %v2345_v38 }
 0x6ad   : > { %v2347_v1 = vmax.f32 %v2346_v11, 0.0 }
 0x6af   : > { %v2348_v9 = vadd.f32 1e-05, %v2347_v1 }
 0x6b1   : > { %3071 = vrsqrt.f32 %v2348_v9 }
 0x6be   : > { %v3072_v3 = vpop.eup %3071 }
 0x6bf   : > { %v2350_v4 = vmul.f32 %v3072_v3, %v2291_v2 }
 0x6c1   : > { %v2354_v31 = vrot.slane %v2350_v4, %v3354_v16  ;;  %v2363_v12 = vmul.f32 %v2350_v4, %v2314_v32 }
 0x6c3   : > { %v2364_v5 = vsub.f32 %v2292_v17, %v2363_v12  ;;  %v2360_v52 = vmul.f32 %v2354_v31, %v2279_v23  ;;  %v2355_v21 = vmul.f32 %v2354_v31, %v3690_v7  ;;  %v2356_v13 = vmul.f32 %v2354_v31, %v3696_v60 }
 0x6c4   : > { %v2357_v22 = vmul.f32 %v3688_v10, %v2354_v31  ;;  %v2358_v26 = vmul.f32 %v3692_v61, %v2354_v31  ;;  %v2359_v28 = vmul.f32 %v2354_v31, %v2276_v15  ;;  %v2361_v7 = vmul.f32 %v3706_v50, %v2354_v31 }
 0x6c5   : > { %v2369_v20 = vrot.slane %v2364_v5, %v3354_v16  ;;  %v2362_v60 = vmul.f32 %v3717_v18, %v2354_v31  ;;  %v3114_v50 = vmov 0.0   ;;  %v2520_v18 = vld [vmem:[#allocation2] sm:$0x1] }
 0x6c6   : > { %2947 = vmatprep.subr.bf16.mxu0 %v3114_v50  ;;  %2955 = vmatprep.mubr.msk.bf16.mxu0 %vm3115_vm3, %v3114_v50 }
 0x6c7   : > { %v2376_v29 = vadd.f32 %v2369_v20, %v2360_v52  ;;  %v2371_v30 = vadd.f32 %v2369_v20, %v2355_v21  ;;  %v2372_v34 = vadd.f32 %v2369_v20, %v2356_v13  ;;  %v2373_v36 = vadd.f32 %v2369_v20, %v2357_v22  ;;  %2523 = vperm.xlu0 %3004, %v2520_v18   ;;  %v2515_v21 = vld [vmem:[%s3255_s6] sm:$0x1] }
 0x6c8   : > { %v2374_v40 = vadd.f32 %v2369_v20, %v2358_v26  ;;  %v2375_v43 = vadd.f32 %v2369_v20, %v2359_v28  ;;  %v2377_v61 = vadd.f32 %v2369_v20, %v2361_v7  ;;  %v2378_v15 = vadd.f32 %v2369_v20, %v2362_v60 }
 0x6c9   : > { %v2384_v44 = vmax.f32 %v2376_v29, 0.0  ;;  %v2379_v45 = vmax.f32 %v2371_v30, 0.0  ;;  %v2380_v23 = vmax.f32 %v2372_v34, 0.0  ;;  %v2381_v42 = vmax.f32 %v2373_v36, 0.0 }
 0x6ca   : > { %v2382_v46 = vmax.f32 %v2374_v40, 0.0  ;;  %v2383_v48 = vmax.f32 %v2375_v43, 0.0  ;;  %v2385_v53 = vmax.f32 %v2377_v61, 0.0  ;;  %v2386_v54 = vmax.f32 %v2378_v15, 0.0 }
 0x6cb   : > { %v2391_v10 = vpack.c.bf16 %v2380_v23, %v2379_v45 }
 0x6cc   : > { %v2392_v49 = vpack.c.bf16 %v2382_v46, %v2381_v42  ;;  %v2393_v51 = vpack.c.bf16 %v2384_v44, %v2383_v48  ;;  %v2394_v47 = vpack.c.bf16 %v2386_v54, %v2385_v53 }
 0x6cd   : > { %2939 = vmatprep.mubr.msk.bf16.mxu1 %vm951_vm0, %v2391_v10 }
 0x6ce   : > { %2940 = vmatmul.mubr.msk.bf16.vlgmr.msra.gmra.mxu1 %vm951_vm0, %v2392_v49 }
 0x6cf   : > { %2943 = vmatprep.mubr.msk.bf16.mxu1 %vm951_vm0, %v2393_v51 }
 0x6d6   : > { %2944 = vmatmul.mubr.msk.bf16.gmra.mxu1 %vm951_vm0, %v2394_v47 }
 0x742   : > { %v2524_v13 = vpop.permute.xlu0 %2523 }
 0x743   : > { %v2529_v22 = vrot.slane %v2524_v13, %v3354_v16 }
 0x78e   : > { %v2941_v63 = vpop.f32.mrf.mxu1 }
 0x78f   : > { %v2486_v19 = vadd.f32 %v2941_v63, %v3616_v58 }
 0x790   : > { %v2453_v59 = vpop.f32.mrf.mxu1 }
 0x791   : > { %v2501_v14 = vadd.f32 %v2777_v57, %v2486_v19  ;;  %v2484_v35 = vadd.f32 %v2453_v59, %v3614_v56 }
 0x792   : > { %v2942_v6 = vpop.f32.mrf.mxu1 }
 0x793   : > { %2509 = vst.msk [vmem:[%s3752_s23 + $0x10] sm:$0xff] %vm951_vm0, %v2501_v14  ;;  %v2499_v62 = vadd.f32 %v2777_v57, %v2484_v35  ;;  %v2487_v0 = vadd.f32 %v2942_v6, %v3620_v8 }
 0x794   : > { %v2456_v32 = vpop.f32.mrf.mxu1 }
 0x795   : > { %2507 = vst.msk [vmem:[%s3752_s23] sm:$0xff] %vm951_vm0, %v2499_v62  ;;  %v2502_v58 = vadd.f32 %v2777_v57, %v2487_v0  ;;  %v2485_v41 = vadd.f32 %v2456_v32, %v3622_v27 }
 0x796   : > { %v2945_v33 = vpop.f32.mrf.mxu1 }
 0x797   : > { %2510 = vst.msk [vmem:[%s3752_s23 + $0x18] sm:$0xff] %vm951_vm0, %v2502_v58  ;;  %v2500_v38 = vadd.f32 %v2777_v57, %v2485_v41  ;;  %v2490_v56 = vadd.f32 %v2945_v33, %v3643_v25  ;;  %v2517_v5 = vpack.c.bf16 %v2502_v58, %v2501_v14 }
 0x798   : > { %v2469_v11 = vpop.f32.mrf.mxu1 }
 0x799   : > { %2508 = vst.msk [vmem:[%s3752_s23 + $0x8] sm:$0xff] %vm951_vm0, %v2500_v38  ;;  %v2505_v1 = vadd.f32 %v2777_v57, %v2490_v56  ;;  %v2488_v8 = vadd.f32 %v2469_v11, %v3634_v24  ;;  %v2516_v52 = vpack.c.bf16 %v2500_v38, %v2499_v62 }
 0x79a   : > { %v2946_v9 = vpop.f32.mrf.mxu1 }
 0x79b   : > { %2513 = vst.msk [vmem:[%s3752_s23 + $0x30] sm:$0xff] %vm951_vm0, %v2505_v1  ;;  %v2503_v2 = vadd.f32 %v2777_v57, %v2488_v8  ;;  %v2491_v27 = vadd.f32 %v2946_v9, %v3650_v37  ;;  %v2534_v20 = vsel %vm951_vm0, %v2516_v52, 0 }
 0x79c   : > { %v2472_v3 = vpop.f32.mrf.mxu1 }
 0x79d   : > { %2511 = vst.msk [vmem:[%s3752_s23 + $0x20] sm:$0xff] %vm951_vm0, %v2503_v2  ;;  %v2506_v4 = vadd.f32 %v2777_v57, %v2491_v27  ;;  %v2489_v17 = vadd.f32 %v2472_v3, %v3652_v39  ;;  %v2537_v39 = vsel %vm951_vm0, %v2517_v5, 0 }
 0x79f   : > { %2514 = vst.msk [vmem:[%s3752_s23 + $0x38] sm:$0xff] %vm951_vm0, %v2506_v4  ;;  %v2519_v25 = vpack.c.bf16 %v2506_v4, %v2505_v1  ;;  %v2504_v31 = vadd.f32 %v2777_v57, %v2489_v17 }
 0x7a1   : > { %2512 = vst.msk [vmem:[%s3752_s23 + $0x28] sm:$0xff] %vm951_vm0, %v2504_v31  ;;  %v2543_v24 = vsel %vm951_vm0, %v2519_v25, 0  ;;  %v2518_v37 = vpack.c.bf16 %v2504_v31, %v2503_v2 }
 0x7a2   : > { %2948 = vmatpush3.bf16.xpose.msra.mxu0 %v2543_v24 }
 0x7a3   : > { %2949 = vmatprep.subr.bf16.mxu0 %v3114_v50  ;;  %v2540_v12 = vsel %vm951_vm0, %v2518_v37, 0 }
 0x7aa   : > { %2950 = vmatpush3.bf16.xpose.msra.mxu0 %v2540_v12 }
 0x7ab   : > { %2951 = vmatprep.subr.bf16.mxu0 %v3114_v50 }
 0x7b2   : > { %2952 = vmatpush3.bf16.xpose.msra.mxu0 %v2537_v39 }
 0x7b3   : > { %2953 = vmatprep.subr.bf16.mxu0 %v3114_v50 }
 0x7ba   : > { %2954 = vmatpush3.bf16.xpose.msra.mxu0 %v2534_v20 }
 0x7c1   : > { %2956 = vmatmul.mubr.msk.bf16.vlgmr.msra.gmra.mxu0 %vm951_vm0, %v2515_v21 }
 0x881   : > { %v2579_v26 = vpop.f32.mrf.mxu0 }
 0x882   : > { %v2580_v28 = vadd.f32 %v2579_v26, %v2529_v22 }
 0x883   : > { %v2957_v29 = vpop.f32.mrf.mxu0 }
 0x884   : > { %2586 = vst.msk [vmem:[%s930_s26] sm:$0x1] %vm2585_vm4, %v2580_v28 }
 0x885   : > { %v2582_v30 = vpop.f32.mrf.mxu0 }
 0x887   : > { %v2958_v34 = vpop.f32.mrf.mxu0 }
 0x888 PF: > { %s72_s7 = sadd.s32 1, %s3083_s7  }
 0x889   : > { %p69_p4 = scmp.ge.s32.totalorder %s72_s7, 4  }
 0x88b   :  { %71 = sbr.rel (!%p69_p4) target bundleno = 48 (0x30), region = 206 }

// kernel: custom-call.58
= control target key start
LH: loop header
LB: loop body
LE: loop exit
PB: predicated region body
PF: predicated region fallthrough
CT: control target
= control target key end

     0   :  { %s243_s6 = smov 0   ;;  %s270_s0 = inlined_call_operand.vmem [shape: f32[2,3,3], index: 0, kind: input, shape index: {}]   ;;  %s271_s1 = inlined_call_operand.vmem [shape: f32[2,3,3], index: 1, kind: output, shape index: {}]  }
   0x1 LB: > { %s205_s7 = sadd.s32 4294967295, %s231_s6   ;;  %p207_p0 = scmp.ge.s32.totalorder %s231_s6, 2  ;;  %s231_s6 = sphi %s243_s6, %s7_s6  }
   0x2   : > { %s23_s8 = sand.u32 (!%p207_p0), 1, %s231_s6   ;;  %s209_s9 = sshll.u32 (!%p207_p0), %s231_s6, 2 }
   0x3   : > { %21 = sbr.rel (%p207_p0) target bundleno = 10 (0xa), region = 16  ;;  %s208_s10 = sshll.u32 (!%p207_p0), %s23_s8, 2 }
   0x4   : > { %s27_s13 = scalar_lea.vmem (!%p207_p0), %s270_s0, %s209_s9  ;;  %s25_s14 = scalar_lea.vmem (!%p207_p0), [#allocation1], %s208_s10 }
   0x8   : > { %v44_v0 = vld [vmem:[%s27_s13] sm:$0xf] }
   0x9   : > { %45 = vst [vmem:[%s25_s14] sm:$0xf] %v44_v0 }
   0xa PF: > { %p210_p1 = scmp.ge.s32.totalorder %s231_s6, 1  ;;  %p62_p2 = scmp.lt.s32.totalorder %s231_s6, 3 }
   0xc   : > { %p63_p3 = pnand %p210_p1, %p62_p2 }
   0xd   : > { %s259_s15 = sand.u32 (!%p63_p3), 1, %s205_s7   ;;  %s214_s19 = sshll.u32 (!%p63_p3), %s205_s7, 2 }
   0xe   : > { %66 = sbr.rel (%p63_p3) target bundleno = 329 (0x149), region = 50  ;;  %s211_s16 = sshll.u32 (!%p63_p3), %s259_s15, 2 }
   0xf   : > { %s75_s17 = scalar_lea.vmem (!%p63_p3), [#allocation1], %s211_s16  ;;  %s79_s18 = scalar_lea.vmem (!%p63_p3), [#allocation3], %s211_s16 }
  0x10   : > { %s133_s22 = scalar_lea.vmem (!%p63_p3), %s271_s1, %s214_s19 }
  0x13   : > { %v85_v1 = vlaneseq  ;;  %v83_v2 = vld [vmem:[%s75_s17] sm:$0xf]  ;;  %vm99_vm1 = vcmask 23552  }
  0x14   : > { %84 = vst [vmem:[#allocation0] sm:$0xf] %v83_v2 }
  0x15   : > { %v86_v3 = vand.u32 127, %v85_v1  ;;  %v88_v4 = vshrl.u32 %v85_v1, 7 }
  0x17   : > { %vm94_vm0 = vcmp.eq.s32.totalorder %v86_v3, 0  ;;  %vm90_vm2 = vcmp.eq.s32.totalorder %v86_v3, %v88_v4  ;;  %vm103_vm3 = vcmp.eq.s32.totalorder %v86_v3, 1  ;;  %vm114_vm4 = vcmp.eq.s32.totalorder %v86_v3, 2 }
  0x1b   : > { %v91_v5 = vld [vmem:[#allocation0] sm:$0xff] }
  0x1c   : > { %v98_v6 = vld [vmem:[#allocation0 + $0x1] ss:$0 sm:$0xff]  ;;  %v95_v7 = vsel %vm94_vm0, %v91_v5, 1.0  ;;  %v109_v11 = vld [vmem:[#allocation0 + $0x2] ss:$0 sm:$0xff] }
  0x1d   : > { %v100_v8 = vsel %vm99_vm1, %v98_v6, 0.0  ;;  %v96_v9 = vsel %vm90_vm2, %v95_v7, 0.0  ;;  %v111_v12 = vsel %vm99_vm1, %v109_v11, 0.0 }
  0x1e   : > { %v104_v10 = vmul.f32 %v100_v8, %v96_v9 }
  0x20   : > { %105 = vadd.xlane.f32.xlu0 %v104_v10 }
  0xa9   : > { %v106_v13 = vpop.xlane.xlu0 %105 }
  0xaa   : > { %v107_v14 = vsel %vm103_vm3, %v106_v13, %v96_v9 }
  0xab   : > { %v115_v15 = vmul.f32 %v111_v12, %v107_v14 }
  0xad   : > { %116 = vadd.xlane.f32.xlu0 %v115_v15 }
 0x136   : > { %v117_v16 = vpop.xlane.xlu0 %116 }
 0x137   : > { %v118_v17 = vsel %vm114_vm4, %v117_v16, %v107_v14 }
 0x138   : > { %119 = vst [vmem:[#allocation2] sm:$0xff] %v118_v17 }
 0x13f   : > { %v124_v18 = vld [vmem:[#allocation2] sm:$0xf] }
 0x140   : > { %127 = vst [vmem:[%s79_s18] sm:$0xf] %v124_v18 }
 0x147   : > { %v150_v19 = vld [vmem:[%s79_s18] sm:$0xf] }
 0x148   : > { %151 = vst [vmem:[%s133_s22] sm:$0xf] %v150_v19 }
 0x149 PF: > { %s7_s6 = sadd.s32 1, %s231_s6  }
 0x14a   : > { %p4_p4 = scmp.ge.s32.totalorder %s7_s6, 4  }
 0x14c   :  { %6 = sbr.rel (!%p4_p4) target bundleno = 1 (0x1), region = 112 }

// kernel: custom-call.50
= control target key start
LH: loop header
LB: loop body
LE: loop exit
PB: predicated region body
PF: predicated region fallthrough
CT: control target
= control target key end

     0   :  { %s6_s0 = inlined_call_operand.hbm [shape: pred[2], index: 0, kind: output, shape index: {}]  }

// kernel: custom-call.55
= control target key start
LH: loop header
LB: loop body
LE: loop exit
PB: predicated region body
PF: predicated region fallthrough
CT: control target
= control target key end

     0   :  { %s350_s6 = smov 0   ;;  %s352_s7 = smov 0   ;;  %s397_s0 = inlined_call_operand.vmem [shape: f32[2,3,3], index: 0, kind: input, shape index: {}]   ;;  %s398_s1 = inlined_call_operand.vmem [shape: f32[2,3,3], index: 1, kind: output, shape index: {}]  }
   0x1   :  { %s354_s8 = smov 0  }
   0x2 LB: > { %s272_s9 = sadd.s32 4294967295, %s337_s8   ;;  %s26_s10 = sadd.s32 1, %s333_s7  ;;  %s337_s8 = sphi %s354_s8, %s7_s8   ;;  %s333_s7 = sphi %s352_s7, %s400_s7   ;;  %s329_s6 = sphi %s350_s6, %s399_s6  }
   0x3   : > { %p28_p0 = scmp.ge.s32.totalorder %s26_s10, 2  ;;  %p274_p1 = scmp.ge.s32.totalorder %s337_s8, 2 }
   0x4   : > { %s42_s11 = sand.u32 (!%p274_p1), 1, %s337_s8   ;;  %s276_s12 = sshll.u32 (!%p274_p1), %s333_s7, 2 }
   0x5   : > { %s402_s10 = smov (%p28_p0, %s26_s10), 0  ;;  %40 = sbr.rel (%p274_p1) target bundleno = 12 (0xc), region = 16 }
   0x6   : > { %s275_s13 = sshll.u32 (!%p274_p1), %s42_s11, 2  ;;  %s48_s16 = scalar_lea.vmem (!%p274_p1), %s397_s0, %s276_s12 }
   0x7   : > { %s44_s17 = scalar_lea.vmem (!%p274_p1), [#allocation1], %s275_s13 }
   0xa   : > { %v65_v0 = vld [vmem:[%s48_s16] sm:$0xf] }
   0xb   : > { %66 = vst [vmem:[%s44_s17] sm:$0xf] %v65_v0 }
   0xc PF: > { %p277_p2 = scmp.ge.s32.totalorder %s337_s8, 1  ;;  %p83_p3 = scmp.lt.s32.totalorder %s337_s8, 3 }
   0xe   : > { %p84_p4 = pnand %p277_p2, %p83_p3 }
   0xf   : > { %s377_s18 = sand.u32 (!%p84_p4), 1, %s272_s9   ;;  %s281_s22 = sshll.u32 (!%p84_p4), %s329_s6, 2 }
  0x10   : > { %87 = sbr.rel (%p84_p4) target bundleno = 544 (0x220), region = 50  ;;  %s278_s19 = sshll.u32 (!%p84_p4), %s377_s18, 2 }
  0x11   : > { %s96_s20 = scalar_lea.vmem (!%p84_p4), [#allocation1], %s278_s19  ;;  %s100_s21 = scalar_lea.vmem (!%p84_p4), [#allocation3], %s278_s19 }
  0x12   : > { %s184_s25 = scalar_lea.vmem (!%p84_p4), %s398_s1, %s281_s22 }
  0x15   : > { %v339_v1 = vmov 0.0   ;;  %v104_v5 = vld [vmem:[%s96_s20] sm:$0xf]  ;;  %vm107_vm0 = vcmask 7168   ;;  %vm125_vm1 = vcmask 15368   ;;  %vm142_vm2 = vcmask 1047553  }
  0x16   : > { %106 = vst [vmem:[#allocation2] sm:$0xff] %v339_v1  ;;  %105 = vst [vmem:[#allocation0] sm:$0xf] %v104_v5  ;;  %vm147_vm4 = vcmask 23568   ;;  %vm164_vm5 = vcmask 1047554  }
  0x17   : > { %vm143_vm3 = vmand %vm125_vm1, %vm142_vm2 }
  0x18   : > { %vm165_vm6 = vmand %vm147_vm4, %vm164_vm5 }
  0x1d   : > { %v108_v2 = vld [vmem:[#allocation2] ss:$0 sm:$0xff]  ;;  %v109_v6 = vld [vmem:[#allocation0] ss:$0 sm:$0xff]  ;;  %v129_v18 = vld [vmem:[#allocation0 + $0x1] ss:$0 sm:$0xff] }
  0x1e   : > { %v110_v3 = vmul.f32 %v108_v2, %v108_v2  ;;  %v117_v4 = vmul.f32 0.0, %v108_v2  ;;  %v115_v10 = vld [vmem:[#allocation0] sm:$0xff] }
  0x1f   : > { %v151_v30 = vld [vmem:[#allocation0 + $0x2] ss:$0 sm:$0xff] }
  0x20   : > { %111 = vadd.xlane.f32.xlu0 %v110_v3 }
  0x24   : > { %118 = vadd.xlane.f32.xlu0 %v117_v4 }
  0xa9   : > { %v112_v7 = vpop.xlane.xlu0 %111 }
  0xaa   : > { %v113_v8 = vsub.f32 %v109_v6, %v112_v7 }
  0xac   : > { %309 = vrsqrt.f32 %v113_v8 }
  0xad   : > { %v119_v9 = vpop.xlane.xlu0 %118 }
  0xae   : > { %v120_v11 = vsub.f32 %v115_v10, %v119_v9 }
  0xb9   : > { %v310_v12 = vpop.eup %309 }
  0xba   : > { %v121_v13 = vmul.f32 %v310_v12, %v120_v11 }
  0xbc   : > { %v122_v14 = vsel %vm107_vm0, %v121_v13, 0.0 }
  0xbd   : > { %124 = vst [vmem:[#allocation2] sm:$0xff] %v122_v14 }
  0xc4   : > { %v127_v15 = vld [vmem:[#allocation2 + $0x1] ss:$0 sm:$0xff] }
  0xc5   : > { %v130_v16 = vmul.f32 %v127_v15, %v127_v15  ;;  %v137_v17 = vmul.f32 %v127_v15, %v122_v14 }
  0xc7   : > { %131 = vadd.xlane.f32.xlu1 %v130_v16 }
  0xcb   : > { %138 = vadd.xlane.f32.xlu1 %v137_v17 }
 0x150   : > { %v132_v19 = vpop.xlane.xlu1 %131 }
 0x151   : > { %v133_v20 = vsub.f32 %v129_v18, %v132_v19 }
 0x153   : > { %311 = vrsqrt.f32 %v133_v20 }
 0x154   : > { %v139_v21 = vpop.xlane.xlu1 %138 }
 0x155   : > { %v140_v22 = vsub.f32 %v115_v10, %v139_v21 }
 0x160   : > { %v312_v23 = vpop.eup %311 }
 0x161   : > { %v141_v24 = vmul.f32 %v312_v23, %v140_v22 }
 0x163   : > { %v144_v25 = vsel %vm143_vm3, %v141_v24, 0.0 }
 0x164   : > { %v145_v26 = vadd.f32 %v144_v25, %v122_v14 }
 0x166   : > { %146 = vst [vmem:[#allocation2] sm:$0xff] %v145_v26 }
 0x16d   : > { %v149_v27 = vld [vmem:[#allocation2 + $0x2] ss:$0 sm:$0xff] }
 0x16e   : > { %v159_v28 = vmul.f32 %v149_v27, %v145_v26  ;;  %v152_v29 = vmul.f32 %v149_v27, %v149_v27 }
 0x170   : > { %160 = vadd.xlane.f32.xlu1 %v159_v28  ;;  %153 = vadd.xlane.f32.xlu0 %v152_v29 }
 0x1f9   : > { %v154_v31 = vpop.xlane.xlu0 %153  ;;  %v161_v33 = vpop.xlane.xlu1 %160 }
 0x1fa   : > { %v155_v32 = vsub.f32 %v151_v30, %v154_v31  ;;  %v162_v34 = vsub.f32 %v115_v10, %v161_v33 }
 0x1fc   : > { %313 = vrsqrt.f32 %v155_v32 }
 0x209   : > { %v314_v35 = vpop.eup %313 }
 0x20a   : > { %v163_v36 = vmul.f32 %v314_v35, %v162_v34 }
 0x20c   : > { %v166_v37 = vsel %vm165_vm6, %v163_v36, 0.0 }
 0x20d   : > { %v167_v38 = vadd.f32 %v166_v37, %v145_v26 }
 0x20f   : > { %168 = vst [vmem:[#allocation2] sm:$0xff] %v167_v38 }
 0x216   : > { %v173_v39 = vld [vmem:[#allocation2] sm:$0xf] }
 0x217   : > { %176 = vst [vmem:[%s100_s21] sm:$0xf] %v173_v39 }
 0x21e   : > { %v201_v40 = vld [vmem:[%s100_s21] sm:$0xf] }
 0x21f   : > { %202 = vst [vmem:[%s184_s25] sm:$0xf] %v201_v40 }
 0x220 PF: > { %s7_s8 = sadd.s32 1, %s337_s8   ;;  %s399_s6 = smov %s333_s7 }
 0x221   : > { %p4_p5 = scmp.ge.s32.totalorder %s7_s8, 4   ;;  %s400_s7 = smov %s402_s10 }
 0x223   :  { %6 = sbr.rel (!%p4_p5) target bundleno = 2 (0x2), region = 114 }

// kernel: custom-call.56
= control target key start
LH: loop header
LB: loop body
LE: loop exit
PB: predicated region body
PF: predicated region fallthrough
CT: control target
= control target key end

     0   :  { %s350_s6 = smov 0   ;;  %s352_s7 = smov 0   ;;  %s397_s0 = inlined_call_operand.vmem [shape: f32[2,1,3,3], index: 0, kind: input, shape index: {}]   ;;  %s398_s1 = inlined_call_operand.vmem [shape: f32[2,1,3,3], index: 1, kind: output, shape index: {}]  }
   0x1   :  { %s354_s8 = smov 0  }
   0x2 LB: > { %s276_s9 = sadd.s32 4294967295, %s337_s8   ;;  %s33_s10 = sadd.s32 1, %s333_s7  ;;  %s337_s8 = sphi %s354_s8, %s7_s8   ;;  %s333_s7 = sphi %s352_s7, %s400_s7   ;;  %s329_s6 = sphi %s350_s6, %s399_s6  }
   0x3   : > { %p35_p0 = scmp.ge.s32.totalorder %s33_s10, 2  ;;  %p278_p1 = scmp.ge.s32.totalorder %s337_s8, 2 }
   0x4   : > { %s49_s11 = sand.u32 (!%p278_p1), 1, %s337_s8   ;;  %s280_s12 = sshll.u32 (!%p278_p1), %s333_s7, 2 }
   0x5   : > { %s402_s10 = smov (%p35_p0, %s33_s10), 0  ;;  %47 = sbr.rel (%p278_p1) target bundleno = 12 (0xc), region = 16 }
   0x6   : > { %s279_s13 = sshll.u32 (!%p278_p1), %s49_s11, 2  ;;  %s56_s16 = scalar_lea.vmem (!%p278_p1), %s397_s0, %s280_s12 }
   0x7   : > { %s51_s17 = scalar_lea.vmem (!%p278_p1), [#allocation1], %s279_s13 }
   0xa   : > { %v73_v0 = vld [vmem:[%s56_s16] sm:$0xf] }
   0xb   : > { %74 = vst [vmem:[%s51_s17] sm:$0xf] %v73_v0 }
   0xc PF: > { %p281_p2 = scmp.ge.s32.totalorder %s337_s8, 1  ;;  %p91_p3 = scmp.lt.s32.totalorder %s337_s8, 3 }
   0xe   : > { %p92_p4 = pnand %p281_p2, %p91_p3 }
  0x10   : > { %95 = sbr.rel (%p92_p4) target bundleno = 500 (0x1f4), region = 50 }
  0x15   : > { %s377_s18 = sand.u32 1, %s276_s9   ;;  %v114_v1 = vlaneseq  ;;  %v339_v11 = vmov -1.0   ;;  %s285_s22 = sshll.u32 %s329_s6, 2 }
  0x16   : > { %s282_s19 = sshll.u32 %s377_s18, 2  ;;  %s183_s25 = scalar_lea.vmem %s398_s1, %s285_s22 }
  0x17   : > { %s104_s20 = scalar_lea.vmem [#allocation1], %s282_s19  ;;  %v115_v3 = vand.u32 127, %v114_v1  ;;  %v118_v4 = vshrl.u32 %v114_v1, 7  ;;  %s108_s21 = scalar_lea.vmem [#allocation3], %s282_s19 }
  0x18   : > { %v112_v2 = vld [vmem:[%s104_s20] sm:$0xf] }
  0x19   : > { %113 = vst [vmem:[#allocation0] sm:$0xf] %v112_v2  ;;  %vm116_vm0 = vcmp.lt.s32.totalorder %v115_v3, 3  ;;  %vm125_vm1 = vcmp.ge.s32.totalorder %v118_v4, %v115_v3  ;;  %vm120_vm2 = vcmp.eq.s32.totalorder %v118_v4, %v115_v3  ;;  %vm139_vm4 = vcmp.eq.s32.totalorder %v115_v3, 0 }
  0x1a   : > { %vm126_vm3 = vmand %vm125_vm1, %vm116_vm0  ;;  %vm136_vm5 = vcmp.eq.s32.totalorder %v115_v3, %v118_v4  ;;  %v140_v12 = vsel %vm139_vm4, 1.0, %v339_v11  ;;  %vm147_vm6 = vcmp.eq.s32.totalorder %v115_v3, 1  ;;  %vm157_vm7 = vcmp.eq.s32.totalorder %v115_v3, 2 }
  0x1b   : > { %v141_v13 = vsel %vm136_vm5, %v140_v12, 0.0 }
  0x20   : > { %v121_v5 = vld [vmem:[#allocation0] sm:$0xff] }
  0x21   : > { %v122_v6 = vsel %vm120_vm2, %v121_v5, 0.0  ;;  %v127_v7 = vsel %vm126_vm3, %v121_v5, 0.0 }
  0x22   : > { %123 = vadd.xlane.f32.xlu0 %v122_v6 }
  0xab   : > { %v124_v8 = vpop.xlane.xlu0 %123 }
  0xac   : > { %313 = vrcp.f32 %v124_v8  ;;  %vm164_vm8 = vweird.f32 %v124_v8 }
  0xb9   : > { %v314_v9 = vpop.eup %313 }
  0xba   : > { %v129_v10 = vmul.f32 %v314_v9, %v127_v7 }
  0xbc   : > { %130 = vst [vmem:[#allocation4] sm:$0xff] %v129_v10 }
  0xc3   : > { %v143_v14 = vld [vmem:[#allocation4 + $0x1] ss:$0 sm:$0xff]  ;;  %v153_v17 = vld [vmem:[#allocation4 + $0x2] ss:$0 sm:$0xff] }
  0xc4   : > { %v144_v15 = vxor.u32 2147483648, %v143_v14  ;;  %v154_v19 = vxor.u32 2147483648, %v153_v17 }
  0xc6   : > { %v148_v16 = vmul.f32 %v144_v15, %v141_v13 }
  0xc8   : > { %149 = vadd.xlane.f32.xlu0 %v148_v16 }
 0x151   : > { %v150_v18 = vpop.xlane.xlu0 %149 }
 0x152   : > { %v151_v20 = vsel %vm147_vm6, %v150_v18, %v141_v13 }
 0x153   : > { %v158_v21 = vmul.f32 %v154_v19, %v151_v20 }
 0x155   : > { %159 = vadd.xlane.f32.xlu1 %v158_v21 }
 0x1de   : > { %v160_v22 = vpop.xlane.xlu1 %159 }
 0x1df   : > { %v161_v23 = vsel %vm157_vm7, %v160_v22, %v151_v20 }
 0x1e0   : > { %v163_v24 = vmul.f32 %v314_v9, %v161_v23 }
 0x1e2   : > { %v165_v25 = vsel %vm164_vm8, %v161_v23, %v163_v24 }
 0x1e3   : > { %166 = vst [vmem:[#allocation2] sm:$0xff] %v165_v25 }
 0x1ea   : > { %v171_v26 = vld [vmem:[#allocation2] sm:$0xf] }
 0x1eb   : > { %174 = vst [vmem:[%s108_s21] sm:$0xf] %v171_v26 }
 0x1f2   : > { %v200_v27 = vld [vmem:[%s108_s21] sm:$0xf] }
 0x1f3   : > { %201 = vst [vmem:[%s183_s25] sm:$0xf] %v200_v27 }
 0x1f4 PF: > { %s7_s8 = sadd.s32 1, %s337_s8   ;;  %s399_s6 = smov %s333_s7 }
 0x1f5   : > { %p4_p5 = scmp.ge.s32.totalorder %s7_s8, 4   ;;  %s400_s7 = smov %s402_s10 }
 0x1f7   :  { %6 = sbr.rel (!%p4_p5) target bundleno = 2 (0x2), region = 112 }

// kernel: custom-call.22
= control target key start
LH: loop header
LB: loop body
LE: loop exit
PB: predicated region body
PF: predicated region fallthrough
CT: control target
= control target key end

     0   :  { %s1740_s30 = smov 0   ;;  %s1742_s10 = smov 0   ;;  %s2066_s0 = inlined_call_operand.vmem [shape: f32[2,2,2], index: 0, kind: input, shape index: {}]   ;;  %s2067_s1 = inlined_call_operand.vmem [shape: f32[2,2,2], index: 1, kind: input, shape index: {}]   ;;  %s2068_s2 = inlined_call_operand.vmem [shape: f32[2,2,2], index: 2, kind: input, shape index: {}]   ;;  %s2069_s3 = inlined_call_operand.vmem [shape: f32[2,2,2], index: 3, kind: input, shape index: {}]   ;;  %s2070_s4 = inlined_call_operand.vmem [shape: f32[2,2], index: 4, kind: output, shape index: {0}]   ;;  %s2071_s5 = inlined_call_operand.vmem [shape: f32[2,2], index: 5, kind: output, shape index: {1}]   ;;  %s2072_s6 = inlined_call_operand.vmem [shape: f32[2,2,2], index: 6, kind: output, shape index: {2}]   ;;  %s2073_s7 = inlined_call_operand.vmem [shape: f32[2,2,2], index: 7, kind: output, shape index: {3}]   ;;  %s2074_s8 = inlined_call_operand.vmem [shape: f32[2,2,2], index: 8, kind: output, shape index: {4}]   ;;  %s2075_s9 = inlined_call_operand.vmem [shape: f32[2,2,2], index: 9, kind: output, shape index: {5}]  }
   0x1   :  { %s1744_s11 = smov 0  }
   0x2 LB: > { %s1756_s12 = sadd.s32 4294967295, %s1677_s11   ;;  %s1759_s13 = sadd.s32 1, %s1677_s11   ;;  %s1677_s11 = sphi %s1744_s11, %s2094_s11   ;;  %s1673_s10 = sphi %s1742_s10, %s2093_s10   ;;  %s1669_s30 = sphi %s1740_s30, %s2092_s30  }
   0x3   : > { %s20_s14 = sshrl.u32 %s1677_s11, 3  ;;  %s21_s15 = sshrl.u32 %s1759_s13, 3 }
   0x4   : > { %s22_s16 = ssub.s32 %s20_s14, %s21_s15  ;;  %s25_s17 = sadd.s32 1, %s1673_s10 }
   0x5   : > { %p23_p0 = scmp.eq.s32.totalorder %s22_s16, 0  ;;  %p35_p1 = scmp.ne.s32.totalorder %s1673_s10, %s1669_s30 }
   0x6   : > { %p36_p2 = scmp.eq.s32.totalorder %s1756_s12, 1  ;;  %p1538_p4 = scmp.ge.s32.totalorder %s1677_s11, 2 }
   0x7   : > { %s1768_s18 = scalar_select %p23_p0, %s1673_s10, %s25_s17  }
   0x8   : > { %p1770_p3 = por %p36_p2, %p35_p1  ;;  %86 = sbr.rel (%p1538_p4) target bundleno = 18 (0x12), region = 16 }
   0x9   : > { %2076 = sst [smem:[#allocation33_spill]] %s1768_s18  ;;  %s88_s20 = sand.u32 (!%p1538_p4), 1, %s1677_s11  }
   0xa   : > { %s1540_s21 = sshll.u32 (!%p1538_p4), %s1677_s11, 1  ;;  %s1539_s22 = sshll.u32 (!%p1538_p4), %s88_s20, 1 }
   0xb   : > { %s92_s25 = scalar_lea.vmem (!%p1538_p4), %s2066_s0, %s1540_s21  ;;  %s90_s26 = scalar_lea.vmem (!%p1538_p4), [#allocation1], %s1539_s22 }
   0xc   : > { %s131_s29 = scalar_lea.vmem (!%p1538_p4), %s2067_s1, %s1540_s21  ;;  %s170_s16 = scalar_lea.vmem (!%p1538_p4), %s2068_s2, %s1540_s21 }
   0xd   : > { %v109_v0 = vld [vmem:[%s92_s25] sm:$0x3]  ;;  %s129_s17 = scalar_lea.vmem [#allocation3], %s1539_s22  ;;  %s209_s23 = scalar_lea.vmem %s2069_s3, %s1540_s21 }
   0xe   : > { %110 = vst [vmem:[%s90_s26] sm:$0x3] %v109_v0  ;;  %v148_v1 = vld [vmem:[%s131_s29] sm:$0x3]  ;;  %s168_s24 = scalar_lea.vmem [#allocation5], %s1539_s22  ;;  %s207_s25 = scalar_lea.vmem [#allocation7], %s1539_s22 }
   0xf   : > { %149 = vst [vmem:[%s129_s17] sm:$0x3] %v148_v1  ;;  %v187_v2 = vld [vmem:[%s170_s16] sm:$0x3] }
  0x10   : > { %188 = vst [vmem:[%s168_s24] sm:$0x3] %v187_v2  ;;  %v226_v3 = vld [vmem:[%s209_s23] sm:$0x3] }
  0x11   : > { %227 = vst [vmem:[%s207_s25] sm:$0x3] %v226_v3 }
  0x12 PF: > { %p1547_p5 = scmp.ge.s32.totalorder %s1677_s11, 1  ;;  %p244_p6 = scmp.lt.s32.totalorder %s1677_s11, 3 }
  0x14   : > { %p245_p7 = pnand %p1547_p5, %p244_p6 }
  0x16   : > { %248 = sbr.rel (%p245_p7) target bundleno = 994 (0x3e2), region = 140 }
  0x1b   : > { %s267_s26 = sand.u32 1, %s1756_s12   ;;  %s285_s27 = sand.u32 1, %s1669_s30   ;;  %v349_v4 = vlaneseq  ;;  %v1687_v5 = vmov 0.0  }
  0x1c   : > { %s1793_s28 = sshll.u32 %s267_s26, 1  ;;  %s1795_s18 = sshll.u32 %s285_s27, 1  ;;  %344 = vst [vmem:[#allocation12] sm:$0xff] %v1687_v5  ;;  %345 = vst [vmem:[#allocation14] sm:$0xff] %v1687_v5 }
  0x1d   : > { %346 = vst [vmem:[#allocation16] sm:$0xff] %v1687_v5  ;;  %347 = vst [vmem:[#allocation18] sm:$0xff] %v1687_v5  ;;  %v1797_v6 = vand.u32 127, %v349_v4  ;;  %v1799_v7 = vshrl.u32 %v349_v4, 7  ;;  %s269_s11 = scalar_lea.vmem [#allocation1], %s1793_s28  ;;  %s273_s30 = scalar_lea.vmem [#allocation3], %s1793_s28 }
  0x1e   : > { %v313_v8 = vld [vmem:[%s269_s11] sm:$0x3]  ;;  %v318_v9 = vld [vmem:[%s273_s30] sm:$0x3]  ;;  %s277_s21 = scalar_lea.vmem [#allocation5], %s1793_s28  ;;  %s281_s22 = scalar_lea.vmem [#allocation7], %s1793_s28 }
  0x1f   : > { %314 = vst [vmem:[#allocation0] sm:$0x3] %v313_v8  ;;  %319 = vst [vmem:[#allocation2] sm:$0x3] %v318_v9  ;;  %v323_v10 = vld [vmem:[%s277_s21] sm:$0x3]  ;;  %v351_v6 = vmov %v1797_v6  ;;  %v354_v7 = vmov %v1799_v7 }
  0x20   : > { %v328_v11 = vld [vmem:[%s281_s22] sm:$0x3]  ;;  %324 = vst [vmem:[#allocation4] sm:$0x3] %v323_v10  ;;  %v364_v6 = vmov %v1797_v6  ;;  %v367_v7 = vmov %v1799_v7  ;;  %s332_s29 = smov [#allocation20]  ;;  %s335_s14 = smov [#allocation21]  ;;  %vm358_vm0 = vcmp.eq.s32.totalorder %v354_v7, %v351_v6 }
  0x21   : > { %329 = vst [vmem:[#allocation6] sm:$0x3] %v328_v11  ;;  %vm371_vm1 = vcmp.eq.s32.totalorder %v367_v7, %v364_v6  ;;  %s348_s15 = smov [#allocation12]  ;;  %s361_s16 = smov [#allocation18]  ;;  %vm1427_vm2 = vcmp.lt.s32.totalorder %v1797_v6, 2  ;;  %v1419_v6 = vmov %v1797_v6  ;;  %v1422_v7 = vmov %v1799_v7 }
  0x22   : > { %s338_s17 = smov [#allocation22]  ;;  %s341_s20 = smov [#allocation23]  ;;  %vm1432_vm3 = vcmp.eq.s32.totalorder %v1422_v7, %v1419_v6  ;;  %v1470_v6 = vmov %v1797_v6  ;;  %v1439_v7 = vmov %v1799_v7 }
  0x23   : > { %v355_v12 = vld [vmem:[%s348_s15] sm:$0x3]  ;;  %s1423_s30 = smov [#allocation20]  ;;  %s1440_s21 = smov [#allocation21]  ;;  %v1436_v6 = vmov %v1797_v6  ;;  %v1473_v7 = vmov %v1799_v7 }
  0x24   : > { %v368_v13 = vld [vmem:[%s361_s16] sm:$0x3]  ;;  %v359_v16 = vsel %vm358_vm0, 1.0, %v355_v12  ;;  %s1457_s22 = smov [#allocation22]  ;;  %v1453_v6 = vmov %v1797_v6  ;;  %v1456_v7 = vmov %v1799_v7  ;;  %vm1483_vm4 = vcmp.eq.s32.totalorder %v1473_v7, %v1470_v6 }
  0x25   : > { %v372_v17 = vsel %vm371_vm1, 1.0, %v368_v13  ;;  %360 = vst [vmem:[%s348_s15] sm:$0x3] %v359_v16 }
  0x26   : > { %v333_v14 = vld [vmem:[#allocation0] sm:$0xff]  ;;  %v336_v15 = vld [vmem:[#allocation2] sm:$0xff]  ;;  %373 = vst [vmem:[%s361_s16] sm:$0x3] %v372_v17 }
  0x27   : > { %334 = vst [vmem:[%s332_s29] sm:$0xff] %v333_v14  ;;  %337 = vst [vmem:[%s335_s14] sm:$0xff] %v336_v15  ;;  %v339_v18 = vld [vmem:[#allocation4] sm:$0xff]  ;;  %s1474_s29 = smov [#allocation23] }
  0x28   : > { %v342_v19 = vld [vmem:[#allocation6] sm:$0xff]  ;;  %340 = vst [vmem:[%s338_s17] sm:$0xff] %v339_v18 }
  0x29   : > { %343 = vst [vmem:[%s341_s20] sm:$0xff] %v342_v19 }
  0x2e   : > { %v1429_v20 = vld [vmem:[%s1423_s30] sm:$0x3] }
  0x2f   : > { %v1446_v21 = vld [vmem:[%s1440_s21] sm:$0x3]  ;;  %v1430_v22 = vsel %vm1427_vm2, %v1429_v20, 0.0 }
  0x30   : > { %v1447_v23 = vsel %vm1427_vm2, %v1446_v21, 0.0  ;;  %v1463_v24 = vld [vmem:[%s1457_s22] sm:$0x3]  ;;  %v1431_v26 = vmul.f32 %v1430_v22, %v1430_v22 }
  0x31   : > { %v1480_v25 = vld [vmem:[%s1474_s29] sm:$0x3]  ;;  %v1448_v27 = vmul.f32 %v1447_v23, %v1447_v23  ;;  %v1464_v28 = vsel %vm1427_vm2, %v1463_v24, 0.0 }
  0x32   : > { %v1481_v29 = vsel %vm1427_vm2, %v1480_v25, 0.0  ;;  %v1465_v30 = vmul.f32 %v1464_v28, %v1464_v28  ;;  %v1433_v33 = vsel %vm1432_vm3, 0.0, %v1431_v26 }
  0x33   : > { %v1450_v31 = vadd.f32 %v1448_v27, %v1431_v26  ;;  %v1482_v32 = vmul.f32 %v1481_v29, %v1481_v29  ;;  %v1449_v34 = vadd.f32 %v1448_v27, %v1433_v33 }
  0x35   : > { %v1467_v35 = vadd.f32 %v1465_v30, %v1450_v31  ;;  %v1466_v36 = vadd.f32 %v1465_v30, %v1449_v34  ;;  %v1484_v37 = vsel %vm1483_vm4, 0.0, %v1482_v32 }
  0x37   : > { %v1486_v38 = vadd.f32 %v1482_v32, %v1467_v35  ;;  %v1485_v39 = vadd.f32 %v1484_v37, %v1466_v36 }
  0x39   : > { %1487 = vadd.xlane.f32.xlu0 %v1486_v38 }
  0x3d   : > { %1495 = vadd.xlane.f32.xlu0 %v1485_v39 }
  0xc2   : > { %v1488_v40 = vpop.xlane.xlu0 %1487 }
  0xc3   : > { %v1489_v41 = vrot.slane %v1488_v40, 4 }
  0xc5   : > { %v1490_v42 = vadd.f32 %v1489_v41, %v1488_v40 }
  0xc6   : > { %v1496_v43 = vpop.xlane.xlu0 %1495 }
  0xc7   : > { %v1491_v44 = vrot.slane %v1490_v42, 2  ;;  %v1497_v45 = vrot.slane %v1496_v43, 4 }
  0xc9   : > { %v1498_v46 = vadd.f32 %v1497_v45, %v1496_v43  ;;  %v1492_v47 = vadd.f32 %v1491_v44, %v1490_v42 }
  0xcb   : > { %v1499_v48 = vrot.slane %v1498_v46, 2  ;;  %v1493_v50 = vrot.slane %v1492_v47, 1 }
  0xcd   : > { %v1500_v49 = vadd.f32 %v1499_v48, %v1498_v46  ;;  %v1494_v53 = vadd.f32 %v1493_v50, %v1492_v47 }
  0xcf   : > { %v1501_v51 = vrot.slane %v1500_v49, 1 }
  0xd1   : > { %v1502_v52 = vadd.f32 %v1501_v51, %v1500_v49 }
  0xd3   : > { %1588 = vpush %v1502_v52 }
  0xd4   : > { %1590 = vpush %v1494_v53 }
 0x104   : > { %s1589_s14 = spop %1588 }
 0x105   : > { %s1591_s15 = spop %1590 }
 0x106   : > { %s1505_s16 = smul.f32 1e-10, %s1591_s15 }
 0x108   : > { %p1506_p8 = scmp.le.f32.partialorder %s1589_s14, %s1505_s16 }
 0x109   : > { %s1833_s17 = smov (!%p1506_p8), 0  }
 0x10a   : > { %1509 = sbr.rel (%p1506_p8) target bundleno = 948 (0x3b4), region = 467 }
 0x10f LB: >> { %s1838_s20 = smov 0   ;;  %s1681_s17 = sphi %s1833_s17, %s2078_s17  }
 0x110 LB: >>> { %s478_s30 = smov [#allocation20]  ;;  %v482_v6 = vmov %v1797_v6  ;;  %v485_v7 = vmov %v1799_v7  ;;  %s498_s21 = smov [#allocation21]  ;;  %vm801_vm14 = vcmp.eq.s32.totalorder %v1799_v7, 0  ;;  %vm813_vm15 = vcmp.eq.s32.totalorder %v1799_v7, 1  ;;  %s1685_s20 = sphi %s1838_s20, %s477_s20  }
 0x111   : >>> { %v502_v6 = vmov %v1797_v6  ;;  %v505_v7 = vmov %v1799_v7  ;;  %v486_v54 = vld [vmem:[%s478_s30] sm:$0x3]  ;;  %vm489_vm5 = vcmp.eq.s32.totalorder %v485_v7, %v482_v6  ;;  %s518_s22 = smov [#allocation23]  ;;  %s479_s29 = smov [#allocation24] }
 0x112   : >>> { %vm509_vm6 = vcmp.eq.s32.totalorder %v505_v7, %v502_v6  ;;  %v522_v6 = vmov %v1797_v6  ;;  %v525_v7 = vmov %v1799_v7  ;;  %v490_v55 = vsel %vm489_vm5, %v486_v54, 0.0  ;;  %v506_v56 = vld [vmem:[%s498_s21] sm:$0x3]  ;;  %s499_s14 = smov [#allocation25]  ;;  %s519_s15 = smov [#allocation26] }
 0x113   : >>> { %vm529_vm7 = vcmp.eq.s32.totalorder %v525_v7, %v522_v6  ;;  %v491_v57 = vrot.slane %v490_v55, 4  ;;  %v510_v58 = vsel %vm509_vm6, %v506_v56, 0.0  ;;  %v526_v59 = vld [vmem:[%s518_s22] sm:$0x3]  ;;  %s542_s16 = smov [#allocation25]  ;;  %s540_s30 = smov [#allocation24]  ;;  %v591_v6 = vmov %v1797_v6 }
 0x114   : >>> { %v511_v60 = vrot.slane %v510_v58, 4  ;;  %v530_v61 = vsel %vm529_vm7, %v526_v59, 0.0  ;;  %s544_s21 = smov [#allocation26]  ;;  %s579_s22 = smov [#allocation27]  ;;  %v594_v7 = vmov %v1799_v7  ;;  %v606_v6 = vmov %v1797_v6 }
 0x115   : >>> { %v492_v62 = vadd.f32 %v491_v57, %v490_v55  ;;  %v531_v63 = vrot.slane %v530_v61, 4  ;;  %v609_v7 = vmov %v1799_v7  ;;  %vm596_vm12 = vcmp.eq.s32.totalorder %v594_v7, %v591_v6  ;;  %s1857_s24 = smov [#allocation22]  ;;  %s1863_s23 = smov [#allocation14] }
 0x116   : >>> { %v512_v0 = vadd.f32 %v511_v60, %v510_v58  ;;  %vm611_vm13 = vcmp.eq.s32.totalorder %v609_v7, %v606_v6  ;;  %s841_s11 = smov [#allocation31]  ;;  %s1869_s27 = smov [#allocation18]  ;;  %v627_v55 = vld [vmem:[%s1857_s24] sm:$0x3]  ;;  %v704_v6 = vmov %v1797_v6  ;;  %v707_v7 = vmov %v1799_v7 }
 0x117   : >>> { %v493_v1 = vrot.slane %v492_v62, 2  ;;  %v532_v2 = vadd.f32 %v531_v63, %v530_v61  ;;  %v850_v58 = vld [vmem:[%s1863_s23] sm:$0x3]  ;;  %s619_s26 = smov [#allocation32]  ;;  %s843_s25 = smov [#allocation32]  ;;  %v718_v6 = vmov %v1797_v6  ;;  %v721_v7 = vmov %v1799_v7 }
 0x118   : >>> { %v513_v3 = vrot.slane %v512_v0, 2  ;;  %v852_v61 = vld [vmem:[%s1869_s27] sm:$0x3]  ;;  %vm711_vm0 = vcmp.eq.s32.totalorder %v707_v7, %v704_v6  ;;  %v677_v6 = vmov %v1797_v6  ;;  %v680_v7 = vmov %v1799_v7  ;;  %s477_s20 = sadd.s32 1, %s1685_s20  }
 0x119   : >>> { %v494_v4 = vadd.f32 %v493_v1, %v492_v62  ;;  %v533_v5 = vrot.slane %v532_v2, 2  ;;  %v691_v6 = vmov %v1797_v6  ;;  %v694_v7 = vmov %v1799_v7  ;;  %p474_p9 = scmp.ge.s32.totalorder %s477_s20, 3  }
 0x11a   : >>> { %v514_v8 = vadd.f32 %v513_v3, %v512_v0  ;;  %vm726_vm1 = vcmp.eq.s32.totalorder %v721_v7, %v718_v6  ;;  %vm685_vm3 = vcmp.eq.s32.totalorder %v680_v7, %v677_v6  ;;  %vm698_vm4 = vcmp.eq.s32.totalorder %v694_v7, %v691_v6 }
 0x11b   : >>> { %v495_v9 = vrot.slane %v494_v4, 1  ;;  %v534_v10 = vadd.f32 %v533_v5, %v532_v2  ;;  %vm740_vm5 = vcmp.eq.s32.totalorder %v1797_v6, 0  ;;  %vm744_vm6 = vcmp.eq.s32.totalorder %v1797_v6, 1 }
 0x11c   : >>> { %v515_v11 = vrot.slane %v514_v8, 1  ;;  %v378_v6 = vmov (%p474_p9), %v1797_v6  ;;  %v381_v7 = vmov (%p474_p9), %v1799_v7 }
 0x11d   : >>> { %v496_v12 = vadd.f32 %v495_v9, %v494_v4  ;;  %v535_v13 = vrot.slane %v534_v10, 1  ;;  %v431_v6 = vmov (%p474_p9), %v1797_v6  ;;  %vm393_vm7 = vcmp.eq.s32.totalorder (%p474_p9), %v381_v7, %v378_v6 }
 0x11e   : >>> { %v516_v14 = vadd.f32 %v515_v11, %v514_v8  ;;  %v434_v7 = vmov (%p474_p9), %v1799_v7  ;;  %v397_v6 = vmov (%p474_p9), %v1797_v6 }
 0x11f   : >>> { %497 = vst [vmem:[%s479_s29] sm:$0x1] %v496_v12  ;;  %v536_v15 = vadd.f32 %v535_v13, %v534_v10  ;;  %s581_s29 = smov [#allocation28]  ;;  %v400_v7 = vmov (%p474_p9), %v1799_v7  ;;  %v414_v6 = vmov (%p474_p9), %v1797_v6 }
 0x120   : >>> { %517 = vst [vmem:[%s499_s14] sm:$0x1] %v516_v14  ;;  %s538_s14 = smov [#allocation29]  ;;  %v417_v7 = vmov (%p474_p9), %v1799_v7 }
 0x121   : >>> { %537 = vst [vmem:[%s519_s15] sm:$0x1] %v536_v15  ;;  %s539_s15 = smov [#allocation30]  ;;  %s583_s14 = smov %s538_s14 }
 0x122   : >>> { %s585_s15 = smov %s539_s15 }
 0x126   : >>> { %v541_v18 = vld [vmem:[%s540_s30] sm:$0xff]  ;;  %s602_s30 = smov [#allocation30] }
 0x127   : >>> { %v543_v16 = vld [vmem:[%s542_s16] sm:$0xff]  ;;  %v564_v33 = vand.u32 2147483647, %v541_v18  ;;  %s587_s16 = smov [#allocation29] }
 0x128   : >>> { %v547_v17 = vmul.f32 2.0, %v543_v16  ;;  %v545_v19 = vld [vmem:[%s544_s21] sm:$0xff]  ;;  %v565_v36 = vand.u32 2147483647, %v543_v16  ;;  %s600_s21 = smov [#allocation31] }
 0x129   : >>> { %v546_v20 = vsub.f32 %v545_v19, %v541_v18  ;;  %v566_v34 = vand.u32 2147483647, %v545_v19 }
 0x12a   : >>> { %1639 = vrcp.f32 %v547_v17 }
 0x12b   : >>> { %v567_v35 = vmin.f32 %v564_v33, %v566_v34 }
 0x12d   : >>> { %v568_v37 = vmul.f32 1.1920929e-08, %v567_v35 }
 0x12f   : >>> { %vm569_vm11 = vcmp.le.f32.partialorder %v565_v36, %v568_v37 }
 0x137   : >>> { %v1640_v21 = vpop.eup %1639 }
 0x138   : >>> { %v549_v22 = vmul.f32 %v1640_v21, %v546_v20 }
 0x13a   : >>> { %v551_v23 = vmul.f32 %v549_v22, %v549_v22  ;;  %vm550_vm10 = vcmp.ge.f32.partialorder %v549_v22, 0.0 }
 0x13c   : >>> { %v552_v24 = vadd.f32 1.0, %v551_v23 }
 0x13e   : >>> { %1641 = vrsqrt.f32 %v552_v24  ;;  %vm555_vm8 = vcmp.eq.f32.partialorder %v552_v24, inf  ;;  %v558_v26 = vand.u32 2147483648, %v552_v24  ;;  %vm557_vm9 = vcmp.eq.f32.partialorder %v552_v24, 0.0 }
 0x14b   : >>> { %v1642_v25 = vpop.eup %1641 }
 0x14c   : >>> { %v554_v27 = vmul.f32 %v1642_v25, %v552_v24 }
 0x14e   : >>> { %v556_v28 = vsel %vm555_vm8, %v552_v24, %v554_v27  ;;  %vm446_vm8 = vcmp.eq.s32.totalorder (%p474_p9), %v434_v7, %v431_v6 }
 0x14f   : >>> { %v559_v29 = vsel %vm557_vm9, %v558_v26, %v556_v28 }
 0x150   : >>> { %v560_v30 = vxor.u32 2147483648, %v559_v29 }
 0x152   : >>> { %v561_v31 = vsel %vm550_vm10, %v559_v29, %v560_v30 }
 0x153   : >>> { %v562_v32 = vadd.f32 %v561_v31, %v549_v22 }
 0x155   : >>> { %1643 = vrcp.f32 %v562_v32 }
 0x162   : >>> { %v1644_v38 = vpop.eup %1643 }
 0x163   : >>> { %v570_v39 = vsel %vm569_vm11, 0.0, %v1644_v38 }
 0x164   : >>> { %v571_v40 = vmul.f32 %v570_v39, %v570_v39  ;;  %v575_v41 = vmul.f32 %v570_v39, %v543_v16 }
 0x166   : >>> { %v572_v42 = vadd.f32 1.0, %v571_v40  ;;  %v576_v43 = vsub.f32 %v541_v18, %v575_v41  ;;  %v578_v44 = vadd.f32 %v575_v41, %v545_v19 }
 0x168   : >>> { %1645 = vrsqrt.f32 %v572_v42  ;;  %580 = vst [vmem:[%s579_s22] sm:$0xff] %v576_v43  ;;  %582 = vst [vmem:[%s581_s29] sm:$0xff] %v578_v44  ;;  %s617_s22 = smov [#allocation31]  ;;  %s1853_s29 = smov [#allocation20] }
 0x169   : >>> { %v625_v53 = vld [vmem:[%s1853_s29] sm:$0x3] }
 0x175   : >>> { %v1646_v45 = vpop.eup %1645 }
 0x176   : >>> { %584 = vst [vmem:[%s583_s14] sm:$0xff] %v1646_v45  ;;  %v574_v46 = vmul.f32 %v1646_v45, %v570_v39  ;;  %s615_s14 = smov [#allocation32] }
 0x178   : >>> { %586 = vst [vmem:[%s585_s15] sm:$0xff] %v574_v46  ;;  %s1855_s15 = smov [#allocation21] }
 0x179   : >>> { %v626_v54 = vld [vmem:[%s1855_s15] sm:$0x3] }
 0x17d   : >>> { %v588_v47 = vld [vmem:[%s587_s16] ss:$0 sm:$0xff]  ;;  %s1859_s16 = smov [#allocation23] }
 0x17e   : >>> { %v597_v48 = vsel %vm596_vm12, %v588_v47, 0.0  ;;  %v628_v56 = vld [vmem:[%s1859_s16] sm:$0x3] }
 0x17f   : >>> { %598 = vadd.xlane.f32.xlu0 %v597_v48  ;;  %v603_v49 = vld [vmem:[%s602_s30] ss:$0 sm:$0xff]  ;;  %s1861_s30 = smov [#allocation12] }
 0x180   : >>> { %v612_v50 = vsel %vm611_vm13, %v603_v49, 0.0  ;;  %v849_v57 = vld [vmem:[%s1861_s30] sm:$0x3] }
 0x183   : >>> { %613 = vadd.xlane.f32.xlu0 %v612_v50 }
 0x208   : >>> { %v599_v51 = vpop.xlane.xlu0 %598 }
 0x209   : >>> { %601 = vst [vmem:[%s600_s21] sm:$0xff] %v599_v51  ;;  %s1865_s21 = smov [#allocation16] }
 0x20a   : >>> { %v851_v59 = vld [vmem:[%s1865_s21] sm:$0x3] }
 0x20c   : >>> { %v614_v52 = vpop.xlane.xlu0 %613 }
 0x20d   : >>> { %616 = vst [vmem:[%s615_s14] sm:$0xff] %v614_v52  ;;  %s1889_s14 = smov [#allocation23] }
 0x210   : >>> { %v618_v60 = vld [vmem:[%s617_s22] sm:$0xff]  ;;  %s1887_s22 = smov [#allocation22] }
 0x211   : >>> { %v842_v62 = vld [vmem:[%s841_s11] sm:$0xff]  ;;  %v629_v63 = vmul.f32 %v625_v53, %v618_v60  ;;  %v632_v0 = vmul.f32 %v626_v54, %v618_v60  ;;  %v636_v1 = vmul.f32 %v627_v55, %v618_v60  ;;  %v639_v2 = vmul.f32 %v628_v56, %v618_v60  ;;  %s1885_s11 = smov [#allocation12] }
 0x212   : >>> { %v853_v3 = vmul.f32 %v849_v57, %v842_v62  ;;  %v856_v4 = vmul.f32 %v850_v58, %v842_v62  ;;  %v860_v5 = vmul.f32 %v851_v59, %v842_v62  ;;  %v863_v8 = vmul.f32 %v852_v61, %v842_v62 }
 0x214   : >>> { %v620_v9 = vld [vmem:[%s619_s26] sm:$0xff]  ;;  %s647_s26 = smov [#allocation30] }
 0x215   : >>> { %v844_v10 = vld [vmem:[%s843_s25] sm:$0xff]  ;;  %v630_v11 = vmul.f32 %v627_v55, %v620_v9  ;;  %v633_v12 = vmul.f32 %v628_v56, %v620_v9  ;;  %v635_v13 = vmul.f32 %v625_v53, %v620_v9  ;;  %v638_v14 = vmul.f32 %v626_v54, %v620_v9  ;;  %s645_s25 = smov [#allocation29] }
 0x216   : >>> { %v854_v15 = vmul.f32 %v851_v59, %v844_v10  ;;  %v857_v16 = vmul.f32 %v852_v61, %v844_v10  ;;  %v859_v17 = vmul.f32 %v849_v57, %v844_v10  ;;  %v862_v18 = vmul.f32 %v850_v58, %v844_v10  ;;  %v646_v27 = vld [vmem:[%s645_s25] ss:$0 sm:$0xff]  ;;  %s674_s25 = smov [#allocation27] }
 0x217   : >>> { %v631_v19 = vsub.f32 %v629_v63, %v630_v11  ;;  %v634_v20 = vsub.f32 %v632_v0, %v633_v12  ;;  %v637_v21 = vadd.f32 %v636_v1, %v635_v13  ;;  %v640_v22 = vadd.f32 %v639_v2, %v638_v14  ;;  %v648_v28 = vld [vmem:[%s647_s26] ss:$0 sm:$0xff]  ;;  %s673_s26 = smov [#allocation20] }
 0x218   : >>> { %v855_v23 = vsub.f32 %v853_v3, %v854_v15  ;;  %v858_v24 = vsub.f32 %v856_v4, %v857_v16  ;;  %v861_v25 = vadd.f32 %v860_v5, %v859_v17  ;;  %v864_v26 = vadd.f32 %v863_v8, %v862_v18  ;;  %v681_v63 = vld [vmem:[%s674_s25] ss:$0 sm:$0xff]  ;;  %s917_s25 = sadd.s32 (%p474_p9), 1, %s1681_s17  }
 0x219   : >>> { %642 = vst [vmem:[%s1855_s15] sm:$0x3] %v634_v20  ;;  %644 = vst [vmem:[%s1859_s16] sm:$0x3] %v640_v22  ;;  %s1891_s15 = smov [#allocation20]  ;;  %s715_s16 = smov [#allocation28] }
 0x21a   : >>> { %641 = vst [vmem:[%s1853_s29] sm:$0x3] %v631_v19  ;;  %643 = vst [vmem:[%s1857_s24] sm:$0x3] %v637_v21  ;;  %s1893_s24 = smov [#allocation16]  ;;  %s1901_s29 = smov [#allocation21]  ;;  %v722_v59 = vld [vmem:[%s715_s16] ss:$0 sm:$0xff] }
 0x21b   : >>> { %865 = vst [vmem:[%s1861_s30] sm:$0x3] %v855_v23  ;;  %866 = vst [vmem:[%s1863_s23] sm:$0x3] %v858_v24  ;;  %s1895_s23 = smov [#allocation14]  ;;  %s701_s30 = smov [#allocation22] }
 0x21c   : >>> { %867 = vst [vmem:[%s1865_s21] sm:$0x3] %v861_v25  ;;  %868 = vst [vmem:[%s1869_s27] sm:$0x3] %v864_v26  ;;  %s1899_s27 = smov [#allocation18]  ;;  %s714_s21 = smov [#allocation23] }
 0x21d   : >>> { %s817_s16 = smov [#allocation21]  ;;  %p470_p10 = scmp.ge.s32.totalorder (%p474_p9), %s917_s25, 15 }
 0x21e   : >> { %s2078_s17 = smov (%p474_p9), %s917_s25 }
 0x220   : >>> { %v656_v30 = vld [vmem:[%s1889_s14] sm:$0x3] }
 0x221   : >>> { %v655_v29 = vld [vmem:[%s1887_s22] sm:$0x3]  ;;  %v664_v36 = vmul.f32 %v656_v30, %v648_v28  ;;  %v667_v42 = vmul.f32 %v656_v30, %v646_v27 }
 0x222   : >>> { %v653_v31 = vld [vmem:[%s1891_s15] sm:$0x3]  ;;  %v663_v35 = vmul.f32 %v655_v29, %v646_v27  ;;  %v666_v37 = vmul.f32 %v655_v29, %v648_v28 }
 0x223   : >>> { %v871_v32 = vld [vmem:[%s1885_s11] ss:$0 sm:$0xff]  ;;  %v1567_v34 = vld [vmem:[%s1885_s11 + $0x1] ss:$0 sm:$0xff]  ;;  %v657_v48 = vmul.f32 %v653_v31, %v646_v27  ;;  %v660_v49 = vmul.f32 %v653_v31, %v648_v28 }
 0x224   : >>> { %v1566_v33 = vld [vmem:[%s1885_s11 - $0x1] sm:$0x2]  ;;  %v1569_v40 = vld [vmem:[%s1893_s24 + $0x1] sm:$0x1]  ;;  %v665_v47 = vsub.f32 %v663_v35, %v664_v36  ;;  %v668_v53 = vadd.f32 %v667_v42, %v666_v37 }
 0x225   : >>> { %v878_v38 = vsel %vm801_vm14, %v871_v32, %v1566_v33  ;;  %v882_v39 = vld [vmem:[%s1893_s24] ss:$0 sm:$0xff]  ;;  %v890_v43 = vsel %vm813_vm15, %v1567_v34, %v1569_v40  ;;  %v1571_v45 = vld [vmem:[%s1895_s23 + $0x1] ss:$0 sm:$0xff] }
 0x226   : >>> { %v895_v41 = vld [vmem:[%s1895_s23] ss:$0 sm:$0xff]  ;;  %881 = vst [vmem:[%s1885_s11] sm:$0x3] %v878_v38  ;;  %892 = vst [vmem:[%s1893_s24] sm:$0x3] %v890_v43  ;;  %v1573_v51 = vld [vmem:[%s1899_s27 + $0x1] sm:$0x1] }
 0x227   : >>> { %v1570_v44 = vld [vmem:[%s1895_s23 - $0x1] sm:$0x2]  ;;  %1568 = vst [vmem:[%s1885_s11 + $0x1] sm:$0x1] %v882_v39  ;;  %v914_v54 = vsel %vm813_vm15, %v1571_v45, %v1573_v51  ;;  %671 = vst [vmem:[%s1887_s22] sm:$0x3] %v665_v47  ;;  %s688_s11 = smov [#allocation21] }
 0x228   : >>> { %v906_v46 = vld [vmem:[%s1899_s27] ss:$0 sm:$0xff]  ;;  %v902_v50 = vsel %vm801_vm14, %v895_v41, %v1570_v44  ;;  %672 = vst [vmem:[%s1889_s14] sm:$0x3] %v668_v53  ;;  %s1943_s22 = smov [#allocation22]  ;;  %s1688_s14 = smov 1  }
 0x229   : >>> { %v654_v52 = vld [vmem:[%s1901_s29] sm:$0x3]  ;;  %905 = vst [vmem:[%s1895_s23] sm:$0x3] %v902_v50  ;;  %916 = vst [vmem:[%s1899_s27] sm:$0x3] %v914_v54  ;;  %s730_s24 = smov [#allocation21]  ;;  %s1946_s27 = smov [#allocation23] }
 0x22a   : >>> { %v658_v55 = vmul.f32 %v654_v52, %v648_v28  ;;  %v661_v56 = vmul.f32 %v654_v52, %v646_v27  ;;  %1572 = vst [vmem:[%s1895_s23 + $0x1] sm:$0x1] %v906_v46  ;;  %s1689_s23 = smov 127  }
 0x22c   : >>> { %v659_v57 = vsub.f32 %v657_v48, %v658_v55  ;;  %v662_v58 = vadd.f32 %v661_v56, %v660_v49 }
 0x22e   : >>> { %669 = vst [vmem:[%s1891_s15] sm:$0x3] %v659_v57  ;;  %670 = vst [vmem:[%s1901_s29] sm:$0x3] %v662_v58  ;;  %v708_v60 = vld [vmem:[%s701_s30] sm:$0x3]  ;;  %s729_s15 = smov [#allocation20]  ;;  %s793_s29 = smov [#allocation20] }
 0x22f   : >>> { %v712_v61 = vsel %vm711_vm0, 0.0, %v708_v60  ;;  %v723_v62 = vld [vmem:[%s714_s21] sm:$0x3] }
 0x230   : >>> { %713 = vst [vmem:[%s701_s30] sm:$0x3] %v712_v61  ;;  %v727_v0 = vsel %vm726_vm1, %v722_v59, %v723_v62  ;;  %s794_s30 = smov [#allocation22] }
 0x231   : >>> { %728 = vst [vmem:[%s714_s21] sm:$0x3] %v727_v0  ;;  %s818_s21 = smov [#allocation23] }
 0x235   : >>> { %v682_v1 = vld [vmem:[%s673_s26] sm:$0x3] }
 0x236   : >>> { %v695_v2 = vld [vmem:[%s688_s11] sm:$0x3]  ;;  %v686_v3 = vsel %vm685_vm3, %v681_v63, %v682_v1 }
 0x237   : >>> { %v699_v4 = vsel %vm698_vm4, 0.0, %v695_v2  ;;  %687 = vst [vmem:[%s673_s26] sm:$0x3] %v686_v3  ;;  %v767_v5 = vld [vmem:[%s1943_s22] sm:$0x3]  ;;  %s382_s26 = smov (%p474_p9), [#allocation20] }
 0x238   : >>> { %700 = vst [vmem:[%s688_s11] sm:$0x3] %v699_v4  ;;  %768 = vrot.lane.b32.xlu0 %v767_v5, %s1688_s14  ;;  %v763_v11 = vld [vmem:[%s1946_s27] sm:$0x3]  ;;  %s401_s11 = smov (%p474_p9), [#allocation21] }
 0x239   : >>> { %v784_v12 = vld [vmem:[%s1946_s27] sm:$0x3] }
 0x23a   : >>> { %v766_v30 = vld [vmem:[%s1943_s22] sm:$0x3] }
 0x23e   : >>> { %v735_v8 = vld [vmem:[%s729_s15] sm:$0x3] }
 0x23f   : >>> { %736 = vrot.lane.b32.xlu1 %v735_v8, %s1688_s14  ;;  %v731_v9 = vld [vmem:[%s730_s24] sm:$0x3] }
 0x240   : >>> { %v752_v10 = vld [vmem:[%s730_s24] sm:$0x3] }
 0x241   : >>> { %v734_v18 = vld [vmem:[%s729_s15] sm:$0x3] }
 0x243   : >>> { %732 = vrot.lane.b32.xlu1 %v731_v9, %s1688_s14 }
 0x247   : >>> { %753 = vrot.lane.b32.xlu1 %v752_v10, %s1689_s23 }
 0x24b   : >>> { %764 = vrot.lane.b32.xlu1 %v763_v11, %s1688_s14  ;;  %s435_s14 = smov (%p474_p9), [#allocation23] }
 0x24f   : >>> { %785 = vrot.lane.b32.xlu1 %v784_v12, %s1689_s23 }
 0x2aa   : >>> { %v769_v20 = vpop.permute.xlu0 %768 }
 0x2ab   : >>> { %v773_v22 = vsel %vm740_vm5, %v767_v5, %v769_v20 }
 0x2b1   : >>> { %v737_v13 = vpop.permute.xlu1 %736 }
 0x2b2   : >>> { %v741_v14 = vsel %vm740_vm5, %v735_v8, %v737_v13 }
 0x2b5   : >>> { %v733_v15 = vpop.permute.xlu1 %732 }
 0x2b6   : >>> { %v745_v16 = vsel %vm744_vm6, %v733_v15, %v741_v14 }
 0x2b7   : >>> { %v751_v17 = vsel %vm1427_vm2, %v745_v16, 0.0 }
 0x2b8   : >>> { %759 = vst [vmem:[%s729_s15] sm:$0x3] %v751_v17 }
 0x2b9   : >>> { %v754_v19 = vpop.permute.xlu1 %753 }
 0x2ba   : >>> { %v758_v21 = vsel %vm744_vm6, %v734_v18, %v754_v19 }
 0x2bb   : >>> { %760 = vst [vmem:[%s730_s24] sm:$0x3] %v758_v21 }
 0x2bd   : >>> { %v765_v23 = vpop.permute.xlu1 %764 }
 0x2be   : >>> { %v777_v24 = vsel %vm744_vm6, %v765_v23, %v773_v22 }
 0x2bf   : >>> { %v795_v25 = vld [vmem:[%s793_s29] ss:$0 sm:$0xff]  ;;  %v1559_v27 = vld [vmem:[%s793_s29 + $0x1] ss:$0 sm:$0xff]  ;;  %v783_v29 = vsel %vm1427_vm2, %v777_v24, 0.0 }
 0x2c0   : >>> { %v1558_v26 = vld [vmem:[%s793_s29 - $0x1] sm:$0x2]  ;;  %791 = vst [vmem:[%s1943_s22] sm:$0x3] %v783_v29  ;;  %s418_s22 = smov (%p474_p9), [#allocation22] }
 0x2c1   : >>> { %v802_v28 = vsel %vm801_vm14, %v795_v25, %v1558_v26  ;;  %v786_v31 = vpop.permute.xlu1 %785 }
 0x2c2   : >>> { %805 = vst [vmem:[%s793_s29] sm:$0x3] %v802_v28  ;;  %v819_v32 = vld [vmem:[%s817_s16] ss:$0 sm:$0xff]  ;;  %v1563_v34 = vld [vmem:[%s817_s16 + $0x1] ss:$0 sm:$0xff]  ;;  %v790_v35 = vsel %vm744_vm6, %v766_v30, %v786_v31 }
 0x2c3   : >>> { %v1562_v33 = vld [vmem:[%s817_s16 - $0x1] sm:$0x2]  ;;  %792 = vst [vmem:[%s1946_s27] sm:$0x3] %v790_v35 }
 0x2c4   : >>> { %v826_v36 = vsel %vm801_vm14, %v819_v32, %v1562_v33 }
 0x2c5   : >>> { %829 = vst [vmem:[%s817_s16] sm:$0x3] %v826_v36 }
 0x2c7   : >>> { %v806_v37 = vld [vmem:[%s794_s30] ss:$0 sm:$0xff]  ;;  %v1561_v38 = vld [vmem:[%s794_s30 + $0x1] sm:$0x1] }
 0x2c8   : >>> { %1560 = vst [vmem:[%s793_s29 + $0x1] sm:$0x1] %v806_v37  ;;  %v814_v39 = vsel %vm813_vm15, %v1559_v27, %v1561_v38 }
 0x2c9   : >>> { %816 = vst [vmem:[%s794_s30] sm:$0x3] %v814_v39 }
 0x2ca   : >>> { %v830_v40 = vld [vmem:[%s818_s21] ss:$0 sm:$0xff]  ;;  %v1565_v41 = vld [vmem:[%s818_s21 + $0x1] sm:$0x1] }
 0x2cb   : >>> { %1564 = vst [vmem:[%s817_s16 + $0x1] sm:$0x1] %v830_v40  ;;  %v838_v42 = vsel %vm813_vm15, %v1563_v34, %v1565_v41 }
 0x2cc   : >>> { %840 = vst [vmem:[%s818_s21] sm:$0x3] %v838_v42  ;;  %476 = sbr.rel (!%p474_p9) target bundleno = 272 (0x110), region = 462 }
 0x2cf   : >> { %v388_v43 = vld [vmem:[%s382_s26] sm:$0x3] (%p474_p9) }
 0x2d0   : >> { %v389_v45 = vsel (%p474_p9), %vm1427_vm2, %v388_v43, 0.0  ;;  %v424_v47 = vld [vmem:[%s418_s22] sm:$0x3] (%p474_p9) }
 0x2d1   : >> { %v390_v49 = vmul.f32 %v389_v45, %v389_v45  ;;  %v425_v51 = vsel %vm1427_vm2, %v424_v47, 0.0 }
 0x2d2   : >> { %v407_v44 = vld [vmem:[%s401_s11] sm:$0x3]  ;;  %v426_v53 = vmul.f32 %v425_v51, %v425_v51 }
 0x2d3   : >> { %v408_v46 = vsel %vm1427_vm2, %v407_v44, 0.0  ;;  %v441_v48 = vld [vmem:[%s435_s14] sm:$0x3]  ;;  %v394_v56 = vsel %vm393_vm7, 0.0, %v390_v49 }
 0x2d4   : >> { %v409_v50 = vmul.f32 %v408_v46, %v408_v46  ;;  %v442_v52 = vsel %vm1427_vm2, %v441_v48, 0.0 }
 0x2d5   : >> { %v443_v55 = vmul.f32 %v442_v52, %v442_v52 }
 0x2d6   : >> { %v411_v54 = vadd.f32 %v409_v50, %v390_v49  ;;  %v410_v57 = vadd.f32 %v409_v50, %v394_v56 }
 0x2d7   : >> { %v447_v60 = vsel %vm446_vm8, 0.0, %v443_v55 }
 0x2d8   : >> { %v428_v58 = vadd.f32 %v426_v53, %v411_v54  ;;  %v427_v59 = vadd.f32 %v426_v53, %v410_v57 }
 0x2da   : >> { %v449_v61 = vadd.f32 %v443_v55, %v428_v58  ;;  %v448_v62 = vadd.f32 %v447_v60, %v427_v59 }
 0x2dc   : >> { %450 = vadd.xlane.f32.xlu0 %v449_v61 }
 0x2e0   : >> { %458 = vadd.xlane.f32.xlu0 %v448_v62 }
 0x365   : >> { %v451_v63 = vpop.xlane.xlu0 %450 }
 0x366   : >> { %v452_v0 = vrot.slane %v451_v63, 4 }
 0x368   : >> { %v453_v1 = vadd.f32 %v452_v0, %v451_v63 }
 0x369   : >> { %v459_v2 = vpop.xlane.xlu0 %458 }
 0x36a   : >> { %v454_v3 = vrot.slane %v453_v1, 2  ;;  %v460_v4 = vrot.slane %v459_v2, 4 }
 0x36c   : >> { %v461_v5 = vadd.f32 %v460_v4, %v459_v2  ;;  %v455_v8 = vadd.f32 %v454_v3, %v453_v1 }
 0x36e   : >> { %v462_v9 = vrot.slane %v461_v5, 2  ;;  %v456_v11 = vrot.slane %v455_v8, 1 }
 0x370   : >> { %v463_v10 = vadd.f32 %v462_v9, %v461_v5  ;;  %v457_v14 = vadd.f32 %v456_v11, %v455_v8 }
 0x372   : >> { %v464_v12 = vrot.slane %v463_v10, 1 }
 0x374   : >> { %v465_v13 = vadd.f32 %v464_v12, %v463_v10 }
 0x376   : >> { %1592 = vpush %v465_v13 }
 0x377   : >> { %1594 = vpush %v457_v14 }
 0x3a7   : >> { %s1593_s20 = spop %1592 }
 0x3a8   : >> { %s1595_s15 = spop %1594 }
 0x3a9   : >> { %s468_s24 = smul.f32 1e-10, %s1595_s15 }
 0x3ab   : >> { %p469_p11 = scmp.le.f32.partialorder %s1593_s20, %s468_s24 }
 0x3ad   : >> { %p471_p12 = por %p470_p10, %p469_p11 }
 0x3af   : > { %919 = sbr.rel (!%p471_p12) target bundleno = 271 (0x10f), region = 473 }
 0x3b4 PF: > { %s924_s23 = smov [#allocation20]  ;;  %v928_v6 = vmov %v1797_v6  ;;  %v931_v7 = vmov %v1799_v7  ;;  %v984_v15 = vld [vmem:[#allocation12] sm:$0x3]  ;;  %v992_v16 = vld [vmem:[#allocation14] sm:$0x3]  ;;  %s2079_s17 = scalar_lea.vmem [#allocation13], %s1793_s28 }
 0x3b5   : > { %v948_v6 = vmov %v1797_v6  ;;  %v951_v7 = vmov %v1799_v7  ;;  %v932_v17 = vld [vmem:[%s924_s23] sm:$0x3]  ;;  %vm935_vm9 = vcmp.eq.s32.totalorder %v931_v7, %v928_v6  ;;  %987 = vst [vmem:[%s2079_s17] sm:$0x3] %v984_v15  ;;  %s2080_s27 = scalar_lea.vmem [#allocation15], %s1793_s28  ;;  %s944_s29 = smov [#allocation23] }
 0x3b6   : > { %vm955_vm10 = vcmp.eq.s32.totalorder %v951_v7, %v948_v6  ;;  %995 = vst [vmem:[%s2080_s27] sm:$0x3] %v992_v16  ;;  %v1000_v18 = vld [vmem:[#allocation16] sm:$0x3]  ;;  %v936_v19 = vsel %vm935_vm9, %v932_v17, 0.0  ;;  %s2081_s16 = scalar_lea.vmem [#allocation17], %s1793_s28  ;;  %s2082_s30 = scalar_lea.vmem [#allocation19], %s1793_s28 }
 0x3b7   : > { %1003 = vst [vmem:[%s2081_s16] sm:$0x3] %v1000_v18  ;;  %v1008_v20 = vld [vmem:[#allocation18] sm:$0x3]  ;;  %v937_v21 = vrot.slane %v936_v19, 4  ;;  %v952_v22 = vld [vmem:[%s944_s29] sm:$0x3] }
 0x3b8   : > { %1011 = vst [vmem:[%s2082_s30] sm:$0x3] %v1008_v20  ;;  %v956_v23 = vsel %vm955_vm10, %v952_v22, 0.0  ;;  %s920_s21 = sand.u32 7, %s1756_s12   ;;  %s2083_s11 = scalar_lea.vmem [#allocation9], %s1795_s18 }
 0x3b9   : > { %v938_v24 = vadd.f32 %v937_v21, %v936_v19  ;;  %v957_v25 = vrot.slane %v956_v23, 4  ;;  %s921_s25 = scalar_lea.vmem [#allocation8], %s920_s21  ;;  %s923_s26 = scalar_lea.vmem [#allocation10], %s920_s21 }
 0x3ba   : > { %s925_s25 = smov %s921_s25  ;;  %s945_s26 = smov %s923_s26 }
 0x3bb   : > { %v939_v26 = vrot.slane %v938_v24, 2  ;;  %v958_v6 = vadd.f32 %v957_v25, %v956_v23  ;;  %s2084_s22 = scalar_lea.vmem [#allocation11], %s1795_s18  ;;  %s1039_s14 = sshrl.u32 (%p1770_p3), %s1756_s12, 3 }
 0x3bc   : > { %s2085_s20 = scalar_lea.vmem (%p1770_p3), [#allocation9], %s1795_s18  ;;  %s1580_s15 = sshll.u32 (%p1770_p3), %s1039_s14, 1 }
 0x3bd   : > { %v940_v7 = vadd.f32 %v939_v26, %v938_v24  ;;  %v959_v27 = vrot.slane %v958_v6, 2  ;;  %s1041_s17 = scalar_lea.vmem (%p1770_p3), %s2070_s4, %s1580_s15 }
 0x3bf   : > { %v941_v28 = vrot.slane %v940_v7, 1  ;;  %v960_v29 = vadd.f32 %v959_v27, %v958_v6 }
 0x3c1   : > { %v942_v30 = vadd.f32 %v941_v28, %v940_v7  ;;  %v961_v31 = vrot.slane %v960_v29, 1 }
 0x3c3   : > { %943 = vst [vmem:[%s925_s25] sm:$0x1] %v942_v30  ;;  %v962_v32 = vadd.f32 %v961_v31, %v960_v29 }
 0x3c5   : > { %963 = vst [vmem:[%s945_s26] sm:$0x1] %v962_v32 }
 0x3c9   : > { %1038 = sbr.rel (!%p1770_p3) target bundleno = 980 (0x3d4), region = 158 }
 0x3ca   : > { %v968_v33 = vld [vmem:[#allocation8] sm:$0x3] }
 0x3cb   : > { %971 = vst [vmem:[%s2083_s11] sm:$0x3] %v968_v33 }
 0x3cc   : > { %v976_v34 = vld [vmem:[#allocation10] sm:$0x3] }
 0x3cd   : > { %979 = vst [vmem:[%s2084_s22] sm:$0x3] %v976_v34 }
 0x3d2   : > { %v1058_v35 = vld [vmem:[%s2085_s20] sm:$0x3] }
 0x3d3   : > { %1059 = vst [vmem:[%s1041_s17] sm:$0x3] %v1058_v35 }
 0x3d4 PF: > { %1077 = sbr.rel (!%p1770_p3) target bundleno = 988 (0x3dc), region = 192  ;;  %s1078_s27 = sshrl.u32 (%p1770_p3), %s1756_s12, 3 }
 0x3d5   : > { %s2086_s29 = scalar_lea.vmem (%p1770_p3), [#allocation11], %s1795_s18  ;;  %s1581_s16 = sshll.u32 (%p1770_p3), %s1078_s27, 1 }
 0x3d6   : > { %s1080_s25 = scalar_lea.vmem (%p1770_p3), %s2071_s5, %s1581_s16 }
 0x3da   : > { %v1097_v36 = vld [vmem:[%s2086_s29] sm:$0x3] }
 0x3db   : > { %1098 = vst [vmem:[%s1080_s25] sm:$0x3] %v1097_v36 }
 0x3dc PF: > { %s1582_s26 = sshll.u32 %s1756_s12, 1  ;;  %s2087_s19 = scalar_lea.vmem [#allocation13], %s1793_s28 }
 0x3dd   : > { %v1132_v37 = vld [vmem:[%s2087_s19] sm:$0x3]  ;;  %s2088_s11 = scalar_lea.vmem [#allocation15], %s1793_s28  ;;  %s1115_s14 = scalar_lea.vmem %s2072_s6, %s1582_s26 }
 0x3de   : > { %v1167_v38 = vld [vmem:[%s2088_s11] sm:$0x3]  ;;  %s1150_s24 = scalar_lea.vmem %s2073_s7, %s1582_s26  ;;  %s2089_s23 = scalar_lea.vmem [#allocation17], %s1793_s28  ;;  %1133 = vst [vmem:[%s1115_s14] sm:$0x3] %v1132_v37 }
 0x3df   : > { %v1202_v39 = vld [vmem:[%s2089_s23] sm:$0x3]  ;;  %s2090_s17 = scalar_lea.vmem [#allocation19], %s1793_s28  ;;  %1168 = vst [vmem:[%s1150_s24] sm:$0x3] %v1167_v38  ;;  %s1185_s29 = scalar_lea.vmem %s2074_s8, %s1582_s26 }
 0x3e0   : > { %v1237_v40 = vld [vmem:[%s2090_s17] sm:$0x3]  ;;  %s1220_s21 = scalar_lea.vmem %s2075_s9, %s1582_s26  ;;  %1203 = vst [vmem:[%s1185_s29] sm:$0x3] %v1202_v39 }
 0x3e1   : > { %1238 = vst [vmem:[%s1220_s21] sm:$0x3] %v1237_v40 }
 0x3e2 PF: > { %s2091_s25 = sld [smem:[#allocation33_spill]]  ;;  %p13_p13 = scmp.ge.s32.totalorder %s1759_s13, 4  }
 0x3e3   : > { %s2092_s30 = smov %s1673_s10  ;;  %s2094_s11 = smov %s1759_s13 }
 0x3e4   :  { %15 = sbr.rel (!%p13_p13) target bundleno = 2 (0x2), region = 484 }
 0x3e8   : > { %s2093_s10 = smov %s2091_s25 }

// kernel: reverse
= control target key start
LH: loop header
LB: loop body
LE: loop exit
PB: predicated region body
PF: predicated region fallthrough
CT: control target
= control target key end

     0   :  { %v2_v0 = vlaneseq  ;;  %s112_s0 = inlined_call_operand.vmem [shape: f32[2,3], index: 0, kind: input, shape index: {}]   ;;  %s113_s1 = inlined_call_operand.vmem [shape: f32[2,3], index: 1, kind: output, shape index: {}]  }
   0x2   :  { %v3_v1 = vsub.s32 2, %v2_v0 }
   0x4   :  { %4 = vset.pattern.permute.xlu0 %v3_v1 }
   0x5   :  { %v21_v2 = vld [vmem:[%s112_s0] sm:$0x3] }
   0x6   :  { %22 = vst [vmem:[#allocation1] sm:$0x3] %v21_v2 }
   0xd   :  { %v41_v3 = vld [vmem:[#allocation1] sm:$0x3] }
   0xe   :  { %42 = vst [vmem:[#allocation0] sm:$0x3] %v41_v3 }
  0x15   :  { %v43_v4 = vld [vmem:[#allocation0] sm:$0xff] }
  0x16   :  { %44 = vperm.xlu0 %4, %v43_v4  }
  0x91   :  { %v45_v5 = vpop.permute.xlu0 %44 }
  0x92   :  { %46 = vst [vmem:[#allocation2] sm:$0xff] %v45_v5 }
  0x99   :  { %v51_v6 = vld [vmem:[#allocation2] sm:$0x3] }
  0x9a   :  { %54 = vst [vmem:[#allocation3] sm:$0x3] %v51_v6 }
  0xa1   :  { %v71_v7 = vld [vmem:[#allocation3] sm:$0x3] }
  0xa2   :  { %72 = vst [vmem:[%s113_s1] sm:$0x3] %v71_v7 }

// kernel: custom-call.16
= control target key start
LH: loop header
LB: loop body
LE: loop exit
PB: predicated region body
PF: predicated region fallthrough
CT: control target
= control target key end

     0   :  { %s664_s9 = smov 0   ;;  %s666_s10 = smov 0   ;;  %s810_s0 = inlined_call_operand.vmem [shape: f32[2,3,3], index: 0, kind: input, shape index: {}]   ;;  %s811_s1 = inlined_call_operand.vmem [shape: f32[2,3,3], index: 1, kind: output, shape index: {0}]   ;;  %s812_s2 = inlined_call_operand.vmem [shape: f32[2,3], index: 2, kind: output, shape index: {1}]  }
   0x1   :  { %s668_s11 = smov 0   ;;  %s670_s12 = smov 0  }
   0x2   :  { %s672_s13 = smov 0  }
   0x3 LB: > { %s28_s14 = sadd.s32 1, %s637_s12  ;;  %s519_s15 = sadd.s32 4294967295, %s641_s13   ;;  %s641_s13 = sphi %s672_s13, %s9_s13   ;;  %s637_s12 = sphi %s670_s12, %s819_s12   ;;  %s633_s11 = sphi %s668_s11, %s818_s11   ;;  %s629_s10 = sphi %s666_s10, %s817_s10   ;;  %s625_s9 = sphi %s664_s9, %s816_s9  }
   0x4   : > { %p30_p0 = scmp.ge.s32.totalorder %s28_s14, 2  ;;  %s33_s16 = ssub.s32 0, %s637_s12 }
   0x5   : > { %s521_s17 = smin.u32 %s637_s12, %s33_s16  ;;  %p57_p1 = scmp.ne.s32.totalorder %s629_s10, %s625_s9 }
   0x6   : > { %s821_s14 = smov (%p30_p0, %s28_s14), 0  ;;  %s35_s18 = sshrl.u32 %s521_s17, 3 }
   0x7   : > { %s39_s19 = ssub.s32 0, %s821_s14  ;;  %p58_p2 = scmp.eq.s32.totalorder %s519_s15, 1 }
   0x8   : > { %s522_s20 = smin.u32 %s39_s19, %s821_s14  ;;  %s47_s24 = sadd.s32 1, %s629_s10 }
   0x9   : > { %s41_s21 = sshrl.u32 %s522_s20, 3  ;;  %p699_p3 = por %p58_p2, %p57_p1 }
   0xa   : > { %s44_s23 = ssub.s32 %s35_s18, %s41_s21  ;;  %p524_p5 = scmp.ge.s32.totalorder %s641_s13, 2 }
   0xb   : > { %p45_p4 = scmp.eq.s32.totalorder %s44_s23, 0  ;;  %s82_s26 = sand.u32 (!%p524_p5), 1, %s641_s13  }
   0xc   : > { %80 = sbr.rel (%p524_p5) target bundleno = 19 (0x13), region = 16  ;;  %s526_s27 = sshll.u32 (!%p524_p5), %s637_s12, 2 }
   0xd   : > { %s705_s25 = scalar_select %p45_p4, %s629_s10, %s47_s24  }
   0xe   : > { %s525_s28 = sshll.u32 (!%p524_p5), %s82_s26, 2  ;;  %s88_s3 = scalar_lea.vmem (!%p524_p5), %s810_s0, %s526_s27 }
   0xf   : > { %s84_s4 = scalar_lea.vmem (!%p524_p5), [#allocation1], %s525_s28 }
  0x11   : > { %v105_v0 = vld [vmem:[%s88_s3] sm:$0xf] }
  0x12   : > { %106 = vst [vmem:[%s84_s4] sm:$0xf] %v105_v0 }
  0x13 PF: > { %p527_p6 = scmp.ge.s32.totalorder %s641_s13, 1  ;;  %p123_p7 = scmp.lt.s32.totalorder %s641_s13, 3 }
  0x15   : > { %p124_p8 = pnand %p527_p6, %p123_p7 }
  0x17   : > { %127 = sbr.rel (%p124_p8) target bundleno = 352 (0x160), region = 50 }
  0x1c   : > { %s134_s5 = sand.u32 1, %s519_s15   ;;  %s144_s6 = sand.u32 1, %s625_s9   ;;  %v647_v2 = vmov 0.0  }
  0x1d   : > { %s528_s7 = sshll.u32 %s134_s5, 2  ;;  %s716_s8 = sshll.u32 %s144_s6, 1 }
  0x1e   : > { %s136_s16 = scalar_lea.vmem [#allocation1], %s528_s7  ;;  %s158_s17 = sand.u32 7, %s633_s11  }
  0x1f   : > { %v150_v1 = vld [vmem:[%s136_s16] sm:$0xf]  ;;  %s719_s18 = scalar_lea.vmem [#allocation4], %s158_s17  ;;  %s722_s19 = scalar_lea.vmem [#allocation3], %s528_s7 }
  0x20   : > { %151 = vst [vmem:[#allocation0] sm:$0xf] %v150_v1  ;;  %162 = vst [vmem:[%s719_s18] sm:$0x1] %v647_v2  ;;  %s146_s15 = scalar_lea.vmem [#allocation5], %s716_s8  ;;  %s725_s20 = smov 0  }
  0x27   : > { %v160_v3 = vld [vmem:[#allocation0] sm:$0xff] }
  0x28   : > { %161 = vst [vmem:[#allocation2] sm:$0xff] %v160_v3 }
  0x29 LB: >> { %v170_v4 = vlaneseq  ;;  %v734_v6 = vstv %s645_s20  ;;  %s197_s9 = scalar_lea.vmem [#allocation2], %s645_s20  ;;  %s233_s21 = smov [#allocation2]  ;;  %v648_v60 = vmov 1.0   ;;  %v268_v61 = vld [vmem:[%s719_s18] ss:$0 sm:$0xff]  ;;  %s645_s20 = sphi %s725_s20, %s168_s20  }
  0x2a   : >> { %s255_s23 = scalar_lea.vmem [#allocation6], %s645_s20  ;;  %s271_s24 = smov [#allocation2] }
  0x2b   : >> { %v731_v5 = vshrl.u32 %v170_v4, 7  ;;  %v249_v49 = vand.u32 127, %v170_v4  ;;  %s272_s26 = smov [#allocation6] }
  0x2d   : >> { %vm174_vm0 = vcmp.gt.s32.totalorder %v731_v5, %v734_v6  ;;  %vm175_vm1 = vcmp.lt.s32.totalorder %v731_v5, 3  ;;  %v236_v5 = vmov %v731_v5  ;;  %vm749_vm12 = vcmp.eq.s32.totalorder %v249_v49, %v734_v6 }
  0x2e   : >> { %vm176_vm2 = vmand %vm174_vm0, %vm175_vm1  ;;  %vm240_vm9 = vcmp.gt.s32.totalorder %v236_v5, %v734_v6  ;;  %vm241_vm10 = vcmp.lt.s32.totalorder %v236_v5, 3  ;;  %v275_v5 = vmov %v731_v5  ;;  %vm301_vm15 = vcmp.gt.s32.totalorder %v249_v49, %v734_v6 }
  0x2f   : >> { %v169_v7 = vld [vmem:[#allocation2] sm:$0xff]  ;;  %v198_v16 = vld [vmem:[%s197_s9] ss:$0 sm:$0xff]  ;;  %vm242_vm11 = vmand %vm240_vm9, %vm241_vm10  ;;  %vm280_vm13 = vcmp.lt.s32.totalorder %v275_v5, 3  ;;  %v292_v5 = vmov %v731_v5 }
  0x30   : >> { %v177_v8 = vsel %vm176_vm2, %v169_v7, 0.0  ;;  %v199_v17 = vand.u32 2147483647, %v198_v16  ;;  %vm224_vm8 = vcmp.lt.f32.partialorder %v198_v16, 0.0  ;;  %v237_v46 = vld [vmem:[%s233_s21] sm:$0xff]  ;;  %vm309_vm14 = vcmp.ge.s32.totalorder %v292_v5, %v734_v6 }
  0x31   : >> { %v178_v9 = vmul.f32 %v177_v8, %v177_v8  ;;  %v243_v50 = vsel %vm242_vm11, %v237_v46, 0.0  ;;  %v278_v0 = vld [vmem:[%s271_s24] sm:$0xff]  ;;  %s288_s24 = smov %s271_s24  ;;  %vm310_vm0 = vmand %vm749_vm12, %vm309_vm14 }
  0x32   : >> { %v200_v22 = vmax.f32 %v199_v17, 0.0  ;;  %s313_s27 = scalar_lea.vmem %s288_s24, %s645_s20  ;;  %s168_s20 = sadd.s32 1, %s645_s20  }
  0x33   : >> { %v179_v10 = vrot.slane %v178_v9, 4  ;;  %p165_p9 = scmp.ge.s32.totalorder %s168_s20, 3  }
  0x34   : > { %s534_s28 = sshll.u32 (%p165_p9), %s633_s11, 2 }
  0x35   : >> { %v180_v11 = vadd.f32 %v179_v10, %v178_v9  ;;  %s348_s3 = scalar_lea.vmem (%p165_p9), %s811_s1, %s534_s28 }
  0x37   : >> { %v181_v12 = vrot.slane %v180_v11, 2 }
  0x39   : >> { %v182_v13 = vadd.f32 %v181_v12, %v180_v11 }
  0x3b   : >> { %v183_v14 = vrot.slane %v182_v13, 1 }
  0x3d   : >> { %v184_v15 = vadd.f32 %v183_v14, %v182_v13  ;;  %v299_v14 = vld [vmem:[%s288_s24] sm:$0xff] }
  0x3f   : >> { %589 = vrsqrt.f32 %v184_v15  ;;  %vm187_vm3 = vcmp.eq.f32.partialorder %v184_v15, inf  ;;  %v190_v19 = vand.u32 2147483648, %v184_v15  ;;  %vm189_vm4 = vcmp.eq.f32.partialorder %v184_v15, 0.0 }
  0x4c   : >> { %v590_v18 = vpop.eup %589 }
  0x4d   : >> { %v186_v20 = vmul.f32 %v590_v18, %v184_v15 }
  0x4f   : >> { %v188_v21 = vsel %vm187_vm3, %v184_v15, %v186_v20 }
  0x50   : >> { %v191_v23 = vsel %vm189_vm4, %v190_v19, %v188_v21 }
  0x51   : >> { %v201_v24 = vand.u32 2147483647, %v191_v23 }
  0x53   : >> { %v202_v25 = vmax.f32 %v200_v22, %v201_v24 }
  0x55   : >> { %591 = vrcp.f32 %v202_v25  ;;  %vm214_vm7 = vcmp.eq.f32.partialorder %v202_v25, 0.0 }
  0x62   : >> { %v592_v26 = vpop.eup %591 }
  0x63   : >> { %v204_v27 = vmul.f32 %v592_v26, %v199_v17  ;;  %v207_v28 = vmul.f32 0.0, %v592_v26  ;;  %v211_v29 = vmul.f32 %v592_v26, %v201_v24 }
  0x65   : >> { %v205_v30 = vmul.f32 %v204_v27, %v204_v27  ;;  %v208_v31 = vmul.f32 %v207_v28, %v207_v28  ;;  %v212_v32 = vmul.f32 %v211_v29, %v211_v29 }
  0x67   : >> { %v209_v33 = vadd.f32 %v208_v31, %v205_v30 }
  0x69   : >> { %v213_v34 = vadd.f32 %v212_v32, %v209_v33 }
  0x6b   : >> { %593 = vrsqrt.f32 %v213_v34  ;;  %vm217_vm5 = vcmp.eq.f32.partialorder %v213_v34, inf  ;;  %v220_v36 = vand.u32 2147483648, %v213_v34  ;;  %vm219_vm6 = vcmp.eq.f32.partialorder %v213_v34, 0.0 }
  0x78   : >> { %v594_v35 = vpop.eup %593 }
  0x79   : >> { %v216_v37 = vmul.f32 %v594_v35, %v213_v34 }
  0x7b   : >> { %v218_v38 = vsel %vm217_vm5, %v213_v34, %v216_v37 }
  0x7c   : >> { %v221_v39 = vsel %vm219_vm6, %v220_v36, %v218_v38 }
  0x7d   : >> { %v222_v40 = vmul.f32 %v221_v39, %v202_v25 }
  0x7f   : >> { %v223_v41 = vsel %vm214_vm7, 0.0, %v222_v40 }
  0x80   : >> { %v225_v42 = vxor.u32 2147483648, %v223_v41 }
  0x82   : >> { %v226_v43 = vsel %vm224_vm8, %v223_v41, %v225_v42 }
  0x83   : >> { %v742_v44 = vsel %vm189_vm4, %v198_v16, %v226_v43  ;;  %595 = vrcp.f32 %v226_v43  ;;  %v227_v47 = vsub.f32 %v226_v43, %v198_v16 }
  0x84   : >> { %v232_v45 = vsub.f32 %v198_v16, %v742_v44 }
  0x86   : >> { %597 = vrcp.f32 %v232_v45 }
  0x90   : >> { %v596_v48 = vpop.eup %595 }
  0x91   : >> { %v229_v51 = vmul.f32 %v596_v48, %v227_v47 }
  0x93   : >> { %v598_v52 = vpop.eup %597  ;;  %v231_v56 = vsel %vm189_vm4, 0.0, %v229_v51 }
  0x94   : >> { %v245_v53 = vmul.f32 %v598_v52, %v243_v50  ;;  %v261_v58 = vsel %vm749_vm12, %v231_v56, 0.0 }
  0x96   : >> { %v246_v55 = vsel %vm189_vm4, 0.0, %v245_v53 }
  0x97   : >> { %v251_v57 = vsel %vm749_vm12, %v246_v55, 0.0 }
  0x98   : >> { %252 = vadd.xlane.f32.xlu0 %v251_v57 }
  0x9c   : >> { %262 = vadd.xlane.f32.xlu0 %v261_v58 }
 0x121   : >> { %v253_v59 = vpop.xlane.xlu0 %252 }
 0x122   : >> { %254 = vst [vmem:[#allocation6] sm:$0xff] %v253_v59 }
 0x123   : >> { %256 = vst [vmem:[%s255_s23] sm:$0x1] %v648_v60 }
 0x125   : >> { %v263_v62 = vpop.xlane.xlu0 %262 }
 0x126   : >> { %v269_v63 = vsel %vm749_vm12, %v263_v62, %v268_v61 }
 0x127   : >> { %270 = vst [vmem:[%s719_s18] sm:$0x1] %v269_v63 }
 0x12a   : >> { %v277_v1 = vld [vmem:[%s272_s26] sm:$0xff]  ;;  %s289_s26 = smov %s272_s26 }
 0x12b   : >> { %v279_v2 = vmul.f32 %v278_v0, %v277_v1  ;;  %v297_v13 = vld [vmem:[%s289_s26] sm:$0xff] }
 0x12d   : >> { %v281_v3 = vsel %vm280_vm13, %v279_v2, 0.0 }
 0x12e   : >> { %v282_v4 = vrot.slane %v281_v3, 4  ;;  %v333_v6 = vld [vmem:[#allocation4] sm:$0x3] (%p165_p9) }
 0x12f   : > { %336 = vst [vmem:[%s146_s15] sm:$0x3] (%p165_p9), %v333_v6 }
 0x130   : >> { %v283_v7 = vadd.f32 %v282_v4, %v281_v3 }
 0x132   : >> { %v284_v8 = vrot.slane %v283_v7, 2 }
 0x134   : >> { %v285_v9 = vadd.f32 %v284_v8, %v283_v7 }
 0x136   : >> { %v286_v10 = vrot.slane %v285_v9, 1 }
 0x138   : >> { %v287_v11 = vadd.f32 %v286_v10, %v285_v9 }
 0x13a   : >> { %v293_v12 = vmul.f32 %v287_v11, %v263_v62 }
 0x13c   : >> { %v298_v15 = vmul.f32 %v297_v13, %v293_v12 }
 0x13e   : >> { %v302_v16 = vsub.f32 %v299_v14, %v298_v15 }
 0x140   : >> { %v303_v17 = vsel %vm301_vm15, %v302_v16, %v299_v14 }
 0x141   : >> { %v311_v18 = vsel %vm310_vm0, %v297_v13, %v303_v17 }
 0x142   : >> { %312 = vst [vmem:[%s288_s24] sm:$0xff] %v311_v18 }
 0x147   : > { %167 = sbr.rel (!%p165_p9) target bundleno = 41 (0x29), region = 167 }
 0x149   : >> { %v314_v19 = vld [vmem:[%s313_s27] ss:$0 sm:$0xff] }
 0x14a   : >> { %v319_v20 = vsel %vm749_vm12, %v742_v44, %v314_v19 }
 0x14b   : >> { %320 = vst [vmem:[%s313_s27] sm:$0x1] %v319_v20 }
 0x14c   : > { %p385_p10 = scmp.lt.s32.totalorder (%p699_p3), %s633_s11, 0  ;;  %s386_s4 = ssub.s32 (%p699_p3), 0, %s633_s11  ;;  %v409_v22 = vld [vmem:[%s146_s15] sm:$0x3] (%p699_p3) }
 0x14d   : > { %s535_s5 = smin.u32 (%p699_p3), %s633_s11, %s386_s4 }
 0x14e   : > { %s388_s6 = sshrl.u32 (%p699_p3), %s535_s5, 3 }
 0x14f   : > { %s389_s7 = ssub.s32 (%p699_p3), 0, %s388_s6 }
 0x152   : > { %v325_v5 = vld [vmem:[#allocation2] sm:$0xf] }
 0x153   : > { %328 = vst [vmem:[%s722_s19] sm:$0xf] %v325_v5 }
 0x157   : > { %384 = sbr.rel (!%p699_p3) target bundleno = 352 (0x160), region = 91 }
 0x15a   : > { %v365_v21 = vld [vmem:[%s722_s19] sm:$0xf] }
 0x15b   : > { %366 = vst [vmem:[%s348_s3] sm:$0xf] %v365_v21 }
 0x15c   : > { %s823_s7 = smov (!%p385_p10, %s389_s7), %s388_s6 }
 0x15d   : > { %s536_s16 = sshll.u32 %s823_s7, 1 }
 0x15e   : > { %s392_s19 = scalar_lea.vmem %s812_s2, %s536_s16 }
 0x15f   : > { %410 = vst [vmem:[%s392_s19] sm:$0x3] %v409_v22 }
 0x160 PF: > { %s9_s13 = sadd.s32 1, %s641_s13   ;;  %s816_s9 = smov %s629_s10 }
 0x161   : > { %p6_p11 = scmp.ge.s32.totalorder %s9_s13, 4   ;;  %s817_s10 = smov %s705_s25 }
 0x162   : > { %s818_s11 = smov %s637_s12  ;;  %s819_s12 = smov %s821_s14 }
 0x163   :  { %8 = sbr.rel (!%p6_p11) target bundleno = 3 (0x3), region = 178 }

// kernel: sub.41
= control target key start
LH: loop header
LB: loop body
LE: loop exit
PB: predicated region body
PF: predicated region fallthrough
CT: control target
= control target key end

     0   :  { %s34_s0 = inlined_call_operand.vmem [shape: f32[2,3], index: 0, kind: input, shape index: {}]   ;;  %s35_s1 = inlined_call_operand.vmem [shape: f32[2,3], index: 1, kind: input, shape index: {}]   ;;  %s36_s2 = inlined_call_operand.vmem [shape: f32[2,3], index: 2, kind: output, shape index: {}]  }
   0x1   :  { %v3_v0 = vld [vmem:[%s34_s0] sm:$0x3] }
   0x2   :  { %v4_v1 = vld [vmem:[%s35_s1] sm:$0x3] }
   0x3   :  { %v7_v2 = vsub.f32 %v3_v0, %v4_v1 }
   0x5   :  { %9 = vst [vmem:[%s36_s2] sm:$0x3] %v7_v2 }

</bundles_post_ra>
